<compile_context>
chip_gen: v6e
topology: v6e:2x2x1
jax: 0.10.0
libtpu: 0.0.40
codegen_flags: <defaults>
</compile_context>

<pallas_src>
import functools

import jax
import jax.numpy as jnp
from jax.experimental import pallas as pl
from jax.experimental.pallas import tpu as pltpu

KH = KW = 3   # nn.Conv2d(256, 256, kernel_size=3, stride=1)


def _kconv_kernel(x_ref, w_ref, b_ref, out_ref):
    # x_ref  : (Lflat, Cin)         flattened ((TH+2)*Wpad, Cin) input slab (compute dtype)
    # w_ref  : (KH, KW, Cin, Cout)  pre-modulated weight (Attention * weight)
    # b_ref  : (1, Cout)            f32 bias
    # out_ref: (TH, Wout, Cout)     output row tile
    TH, Wout, Cout = out_ref.shape
    Lflat, Cin = x_ref.shape
    Wpad = Lflat // (TH + KH - 1)
    M = TH * Wpad

    # Aligned kh-slabs: kh*Wpad is a multiple of 16 (Wpad is), so each window starts
    # on a packed (16,128)/(8,128) tile boundary -> clean sublane-aligned loads.
    xs = [x_ref[kh * Wpad: kh * Wpad + M, :] for kh in range(KH)]

    # One f32 partial per kw; each is a single expression summing three MXU matmuls,
    # so the (M, Cout) f32 result is written (not read-modify-written) once per kw.
    z = []
    for kw in range(KW):
        zk = None
        for kh in range(KH):
            y = jnp.dot(xs[kh], w_ref[kh, kw], preferred_element_type=jnp.float32)
            zk = y if zk is None else zk + y
        z.append(zk)

    # kw shifts become 32-bit sublane rolls of the f32 partials (XLU).  The wrapped
    # rows only feed acc columns >= Wpad - kw >= Wout, which are discarded below.
    acc = z[0]
    for kw in range(1, KW):
        acc = acc + pltpu.roll(z[kw], shift=M - kw, axis=0)

    res = acc.reshape(TH, Wpad, Cout)[:, :Wout, :]                # drop pad columns
    out_ref[...] = (res + b_ref[...]).astype(out_ref.dtype)       # bias + cast on store


def _vmem_capacity_bytes():
    """Generation-aware VMEM capacity (falls back to the smallest, v7x's 64 MiB/TC)."""
    try:
        info = pltpu.get_tpu_info()
        cap = getattr(info, "vmem_capacity_bytes", None)
        if cap:
            return int(cap)
    except Exception:
        pass
    return 64 << 20


@functools.partial(
    jax.jit, static_argnames=("kernel_size", "tile_h", "compute_dtype", "out_dtype"))
def k_convolution(attention, x_nchw, weight_oihw, bias, kernel_size=3, tile_h=32,
                  compute_dtype=jnp.bfloat16, out_dtype=None):
    """Pallas implementation of K_Convolution.forward(Attention, X).

    attention  : broadcastable to weight_oihw (Cout, Cin, KH, KW)
    x_nchw     : (N, Cin, H, W)
    weight_oihw: (Cout, Cin, KH, KW)
    bias       : (Cout,)
    returns    : (N, Cout, H, W)   (k=3, reflection pad k//2 keeps spatial size)

    compute_dtype=jnp.float32 gives a parity path vs. the f32 PyTorch module;
    bf16 (default) halves DMA bytes and runs the MXU at full rate (f32 accumulate).
    """
    assert kernel_size == KH
    p = kernel_size // 2
    odt = jnp.dtype(x_nchw.dtype if out_dtype is None else out_dtype)

    # ---- one-time prep (fused under jit; amortized over all grid steps) ----
    w_mod = jnp.broadcast_to(attention, weight_oihw.shape) * weight_oihw      # (Cout,Cin,KH,KW)
    w = jnp.transpose(w_mod, (2, 3, 1, 0)).astype(compute_dtype)              # (KH,KW,Cin,Cout)
    b = bias.astype(jnp.float32).reshape(1, -1)                               # (1, Cout)

    x = jnp.transpose(x_nchw, (0, 2, 3, 1))                                   # NHWC
    N, H, W, Cin = x.shape
    Cout = w.shape[-1]

    # ReflectionPad2d(kernel_size // 2)
    xpad = jnp.pad(x, ((0, 0), (p, p), (p, p), (0, 0)), mode="reflect")
    Hp, Wp = H + 2 * p, W + 2 * p
    Hout, Wout = Hp - KH + 1, Wp - KW + 1

    # Layout: Wpad multiple of 16 so every kh-slab window of the flattened slab is
    # aligned to the packed sublane tile (bf16: 16 rows/vreg).  rows_per_tile = th+2
    # halo rows only (kw handled by in-kernel rolls, no spare row).
    Wpad = ((Wp + 15) // 16) * 16
    assert Wpad >= Wp and Wout <= Wpad - (KW - 1), (Wpad, Wp, Wout)  # roll wrap is discarded

    esize_c = jnp.dtype(compute_dtype).itemsize
    esize_o = odt.itemsize
    wbytes = KH * KW * Cin * Cout * esize_c
    bbytes = Cout * 4

    budget = (_vmem_capacity_bytes() * 3) // 4    # ~48 MiB on v7x, ~96 MiB on v5e/v6e

    def step_bytes(th_):
        lf = (th_ + KH - 1) * Wpad
        itile = lf * Cin * esize_c                # double-buffered input block
        otile = th_ * Wout * Cout * esize_o       # double-buffered output block
        ftile = th_ * Wpad * Cout * 4             # one f32 (M, Cout) compute value
        return 2 * itile + 2 * wbytes + 2 * bbytes + 2 * otile + 6 * ftile + (4 << 20)

    th = max(1, min(tile_h, Hout))
    while th > 4 and step_bytes(th) > budget:     # keep double-buffering alive on v7x
        th = max(4, th // 2)
    n_t = -(-Hout // th)
    rows_per_tile = th + KH - 1
    Lflat = rows_per_tile * Wpad
    vmem_limit = int(max(16 << 20, min(step_bytes(th), budget)))

    # Pad rows (ragged last tile) / columns (Wpad) with zeros, cast once, then
    # materialize the overlapping row slabs as non-overlapping HBM blocks so the
    # pipeline uses plain Blocked BlockSpecs.
    Hneed = (n_t - 1) * th + rows_per_tile
    xpad = jnp.pad(xpad, ((0, 0), (0, Hneed - Hp), (0, Wpad - Wp), (0, 0)))
    xpad = xpad.astype(compute_dtype)
    xtiles = jnp.stack([xpad[:, t * th: t * th + rows_per_tile] for t in range(n_t)],
                       axis=1)                                    # (N, n_t, th+2, Wpad, Cin)
    xtiles = xtiles.reshape(N * n_t, Lflat, Cin)                  # flattened slabs
    # TODO(synk): for very large inputs, replace the slab stack with in-kernel halo DMA
    # (memory_space=pl.ANY + double-buffered pltpu.make_async_copy) to drop this HBM pass.

    cost = pl.CostEstimate(
        flops=2 * KH * KW * N * Hout * Wout * Cin * Cout,
        transcendentals=0,
        bytes_accessed=(xtiles.size * esize_c + wbytes + bbytes
                        + N * n_t * th * Wout * Cout * esize_o))

    out_tiles = pl.pallas_call(
        _kconv_kernel,
        out_shape=jax.ShapeDtypeStruct((N * n_t, th, Wout, Cout), odt),
        grid_spec=pltpu.PrefetchScalarGridSpec(
            num_scalar_prefetch=0,
            grid=(N * n_t,),
            in_specs=[
                pl.BlockSpec((None, Lflat, Cin), lambda i: (i, 0, 0)),
                # Constant blocks (weight/bias): index_map is constant, so they are
                # only DMA'd once by the pipeline.
                pl.BlockSpec((KH, KW, Cin, Cout), lambda i: (0, 0, 0, 0)),
                pl.BlockSpec((1, Cout), lambda i: (0, 0)),
            ],
            out_specs=pl.BlockSpec((None, th, Wout, Cout), lambda i: (i, 0, 0, 0)),
        ),
        compiler_params=pltpu.CompilerParams(
            dimension_semantics=("parallel",),
            vmem_limit_bytes=vmem_limit),
        cost_estimate=cost,
    )(xtiles, w, b)

    out = out_tiles.reshape(N, n_t * th, Wout, Cout)[:, :Hout]    # drop padded output rows
    return jnp.transpose(out, (0, 3, 1, 2))                       # back to NCHW


def _reference(attention, x_nchw, weight_oihw, bias, kernel_size=3):
    """Pure-JAX f32 reference mirroring the PyTorch forward."""
    p = kernel_size // 2
    w_mod = jnp.broadcast_to(attention, weight_oihw.shape) * weight_oihw
    xpad = jnp.pad(x_nchw, ((0, 0), (0, 0), (p, p), (p, p)), mode="reflect")
    out = jax.lax.conv_general_dilated(
        xpad, w_mod, window_strides=(1, 1), padding="VALID",
        dimension_numbers=("NCHW", "OIHW", "NCHW"))
    return out + bias[None, :, None, None]


if __name__ == "__main__":
    # Channels are fixed at 256 by the module; spatial kept small.
    N, C, H, W = 2, 256, 24, 24
    kernel_size = 3

    key = jax.random.PRNGKey(0)
    k1, k2, k3, k4 = jax.random.split(key, 4)
    X = jax.random.normal(k1, (N, C, H, W), dtype=jnp.float32)
    weight = 0.05 * jax.random.normal(k2, (C, C, KH, KW), dtype=jnp.float32)
    bias = 0.01 * jax.random.normal(k3, (C,), dtype=jnp.float32)
    Attention = jax.random.uniform(k4, (C, C, KH, KW), dtype=jnp.float32)

    ref = jax.block_until_ready(_reference(Attention, X, weight, bias, kernel_size))

    # bf16 compute, default tile_h (single row tile per image here).
    out = jax.block_until_ready(k_convolution(Attention, X, weight, bias))
    assert out.shape == ref.shape == (N, C, H, W), (out.shape, ref.shape)
    assert jnp.allclose(out, ref, atol=5e-2, rtol=5e-2), float(jnp.max(jnp.abs(out - ref)))

    # bf16 compute, tile_h=16 -> exercises multi-tile slabs + ragged last tile.
    out_t16 = jax.block_until_ready(
        k_convolution(Attention, X, weight, bias, tile_h=16))
    assert jnp.allclose(out_t16, ref, atol=5e-2, rtol=5e-2), \
        float(jnp.max(jnp.abs(out_t16 - ref)))

    # f32 compute path (parity check at tighter tolerance).
    out_f32 = jax.block_until_ready(
        k_convolution(Attention, X, weight, bias, tile_h=16, compute_dtype=jnp.float32))
    assert jnp.allclose(out_f32, ref, atol=2e-2, rtol=2e-2), \
        float(jnp.max(jnp.abs(out_f32 - ref)))

    print("KERNEL_OK")
</pallas_src>

<mosaic_0001>
module attributes {stable_mosaic.version = 11 : i64} {
  func.func @_kconv_kernel(%arg0: i32, %arg1: memref<1x832x256xbf16, #tpu.memory_space<vmem>>, %arg2: memref<3x3x256x256xbf16, #tpu.memory_space<vmem>>, %arg3: memref<1x256xf32, #tpu.memory_space<vmem>>, %arg4: memref<1x24x24x256xf32, #tpu.memory_space<vmem>>) attributes {dimension_semantics = [#tpu.dimension_semantics<parallel>], iteration_bounds = array<i64: 2>, scalar_prefetch = 0 : i64, scratch_operands = 0 : i64, tpu.core_type = #tpu.core_type<tc>, window_params = [{transform_indices = @transform_0, window_bounds = array<i64: 1, 832, 256>}, {pipeline_mode = #tpu.pipeline_mode<synchronous>, transform_indices = @transform_1, window_bounds = array<i64: 3, 3, 256, 256>}, {pipeline_mode = #tpu.pipeline_mode<synchronous>, transform_indices = @transform_2, window_bounds = array<i64: 1, 256>}, {transform_indices = @transform_3, window_bounds = array<i64: 1, 24, 24, 256>}]} {
    %c0 = arith.constant 0 : index
    %c0_0 = arith.constant 0 : index
    %c0_1 = arith.constant 0 : index
    %0 = vector.load %arg1[%c0, %c0_0, %c0_1] : memref<1x832x256xbf16, #tpu.memory_space<vmem>>, vector<1x768x256xbf16>
    %1 = vector.shape_cast %0 : vector<1x768x256xbf16> to vector<768x256xbf16>
    %c0_2 = arith.constant 0 : index
    %c32 = arith.constant 32 : index
    %c0_3 = arith.constant 0 : index
    %2 = vector.load %arg1[%c0_2, %c32, %c0_3] : memref<1x832x256xbf16, #tpu.memory_space<vmem>>, vector<1x768x256xbf16>
    %3 = vector.shape_cast %2 : vector<1x768x256xbf16> to vector<768x256xbf16>
    %c0_4 = arith.constant 0 : index
    %c64 = arith.constant 64 : index
    %c0_5 = arith.constant 0 : index
    %4 = vector.load %arg1[%c0_4, %c64, %c0_5] : memref<1x832x256xbf16, #tpu.memory_space<vmem>>, vector<1x768x256xbf16>
    %5 = vector.shape_cast %4 : vector<1x768x256xbf16> to vector<768x256xbf16>
    %c0_6 = arith.constant 0 : index
    %c0_7 = arith.constant 0 : index
    %c0_8 = arith.constant 0 : index
    %c0_9 = arith.constant 0 : index
    %6 = vector.load %arg2[%c0_6, %c0_7, %c0_8, %c0_9] : memref<3x3x256x256xbf16, #tpu.memory_space<vmem>>, vector<1x1x256x256xbf16>
    %7 = vector.shape_cast %6 : vector<1x1x256x256xbf16> to vector<256x256xbf16>
    %cst = arith.constant dense<0.000000e+00> : vector<768x256xf32>
    %8 = tpu.matmul %1, %7, %cst {dimension_numbers = #tpu.dot_dimension_numbers<[1], [0], [0], [1], [0, 0, 1, 1], [], []>} : vector<768x256xbf16>, vector<256x256xbf16>, vector<768x256xf32> -> vector<768x256xf32>
    %c1 = arith.constant 1 : index
    %c0_10 = arith.constant 0 : index
    %c0_11 = arith.constant 0 : index
    %c0_12 = arith.constant 0 : index
    %9 = vector.load %arg2[%c1, %c0_10, %c0_11, %c0_12] : memref<3x3x256x256xbf16, #tpu.memory_space<vmem>>, vector<1x1x256x256xbf16>
    %10 = vector.shape_cast %9 : vector<1x1x256x256xbf16> to vector<256x256xbf16>
    %cst_13 = arith.constant dense<0.000000e+00> : vector<768x256xf32>
    %11 = tpu.matmul %3, %10, %cst_13 {dimension_numbers = #tpu.dot_dimension_numbers<[1], [0], [0], [1], [0, 0, 1, 1], [], []>} : vector<768x256xbf16>, vector<256x256xbf16>, vector<768x256xf32> -> vector<768x256xf32>
    %12 = arith.addf %8, %11 : vector<768x256xf32>
    %c2 = arith.constant 2 : index
    %c0_14 = arith.constant 0 : index
    %c0_15 = arith.constant 0 : index
    %c0_16 = arith.constant 0 : index
    %13 = vector.load %arg2[%c2, %c0_14, %c0_15, %c0_16] : memref<3x3x256x256xbf16, #tpu.memory_space<vmem>>, vector<1x1x256x256xbf16>
    %14 = vector.shape_cast %13 : vector<1x1x256x256xbf16> to vector<256x256xbf16>
    %cst_17 = arith.constant dense<0.000000e+00> : vector<768x256xf32>
    %15 = tpu.matmul %5, %14, %cst_17 {dimension_numbers = #tpu.dot_dimension_numbers<[1], [0], [0], [1], [0, 0, 1, 1], [], []>} : vector<768x256xbf16>, vector<256x256xbf16>, vector<768x256xf32> -> vector<768x256xf32>
    %16 = arith.addf %12, %15 : vector<768x256xf32>
    %c0_18 = arith.constant 0 : index
    %c1_19 = arith.constant 1 : index
    %c0_20 = arith.constant 0 : index
    %c0_21 = arith.constant 0 : index
    %17 = vector.load %arg2[%c0_18, %c1_19, %c0_20, %c0_21] : memref<3x3x256x256xbf16, #tpu.memory_space<vmem>>, vector<1x1x256x256xbf16>
    %18 = vector.shape_cast %17 : vector<1x1x256x256xbf16> to vector<256x256xbf16>
    %cst_22 = arith.constant dense<0.000000e+00> : vector<768x256xf32>
    %19 = tpu.matmul %1, %18, %cst_22 {dimension_numbers = #tpu.dot_dimension_numbers<[1], [0], [0], [1], [0, 0, 1, 1], [], []>} : vector<768x256xbf16>, vector<256x256xbf16>, vector<768x256xf32> -> vector<768x256xf32>
    %c1_23 = arith.constant 1 : index
    %c1_24 = arith.constant 1 : index
    %c0_25 = arith.constant 0 : index
    %c0_26 = arith.constant 0 : index
    %20 = vector.load %arg2[%c1_23, %c1_24, %c0_25, %c0_26] : memref<3x3x256x256xbf16, #tpu.memory_space<vmem>>, vector<1x1x256x256xbf16>
    %21 = vector.shape_cast %20 : vector<1x1x256x256xbf16> to vector<256x256xbf16>
    %cst_27 = arith.constant dense<0.000000e+00> : vector<768x256xf32>
    %22 = tpu.matmul %3, %21, %cst_27 {dimension_numbers = #tpu.dot_dimension_numbers<[1], [0], [0], [1], [0, 0, 1, 1], [], []>} : vector<768x256xbf16>, vector<256x256xbf16>, vector<768x256xf32> -> vector<768x256xf32>
    %23 = arith.addf %19, %22 : vector<768x256xf32>
    %c2_28 = arith.constant 2 : index
    %c1_29 = arith.constant 1 : index
    %c0_30 = arith.constant 0 : index
    %c0_31 = arith.constant 0 : index
    %24 = vector.load %arg2[%c2_28, %c1_29, %c0_30, %c0_31] : memref<3x3x256x256xbf16, #tpu.memory_space<vmem>>, vector<1x1x256x256xbf16>
    %25 = vector.shape_cast %24 : vector<1x1x256x256xbf16> to vector<256x256xbf16>
    %cst_32 = arith.constant dense<0.000000e+00> : vector<768x256xf32>
    %26 = tpu.matmul %5, %25, %cst_32 {dimension_numbers = #tpu.dot_dimension_numbers<[1], [0], [0], [1], [0, 0, 1, 1], [], []>} : vector<768x256xbf16>, vector<256x256xbf16>, vector<768x256xf32> -> vector<768x256xf32>
    %27 = arith.addf %23, %26 : vector<768x256xf32>
    %c0_33 = arith.constant 0 : index
    %c2_34 = arith.constant 2 : index
    %c0_35 = arith.constant 0 : index
    %c0_36 = arith.constant 0 : index
    %28 = vector.load %arg2[%c0_33, %c2_34, %c0_35, %c0_36] : memref<3x3x256x256xbf16, #tpu.memory_space<vmem>>, vector<1x1x256x256xbf16>
    %29 = vector.shape_cast %28 : vector<1x1x256x256xbf16> to vector<256x256xbf16>
    %cst_37 = arith.constant dense<0.000000e+00> : vector<768x256xf32>
    %30 = tpu.matmul %1, %29, %cst_37 {dimension_numbers = #tpu.dot_dimension_numbers<[1], [0], [0], [1], [0, 0, 1, 1], [], []>} : vector<768x256xbf16>, vector<256x256xbf16>, vector<768x256xf32> -> vector<768x256xf32>
    %c1_38 = arith.constant 1 : index
    %c2_39 = arith.constant 2 : index
    %c0_40 = arith.constant 0 : index
    %c0_41 = arith.constant 0 : index
    %31 = vector.load %arg2[%c1_38, %c2_39, %c0_40, %c0_41] : memref<3x3x256x256xbf16, #tpu.memory_space<vmem>>, vector<1x1x256x256xbf16>
    %32 = vector.shape_cast %31 : vector<1x1x256x256xbf16> to vector<256x256xbf16>
    %cst_42 = arith.constant dense<0.000000e+00> : vector<768x256xf32>
    %33 = tpu.matmul %3, %32, %cst_42 {dimension_numbers = #tpu.dot_dimension_numbers<[1], [0], [0], [1], [0, 0, 1, 1], [], []>} : vector<768x256xbf16>, vector<256x256xbf16>, vector<768x256xf32> -> vector<768x256xf32>
    %34 = arith.addf %30, %33 : vector<768x256xf32>
    %c2_43 = arith.constant 2 : index
    %c2_44 = arith.constant 2 : index
    %c0_45 = arith.constant 0 : index
    %c0_46 = arith.constant 0 : index
    %35 = vector.load %arg2[%c2_43, %c2_44, %c0_45, %c0_46] : memref<3x3x256x256xbf16, #tpu.memory_space<vmem>>, vector<1x1x256x256xbf16>
    %36 = vector.shape_cast %35 : vector<1x1x256x256xbf16> to vector<256x256xbf16>
    %cst_47 = arith.constant dense<0.000000e+00> : vector<768x256xf32>
    %37 = tpu.matmul %5, %36, %cst_47 {dimension_numbers = #tpu.dot_dimension_numbers<[1], [0], [0], [1], [0, 0, 1, 1], [], []>} : vector<768x256xbf16>, vector<256x256xbf16>, vector<768x256xf32> -> vector<768x256xf32>
    %38 = arith.addf %34, %37 : vector<768x256xf32>
    %c767_i32 = arith.constant 767 : i32
    %39 = tpu.dynamic_rotate %27 by %c767_i32 dim 0 : vector<768x256xf32>, i32 -> vector<768x256xf32>
    %40 = arith.addf %16, %39 : vector<768x256xf32>
    %c766_i32 = arith.constant 766 : i32
    %41 = tpu.dynamic_rotate %38 by %c766_i32 dim 0 : vector<768x256xf32>, i32 -> vector<768x256xf32>
    %42 = arith.addf %40, %41 : vector<768x256xf32>
    %43 = vector.shape_cast %42 : vector<768x256xf32> to vector<24x32x256xf32>
    %44 = vector.extract_strided_slice %43 {offsets = [0, 0, 0], sizes = [24, 24, 256], strides = [1, 1, 1]} : vector<24x32x256xf32> to vector<24x24x256xf32>
    %c0_48 = arith.constant 0 : index
    %c0_49 = arith.constant 0 : index
    %45 = vector.load %arg3[%c0_48, %c0_49] : memref<1x256xf32, #tpu.memory_space<vmem>>, vector<1x256xf32>
    %46 = vector.shape_cast %45 : vector<1x256xf32> to vector<1x1x256xf32>
    %47 = vector.broadcast %46 : vector<1x1x256xf32> to vector<24x24x256xf32>
    %48 = arith.addf %44, %47 : vector<24x24x256xf32>
    %c0_50 = arith.constant 0 : index
    %c0_51 = arith.constant 0 : index
    %c0_52 = arith.constant 0 : index
    %c0_53 = arith.constant 0 : index
    %49 = vector.load %arg4[%c0_50, %c0_51, %c0_52, %c0_53] : memref<1x24x24x256xf32, #tpu.memory_space<vmem>>, vector<1x24x24x256xf32>
    %50 = vector.shape_cast %49 : vector<1x24x24x256xf32> to vector<24x24x256xf32>
    %51 = vector.shape_cast %48 : vector<24x24x256xf32> to vector<1x24x24x256xf32>
    tpu.vector_store %arg4[%c0_50, %c0_51, %c0_52, %c0_53], %51 {strides = array<i32>} : memref<1x24x24x256xf32, #tpu.memory_space<vmem>>, vector<1x24x24x256xf32>,
    return
  }
  func.func @transform_0(%arg0: i32) -> (i32, i32, i32) {
    %c0_i32 = arith.constant 0 : i32
    %c0_i32_0 = arith.constant 0 : i32
    %c0_i32_1 = arith.constant 0 : i32
    return %arg0, %c0_i32, %c0_i32_0 : i32, i32, i32
  }
  func.func @transform_1(%arg0: i32) -> (i32, i32, i32, i32) {
    %c0_i32 = arith.constant 0 : i32
    %c0_i32_0 = arith.constant 0 : i32
    %c0_i32_1 = arith.constant 0 : i32
    %c0_i32_2 = arith.constant 0 : i32
    %c0_i32_3 = arith.constant 0 : i32
    return %c0_i32, %c0_i32_0, %c0_i32_1, %c0_i32_2 : i32, i32, i32, i32
  }
  func.func @transform_2(%arg0: i32) -> (i32, i32) {
    %c0_i32 = arith.constant 0 : i32
    %c0_i32_0 = arith.constant 0 : i32
    %c0_i32_1 = arith.constant 0 : i32
    return %c0_i32, %c0_i32_0 : i32, i32
  }
  func.func @transform_3(%arg0: i32) -> (i32, i32, i32, i32) {
    %c0_i32 = arith.constant 0 : i32
    %c0_i32_0 = arith.constant 0 : i32
    %c0_i32_1 = arith.constant 0 : i32
    %c0_i32_2 = arith.constant 0 : i32
    return %arg0, %c0_i32, %c0_i32_0, %c0_i32_1 : i32, i32, i32, i32
  }
}

</mosaic_0001>

<bundles_post_ra>
// kernel: k_convolution.1
= control target key start
LH: loop header
LB: loop body
LE: loop exit
PB: predicated region body
PF: predicated region fallthrough
CT: control target
= control target key end

     0   :  { %8 = vsyncpa [#allocation3], 0  ;;  %s16769_s0 = inlined_call_operand.vmem [shape: bf16[2,832,256], index: 0, kind: input, shape index: {}]   ;;  %s16770_s1 = inlined_call_operand.vmem [shape: bf16[3,3,256,256], index: 1, kind: input, shape index: {}]   ;;  %s16771_s2 = inlined_call_operand.vmem [shape: f32[1,256], index: 2, kind: input, shape index: {}]   ;;  %s16772_s3 = inlined_call_operand.hbm [shape: f32[2,24,24,256], index: 3, kind: output, shape index: {}]  }
   0x1   :  { %10 = vsyncpa [#allocation3 + $0x1], 0  ;;  %s11458_s12 = smov 0   ;;  %s11460_s13 = smov 0  }
   0x2   :  { %s11462_s14 = smov 0   ;;  %s11464_s15 = smov 0  }
   0x3 LB: > { %s11479_s16 = sadd.s32 4294967295, %s11433_s15   ;;  %s9422_s17 = sadd.s32 4294967294, %s11433_s15   ;;  %s11433_s15 = sphi %s11464_s15, %s18136_s15   ;;  %s11429_s14 = sphi %s11462_s14, %s18135_s14   ;;  %s11425_s13 = sphi %s11460_s13, %s18134_s13   ;;  %s11421_s12 = sphi %s11458_s12, %s18133_s12  }
   0x4   : > { %s11483_s18 = sadd.s32 1, %s11433_s15   ;;  %s91_s19 = sadd.s32 1, %s11429_s14 }
   0x5   : > { %s88_s20 = ssub.s32 %s11433_s15, %s11483_s18  ;;  %p101_p0 = scmp.ne.s32.totalorder %s11429_s14, %s11425_s13 }
   0x6   : > { %p89_p1 = scmp.eq.s32.totalorder %s88_s20, 0  ;;  %p102_p2 = scmp.eq.s32.totalorder %s11479_s16, 1 }
   0x7   : > { %p107_p3 = scmp.ne.s32.totalorder %s11425_s13, %s11421_s12  ;;  %p108_p4 = scmp.eq.s32.totalorder %s9422_s17, 1 }
   0x8   : > { %s11494_s21 = scalar_select %p89_p1, %s11429_s14, %s91_s19  }
   0x9   : > { %p11496_p5 = por %p102_p2, %p101_p0  ;;  %p11500_p6 = por %p108_p4, %p107_p3 }
   0xa   : > { %p9425_p7 = scmp.ge.s32.totalorder %s11433_s15, 1  ;;  %p140_p8 = scmp.lt.s32.totalorder %s11433_s15, 3 }
   0xc   : > { %p141_p9 = pnand %p9425_p7, %p140_p8 }
   0xe   : > { %144 = sbr.rel (%p141_p9) target bundleno = 2028 (0x7ec), region = 32 }
  0x13   : > { %v10246_v0 = vld [vmem:[%s16770_s1 + $0x374] ss:$8 sps:$4 sm:$0xff]   ;;  %v10248_v1 = vld [vmem:[%s16770_s1 + $0x370] ss:$8 sps:$4 sm:$0xff]   ;;  %v10249_v2 = vld [vmem:[%s16770_s1 + $0x364] ss:$8 sps:$4 sm:$0xff]  }
  0x14   : > { %1070 = vmatprep.subr.bf16.mxu0 %v10246_v0  ;;  %10170 = vmatprep.subr.bf16.mxu1 %v10246_v0  ;;  %v10251_v3 = vld [vmem:[%s16770_s1 + $0x360] ss:$8 sps:$4 sm:$0xff]   ;;  %v10252_v4 = vld [vmem:[%s16770_s1 + $0x354] ss:$8 sps:$4 sm:$0xff]   ;;  %v10254_v5 = vld [vmem:[%s16770_s1 + $0x350] ss:$8 sps:$4 sm:$0xff]  }
  0x15   : > { %1071 = vmatpush1.bf16.msra.mxu0 %v10248_v1  ;;  %10186 = vmatpush1.bf16.msra.mxu1 %v10248_v1  ;;  %p164_p10 = scmp.lt.s32.totalorder %s11479_s16, 1  ;;  %v10255_v6 = vld [vmem:[%s16770_s1 + $0x344] ss:$8 sps:$4 sm:$0xff]   ;;  %v10257_v7 = vld [vmem:[%s16770_s1 + $0x340] ss:$8 sps:$4 sm:$0xff]   ;;  %s161_s25 = sand.u32 1, %s11425_s13  }
  0x16   : > { %1072 = vmatprep.subr.bf16.mxu0 %v10249_v2  ;;  %10171 = vmatprep.subr.bf16.mxu1 %v10249_v2  ;;  %v10258_v8 = vld [vmem:[%s16770_s1 + $0x334] ss:$8 sps:$4 sm:$0xff]   ;;  %v10260_v9 = vld [vmem:[%s16770_s1 + $0x330] ss:$8 sps:$4 sm:$0xff]   ;;  %v10261_v10 = vld [vmem:[%s16770_s1 + $0x324] ss:$8 sps:$4 sm:$0xff]  }
  0x17   : > { %s165_s19 = scalar_select %p164_p10, %s11479_s16, 1  ;;  %v10263_v11 = vld [vmem:[%s16770_s1 + $0x320] ss:$8 sps:$4 sm:$0xff]   ;;  %v10264_v12 = vld [vmem:[%s16770_s1 + $0x314] ss:$8 sps:$4 sm:$0xff]  }
  0x18   : > { %v10266_v14 = vld [vmem:[%s16770_s1 + $0x310] ss:$8 sps:$4 sm:$0xff]   ;;  %v10267_v16 = vld [vmem:[%s16770_s1 + $0x304] ss:$8 sps:$4 sm:$0xff]   ;;  %v10269_v17 = vld [vmem:[%s16770_s1 + $0x300] ss:$8 sps:$4 sm:$0xff]  }
  0x19   : > { %1073 = vmatpush1.bf16.msra.mxu0 %v10251_v3  ;;  %10187 = vmatpush1.bf16.msra.mxu1 %v10251_v3  ;;  %s10203_s27 = smul.u32 832, %s165_s19  ;;  %v10270_v18 = vld [vmem:[%s16770_s1 + $0x3f4] ss:$8 sps:$4 sm:$0xff]   ;;  %v10272_v19 = vld [vmem:[%s16770_s1 + $0x3f0] ss:$8 sps:$4 sm:$0xff]   ;;  %s11435_s9 = smov [#allocation2]  }
  0x1a   : > { %1074 = vmatprep.subr.bf16.mxu0 %v10252_v4  ;;  %10172 = vmatprep.subr.bf16.mxu1 %v10252_v4  ;;  %v10273_v20 = vld [vmem:[%s16770_s1 + $0x3e4] ss:$8 sps:$4 sm:$0xff]   ;;  %v10275_v21 = vld [vmem:[%s16770_s1 + $0x3e0] ss:$8 sps:$4 sm:$0xff]   ;;  %v10276_v22 = vld [vmem:[%s16770_s1 + $0x3d4] ss:$8 sps:$4 sm:$0xff]  }
  0x1b   : > { %s11547_s7 = scalar_lea.vmem %s16769_s0, %s10203_s27  ;;  %v10278_v23 = vld [vmem:[%s16770_s1 + $0x3d0] ss:$8 sps:$4 sm:$0xff]   ;;  %v10279_v24 = vld [vmem:[%s16770_s1 + $0x3c4] ss:$8 sps:$4 sm:$0xff]   ;;  %v10281_v25 = vld [vmem:[%s16770_s1 + $0x3c0] ss:$8 sps:$4 sm:$0xff]  }
  0x1c   : > { %v10294_v13 = vld [vmem:[%s11547_s7 + $0x24] ss:$8 sps:$4 sm:$0xff]   ;;  %v10282_v26 = vld [vmem:[%s16770_s1 + $0x3b4] ss:$8 sps:$4 sm:$0xff]   ;;  %v10284_v27 = vld [vmem:[%s16770_s1 + $0x3b0] ss:$8 sps:$4 sm:$0xff]  }
  0x1d   : > { %1075 = vmatpush1.bf16.msra.mxu0 %v10254_v5  ;;  %10188 = vmatpush1.bf16.msra.mxu1 %v10254_v5  ;;  %v10296_v15 = vld [vmem:[%s11547_s7 + $0x1a4] ss:$8 sps:$4 sm:$0xff]   ;;  %v10287_v29 = vld [vmem:[%s16770_s1 + $0x3a0] ss:$8 sps:$4 sm:$0xff]   ;;  %v10288_v30 = vld [vmem:[%s16770_s1 + $0x394] ss:$8 sps:$4 sm:$0xff]  }
  0x1e   : > { %1076 = vmatprep.subr.bf16.mxu0 %v10255_v6  ;;  %10173 = vmatprep.subr.bf16.mxu1 %v10255_v6  ;;  %v10285_v28 = vld [vmem:[%s16770_s1 + $0x3a4] ss:$8 sps:$4 sm:$0xff]   ;;  %v10290_v31 = vld [vmem:[%s16770_s1 + $0x390] ss:$8 sps:$4 sm:$0xff]   ;;  %v10293_v33 = vld [vmem:[%s16770_s1 + $0x380] ss:$8 sps:$4 sm:$0xff]  }
  0x1f   : > { %1102 = vmatprep.mubr.bf16.mxu0 %v10294_v13  ;;  %1318 = vmatprep.mubr.bf16.mxu1 %v10296_v15  ;;  %v10291_v32 = vld [vmem:[%s16770_s1 + $0x384] ss:$8 sps:$4 sm:$0xff]   ;;  %v10298_v34 = vld [vmem:[%s11547_s7 + $0x20] ss:$8 sps:$4 sm:$0xff]   ;;  %v10302_v35 = vld [vmem:[%s16770_s1 + $0x74] ss:$8 sps:$4 sm:$0xff]  }
  0x20   : > { %v10305_v36 = vld [vmem:[%s16770_s1 + $0x674] ss:$8 sps:$4 sm:$0xff]   ;;  %v10299_v37 = vld [vmem:[%s11547_s7 + $0x1a0] ss:$8 sps:$4 sm:$0xff]   ;;  %v10300_v38 = vld [vmem:[%s16770_s1 + $0x70] ss:$8 sps:$4 sm:$0xff]  }
  0x21   : > { %1077 = vmatpush1.bf16.msra.mxu0 %v10257_v7  ;;  %10189 = vmatpush1.bf16.msra.mxu1 %v10257_v7  ;;  %v10303_v39 = vld [vmem:[%s16770_s1 + $0x670] ss:$8 sps:$4 sm:$0xff]   ;;  %v10306_v40 = vld [vmem:[%s11547_s7 + $0x34] ss:$8 sps:$4 sm:$0xff]   ;;  %v10314_v42 = vld [vmem:[%s16770_s1 + $0x64] ss:$8 sps:$4 sm:$0xff]  }
  0x22   : > { %1078 = vmatprep.subr.bf16.mxu0 %v10258_v8  ;;  %10174 = vmatprep.subr.bf16.mxu1 %v10258_v8  ;;  %v10308_v41 = vld [vmem:[%s11547_s7 + $0x1b4] ss:$8 sps:$4 sm:$0xff]   ;;  %v10317_v43 = vld [vmem:[%s16770_s1 + $0x664] ss:$8 sps:$4 sm:$0xff]   ;;  %v10312_v44 = vld [vmem:[%s16770_s1 + $0x60] ss:$8 sps:$4 sm:$0xff]  }
  0x23   : > { %v10315_v45 = vld [vmem:[%s16770_s1 + $0x660] ss:$8 sps:$4 sm:$0xff]   ;;  %v10310_v46 = vld [vmem:[%s11547_s7 + $0x30] ss:$8 sps:$4 sm:$0xff]   ;;  %v10332_v47 = vld [vmem:[%s16770_s1 + $0x54] ss:$8 sps:$4 sm:$0xff]  }
  0x24   : > { %v10335_v48 = vld [vmem:[%s16770_s1 + $0x654] ss:$8 sps:$4 sm:$0xff]   ;;  %v10311_v49 = vld [vmem:[%s11547_s7 + $0x1b0] ss:$8 sps:$4 sm:$0xff]   ;;  %v10318_v50 = vld [vmem:[%s11547_s7 + $0x44] ss:$8 sps:$4 sm:$0xff]  }
  0x25   : > { %1079 = vmatpush1.bf16.msra.mxu0 %v10260_v9  ;;  %10190 = vmatpush1.bf16.msra.mxu1 %v10260_v9  ;;  %v10320_v51 = vld [vmem:[%s11547_s7 + $0x1c4] ss:$8 sps:$4 sm:$0xff]   ;;  %v10330_v52 = vld [vmem:[%s16770_s1 + $0x50] ss:$8 sps:$4 sm:$0xff]   ;;  %v10342_v56 = vld [vmem:[%s16770_s1 + $0x40] ss:$8 sps:$4 sm:$0xff]  }
  0x26   : > { %1080 = vmatprep.subr.bf16.mxu0 %v10261_v10  ;;  %10175 = vmatprep.subr.bf16.mxu1 %v10261_v10  ;;  %v10333_v53 = vld [vmem:[%s16770_s1 + $0x650] ss:$8 sps:$4 sm:$0xff]   ;;  %v10344_v54 = vld [vmem:[%s16770_s1 + $0x44] ss:$8 sps:$4 sm:$0xff]   ;;  %v10322_v57 = vld [vmem:[%s11547_s7 + $0x40] ss:$8 sps:$4 sm:$0xff]  }
  0x27   : > { %v10347_v55 = vld [vmem:[%s16770_s1 + $0x644] ss:$8 sps:$4 sm:$0xff]   ;;  %v10323_v58 = vld [vmem:[%s11547_s7 + $0x1c0] ss:$8 sps:$4 sm:$0xff]   ;;  %v10362_v60 = vld [vmem:[%s16770_s1 + $0x34] ss:$8 sps:$4 sm:$0xff]  }
  0x28   : > { %v10345_v59 = vld [vmem:[%s16770_s1 + $0x640] ss:$8 sps:$4 sm:$0xff]   ;;  %v10365_v61 = vld [vmem:[%s16770_s1 + $0x634] ss:$8 sps:$4 sm:$0xff]   ;;  %v10360_v0 = vld [vmem:[%s16770_s1 + $0x30] ss:$8 sps:$4 sm:$0xff]  }
  0x29   : > { %1081 = vmatpush1.bf16.msra.mxu0 %v10263_v11  ;;  %10191 = vmatpush1.bf16.msra.mxu1 %v10263_v11  ;;  %v10324_v62 = vld [vmem:[%s11547_s7 + $0x54] ss:$8 sps:$4 sm:$0xff]   ;;  %v10363_v1 = vld [vmem:[%s16770_s1 + $0x630] ss:$8 sps:$4 sm:$0xff]   ;;  %v10374_v2 = vld [vmem:[%s16770_s1 + $0x24] ss:$8 sps:$4 sm:$0xff]  }
  0x2a   : > { %1082 = vmatprep.subr.bf16.mxu0 %v10264_v12  ;;  %10176 = vmatprep.subr.bf16.mxu1 %v10264_v12  ;;  %v10326_v63 = vld [vmem:[%s11547_s7 + $0x1d4] ss:$8 sps:$4 sm:$0xff]   ;;  %v10377_v3 = vld [vmem:[%s16770_s1 + $0x624] ss:$8 sps:$4 sm:$0xff]   ;;  %v10372_v4 = vld [vmem:[%s16770_s1 + $0x20] ss:$8 sps:$4 sm:$0xff]  }
  0x2b   : > { %v10375_v5 = vld [vmem:[%s16770_s1 + $0x620] ss:$8 sps:$4 sm:$0xff]   ;;  %v10328_v6 = vld [vmem:[%s11547_s7 + $0x50] ss:$8 sps:$4 sm:$0xff]   ;;  %v10392_v8 = vld [vmem:[%s16770_s1 + $0x14] ss:$8 sps:$4 sm:$0xff]  }
  0x2c   : > { %v10329_v7 = vld [vmem:[%s11547_s7 + $0x1d0] ss:$8 sps:$4 sm:$0xff]   ;;  %v10395_v9 = vld [vmem:[%s16770_s1 + $0x614] ss:$8 sps:$4 sm:$0xff]   ;;  %v10336_v10 = vld [vmem:[%s11547_s7 + $0x64] ss:$8 sps:$4 sm:$0xff]  }
  0x2d   : > { %1083 = vmatpush1.bf16.msra.mxu0 %v10266_v14  ;;  %10192 = vmatpush1.bf16.msra.mxu1 %v10266_v14  ;;  %v10338_v11 = vld [vmem:[%s11547_s7 + $0x1e4] ss:$8 sps:$4 sm:$0xff]   ;;  %v10390_v12 = vld [vmem:[%s16770_s1 + $0x10] ss:$8 sps:$4 sm:$0xff]   ;;  %s15713_s28 = smul.u32 1152, %s161_s25  ;;  %s11377_s10 = sshll.u32 %s11435_s9, 4  ;;  %s11378_s10 = int_to_ptr.vmem [resolvable:$false] %s11377_s10 }
  0x2e   : > { %1084 = vmatprep.subr.bf16.mxu0 %v10267_v16  ;;  %10177 = vmatprep.subr.bf16.mxu1 %v10267_v16  ;;  %v10393_v13 = vld [vmem:[%s16770_s1 + $0x610] ss:$8 sps:$4 sm:$0xff]   ;;  %v10404_v14 = vld [vmem:[%s16770_s1 + $0x4] ss:$8 sps:$4 sm:$0xff]   ;;  %v10402_v16 = vld [vmem:[%s16770_s1] ss:$8 sps:$4 sm:$0xff]  }
  0x2f   : > { %v10407_v15 = vld [vmem:[%s16770_s1 + $0x604] ss:$8 sps:$4 sm:$0xff]   ;;  %s15735_s29 = scalar_lea.vmem [#allocation2], %s15713_s28  ;;  %s11379_s11 = scalar_lea.vmem %s11378_s10, 36864 }
  0x30   : > { %s9360_s30 = sshll.u32 %s15735_s29, 4  ;;  %s16722_s30 = int_to_ptr.vmem [resolvable:$true] %s9360_s30 }
  0x31   : > { %1085 = vmatpush1.bf16.msra.mxu0 %v10269_v17  ;;  %10193 = vmatpush1.bf16.msra.mxu1 %v10269_v17  ;;  %v10405_v17 = vld [vmem:[%s16770_s1 + $0x600] ss:$8 sps:$4 sm:$0xff]   ;;  %s11373_s8 = scalar_lea.vmem %s16722_s30, 18432  ;;  %p11380_p0 = scmp.lt.s32.totalorder %s16722_s30, %s11378_s10 }
  0x32   : > { %1086 = vmatprep.subr.bf16.mxu0 %v10270_v18  ;;  %10178 = vmatprep.subr.bf16.mxu1 %v10270_v18  ;;  %v10340_v18 = vld [vmem:[%s11547_s7 + $0x60] ss:$8 sps:$4 sm:$0xff]   ;;  %p11374_p11 = scmp.ne.s32.totalorder %s16722_s30, %s11373_s8  ;;  %p11381_p1 = scmp.lt.s32.totalorder %s11379_s11, %s11373_s8 }
  0x34   : > { %p11375_p12 = pnand %p11374_p11, %p11496_p5  ;;  %p11382_p2 = por %p11381_p1, %p11380_p0 }
  0x35   : > { %1087 = vmatpush2.bf16.msra.mxu0 %v10272_v19  ;;  %10194 = vmatpush2.bf16.msra.mxu1 %v10272_v19  ;;  %v10341_v19 = vld [vmem:[%s11547_s7 + $0x1e0] ss:$8 sps:$4 sm:$0xff]  }
  0x36   : > { %1088 = vmatprep.subr.bf16.mxu0 %v10273_v20  ;;  %10179 = vmatprep.subr.bf16.mxu1 %v10273_v20  ;;  %v10422_v20 = vld [vmem:[%s16770_s1 + $0xf4] ss:$8 sps:$4 sm:$0xff]   ;;  %p11376_p13 = pneg %p11375_p12 }
  0x38   : > { %p11383_p3 = pnand %p11382_p2, %p11376_p13 }
  0x39   : > { %1089 = vmatpush2.bf16.msra.mxu0 %v10275_v21  ;;  %10195 = vmatpush2.bf16.msra.mxu1 %v10275_v21  ;;  %v10425_v21 = vld [vmem:[%s16770_s1 + $0x6f4] ss:$8 sps:$4 sm:$0xff]  }
  0x3a   : > { %1090 = vmatprep.subr.bf16.mxu0 %v10276_v22  ;;  %10180 = vmatprep.subr.bf16.mxu1 %v10276_v22  ;;  %v10348_v22 = vld [vmem:[%s11547_s7 + $0x74] ss:$8 sps:$4 sm:$0xff]  }
  0x3d   : > { %1091 = vmatpush2.bf16.msra.mxu0 %v10278_v23  ;;  %10196 = vmatpush2.bf16.msra.mxu1 %v10278_v23  ;;  %v10350_v23 = vld [vmem:[%s11547_s7 + $0x1f4] ss:$8 sps:$4 sm:$0xff]  }
  0x3e   : > { %1092 = vmatprep.subr.bf16.mxu0 %v10279_v24  ;;  %10181 = vmatprep.subr.bf16.mxu1 %v10279_v24  ;;  %v10420_v24 = vld [vmem:[%s16770_s1 + $0xf0] ss:$8 sps:$4 sm:$0xff]  }
  0x41   : > { %1093 = vmatpush2.bf16.msra.mxu0 %v10281_v25  ;;  %10197 = vmatpush2.bf16.msra.mxu1 %v10281_v25  ;;  %v10423_v25 = vld [vmem:[%s16770_s1 + $0x6f0] ss:$8 sps:$4 sm:$0xff]  }
  0x42   : > { %1094 = vmatprep.subr.bf16.mxu0 %v10282_v26  ;;  %10182 = vmatprep.subr.bf16.mxu1 %v10282_v26  ;;  %v10434_v26 = vld [vmem:[%s16770_s1 + $0xe4] ss:$8 sps:$4 sm:$0xff]  }
  0x45   : > { %1095 = vmatpush2.bf16.msra.mxu0 %v10284_v27  ;;  %10198 = vmatpush2.bf16.msra.mxu1 %v10284_v27  ;;  %v10437_v27 = vld [vmem:[%s16770_s1 + $0x6e4] ss:$8 sps:$4 sm:$0xff]  }
  0x46   : > { %1096 = vmatprep.subr.bf16.mxu0 %v10285_v28  ;;  %10183 = vmatprep.subr.bf16.mxu1 %v10285_v28  ;;  %v10432_v28 = vld [vmem:[%s16770_s1 + $0xe0] ss:$8 sps:$4 sm:$0xff]  }
  0x49   : > { %1097 = vmatpush2.bf16.msra.mxu0 %v10287_v29  ;;  %10199 = vmatpush2.bf16.msra.mxu1 %v10287_v29  ;;  %v10352_v29 = vld [vmem:[%s11547_s7 + $0x70] ss:$8 sps:$4 sm:$0xff]  }
  0x4a   : > { %1098 = vmatprep.subr.bf16.mxu0 %v10288_v30  ;;  %10184 = vmatprep.subr.bf16.mxu1 %v10288_v30  ;;  %v10353_v30 = vld [vmem:[%s11547_s7 + $0x1f0] ss:$8 sps:$4 sm:$0xff]  }
  0x4d   : > { %1099 = vmatpush2.bf16.msra.mxu0 %v10290_v31  ;;  %10200 = vmatpush2.bf16.msra.mxu1 %v10290_v31  ;;  %v10435_v31 = vld [vmem:[%s16770_s1 + $0x6e0] ss:$8 sps:$4 sm:$0xff]  }
  0x4e   : > { %1100 = vmatprep.subr.bf16.mxu0 %v10291_v32  ;;  %10185 = vmatprep.subr.bf16.mxu1 %v10291_v32  ;;  %v10452_v32 = vld [vmem:[%s16770_s1 + $0xd4] ss:$8 sps:$4 sm:$0xff]  }
  0x51   : > { %1101 = vmatpush2.bf16.msra.mxu0 %v10293_v33  ;;  %10201 = vmatpush2.bf16.msra.mxu1 %v10293_v33  ;;  %v10455_v33 = vld [vmem:[%s16770_s1 + $0x6d4] ss:$8 sps:$4 sm:$0xff]  }
  0x52   : > { %1715 = vmatprep.subr.bf16.mxu1 %v10302_v35  ;;  %2853 = vmatprep.subr.bf16.mxu0 %v10305_v36  ;;  %v10356_v35 = vld [vmem:[%s11547_s7 + $0x204] ss:$8 sps:$4 sm:$0xff]   ;;  %v10450_v36 = vld [vmem:[%s16770_s1 + $0xd0] ss:$8 sps:$4 sm:$0xff]  }
  0x54   : > { %1103 = vmatmul.mubr.bf16.vlgmr.msra.gmra.mxu0 %v10298_v34  ;;  %1319 = vmatmul.mubr.bf16.vlgmr.msra.gmra.mxu1 %v10299_v37  ;;  %v10354_v34 = vld [vmem:[%s11547_s7 + $0x84] ss:$8 sps:$4 sm:$0xff]   ;;  %v10453_v37 = vld [vmem:[%s16770_s1 + $0x6d0] ss:$8 sps:$4 sm:$0xff]  }
  0x55   : > { %1716 = vmatpush1.bf16.msra.mxu1 %v10300_v38  ;;  %2854 = vmatpush1.bf16.msra.mxu0 %v10303_v39  ;;  %v10464_v38 = vld [vmem:[%s16770_s1 + $0xc4] ss:$8 sps:$4 sm:$0xff]  }
  0x56   : > { %1112 = vmatprep.mubr.bf16.mxu0 %v10306_v40  ;;  %1328 = vmatprep.mubr.bf16.mxu1 %v10308_v41  ;;  %v10467_v39 = vld [vmem:[%s16770_s1 + $0x6c4] ss:$8 sps:$4 sm:$0xff]   ;;  %v10462_v40 = vld [vmem:[%s16770_s1 + $0xc0] ss:$8 sps:$4 sm:$0xff]  }
  0x57   : > { %1717 = vmatprep.subr.bf16.mxu1 %v10314_v42  ;;  %2855 = vmatprep.subr.bf16.mxu0 %v10317_v43  ;;  %v10358_v41 = vld [vmem:[%s11547_s7 + $0x80] ss:$8 sps:$4 sm:$0xff]  }
  0x58   : > { %v10359_v42 = vld [vmem:[%s11547_s7 + $0x200] ss:$8 sps:$4 sm:$0xff]  }
  0x59   : > { %1718 = vmatpush1.bf16.msra.mxu1 %v10312_v44  ;;  %2856 = vmatpush1.bf16.msra.mxu0 %v10315_v45  ;;  %v10465_v43 = vld [vmem:[%s16770_s1 + $0x6c0] ss:$8 sps:$4 sm:$0xff]   ;;  %v10482_v44 = vld [vmem:[%s16770_s1 + $0xb4] ss:$8 sps:$4 sm:$0xff]  }
  0x5a   : > { %1719 = vmatprep.subr.bf16.mxu1 %v10332_v47  ;;  %2857 = vmatprep.subr.bf16.mxu0 %v10335_v48  ;;  %v10485_v45 = vld [vmem:[%s16770_s1 + $0x6b4] ss:$8 sps:$4 sm:$0xff]   ;;  %v10480_v48 = vld [vmem:[%s16770_s1 + $0xb0] ss:$8 sps:$4 sm:$0xff]  }
  0x5b   : > { %v10368_v47 = vld [vmem:[%s11547_s7 + $0x214] ss:$8 sps:$4 sm:$0xff]  }
  0x5c   : > { %1113 = vmatmul.mubr.bf16.gmra.mxu0 %v10310_v46  ;;  %1329 = vmatmul.mubr.bf16.gmra.mxu1 %v10311_v49  ;;  %v10366_v46 = vld [vmem:[%s11547_s7 + $0x94] ss:$8 sps:$4 sm:$0xff]   ;;  %v10483_v49 = vld [vmem:[%s16770_s1 + $0x6b0] ss:$8 sps:$4 sm:$0xff]  }
  0x5d   : > { %1120 = vmatprep.mubr.bf16.mxu0 %v10318_v50  ;;  %1336 = vmatprep.mubr.bf16.mxu1 %v10320_v51  ;;  %v10494_v50 = vld [vmem:[%s16770_s1 + $0xa4] ss:$8 sps:$4 sm:$0xff]  }
  0x5e   : > { %1720 = vmatpush1.bf16.msra.mxu1 %v10330_v52  ;;  %2858 = vmatpush1.bf16.msra.mxu0 %v10333_v53  ;;  %v10497_v51 = vld [vmem:[%s16770_s1 + $0x6a4] ss:$8 sps:$4 sm:$0xff]   ;;  %v10370_v52 = vld [vmem:[%s11547_s7 + $0x90] ss:$8 sps:$4 sm:$0xff]  }
  0x5f   : > { %1721 = vmatprep.subr.bf16.mxu1 %v10344_v54  ;;  %2859 = vmatprep.subr.bf16.mxu0 %v10347_v55  ;;  %v10371_v53 = vld [vmem:[%s11547_s7 + $0x210] ss:$8 sps:$4 sm:$0xff]   ;;  %v10492_v54 = vld [vmem:[%s16770_s1 + $0xa0] ss:$8 sps:$4 sm:$0xff]  }
  0x60   : > { %v10495_v55 = vld [vmem:[%s16770_s1 + $0x6a0] ss:$8 sps:$4 sm:$0xff]  }
  0x62   : > { %1722 = vmatpush1.bf16.msra.mxu1 %v10342_v56  ;;  %2860 = vmatpush1.bf16.msra.mxu0 %v10345_v59  ;;  %v10378_v56 = vld [vmem:[%s11547_s7 + $0xa4] ss:$8 sps:$4 sm:$0xff]   ;;  %v10510_v59 = vld [vmem:[%s16770_s1 + $0x90] ss:$8 sps:$4 sm:$0xff]  }
  0x63   : > { %1723 = vmatprep.subr.bf16.mxu1 %v10362_v60  ;;  %2861 = vmatprep.subr.bf16.mxu0 %v10365_v61  ;;  %v10515_v60 = vld [vmem:[%s16770_s1 + $0x694] ss:$8 sps:$4 sm:$0xff]   ;;  %v10513_v61 = vld [vmem:[%s16770_s1 + $0x690] ss:$8 sps:$4 sm:$0xff]  }
  0x64   : > { %1121 = vmatmul.mubr.bf16.gmra.mxu0 %v10322_v57  ;;  %1337 = vmatmul.mubr.bf16.gmra.mxu1 %v10323_v58  ;;  %v10380_v57 = vld [vmem:[%s11547_s7 + $0x224] ss:$8 sps:$4 sm:$0xff]   ;;  %v10512_v58 = vld [vmem:[%s16770_s1 + $0x94] ss:$8 sps:$4 sm:$0xff]  }
  0x65   : > { %1130 = vmatprep.mubr.bf16.mxu0 %v10324_v62  ;;  %1346 = vmatprep.mubr.bf16.mxu1 %v10326_v63  ;;  %v10522_v62 = vld [vmem:[%s16770_s1 + $0x80] ss:$8 sps:$4 sm:$0xff]   ;;  %v10524_v63 = vld [vmem:[%s16770_s1 + $0x84] ss:$8 sps:$4 sm:$0xff]  }
  0x66   : > { %1724 = vmatpush1.bf16.msra.mxu1 %v10360_v0  ;;  %2862 = vmatpush1.bf16.msra.mxu0 %v10363_v1  ;;  %v10382_v0 = vld [vmem:[%s11547_s7 + $0xa0] ss:$8 sps:$4 sm:$0xff]  }
  0x67   : > { %1725 = vmatprep.subr.bf16.mxu1 %v10374_v2  ;;  %2863 = vmatprep.subr.bf16.mxu0 %v10377_v3  ;;  %v10525_v1 = vld [vmem:[%s16770_s1 + $0x680] ss:$8 sps:$4 sm:$0xff]   ;;  %v10527_v2 = vld [vmem:[%s16770_s1 + $0x684] ss:$8 sps:$4 sm:$0xff]  }
  0x68   : > { %v10383_v3 = vld [vmem:[%s11547_s7 + $0x220] ss:$8 sps:$4 sm:$0xff]  }
  0x6a   : > { %1726 = vmatpush1.bf16.msra.mxu1 %v10372_v4  ;;  %2864 = vmatpush1.bf16.msra.mxu0 %v10375_v5  ;;  %v10384_v4 = vld [vmem:[%s11547_s7 + $0xb4] ss:$8 sps:$4 sm:$0xff]  }
  0x6b   : > { %1727 = vmatprep.subr.bf16.mxu1 %v10392_v8  ;;  %2865 = vmatprep.subr.bf16.mxu0 %v10395_v9  ;;  %v10386_v5 = vld [vmem:[%s11547_s7 + $0x234] ss:$8 sps:$4 sm:$0xff]   ;;  %v10389_v8 = vld [vmem:[%s11547_s7 + $0x230] ss:$8 sps:$4 sm:$0xff]  }
  0x6c   : > { %1131 = vmatmul.mubr.bf16.gmra.mxu0 %v10328_v6  ;;  %1347 = vmatmul.mubr.bf16.gmra.mxu1 %v10329_v7  ;;  %v10539_v6 = vld [vmem:[%s16770_s1 + $0x474] ss:$8 sps:$4 sm:$0xff]   ;;  %v10388_v7 = vld [vmem:[%s11547_s7 + $0xb0] ss:$8 sps:$4 sm:$0xff]  }
  0x6d   : > { %1138 = vmatprep.mubr.bf16.mxu0 %v10336_v10  ;;  %1354 = vmatprep.mubr.bf16.mxu1 %v10338_v11  ;;  %v10542_v9 = vld [vmem:[%s16770_s1 + $0x174] ss:$8 sps:$4 sm:$0xff]   ;;  %v11848_v10 = vld [vmem:[%s11547_s7 + $0xc4] ss:$8 sps:$4 sm:$0xff]  }
  0x6e   : > { %1728 = vmatpush1.bf16.msra.mxu1 %v10390_v12  ;;  %2866 = vmatpush1.bf16.msra.mxu0 %v10393_v13  ;;  %v10398_v11 = vld [vmem:[%s11547_s7 + $0x244] ss:$8 sps:$4 sm:$0xff]   ;;  %v11853_v12 = vld [vmem:[%s11547_s7 + $0xc0] ss:$8 sps:$4 sm:$0xff]  }
  0x6f   : > { %1729 = vmatprep.subr.bf16.mxu1 %v10404_v14  ;;  %2867 = vmatprep.subr.bf16.mxu0 %v10407_v15  ;;  %v10401_v13 = vld [vmem:[%s11547_s7 + $0x240] ss:$8 sps:$4 sm:$0xff]   ;;  %v11857_v14 = vld [vmem:[%s11547_s7 + $0xd4] ss:$8 sps:$4 sm:$0xff]  }
  0x70   : > { %v10410_v15 = vld [vmem:[%s11547_s7 + $0x254] ss:$8 sps:$4 sm:$0xff]  }
  0x72   : > { %1730 = vmatpush1.bf16.msra.mxu1 %v10402_v16  ;;  %2868 = vmatpush1.bf16.msra.mxu0 %v10405_v17  ;;  %v11863_v16 = vld [vmem:[%s11547_s7 + $0xd0] ss:$8 sps:$4 sm:$0xff]  }
  0x73   : > { %1731 = vmatprep.subr.bf16.mxu1 %v10422_v20  ;;  %2869 = vmatprep.subr.bf16.mxu0 %v10425_v21  ;;  %v10413_v17 = vld [vmem:[%s11547_s7 + $0x250] ss:$8 sps:$4 sm:$0xff]   ;;  %v11873_v20 = vld [vmem:[%s11547_s7 + $0xe0] ss:$8 sps:$4 sm:$0xff]  }
  0x74   : > { %1139 = vmatmul.mubr.bf16.gmra.mxu0 %v10340_v18  ;;  %1355 = vmatmul.mubr.bf16.gmra.mxu1 %v10341_v19  ;;  %v11867_v18 = vld [vmem:[%s11547_s7 + $0xe4] ss:$8 sps:$4 sm:$0xff]   ;;  %v10419_v21 = vld [vmem:[%s11547_s7 + $0x260] ss:$8 sps:$4 sm:$0xff]  }
  0x75   : > { %1148 = vmatprep.mubr.bf16.mxu0 %v10348_v22  ;;  %1364 = vmatprep.mubr.bf16.mxu1 %v10350_v23  ;;  %v10416_v19 = vld [vmem:[%s11547_s7 + $0x264] ss:$8 sps:$4 sm:$0xff]   ;;  %v11877_v22 = vld [vmem:[%s11547_s7 + $0xf4] ss:$8 sps:$4 sm:$0xff]  }
  0x76   : > { %1732 = vmatpush2.bf16.msra.mxu1 %v10420_v24  ;;  %2870 = vmatpush2.bf16.msra.mxu0 %v10423_v25  ;;  %v10428_v23 = vld [vmem:[%s11547_s7 + $0x274] ss:$8 sps:$4 sm:$0xff]   ;;  %v11883_v24 = vld [vmem:[%s11547_s7 + $0xf0] ss:$8 sps:$4 sm:$0xff]  }
  0x77   : > { %1733 = vmatprep.subr.bf16.mxu1 %v10434_v26  ;;  %2871 = vmatprep.subr.bf16.mxu0 %v10437_v27  ;;  %v10431_v25 = vld [vmem:[%s11547_s7 + $0x270] ss:$8 sps:$4 sm:$0xff]   ;;  %v11887_v26 = vld [vmem:[%s11547_s7 + $0x104] ss:$8 sps:$4 sm:$0xff]  }
  0x78   : > { %v10440_v27 = vld [vmem:[%s11547_s7 + $0x284] ss:$8 sps:$4 sm:$0xff]  }
  0x7a   : > { %1734 = vmatpush2.bf16.msra.mxu1 %v10432_v28  ;;  %2872 = vmatpush2.bf16.msra.mxu0 %v10435_v31  ;;  %v11893_v28 = vld [vmem:[%s11547_s7 + $0x100] ss:$8 sps:$4 sm:$0xff]   ;;  %v10446_v31 = vld [vmem:[%s11547_s7 + $0x294] ss:$8 sps:$4 sm:$0xff]  }
  0x7b   : > { %1735 = vmatprep.subr.bf16.mxu1 %v10452_v32  ;;  %2873 = vmatprep.subr.bf16.mxu0 %v10455_v33  ;;  %v11903_v32 = vld [vmem:[%s11547_s7 + $0x110] ss:$8 sps:$4 sm:$0xff]  }
  0x7c   : > { %1149 = vmatmul.mubr.bf16.gmra.mxu0 %v10352_v29  ;;  %1365 = vmatmul.mubr.bf16.gmra.mxu1 %v10353_v30  ;;  %v10443_v29 = vld [vmem:[%s11547_s7 + $0x280] ss:$8 sps:$4 sm:$0xff]   ;;  %v11897_v30 = vld [vmem:[%s11547_s7 + $0x114] ss:$8 sps:$4 sm:$0xff]   ;;  %v10449_v33 = vld [vmem:[%s11547_s7 + $0x290] ss:$8 sps:$4 sm:$0xff]  }
  0x7d   : > { %1156 = vmatprep.mubr.bf16.mxu0 %v10354_v34  ;;  %1372 = vmatprep.mubr.bf16.mxu1 %v10356_v35  ;;  %v11907_v34 = vld [vmem:[%s11547_s7 + $0x124] ss:$8 sps:$4 sm:$0xff]  }
  0x7e   : > { %1736 = vmatpush2.bf16.msra.mxu1 %v10450_v36  ;;  %2874 = vmatpush2.bf16.msra.mxu0 %v10453_v37  ;;  %v10458_v35 = vld [vmem:[%s11547_s7 + $0x2a4] ss:$8 sps:$4 sm:$0xff]   ;;  %v11913_v36 = vld [vmem:[%s11547_s7 + $0x120] ss:$8 sps:$4 sm:$0xff]  }
  0x7f   : > { %1737 = vmatprep.subr.bf16.mxu1 %v10464_v38  ;;  %2875 = vmatprep.subr.bf16.mxu0 %v10467_v39  ;;  %v10461_v37 = vld [vmem:[%s11547_s7 + $0x2a0] ss:$8 sps:$4 sm:$0xff]   ;;  %v11917_v38 = vld [vmem:[%s11547_s7 + $0x134] ss:$8 sps:$4 sm:$0xff]  }
  0x80   : > { %v10470_v39 = vld [vmem:[%s11547_s7 + $0x2b4] ss:$8 sps:$4 sm:$0xff]  }
  0x82   : > { %1738 = vmatpush2.bf16.msra.mxu1 %v10462_v40  ;;  %2876 = vmatpush2.bf16.msra.mxu0 %v10465_v43  ;;  %v11923_v40 = vld [vmem:[%s11547_s7 + $0x130] ss:$8 sps:$4 sm:$0xff]   ;;  %v10476_v43 = vld [vmem:[%s11547_s7 + $0x2c4] ss:$8 sps:$4 sm:$0xff]  }
  0x83   : > { %1739 = vmatprep.subr.bf16.mxu1 %v10482_v44  ;;  %2877 = vmatprep.subr.bf16.mxu0 %v10485_v45  ;;  %v11933_v44 = vld [vmem:[%s11547_s7 + $0x140] ss:$8 sps:$4 sm:$0xff]  }
  0x84   : > { %1157 = vmatmul.mubr.bf16.gmra.mxu0 %v10358_v41  ;;  %1373 = vmatmul.mubr.bf16.gmra.mxu1 %v10359_v42  ;;  %v10473_v41 = vld [vmem:[%s11547_s7 + $0x2b0] ss:$8 sps:$4 sm:$0xff]   ;;  %v11927_v42 = vld [vmem:[%s11547_s7 + $0x144] ss:$8 sps:$4 sm:$0xff]   ;;  %v10479_v45 = vld [vmem:[%s11547_s7 + $0x2c0] ss:$8 sps:$4 sm:$0xff]  }
  0x85   : > { %1166 = vmatprep.mubr.bf16.mxu0 %v10366_v46  ;;  %1382 = vmatprep.mubr.bf16.mxu1 %v10368_v47  ;;  %v11937_v46 = vld [vmem:[%s11547_s7 + $0x154] ss:$8 sps:$4 sm:$0xff]  }
  0x86   : > { %1740 = vmatpush2.bf16.msra.mxu1 %v10480_v48  ;;  %2878 = vmatpush2.bf16.msra.mxu0 %v10483_v49  ;;  %v10488_v47 = vld [vmem:[%s11547_s7 + $0x2d4] ss:$8 sps:$4 sm:$0xff]   ;;  %v11943_v48 = vld [vmem:[%s11547_s7 + $0x150] ss:$8 sps:$4 sm:$0xff]  }
  0x87   : > { %1741 = vmatprep.subr.bf16.mxu1 %v10494_v50  ;;  %2879 = vmatprep.subr.bf16.mxu0 %v10497_v51  ;;  %v10491_v49 = vld [vmem:[%s11547_s7 + $0x2d0] ss:$8 sps:$4 sm:$0xff]   ;;  %v11947_v50 = vld [vmem:[%s11547_s7 + $0x164] ss:$8 sps:$4 sm:$0xff]  }
  0x88   : > { %v10500_v51 = vld [vmem:[%s11547_s7 + $0x2e4] ss:$8 sps:$4 sm:$0xff]  }
  0x8a   : > { %1742 = vmatpush2.bf16.msra.mxu1 %v10492_v54  ;;  %2880 = vmatpush2.bf16.msra.mxu0 %v10495_v55  ;;  %v11957_v54 = vld [vmem:[%s11547_s7 + $0x174] ss:$8 sps:$4 sm:$0xff]  }
  0x8b   : > { %1743 = vmatprep.subr.bf16.mxu1 %v10512_v58  ;;  %2881 = vmatprep.subr.bf16.mxu0 %v10515_v60  ;;  %v10506_v55 = vld [vmem:[%s11547_s7 + $0x2f4] ss:$8 sps:$4 sm:$0xff]   ;;  %v11967_v58 = vld [vmem:[%s11547_s7 + $0x184] ss:$8 sps:$4 sm:$0xff]   ;;  %v11973_v60 = vld [vmem:[%s11547_s7 + $0x180] ss:$8 sps:$4 sm:$0xff]  }
  0x8c   : > { %1167 = vmatmul.mubr.bf16.gmra.mxu0 %v10370_v52  ;;  %1383 = vmatmul.mubr.bf16.gmra.mxu1 %v10371_v53  ;;  %v11953_v52 = vld [vmem:[%s11547_s7 + $0x160] ss:$8 sps:$4 sm:$0xff]  }
  0x8d   : > { %1174 = vmatprep.mubr.bf16.mxu0 %v10378_v56  ;;  %1390 = vmatprep.mubr.bf16.mxu1 %v10380_v57  ;;  %v10503_v53 = vld [vmem:[%s11547_s7 + $0x2e0] ss:$8 sps:$4 sm:$0xff]   ;;  %v11963_v56 = vld [vmem:[%s11547_s7 + $0x170] ss:$8 sps:$4 sm:$0xff]  }
  0x8e   : > { %1744 = vmatpush2.bf16.msra.mxu1 %v10510_v59  ;;  %2882 = vmatpush2.bf16.msra.mxu0 %v10513_v61  ;;  %v10509_v57 = vld [vmem:[%s11547_s7 + $0x2f0] ss:$8 sps:$4 sm:$0xff]   ;;  %v10518_v59 = vld [vmem:[%s11547_s7 + $0x304] ss:$8 sps:$4 sm:$0xff]   ;;  %v10521_v61 = vld [vmem:[%s11547_s7 + $0x300] ss:$8 sps:$4 sm:$0xff]  }
  0x8f   : > { %1745 = vmatprep.subr.bf16.mxu1 %v10524_v63  ;;  %2883 = vmatprep.subr.bf16.mxu0 %v10527_v2  ;;  %v10530_v63 = vld [vmem:[%s11547_s7 + $0x314] ss:$8 sps:$4 sm:$0xff]   ;;  %v10536_v2 = vld [vmem:[%s11547_s7 + $0x4] ss:$8 sps:$4 sm:$0xff]  }
  0x92   : > { %1746 = vmatpush2.bf16.msra.mxu1 %v10522_v62  ;;  %2884 = vmatpush2.bf16.msra.mxu0 %v10525_v1  ;;  %v11977_v62 = vld [vmem:[%s11547_s7 + $0x194] ss:$8 sps:$4 sm:$0xff]   ;;  %v10533_v1 = vld [vmem:[%s11547_s7 + $0x310] ss:$8 sps:$4 sm:$0xff]  }
  0x93   : > { %3688 = vmatprep.subr.bf16.mxu1 %v10539_v6  ;;  %4361 = vmatprep.subr.bf16.mxu0 %v10542_v9  ;;  %v10540_v6 = vld [vmem:[%s16770_s1 + $0x170] ss:$8 sps:$4 sm:$0xff]   ;;  %v10551_v9 = vld [vmem:[%s16770_s1 + $0x164] ss:$8 sps:$4 sm:$0xff]  }
  0x94   : > { %1175 = vmatmul.mubr.bf16.gmra.mxu0 %v10382_v0  ;;  %1391 = vmatmul.mubr.bf16.gmra.mxu1 %v10383_v3  ;;  %v11983_v0 = vld [vmem:[%s11547_s7 + $0x190] ss:$8 sps:$4 sm:$0xff]   ;;  %v11989_v3 = vld [vmem:[%s11547_s7 + $0x44] ss:$8 sps:$4 sm:$0xff]  }
  0x95   : > { %1184 = vmatprep.mubr.bf16.mxu0 %v10384_v4  ;;  %1400 = vmatprep.mubr.bf16.mxu1 %v10386_v5  ;;  %v10534_v4 = vld [vmem:[%s11547_s7] ss:$8 sps:$4 sm:$0xff]   ;;  %v10537_v5 = vld [vmem:[%s16770_s1 + $0x470] ss:$8 sps:$4 sm:$0xff]  }
  0x9c   : > { %1185 = vmatmul.mubr.bf16.gmra.mxu0 %v10388_v7  ;;  %1401 = vmatmul.mubr.bf16.gmra.mxu1 %v10389_v8  ;;  %v10543_v7 = vld [vmem:[%s11547_s7 + $0x14] ss:$8 sps:$4 sm:$0xff]   ;;  %v10548_v8 = vld [vmem:[%s16770_s1 + $0x464] ss:$8 sps:$4 sm:$0xff]  }
  0x9d   : > { %1192 = vmatprep.mubr.bf16.mxu0 %v11848_v10  ;;  %1408 = vmatprep.mubr.bf16.mxu1 %v10398_v11 }
  0xa4   : > { %1193 = vmatmul.mubr.bf16.gmra.mxu0 %v11853_v12  ;;  %1409 = vmatmul.mubr.bf16.gmra.mxu1 %v10401_v13 }
  0xa5   : > { %1202 = vmatprep.mubr.bf16.mxu0 %v11857_v14  ;;  %1418 = vmatprep.mubr.bf16.mxu1 %v10410_v15  ;;  %v12011_v15 = vld [vmem:[%s11547_s7 + $0x40] ss:$8 sps:$4 sm:$0xff]  }
  0xac   : > { %1203 = vmatmul.mubr.bf16.gmra.mxu0 %v11863_v16  ;;  %1419 = vmatmul.mubr.bf16.gmra.mxu1 %v10413_v17  ;;  %v10546_v17 = vld [vmem:[%s16770_s1 + $0x460] ss:$8 sps:$4 sm:$0xff]  }
  0xad   : > { %1210 = vmatprep.mubr.bf16.mxu0 %v11867_v18  ;;  %1426 = vmatprep.mubr.bf16.mxu1 %v10416_v19  ;;  %v10549_v19 = vld [vmem:[%s16770_s1 + $0x160] ss:$8 sps:$4 sm:$0xff]  }
  0xb4   : > { %1211 = vmatmul.mubr.bf16.gmra.mxu0 %v11873_v20  ;;  %1427 = vmatmul.mubr.bf16.gmra.mxu1 %v10419_v21 }
  0xb5   : > { %1220 = vmatprep.mubr.bf16.mxu0 %v11877_v22  ;;  %1436 = vmatprep.mubr.bf16.mxu1 %v10428_v23 }
  0xbc   : > { %1221 = vmatmul.mubr.bf16.gmra.mxu0 %v11883_v24  ;;  %1437 = vmatmul.mubr.bf16.gmra.mxu1 %v10431_v25  ;;  %v12025_v25 = vld [vmem:[%s11547_s7 + $0x54] ss:$8 sps:$4 sm:$0xff]  }
  0xbd   : > { %1228 = vmatprep.mubr.bf16.mxu0 %v11887_v26  ;;  %1444 = vmatprep.mubr.bf16.mxu1 %v10440_v27  ;;  %v10554_v27 = vld [vmem:[%s16770_s1 + $0x454] ss:$8 sps:$4 sm:$0xff]  }
  0xc4   : > { %1229 = vmatmul.mubr.bf16.gmra.mxu0 %v11893_v28  ;;  %1445 = vmatmul.mubr.bf16.gmra.mxu1 %v10443_v29  ;;  %v10557_v29 = vld [vmem:[%s16770_s1 + $0x154] ss:$8 sps:$4 sm:$0xff]  }
  0xc5   : > { %1238 = vmatprep.mubr.bf16.mxu0 %v11897_v30  ;;  %1454 = vmatprep.mubr.bf16.mxu1 %v10446_v31 }
  0xcc   : > { %1239 = vmatmul.mubr.bf16.gmra.mxu0 %v11903_v32  ;;  %1455 = vmatmul.mubr.bf16.gmra.mxu1 %v10449_v33 }
  0xcd   : > { %1246 = vmatprep.mubr.bf16.mxu0 %v11907_v34  ;;  %1462 = vmatprep.mubr.bf16.mxu1 %v10458_v35  ;;  %v10545_v35 = vld [vmem:[%s11547_s7 + $0x10] ss:$8 sps:$4 sm:$0xff]  }
  0xd4   : > { %1247 = vmatmul.mubr.bf16.gmra.mxu0 %v11913_v36  ;;  %1463 = vmatmul.mubr.bf16.gmra.mxu1 %v10461_v37 }
  0xd5   : > { %1256 = vmatprep.mubr.bf16.mxu0 %v11917_v38  ;;  %1472 = vmatprep.mubr.bf16.mxu1 %v10470_v39 }
  0xdc   : > { %1257 = vmatmul.mubr.bf16.gmra.mxu0 %v11923_v40  ;;  %1473 = vmatmul.mubr.bf16.gmra.mxu1 %v10473_v41  ;;  %v10552_v41 = vld [vmem:[%s16770_s1 + $0x450] ss:$8 sps:$4 sm:$0xff]  }
  0xdd   : > { %1264 = vmatprep.mubr.bf16.mxu0 %v11927_v42  ;;  %1480 = vmatprep.mubr.bf16.mxu1 %v10476_v43  ;;  %v10555_v43 = vld [vmem:[%s16770_s1 + $0x150] ss:$8 sps:$4 sm:$0xff]  }
  0xe4   : > { %1265 = vmatmul.mubr.bf16.gmra.mxu0 %v11933_v44  ;;  %1481 = vmatmul.mubr.bf16.gmra.mxu1 %v10479_v45  ;;  %v10560_v45 = vld [vmem:[%s16770_s1 + $0x444] ss:$8 sps:$4 sm:$0xff]  }
  0xe5   : > { %1274 = vmatprep.mubr.bf16.mxu0 %v11937_v46  ;;  %1490 = vmatprep.mubr.bf16.mxu1 %v10488_v47  ;;  %v10563_v47 = vld [vmem:[%s16770_s1 + $0x144] ss:$8 sps:$4 sm:$0xff]  }
  0xec   : > { %1275 = vmatmul.mubr.bf16.gmra.mxu0 %v11943_v48  ;;  %1491 = vmatmul.mubr.bf16.gmra.mxu1 %v10491_v49 }
  0xed   : > { %1282 = vmatprep.mubr.bf16.mxu0 %v11947_v50  ;;  %1498 = vmatprep.mubr.bf16.mxu1 %v10500_v51 }
  0xf4   : > { %1283 = vmatmul.mubr.bf16.gmra.mxu0 %v11953_v52  ;;  %1499 = vmatmul.mubr.bf16.gmra.mxu1 %v10503_v53  ;;  %v12060_v53 = vld [vmem:[%s11547_s7 + $0x50] ss:$8 sps:$4 sm:$0xff]  }
  0xf5   : > { %1292 = vmatprep.mubr.bf16.mxu0 %v11957_v54  ;;  %1508 = vmatprep.mubr.bf16.mxu1 %v10506_v55  ;;  %v10910_v55 = vld [vmem:[%s11547_s7 + $0x24] ss:$8 sps:$4 sm:$0xff]  }
  0xfc   : > { %1293 = vmatmul.mubr.bf16.gmra.mxu0 %v11963_v56  ;;  %1509 = vmatmul.mubr.bf16.gmra.mxu1 %v10509_v57  ;;  %v12065_v57 = vld [vmem:[%s11547_s7 + $0x64] ss:$8 sps:$4 sm:$0xff]  }
  0xfd   : > { %1300 = vmatprep.mubr.bf16.mxu0 %v11967_v58  ;;  %1516 = vmatprep.mubr.bf16.mxu1 %v10518_v59 }
 0x104   : > { %1301 = vmatmul.mubr.bf16.gmra.mxu0 %v11973_v60  ;;  %1517 = vmatmul.mubr.bf16.gmra.mxu1 %v10521_v61 }
 0x105   : > { %1310 = vmatprep.mubr.bf16.mxu0 %v11977_v62  ;;  %1526 = vmatprep.mubr.bf16.mxu1 %v10530_v63  ;;  %v10558_v63 = vld [vmem:[%s16770_s1 + $0x440] ss:$8 sps:$4 sm:$0xff]  }
 0x10c   : > { %1311 = vmatmul.mubr.bf16.gmra.mxu0 %v11983_v0  ;;  %1527 = vmatmul.mubr.bf16.gmra.mxu1 %v10533_v1  ;;  %v10561_v1 = vld [vmem:[%s16770_s1 + $0x140] ss:$8 sps:$4 sm:$0xff]  }
 0x10d   : > { %1747 = vmatprep.mubr.bf16.mxu1 %v10536_v2  ;;  %2885 = vmatprep.mubr.bf16.mxu0 %v11989_v3  ;;  %v10566_v2 = vld [vmem:[%s16770_s1 + $0x434] ss:$8 sps:$4 sm:$0xff]  }
 0x114   : > { %v12006_v11 = vpop.f32.mrf.mxu0  ;;  %v12008_v13 = vpop.f32.mrf.mxu1  ;;  %1748 = vmatmul.mubr.bf16.vlgmr.msra.gmra.mxu1 %v10534_v4  ;;  %2886 = vmatmul.mubr.bf16.vlgmr.msra.gmra.mxu0 %v12011_v15  ;;  %v10569_v4 = vld [vmem:[%s16770_s1 + $0x134] ss:$8 sps:$4 sm:$0xff]  }
 0x115   : > { %16775 = vst [vmem:[#allocation5_spill] sm:$0xff] %v12008_v13  ;;  %3689 = vmatpush1.bf16.msra.mxu1 %v10537_v5  ;;  %4362 = vmatpush1.bf16.msra.mxu0 %v10540_v6 }
 0x116   : > { %v12020_v21 = vpop.f32.mrf.mxu0  ;;  %v12022_v23 = vpop.f32.mrf.mxu1  ;;  %1757 = vmatprep.mubr.bf16.mxu1 %v10543_v7  ;;  %2895 = vmatprep.mubr.bf16.mxu0 %v12025_v25 }
 0x117   : > { %16776 = vst [vmem:[#allocation6_spill] sm:$0xff] %v12022_v23  ;;  %3690 = vmatprep.subr.bf16.mxu1 %v10548_v8  ;;  %4363 = vmatprep.subr.bf16.mxu0 %v10551_v9  ;;  %v10564_v9 = vld [vmem:[%s16770_s1 + $0x430] ss:$8 sps:$4 sm:$0xff]  }
 0x118   : > { %v12034_v31 = vpop.f32.mrf.mxu0  ;;  %v12036_v33 = vpop.f32.mrf.mxu1 }
 0x119   : > { %16777 = vst [vmem:[#allocation7_spill] sm:$0xff] %v12036_v33  ;;  %3691 = vmatpush1.bf16.msra.mxu1 %v10546_v17  ;;  %4364 = vmatpush1.bf16.msra.mxu0 %v10549_v19  ;;  %v10567_v17 = vld [vmem:[%s16770_s1 + $0x130] ss:$8 sps:$4 sm:$0xff]   ;;  %v10572_v19 = vld [vmem:[%s16770_s1 + $0x424] ss:$8 sps:$4 sm:$0xff]  }
 0x11a   : > { %v12039_v37 = vpop.f32.mrf.mxu0  ;;  %v12041_v39 = vpop.f32.mrf.mxu1  ;;  %3692 = vmatprep.subr.bf16.mxu1 %v10554_v27  ;;  %4365 = vmatprep.subr.bf16.mxu0 %v10557_v29  ;;  %v10575_v27 = vld [vmem:[%s16770_s1 + $0x124] ss:$8 sps:$4 sm:$0xff]  }
 0x11b   : > { %16778 = vst [vmem:[#allocation8_spill] sm:$0xff] %v12041_v39 }
 0x11c   : > { %v12055_v49 = vpop.f32.mrf.mxu0  ;;  %v12057_v51 = vpop.f32.mrf.mxu1  ;;  %1758 = vmatmul.mubr.bf16.gmra.mxu1 %v10545_v35  ;;  %2896 = vmatmul.mubr.bf16.gmra.mxu0 %v12060_v53 }
 0x11d   : > { %16779 = vst [vmem:[#allocation9_spill] sm:$0xff] %v12057_v51  ;;  %1765 = vmatprep.mubr.bf16.mxu1 %v10910_v55  ;;  %2903 = vmatprep.mubr.bf16.mxu0 %v12065_v57  ;;  %v10587_v51 = vld [vmem:[%s16770_s1 + $0x104] ss:$8 sps:$4 sm:$0xff]  }
 0x11e   : > { %v12068_v59 = vpop.f32.mrf.mxu0  ;;  %v12070_v61 = vpop.f32.mrf.mxu1  ;;  %3693 = vmatpush1.bf16.msra.mxu1 %v10552_v41  ;;  %4366 = vmatpush1.bf16.msra.mxu0 %v10555_v43  ;;  %v10912_v41 = vld [vmem:[%s11547_s7 + $0x20] ss:$8 sps:$4 sm:$0xff]  }
 0x11f   : > { %16780 = vst [vmem:[#allocation10_spill] sm:$0xff] %v12070_v61  ;;  %3694 = vmatprep.subr.bf16.mxu1 %v10560_v45  ;;  %4367 = vmatprep.subr.bf16.mxu0 %v10563_v47  ;;  %v12102_v43 = vld [vmem:[%s11547_s7 + $0x60] ss:$8 sps:$4 sm:$0xff]   ;;  %v10914_v45 = vld [vmem:[%s11547_s7 + $0x34] ss:$8 sps:$4 sm:$0xff]  }
 0x120   : > { %v1118_v5 = vpop.f32.mrf.mxu0  ;;  %v1334_v6 = vpop.f32.mrf.mxu1  ;;  %v12107_v47 = vld [vmem:[%s11547_s7 + $0x74] ss:$8 sps:$4 sm:$0xff]  }
 0x121   : > { %v10581_v5 = vld [vmem:[%s16770_s1 + $0x114] ss:$8 sps:$4 sm:$0xff]  }
 0x122   : > { %v1119_v7 = vpop.f32.mrf.mxu0  ;;  %v1335_v8 = vpop.f32.mrf.mxu1  ;;  %3695 = vmatpush1.bf16.msra.mxu1 %v10558_v63  ;;  %4368 = vmatpush1.bf16.msra.mxu0 %v10561_v1  ;;  %v10570_v1 = vld [vmem:[%s16770_s1 + $0x420] ss:$8 sps:$4 sm:$0xff]   ;;  %v10920_v61 = vld [vmem:[%s11547_s7 + $0x94] ss:$8 sps:$4 sm:$0xff]  }
 0x123   : > { %3696 = vmatprep.subr.bf16.mxu1 %v10566_v2  ;;  %4369 = vmatprep.subr.bf16.mxu0 %v10569_v4  ;;  %v10573_v2 = vld [vmem:[%s16770_s1 + $0x120] ss:$8 sps:$4 sm:$0xff]   ;;  %v10578_v4 = vld [vmem:[%s16770_s1 + $0x414] ss:$8 sps:$4 sm:$0xff]  }
 0x124   : > { %v12096_v29 = vpop.f32.mrf.mxu0  ;;  %v12098_v35 = vpop.f32.mrf.mxu1  ;;  %1766 = vmatmul.mubr.bf16.gmra.mxu1 %v10912_v41  ;;  %2904 = vmatmul.mubr.bf16.gmra.mxu0 %v12102_v43 }
 0x125   : > { %16781 = vst [vmem:[#allocation11_spill] sm:$0xff] %v12098_v35  ;;  %1775 = vmatprep.mubr.bf16.mxu1 %v10914_v45  ;;  %2913 = vmatprep.mubr.bf16.mxu0 %v12107_v47  ;;  %v10916_v45 = vld [vmem:[%s11547_s7 + $0x30] ss:$8 sps:$4 sm:$0xff]  }
 0x126   : > { %v12110_v55 = vpop.f32.mrf.mxu0  ;;  %v12112_v63 = vpop.f32.mrf.mxu1  ;;  %3697 = vmatpush1.bf16.msra.mxu1 %v10564_v9  ;;  %4370 = vmatpush1.bf16.msra.mxu0 %v10567_v17  ;;  %v10576_v17 = vld [vmem:[%s16770_s1 + $0x410] ss:$8 sps:$4 sm:$0xff]  }
 0x127   : > { %16782 = vst [vmem:[#allocation12_spill] sm:$0xff] %v12112_v63  ;;  %3698 = vmatprep.subr.bf16.mxu1 %v10572_v19  ;;  %4371 = vmatprep.subr.bf16.mxu0 %v10575_v27  ;;  %v10579_v19 = vld [vmem:[%s16770_s1 + $0x110] ss:$8 sps:$4 sm:$0xff]  }
 0x128   : > { %v12126_v6 = vpop.f32.mrf.mxu0  ;;  %v12128_v7 = vpop.f32.mrf.mxu1 }
 0x129   : > { %16783 = vst [vmem:[#allocation13_spill] sm:$0xff] %v12128_v7  ;;  %v12146_v7 = vld [vmem:[%s11547_s7 + $0x70] ss:$8 sps:$4 sm:$0xff]  }
 0x12a   : > { %v12130_v8 = vpop.f32.mrf.mxu0  ;;  %v12132_v9 = vpop.f32.mrf.mxu1  ;;  %3699 = vmatpush1.bf16.msra.mxu1 %v10570_v1  ;;  %4372 = vmatpush1.bf16.msra.mxu0 %v10573_v2  ;;  %v12151_v1 = vld [vmem:[%s11547_s7 + $0x84] ss:$8 sps:$4 sm:$0xff]  }
 0x12b   : > { %16784 = vst [vmem:[#allocation14_spill] sm:$0xff] %v12132_v9  ;;  %3700 = vmatprep.subr.bf16.mxu1 %v10578_v4  ;;  %4373 = vmatprep.subr.bf16.mxu0 %v10581_v5 }
 0x12c   : > { %v12140_v27 = vpop.f32.mrf.mxu0  ;;  %v12142_v41 = vpop.f32.mrf.mxu1  ;;  %1776 = vmatmul.mubr.bf16.gmra.mxu1 %v10916_v45  ;;  %2914 = vmatmul.mubr.bf16.gmra.mxu0 %v12146_v7 }
 0x12d   : > { %16785 = vst [vmem:[#allocation15_spill] sm:$0xff] %v12142_v41  ;;  %1783 = vmatprep.mubr.bf16.mxu1 %v11989_v3  ;;  %2921 = vmatprep.mubr.bf16.mxu0 %v12151_v1  ;;  %v10919_v3 = vld [vmem:[%s11547_s7 + $0x80] ss:$8 sps:$4 sm:$0xff]  }
 0x12e   : > { %v12154_v2 = vpop.f32.mrf.mxu0  ;;  %v12156_v4 = vpop.f32.mrf.mxu1  ;;  %3701 = vmatpush1.bf16.msra.mxu1 %v10576_v17  ;;  %4374 = vmatpush1.bf16.msra.mxu0 %v10579_v19 }
 0x12f   : > { %16786 = vst [vmem:[#allocation16_spill] sm:$0xff] %v12156_v4  ;;  %v10585_v4 = vld [vmem:[%s16770_s1 + $0x100] ss:$8 sps:$4 sm:$0xff]   ;;  %4375 = vmatprep.subr.bf16.mxu0 %v10587_v51 }
 0x130   : > { %v1136_v5 = vpop.f32.mrf.mxu0  ;;  %v1352_v45 = vpop.f32.mrf.mxu1 }
 0x132   : > { %v1137_v41 = vpop.f32.mrf.mxu0  ;;  %v1353_v9 = vpop.f32.mrf.mxu1  ;;  %4376 = vmatpush1.bf16.msra.mxu0 %v10585_v4 }
 0x134   : > { %v12158_v63 = vpop.f32.mrf.mxu0  ;;  %v12160_v35 = vpop.f32.mrf.mxu1  ;;  %1784 = vmatmul.mubr.bf16.gmra.mxu1 %v12011_v15  ;;  %2922 = vmatmul.mubr.bf16.gmra.mxu0 %v10919_v3 }
 0x135   : > { %16787 = vst [vmem:[#allocation17_spill] sm:$0xff] %v12160_v35  ;;  %1793 = vmatprep.mubr.bf16.mxu1 %v12025_v25  ;;  %2931 = vmatprep.mubr.bf16.mxu0 %v10920_v61  ;;  %v12184_v25 = vld [vmem:[%s11547_s7 + $0x90] ss:$8 sps:$4 sm:$0xff]  }
 0x136   : > { %v12166_v17 = vpop.f32.mrf.mxu0  ;;  %v12168_v19 = vpop.f32.mrf.mxu1 }
 0x137   : > { %16788 = vst [vmem:[#allocation18_spill] sm:$0xff] %v12168_v19  ;;  %v10582_v19 = vld [vmem:[%s16770_s1 + $0x400] ss:$8 sps:$4 sm:$0xff]  }
 0x138   : > { %v12170_v41 = vpop.f32.mrf.mxu0  ;;  %v12172_v9 = vpop.f32.mrf.mxu1 }
 0x139   : > { %16789 = vst [vmem:[#allocation19_spill] sm:$0xff] %v12172_v9  ;;  %v10584_v9 = vld [vmem:[%s16770_s1 + $0x404] ss:$8 sps:$4 sm:$0xff]  }
 0x13a   : > { %v12174_v5 = vpop.f32.mrf.mxu0  ;;  %v12176_v45 = vpop.f32.mrf.mxu1  ;;  %3702 = vmatprep.subr.bf16.mxu1 %v10584_v9  ;;  %v10923_v9 = vld [vmem:[%s11547_s7 + $0xa0] ss:$8 sps:$4 sm:$0xff]  }
 0x13b   : > { %16790 = vst [vmem:[#allocation20_spill] sm:$0xff] %v12176_v45  ;;  %v12195_v45 = vld [vmem:[%s11547_s7 + $0xa4] ss:$8 sps:$4 sm:$0xff]   ;;  %3703 = vmatpush1.bf16.msra.mxu1 %v10582_v19 }
 0x13c   : > { %v12178_v15 = vpop.f32.mrf.mxu0  ;;  %v12180_v35 = vpop.f32.mrf.mxu1  ;;  %1794 = vmatmul.mubr.bf16.gmra.mxu1 %v12060_v53  ;;  %2932 = vmatmul.mubr.bf16.gmra.mxu0 %v12184_v25 }
 0x13d   : > { %16791 = vst [vmem:[#allocation21_spill] sm:$0xff] %v12180_v35  ;;  %1801 = vmatprep.mubr.bf16.mxu1 %v12065_v57  ;;  %2939 = vmatprep.mubr.bf16.mxu0 %v12195_v45 }
 0x13e   : > { %v12198_v53 = vpop.f32.mrf.mxu0  ;;  %v12200_v35 = vpop.f32.mrf.mxu1 }
 0x13f   : > { %16792 = vst [vmem:[#allocation22_spill] sm:$0xff] %v12198_v53  ;;  %16793 = vst [vmem:[#allocation23_spill] sm:$0xff] %v12200_v35  ;;  %v10924_v53 = vld [vmem:[%s11547_s7 + $0xb4] ss:$8 sps:$4 sm:$0xff]  }
 0x140   : > { %v1154_v57 = vpop.f32.mrf.mxu0  ;;  %v1370_v39 = vpop.f32.mrf.mxu1 }
 0x142   : > { %v1155_v33 = vpop.f32.mrf.mxu0  ;;  %v1371_v23 = vpop.f32.mrf.mxu1 }
 0x144   : > { %v12208_v13 = vpop.f32.mrf.mxu0  ;;  %v12210_v35 = vpop.f32.mrf.mxu1  ;;  %1802 = vmatmul.mubr.bf16.gmra.mxu1 %v12102_v43  ;;  %2940 = vmatmul.mubr.bf16.gmra.mxu0 %v10923_v9 }
 0x145   : > { %16794 = vst [vmem:[#allocation24_spill] sm:$0xff] %v12210_v35  ;;  %1811 = vmatprep.mubr.bf16.mxu1 %v12107_v47  ;;  %2949 = vmatprep.mubr.bf16.mxu0 %v10924_v53  ;;  %v10925_v47 = vld [vmem:[%s11547_s7 + $0xb0] ss:$8 sps:$4 sm:$0xff]  }
 0x146   : > { %v12216_v19 = vpop.f32.mrf.mxu0  ;;  %v12218_v39 = vpop.f32.mrf.mxu1 }
 0x147   : > { %16795 = vst [vmem:[#allocation25_spill] sm:$0xff] %v12216_v19  ;;  %16796 = vst [vmem:[#allocation26_spill] sm:$0xff] %v12218_v39 }
 0x148   : > { %v12220_v51 = vpop.f32.mrf.mxu0  ;;  %v12222_v23 = vpop.f32.mrf.mxu1 }
 0x149   : > { %16797 = vst [vmem:[#allocation27_spill] sm:$0xff] %v12220_v51  ;;  %16798 = vst [vmem:[#allocation28_spill] sm:$0xff] %v12222_v23 }
 0x14a   : > { %v12224_v33 = vpop.f32.mrf.mxu0  ;;  %v12226_v4 = vpop.f32.mrf.mxu1 }
 0x14b   : > { %16799 = vst [vmem:[#allocation29_spill] sm:$0xff] %v12224_v33  ;;  %16800 = vst [vmem:[#allocation30_spill] sm:$0xff] %v12226_v4 }
 0x14c   : > { %v12228_v57 = vpop.f32.mrf.mxu0  ;;  %v12230_v43 = vpop.f32.mrf.mxu1  ;;  %1812 = vmatmul.mubr.bf16.gmra.mxu1 %v12146_v7  ;;  %2950 = vmatmul.mubr.bf16.gmra.mxu0 %v10925_v47 }
 0x14d   : > { %16801 = vst [vmem:[#allocation31_spill] sm:$0xff] %v12228_v57  ;;  %16802 = vst [vmem:[#allocation32_spill] sm:$0xff] %v12230_v43  ;;  %1819 = vmatprep.mubr.bf16.mxu1 %v12151_v1  ;;  %2957 = vmatprep.mubr.bf16.mxu0 %v11848_v10  ;;  %v10597_v1 = vld [vmem:[%s16770_s1 + $0x4f0] ss:$8 sps:$4 sm:$0xff]  }
 0x14e   : > { %v12236_v39 = vpop.f32.mrf.mxu0  ;;  %v12238_v35 = vpop.f32.mrf.mxu1 }
 0x14f   : > { %16803 = vst [vmem:[#allocation33_spill] sm:$0xff] %v12238_v35 }
 0x150   : > { %v1172_v23 = vpop.f32.mrf.mxu0  ;;  %v1388_v33 = vpop.f32.mrf.mxu1 }
 0x151   : > { %v10600_v33 = vld [vmem:[%s16770_s1 + $0x1f0] ss:$8 sps:$4 sm:$0xff]  }
 0x152   : > { %v1173_v51 = vpop.f32.mrf.mxu0  ;;  %v1389_v4 = vpop.f32.mrf.mxu1 }
 0x153   : > { %v10599_v51 = vld [vmem:[%s16770_s1 + $0x4f4] ss:$8 sps:$4 sm:$0xff]  }
 0x154   : > { %v12240_v19 = vpop.f32.mrf.mxu0  ;;  %v12242_v57 = vpop.f32.mrf.mxu1  ;;  %1820 = vmatmul.mubr.bf16.gmra.mxu1 %v10919_v3  ;;  %2958 = vmatmul.mubr.bf16.gmra.mxu0 %v11853_v12  ;;  %v10602_v12 = vld [vmem:[%s16770_s1 + $0x1f4] ss:$8 sps:$4 sm:$0xff]  }
 0x155   : > { %16804 = vst [vmem:[#allocation34_spill] sm:$0xff] %v12242_v57  ;;  %1829 = vmatprep.mubr.bf16.mxu1 %v10920_v61  ;;  %2967 = vmatprep.mubr.bf16.mxu0 %v11857_v14 }
 0x156   : > { %v12246_v7 = vpop.f32.mrf.mxu0  ;;  %v12248_v10 = vpop.f32.mrf.mxu1  ;;  %3704 = vmatprep.subr.bf16.mxu1 %v10599_v51  ;;  %4377 = vmatprep.subr.bf16.mxu0 %v10602_v12 }
 0x157   : > { %16805 = vst [vmem:[#allocation35_spill] sm:$0xff] %v12248_v10  ;;  %3705 = vmatpush2.bf16.msra.mxu1 %v10597_v1  ;;  %4378 = vmatpush2.bf16.msra.mxu0 %v10600_v33  ;;  %v10612_v33 = vld [vmem:[%s16770_s1 + $0x4e0] ss:$8 sps:$4 sm:$0xff]  }
 0x158   : > { %v12256_v23 = vpop.f32.mrf.mxu0  ;;  %v12258_v3 = vpop.f32.mrf.mxu1 }
 0x159   : > { %16806 = vst [vmem:[#allocation36_spill] sm:$0xff] %v12258_v3 }
 0x15a   : > { %v12263_v14 = vpop.f32.mrf.mxu0  ;;  %v12265_v61 = vpop.f32.mrf.mxu1 }
 0x15b   : > { %16807 = vst [vmem:[#allocation37_spill] sm:$0xff] %v12265_v61 }
 0x15c   : > { %v12270_v4 = vpop.f32.mrf.mxu0  ;;  %v12272_v10 = vpop.f32.mrf.mxu1  ;;  %1830 = vmatmul.mubr.bf16.gmra.mxu1 %v12184_v25  ;;  %2968 = vmatmul.mubr.bf16.gmra.mxu0 %v11863_v16 }
 0x15d   : > { %16808 = vst [vmem:[#allocation38_spill] sm:$0xff] %v12272_v10  ;;  %1837 = vmatprep.mubr.bf16.mxu1 %v12195_v45  ;;  %2975 = vmatprep.mubr.bf16.mxu0 %v11867_v18 }
 0x15e   : > { %v12278_v51 = vpop.f32.mrf.mxu0  ;;  %v12280_v1 = vpop.f32.mrf.mxu1 }
 0x15f   : > { %16809 = vst [vmem:[#allocation39_spill] sm:$0xff] %v12280_v1 }
 0x160   : > { %v1190_v61 = vpop.f32.mrf.mxu0  ;;  %v1406_v3 = vpop.f32.mrf.mxu1 }
 0x162   : > { %v1191_v12 = vpop.f32.mrf.mxu0  ;;  %v1407_v57 = vpop.f32.mrf.mxu1 }
 0x164   : > { %v12282_v35 = vpop.f32.mrf.mxu0  ;;  %v12284_v10 = vpop.f32.mrf.mxu1  ;;  %1838 = vmatmul.mubr.bf16.gmra.mxu1 %v10923_v9  ;;  %2976 = vmatmul.mubr.bf16.gmra.mxu0 %v11873_v20  ;;  %v10926_v20 = vld [vmem:[%s11547_s7 + $0xc4] ss:$8 sps:$4 sm:$0xff]  }
 0x165   : > { %16810 = vst [vmem:[#allocation40_spill] sm:$0xff] %v12284_v10  ;;  %1847 = vmatprep.mubr.bf16.mxu1 %v10924_v53  ;;  %2985 = vmatprep.mubr.bf16.mxu0 %v11877_v22 }
 0x166   : > { %v12288_v16 = vpop.f32.mrf.mxu0  ;;  %v12290_v18 = vpop.f32.mrf.mxu1 }
 0x167   : > { %16811 = vst [vmem:[#allocation41_spill] sm:$0xff] %v12290_v18 }
 0x168   : > { %v12292_v45 = vpop.f32.mrf.mxu0  ;;  %v12294_v25 = vpop.f32.mrf.mxu1 }
 0x169   : > { %16812 = vst [vmem:[#allocation42_spill] sm:$0xff] %v12294_v25 }
 0x16a   : > { %v12296_v57 = vpop.f32.mrf.mxu0  ;;  %v12298_v3 = vpop.f32.mrf.mxu1 }
 0x16b   : > { %16813 = vst [vmem:[#allocation43_spill] sm:$0xff] %v12298_v3 }
 0x16c   : > { %v12300_v61 = vpop.f32.mrf.mxu0  ;;  %v12302_v9 = vpop.f32.mrf.mxu1  ;;  %1848 = vmatmul.mubr.bf16.gmra.mxu1 %v10925_v47  ;;  %2986 = vmatmul.mubr.bf16.gmra.mxu0 %v11883_v24  ;;  %v10614_v47 = vld [vmem:[%s16770_s1 + $0x4e4] ss:$8 sps:$4 sm:$0xff]  }
 0x16d   : > { %16814 = vst [vmem:[#allocation44_spill] sm:$0xff] %v12302_v9  ;;  %1855 = vmatprep.mubr.bf16.mxu1 %v10926_v20  ;;  %2993 = vmatprep.mubr.bf16.mxu0 %v11887_v26  ;;  %v10617_v20 = vld [vmem:[%s16770_s1 + $0x1e4] ss:$8 sps:$4 sm:$0xff]  }
 0x16e   : > { %v12307_v22 = vpop.f32.mrf.mxu0  ;;  %v12309_v53 = vpop.f32.mrf.mxu1  ;;  %3706 = vmatprep.subr.bf16.mxu1 %v10614_v47  ;;  %4379 = vmatprep.subr.bf16.mxu0 %v10617_v20 }
 0x16f   : > { %16815 = vst [vmem:[#allocation45_spill] sm:$0xff] %v12309_v53  ;;  %3707 = vmatpush2.bf16.msra.mxu1 %v10612_v33  ;;  %v10615_v53 = vld [vmem:[%s16770_s1 + $0x1e0] ss:$8 sps:$4 sm:$0xff]  }
 0x170   : > { %v1208_v12 = vpop.f32.mrf.mxu0  ;;  %v1424_v9 = vpop.f32.mrf.mxu1  ;;  %4380 = vmatpush2.bf16.msra.mxu0 %v10615_v53 }
 0x171   : > { %v10927_v12 = vld [vmem:[%s11547_s7 + $0xc0] ss:$8 sps:$4 sm:$0xff]   ;;  %v10928_v9 = vld [vmem:[%s11547_s7 + $0xd4] ss:$8 sps:$4 sm:$0xff]  }
 0x172   : > { %v1209_v3 = vpop.f32.mrf.mxu0  ;;  %v1425_v25 = vpop.f32.mrf.mxu1 }
 0x174   : > { %v12323_v18 = vpop.f32.mrf.mxu0  ;;  %v12325_v10 = vpop.f32.mrf.mxu1  ;;  %1856 = vmatmul.mubr.bf16.gmra.mxu1 %v10927_v12  ;;  %2994 = vmatmul.mubr.bf16.gmra.mxu0 %v11893_v28 }
 0x175   : > { %16816 = vst [vmem:[#allocation46_spill] sm:$0xff] %v12325_v10  ;;  %1865 = vmatprep.mubr.bf16.mxu1 %v10928_v9  ;;  %3003 = vmatprep.mubr.bf16.mxu0 %v11897_v30  ;;  %v10929_v9 = vld [vmem:[%s11547_s7 + $0xd0] ss:$8 sps:$4 sm:$0xff]  }
 0x176   : > { %v12331_v25 = vpop.f32.mrf.mxu0  ;;  %v12333_v3 = vpop.f32.mrf.mxu1 }
 0x177   : > { %16817 = vst [vmem:[#allocation47_spill] sm:$0xff] %v12331_v25  ;;  %16818 = vst [vmem:[#allocation48_spill] sm:$0xff] %v12333_v3  ;;  %v10930_v3 = vld [vmem:[%s11547_s7 + $0xe4] ss:$8 sps:$4 sm:$0xff]   ;;  %v10932_v25 = vld [vmem:[%s11547_s7 + $0xf4] ss:$8 sps:$4 sm:$0xff]  }
 0x178   : > { %v12335_v33 = vpop.f32.mrf.mxu0  ;;  %v12337_v47 = vpop.f32.mrf.mxu1 }
 0x179   : > { %16819 = vst [vmem:[#allocation49_spill] sm:$0xff] %v12335_v33  ;;  %16820 = vst [vmem:[#allocation50_spill] sm:$0xff] %v12337_v47 }
 0x17a   : > { %v12339_v20 = vpop.f32.mrf.mxu0  ;;  %v12341_v10 = vpop.f32.mrf.mxu1 }
 0x17b   : > { %16821 = vst [vmem:[#allocation51_spill] sm:$0xff] %v12339_v20  ;;  %16822 = vst [vmem:[#allocation52_spill] sm:$0xff] %v12341_v10 }
 0x17c   : > { %v12343_v12 = vpop.f32.mrf.mxu0  ;;  %v12345_v1 = vpop.f32.mrf.mxu1  ;;  %1866 = vmatmul.mubr.bf16.gmra.mxu1 %v10929_v9  ;;  %3004 = vmatmul.mubr.bf16.gmra.mxu0 %v11903_v32  ;;  %v10931_v9 = vld [vmem:[%s11547_s7 + $0xe0] ss:$8 sps:$4 sm:$0xff]  }
 0x17d   : > { %16823 = vst [vmem:[#allocation53_spill] sm:$0xff] %v12343_v12  ;;  %16824 = vst [vmem:[#allocation54_spill] sm:$0xff] %v12345_v1  ;;  %1873 = vmatprep.mubr.bf16.mxu1 %v10930_v3  ;;  %3011 = vmatprep.mubr.bf16.mxu0 %v11907_v34 }
 0x17e   : > { %v12351_v53 = vpop.f32.mrf.mxu0  ;;  %v12353_v47 = vpop.f32.mrf.mxu1 }
 0x17f   : > { %16825 = vst [vmem:[#allocation55_spill] sm:$0xff] %v12351_v53  ;;  %16826 = vst [vmem:[#allocation56_spill] sm:$0xff] %v12353_v47 }
 0x180   : > { %v1226_v43 = vpop.f32.mrf.mxu0  ;;  %v1442_v10 = vpop.f32.mrf.mxu1 }
 0x181   : > { %v10627_v43 = vld [vmem:[%s16770_s1 + $0x4d0] ss:$8 sps:$4 sm:$0xff]   ;;  %v10629_v10 = vld [vmem:[%s16770_s1 + $0x4d4] ss:$8 sps:$4 sm:$0xff]  }
 0x182   : > { %v1227_v20 = vpop.f32.mrf.mxu0  ;;  %v1443_v12 = vpop.f32.mrf.mxu1  ;;  %3708 = vmatprep.subr.bf16.mxu1 %v10629_v10 }
 0x183   : > { %3709 = vmatpush2.bf16.msra.mxu1 %v10627_v43 }
 0x184   : > { %v12355_v33 = vpop.f32.mrf.mxu0  ;;  %v12357_v1 = vpop.f32.mrf.mxu1  ;;  %1874 = vmatmul.mubr.bf16.gmra.mxu1 %v10931_v9  ;;  %3012 = vmatmul.mubr.bf16.gmra.mxu0 %v11913_v36 }
 0x185   : > { %16827 = vst [vmem:[#allocation57_spill] sm:$0xff] %v12357_v1  ;;  %1883 = vmatprep.mubr.bf16.mxu1 %v10932_v25  ;;  %3021 = vmatprep.mubr.bf16.mxu0 %v11917_v38  ;;  %v10632_v25 = vld [vmem:[%s16770_s1 + $0x1d4] ss:$8 sps:$4 sm:$0xff]   ;;  %v10630_v1 = vld [vmem:[%s16770_s1 + $0x1d0] ss:$8 sps:$4 sm:$0xff]  }
 0x186   : > { %v12363_v3 = vpop.f32.mrf.mxu0  ;;  %v12365_v53 = vpop.f32.mrf.mxu1  ;;  %4381 = vmatprep.subr.bf16.mxu0 %v10632_v25 }
 0x187   : > { %16828 = vst [vmem:[#allocation58_spill] sm:$0xff] %v12365_v53  ;;  %4382 = vmatpush2.bf16.msra.mxu0 %v10630_v1 }
 0x188   : > { %v12373_v20 = vpop.f32.mrf.mxu0  ;;  %v12375_v12 = vpop.f32.mrf.mxu1 }
 0x189   : > { %16829 = vst [vmem:[#allocation59_spill] sm:$0xff] %v12373_v20  ;;  %16830 = vst [vmem:[#allocation60_spill] sm:$0xff] %v12375_v12 }
 0x18a   : > { %v12380_v9 = vpop.f32.mrf.mxu0  ;;  %v12382_v53 = vpop.f32.mrf.mxu1 }
 0x18b   : > { %16831 = vst [vmem:[#allocation61_spill] sm:$0xff] %v12380_v9  ;;  %16832 = vst [vmem:[#allocation62_spill] sm:$0xff] %v12382_v53 }
 0x18c   : > { %v12387_v47 = vpop.f32.mrf.mxu0  ;;  %v12389_v20 = vpop.f32.mrf.mxu1  ;;  %1884 = vmatmul.mubr.bf16.gmra.mxu1 %v11883_v24  ;;  %3022 = vmatmul.mubr.bf16.gmra.mxu0 %v11923_v40 }
 0x18d   : > { %16833 = vst [vmem:[#allocation63_spill] sm:$0xff] %v12387_v47  ;;  %16834 = vst [vmem:[#allocation64_spill] sm:$0xff] %v12389_v20  ;;  %1891 = vmatprep.mubr.bf16.mxu1 %v11887_v26  ;;  %3029 = vmatprep.mubr.bf16.mxu0 %v11927_v42 }
 0x18e   : > { %v12395_v10 = vpop.f32.mrf.mxu0  ;;  %v12397_v43 = vpop.f32.mrf.mxu1 }
 0x18f   : > { %16835 = vst [vmem:[#allocation65_spill] sm:$0xff] %v12397_v43 }
 0x190   : > { %v1244_v53 = vpop.f32.mrf.mxu0  ;;  %v1460_v12 = vpop.f32.mrf.mxu1 }
 0x192   : > { %v1245_v25 = vpop.f32.mrf.mxu0  ;;  %v1461_v9 = vpop.f32.mrf.mxu1 }
 0x194   : > { %v12399_v47 = vpop.f32.mrf.mxu0  ;;  %v12401_v20 = vpop.f32.mrf.mxu1  ;;  %1892 = vmatmul.mubr.bf16.gmra.mxu1 %v11893_v28  ;;  %3030 = vmatmul.mubr.bf16.gmra.mxu0 %v11933_v44 }
 0x195   : > { %16836 = vst [vmem:[#allocation66_spill] sm:$0xff] %v12401_v20  ;;  %1901 = vmatprep.mubr.bf16.mxu1 %v11897_v30  ;;  %3039 = vmatprep.mubr.bf16.mxu0 %v11937_v46 }
 0x196   : > { %v12407_v24 = vpop.f32.mrf.mxu0  ;;  %v12409_v26 = vpop.f32.mrf.mxu1 }
 0x197   : > { %16837 = vst [vmem:[#allocation67_spill] sm:$0xff] %v12409_v26 }
 0x198   : > { %v12411_v1 = vpop.f32.mrf.mxu0  ;;  %v12413_v53 = vpop.f32.mrf.mxu1 }
 0x199   : > { %16838 = vst [vmem:[#allocation68_spill] sm:$0xff] %v12413_v53 }
 0x19a   : > { %v12415_v12 = vpop.f32.mrf.mxu0  ;;  %v12417_v9 = vpop.f32.mrf.mxu1 }
 0x19b   : > { %16839 = vst [vmem:[#allocation69_spill] sm:$0xff] %v12417_v9  ;;  %v10642_v9 = vld [vmem:[%s16770_s1 + $0x4c0] ss:$8 sps:$4 sm:$0xff]  }
 0x19c   : > { %v12419_v25 = vpop.f32.mrf.mxu0  ;;  %v12421_v28 = vpop.f32.mrf.mxu1  ;;  %1902 = vmatmul.mubr.bf16.gmra.mxu1 %v11903_v32  ;;  %3040 = vmatmul.mubr.bf16.gmra.mxu0 %v11943_v48 }
 0x19d   : > { %16840 = vst [vmem:[#allocation70_spill] sm:$0xff] %v12419_v25  ;;  %16841 = vst [vmem:[#allocation71_spill] sm:$0xff] %v12421_v28  ;;  %1909 = vmatprep.mubr.bf16.mxu1 %v11907_v34  ;;  %3047 = vmatprep.mubr.bf16.mxu0 %v11947_v50  ;;  %v10644_v28 = vld [vmem:[%s16770_s1 + $0x4c4] ss:$8 sps:$4 sm:$0xff]  }
 0x19e   : > { %v12427_v30 = vpop.f32.mrf.mxu0  ;;  %v12429_v26 = vpop.f32.mrf.mxu1  ;;  %3710 = vmatprep.subr.bf16.mxu1 %v10644_v28  ;;  %v10647_v34 = vld [vmem:[%s16770_s1 + $0x1c4] ss:$8 sps:$4 sm:$0xff]  }
 0x19f   : > { %16842 = vst [vmem:[#allocation72_spill] sm:$0xff] %v12427_v30  ;;  %16843 = vst [vmem:[#allocation73_spill] sm:$0xff] %v12429_v26  ;;  %3711 = vmatpush2.bf16.msra.mxu1 %v10642_v9  ;;  %v10645_v26 = vld [vmem:[%s16770_s1 + $0x1c0] ss:$8 sps:$4 sm:$0xff]   ;;  %4383 = vmatprep.subr.bf16.mxu0 %v10647_v34 }
 0x1a0   : > { %v1262_v53 = vpop.f32.mrf.mxu0  ;;  %v1478_v32 = vpop.f32.mrf.mxu1  ;;  %4384 = vmatpush2.bf16.msra.mxu0 %v10645_v26 }
 0x1a2   : > { %v1263_v20 = vpop.f32.mrf.mxu0  ;;  %v1479_v43 = vpop.f32.mrf.mxu1 }
 0x1a4   : > { %v12443_v30 = vpop.f32.mrf.mxu0  ;;  %v12445_v25 = vpop.f32.mrf.mxu1  ;;  %1910 = vmatmul.mubr.bf16.gmra.mxu1 %v11913_v36  ;;  %3048 = vmatmul.mubr.bf16.gmra.mxu0 %v11953_v52 }
 0x1a5   : > { %16844 = vst [vmem:[#allocation74_spill] sm:$0xff] %v12445_v25  ;;  %1919 = vmatprep.mubr.bf16.mxu1 %v11917_v38  ;;  %3057 = vmatprep.mubr.bf16.mxu0 %v11957_v54 }
 0x1a6   : > { %v12451_v20 = vpop.f32.mrf.mxu0  ;;  %v12453_v43 = vpop.f32.mrf.mxu1 }
 0x1a7   : > { %16845 = vst [vmem:[#allocation75_spill] sm:$0xff] %v12453_v43 }
 0x1a8   : > { %v12455_v53 = vpop.f32.mrf.mxu0  ;;  %v12457_v9 = vpop.f32.mrf.mxu1 }
 0x1a9   : > { %16846 = vst [vmem:[#allocation76_spill] sm:$0xff] %v12457_v9 }
 0x1aa   : > { %v12459_v28 = vpop.f32.mrf.mxu0  ;;  %v12461_v32 = vpop.f32.mrf.mxu1 }
 0x1ab   : > { %16847 = vst [vmem:[#allocation77_spill] sm:$0xff] %v12461_v32 }
 0x1ac   : > { %v12463_v36 = vpop.f32.mrf.mxu0  ;;  %v12465_v34 = vpop.f32.mrf.mxu1  ;;  %1920 = vmatmul.mubr.bf16.gmra.mxu1 %v11923_v40  ;;  %3058 = vmatmul.mubr.bf16.gmra.mxu0 %v11963_v56 }
 0x1ad   : > { %16848 = vst [vmem:[#allocation78_spill] sm:$0xff] %v12463_v36  ;;  %16849 = vst [vmem:[#allocation79_spill] sm:$0xff] %v12465_v34  ;;  %1927 = vmatprep.mubr.bf16.mxu1 %v11927_v42  ;;  %3065 = vmatprep.mubr.bf16.mxu0 %v11967_v58 }
 0x1ae   : > { %v12471_v38 = vpop.f32.mrf.mxu0  ;;  %v12473_v26 = vpop.f32.mrf.mxu1 }
 0x1af   : > { %16850 = vst [vmem:[#allocation80_spill] sm:$0xff] %v12473_v26  ;;  %v10660_v26 = vld [vmem:[%s16770_s1 + $0x1b0] ss:$8 sps:$4 sm:$0xff]  }
 0x1b0   : > { %v1280_v9 = vpop.f32.mrf.mxu0  ;;  %v1496_v43 = vpop.f32.mrf.mxu1 }
 0x1b1   : > { %v10659_v43 = vld [vmem:[%s16770_s1 + $0x4b4] ss:$8 sps:$4 sm:$0xff]  }
 0x1b2   : > { %v1281_v32 = vpop.f32.mrf.mxu0  ;;  %v1497_v25 = vpop.f32.mrf.mxu1  ;;  %3712 = vmatprep.subr.bf16.mxu1 %v10659_v43 }
 0x1b3   : > { %v10657_v25 = vld [vmem:[%s16770_s1 + $0x4b0] ss:$8 sps:$4 sm:$0xff]   ;;  %v10590_v32 = vld [vmem:[%s11547_s7 + $0x1a4] ss:$8 sps:$4 sm:$0xff]  }
 0x1b4   : > { %v12475_v36 = vpop.f32.mrf.mxu0  ;;  %v12477_v34 = vpop.f32.mrf.mxu1  ;;  %1928 = vmatmul.mubr.bf16.gmra.mxu1 %v11933_v44  ;;  %3066 = vmatmul.mubr.bf16.gmra.mxu0 %v11973_v60 }
 0x1b5   : > { %16851 = vst [vmem:[#allocation81_spill] sm:$0xff] %v12475_v36  ;;  %16852 = vst [vmem:[#allocation82_spill] sm:$0xff] %v12477_v34  ;;  %1937 = vmatprep.mubr.bf16.mxu1 %v11937_v46  ;;  %3075 = vmatprep.mubr.bf16.mxu0 %v11977_v62  ;;  %v10662_v46 = vld [vmem:[%s16770_s1 + $0x1b4] ss:$8 sps:$4 sm:$0xff]  }
 0x1b6   : > { %v12483_v40 = vpop.f32.mrf.mxu0  ;;  %v12485_v42 = vpop.f32.mrf.mxu1  ;;  %3713 = vmatpush2.bf16.msra.mxu1 %v10657_v25  ;;  %4385 = vmatprep.subr.bf16.mxu0 %v10662_v46  ;;  %v10588_v46 = vld [vmem:[%s11547_s7 + $0x1a0] ss:$8 sps:$4 sm:$0xff]  }
 0x1b7   : > { %16853 = vst [vmem:[#allocation83_spill] sm:$0xff] %v12483_v40  ;;  %16854 = vst [vmem:[#allocation84_spill] sm:$0xff] %v12485_v42  ;;  %4386 = vmatpush2.bf16.msra.mxu0 %v10660_v26 }
 0x1b8   : > { %v12493_v9 = vpop.f32.mrf.mxu0  ;;  %v12495_v44 = vpop.f32.mrf.mxu1 }
 0x1b9   : > { %16855 = vst [vmem:[#allocation85_spill] sm:$0xff] %v12493_v9  ;;  %16856 = vst [vmem:[#allocation86_spill] sm:$0xff] %v12495_v44 }
 0x1ba   : > { %v12501_v34 = vpop.f32.mrf.mxu0  ;;  %v12503_v42 = vpop.f32.mrf.mxu1 }
 0x1bb   : > { %16857 = vst [vmem:[#allocation87_spill] sm:$0xff] %v12501_v34  ;;  %16858 = vst [vmem:[#allocation88_spill] sm:$0xff] %v12503_v42 }
 0x1bc   : > { %v12508_v9 = vpop.f32.mrf.mxu0  ;;  %v12510_v44 = vpop.f32.mrf.mxu1  ;;  %1938 = vmatmul.mubr.bf16.gmra.mxu1 %v11943_v48  ;;  %3076 = vmatmul.mubr.bf16.gmra.mxu0 %v11983_v0 }
 0x1bd   : > { %16859 = vst [vmem:[#allocation89_spill] sm:$0xff] %v12508_v9  ;;  %16860 = vst [vmem:[#allocation90_spill] sm:$0xff] %v12510_v44  ;;  %1945 = vmatprep.mubr.bf16.mxu1 %v11947_v50  ;;  %3083 = vmatprep.mubr.bf16.mxu0 %v10590_v32  ;;  %v10593_v9 = vld [vmem:[%s11547_s7 + $0x1b4] ss:$8 sps:$4 sm:$0xff]  }
 0x1be   : > { %v12515_v43 = vpop.f32.mrf.mxu0  ;;  %v12517_v42 = vpop.f32.mrf.mxu1 }
 0x1bf   : > { %16861 = vst [vmem:[#allocation91_spill] sm:$0xff] %v12517_v42  ;;  %v10594_v42 = vld [vmem:[%s11547_s7 + $0x1c0] ss:$8 sps:$4 sm:$0xff]  }
 0x1c0   : > { %v1298_v25 = vpop.f32.mrf.mxu0  ;;  %v1514_v34 = vpop.f32.mrf.mxu1 }
 0x1c2   : > { %v1299_v40 = vpop.f32.mrf.mxu0  ;;  %v1515_v44 = vpop.f32.mrf.mxu1 }
 0x1c3   : > { %v10591_v40 = vld [vmem:[%s11547_s7 + $0x1b0] ss:$8 sps:$4 sm:$0xff]   ;;  %v10596_v44 = vld [vmem:[%s11547_s7 + $0x1c4] ss:$8 sps:$4 sm:$0xff]  }
 0x1c4   : > { %v12521_v36 = vpop.f32.mrf.mxu0  ;;  %v12523_v48 = vpop.f32.mrf.mxu1  ;;  %1946 = vmatmul.mubr.bf16.gmra.mxu1 %v11953_v52  ;;  %3084 = vmatmul.mubr.bf16.gmra.mxu0 %v10588_v46 }
 0x1c5   : > { %16862 = vst [vmem:[#allocation92_spill] sm:$0xff] %v12523_v48  ;;  %1955 = vmatprep.mubr.bf16.mxu1 %v11957_v54  ;;  %3093 = vmatprep.mubr.bf16.mxu0 %v10593_v9 }
 0x1c6   : > { %v12527_v50 = vpop.f32.mrf.mxu0  ;;  %v12529_v26 = vpop.f32.mrf.mxu1 }
 0x1c7   : > { %16863 = vst [vmem:[#allocation93_spill] sm:$0xff] %v12529_v26 }
 0x1c8   : > { %v12531_v34 = vpop.f32.mrf.mxu0  ;;  %v12533_v32 = vpop.f32.mrf.mxu1 }
 0x1c9   : > { %16864 = vst [vmem:[#allocation94_spill] sm:$0xff] %v12531_v34  ;;  %16865 = vst [vmem:[#allocation95_spill] sm:$0xff] %v12533_v32  ;;  %v10672_v32 = vld [vmem:[%s16770_s1 + $0x4a0] ss:$8 sps:$4 sm:$0xff]   ;;  %v10608_v34 = vld [vmem:[%s11547_s7 + $0x1e4] ss:$8 sps:$4 sm:$0xff]  }
 0x1ca   : > { %v12537_v25 = vpop.f32.mrf.mxu0  ;;  %v12539_v48 = vpop.f32.mrf.mxu1 }
 0x1cb   : > { %16866 = vst [vmem:[#allocation96_spill] sm:$0xff] %v12537_v25  ;;  %16867 = vst [vmem:[#allocation97_spill] sm:$0xff] %v12539_v48  ;;  %v10674_v48 = vld [vmem:[%s16770_s1 + $0x4a4] ss:$8 sps:$4 sm:$0xff]   ;;  %v10603_v25 = vld [vmem:[%s11547_s7 + $0x1d0] ss:$8 sps:$4 sm:$0xff]  }
 0x1cc   : > { %v12541_v52 = vpop.f32.mrf.mxu0  ;;  %v12543_v54 = vpop.f32.mrf.mxu1  ;;  %1956 = vmatmul.mubr.bf16.gmra.mxu1 %v11963_v56  ;;  %3094 = vmatmul.mubr.bf16.gmra.mxu0 %v10591_v40  ;;  %v10605_v56 = vld [vmem:[%s11547_s7 + $0x1d4] ss:$8 sps:$4 sm:$0xff]  }
 0x1cd   : > { %16868 = vst [vmem:[#allocation98_spill] sm:$0xff] %v12541_v52  ;;  %16869 = vst [vmem:[#allocation99_spill] sm:$0xff] %v12543_v54  ;;  %1963 = vmatprep.mubr.bf16.mxu1 %v11967_v58  ;;  %3101 = vmatprep.mubr.bf16.mxu0 %v10596_v44  ;;  %v10677_v58 = vld [vmem:[%s16770_s1 + $0x1a4] ss:$8 sps:$4 sm:$0xff]  }
 0x1ce   : > { %v12547_v9 = vpop.f32.mrf.mxu0  ;;  %v12549_v46 = vpop.f32.mrf.mxu1  ;;  %3714 = vmatprep.subr.bf16.mxu1 %v10674_v48  ;;  %4387 = vmatprep.subr.bf16.mxu0 %v10677_v58 }
 0x1cf   : > { %16870 = vst [vmem:[#allocation100_spill] sm:$0xff] %v12547_v9  ;;  %16871 = vst [vmem:[#allocation101_spill] sm:$0xff] %v12549_v46  ;;  %3715 = vmatpush2.bf16.msra.mxu1 %v10672_v32  ;;  %v10675_v46 = vld [vmem:[%s16770_s1 + $0x1a0] ss:$8 sps:$4 sm:$0xff]  }
 0x1d0   : > { %v1316_v26 = vpop.f32.mrf.mxu0  ;;  %v1532_v54 = vpop.f32.mrf.mxu1  ;;  %4388 = vmatpush2.bf16.msra.mxu0 %v10675_v46 }
 0x1d2   : > { %v1317_v40 = vpop.f32.mrf.mxu0  ;;  %v1533_v44 = vpop.f32.mrf.mxu1 }
 0x1d4   : > { %v1749_v9 = vpop.f32.mrf.mxu1  ;;  %1964 = vmatmul.mubr.bf16.gmra.mxu1 %v11973_v60  ;;  %v2887_v26 = vpop.f32.mrf.mxu0  ;;  %3102 = vmatmul.mubr.bf16.gmra.mxu0 %v10594_v42 }
 0x1d5   : > { %v1750_v48 = vadd.f32 %v1749_v9, %v12006_v11  ;;  %1973 = vmatprep.mubr.bf16.mxu1 %v11977_v62  ;;  %3111 = vmatprep.mubr.bf16.mxu0 %v10605_v56 }
 0x1d6   : > { %v1751_v54 = vpop.f32.mrf.mxu1  ;;  %v2889_v40 = vpop.f32.mrf.mxu0 }
 0x1d7   : > { %v12568_v32 = vadd.f32 %v2887_v26, %v1750_v48  ;;  %v1752_v44 = vadd.f32 %v1751_v54, %v12020_v21 }
 0x1d8   : > { %v1753_v52 = vpop.f32.mrf.mxu1  ;;  %v2891_v58 = vpop.f32.mrf.mxu0 }
 0x1d9   : > { %v12572_v60 = vadd.f32 %v2889_v40, %v1752_v44  ;;  %v1754_v42 = vadd.f32 %v1753_v52, %v12034_v31  ;;  %v10933_v31 = vld [vmem:[%s11547_s7 + $0x1a4] ss:$8 sps:$4 sm:$0xff]  }
 0x1da   : > { %v1755_v11 = vpop.f32.mrf.mxu1  ;;  %v2893_v9 = vpop.f32.mrf.mxu0 }
 0x1db   : > { %v12576_v62 = vadd.f32 %v2891_v58, %v1754_v42  ;;  %v1756_v56 = vadd.f32 %v1755_v11, %v12039_v37  ;;  %v10606_v58 = vld [vmem:[%s11547_s7 + $0x1e0] ss:$8 sps:$4 sm:$0xff]  }
 0x1dc   : > { %v1759_v46 = vpop.f32.mrf.mxu1  ;;  %1974 = vmatmul.mubr.bf16.gmra.mxu1 %v11983_v0  ;;  %v2897_v21 = vpop.f32.mrf.mxu0  ;;  %3112 = vmatmul.mubr.bf16.gmra.mxu0 %v10603_v25  ;;  %v10611_v25 = vld [vmem:[%s11547_s7 + $0x1f4] ss:$8 sps:$4 sm:$0xff]  }
 0x1dd   : > { %v12580_v26 = vadd.f32 %v2893_v9, %v1756_v56  ;;  %v1760_v48 = vadd.f32 %v1759_v46, %v12055_v49  ;;  %1981 = vmatprep.mubr.bf16.mxu1 %v10933_v31  ;;  %3119 = vmatprep.mubr.bf16.mxu0 %v10608_v34  ;;  %v10934_v56 = vld [vmem:[%s11547_s7 + $0x1a0] ss:$8 sps:$4 sm:$0xff]  }
 0x1de   : > { %v1761_v52 = vpop.f32.mrf.mxu1  ;;  %v2899_v54 = vpop.f32.mrf.mxu0 }
 0x1df   : > { %v12584_v40 = vadd.f32 %v2897_v21, %v1760_v48  ;;  %v1762_v37 = vadd.f32 %v1761_v52, %v12068_v59  ;;  %v10935_v21 = vld [vmem:[%s11547_s7 + $0x1b4] ss:$8 sps:$4 sm:$0xff]  }
 0x1e0   : > { %v1763_v44 = vpop.f32.mrf.mxu1  ;;  %v2901_v0 = vpop.f32.mrf.mxu0 }
 0x1e1   : > { %v12588_v42 = vadd.f32 %v2899_v54, %v1762_v37  ;;  %v10687_v54 = vld [vmem:[%s16770_s1 + $0x490] ss:$8 sps:$4 sm:$0xff]   ;;  %v10689_v37 = vld [vmem:[%s16770_s1 + $0x494] ss:$8 sps:$4 sm:$0xff]  }
 0x1e2   : > { %v1764_v11 = vpop.f32.mrf.mxu1  ;;  %v2902_v9 = vpop.f32.mrf.mxu0  ;;  %v10609_v0 = vld [vmem:[%s11547_s7 + $0x1f0] ss:$8 sps:$4 sm:$0xff]   ;;  %3716 = vmatprep.subr.bf16.mxu1 %v10689_v37 }
 0x1e3   : > { %v10620_v11 = vld [vmem:[%s11547_s7 + $0x204] ss:$8 sps:$4 sm:$0xff]   ;;  %3717 = vmatpush2.bf16.msra.mxu1 %v10687_v54 }
 0x1e4   : > { %v1767_v49 = vpop.f32.mrf.mxu1  ;;  %1982 = vmatmul.mubr.bf16.gmra.mxu1 %v10934_v56  ;;  %v2905_v34 = vpop.f32.mrf.mxu0  ;;  %3120 = vmatmul.mubr.bf16.gmra.mxu0 %v10606_v58  ;;  %v10690_v56 = vld [vmem:[%s16770_s1 + $0x190] ss:$8 sps:$4 sm:$0xff]   ;;  %v10937_v54 = vld [vmem:[%s11547_s7 + $0x1c4] ss:$8 sps:$4 sm:$0xff]  }
 0x1e5   : > { %v1768_v46 = vadd.f32 %v1767_v49, %v12096_v29  ;;  %1991 = vmatprep.mubr.bf16.mxu1 %v10935_v21  ;;  %3129 = vmatprep.mubr.bf16.mxu0 %v10611_v25  ;;  %v10936_v21 = vld [vmem:[%s11547_s7 + $0x1b0] ss:$8 sps:$4 sm:$0xff]  }
 0x1e6   : > { %v1769_v59 = vpop.f32.mrf.mxu1  ;;  %v2907_v48 = vpop.f32.mrf.mxu0 }
 0x1e7   : > { %v12594_v31 = vadd.f32 %v2905_v34, %v1768_v46  ;;  %v1770_v52 = vadd.f32 %v1769_v59, %v12110_v55  ;;  %v10692_v55 = vld [vmem:[%s16770_s1 + $0x194] ss:$8 sps:$4 sm:$0xff]  }
 0x1e8   : > { %v1771_v44 = vpop.f32.mrf.mxu1  ;;  %v2909_v29 = vpop.f32.mrf.mxu0  ;;  %4389 = vmatprep.subr.bf16.mxu0 %v10692_v55 }
 0x1e9   : > { %v12604_v58 = vadd.f32 %v2907_v48, %v1770_v52  ;;  %v1772_v25 = vadd.f32 %v1771_v44, %v12126_v6  ;;  %4390 = vmatpush2.bf16.msra.mxu0 %v10690_v56 }
 0x1ea   : > { %v1773_v9 = vpop.f32.mrf.mxu1  ;;  %v2911_v49 = vpop.f32.mrf.mxu0 }
 0x1eb   : > { %v12614_v34 = vadd.f32 %v2909_v29, %v1772_v25  ;;  %v1774_v46 = vadd.f32 %v1773_v9, %v12130_v8  ;;  %v10618_v9 = vld [vmem:[%s11547_s7 + $0x200] ss:$8 sps:$4 sm:$0xff]  }
 0x1ec   : > { %v1777_v6 = vpop.f32.mrf.mxu1  ;;  %1992 = vmatmul.mubr.bf16.gmra.mxu1 %v10936_v21  ;;  %v2915_v59 = vpop.f32.mrf.mxu0  ;;  %3130 = vmatmul.mubr.bf16.gmra.mxu0 %v10609_v0  ;;  %v10938_v21 = vld [vmem:[%s11547_s7 + $0x1c0] ss:$8 sps:$4 sm:$0xff]  }
 0x1ed   : > { %v12618_v48 = vadd.f32 %v2911_v49, %v1774_v46  ;;  %v1778_v52 = vadd.f32 %v1777_v6, %v12140_v27  ;;  %1999 = vmatprep.mubr.bf16.mxu1 %v10937_v54  ;;  %3137 = vmatprep.mubr.bf16.mxu0 %v10620_v11  ;;  %v10623_v49 = vld [vmem:[%s11547_s7 + $0x214] ss:$8 sps:$4 sm:$0xff]  }
 0x1ee   : > { %v1779_v37 = vpop.f32.mrf.mxu1  ;;  %v2917_v44 = vpop.f32.mrf.mxu0 }
 0x1ef   : > { %v12622_v8 = vadd.f32 %v2915_v59, %v1778_v52  ;;  %v1780_v29 = vadd.f32 %v1779_v37, %v12154_v2  ;;  %v10939_v59 = vld [vmem:[%s11547_s7 + $0x1d4] ss:$8 sps:$4 sm:$0xff]  }
 0x1f0   : > { %v1781_v25 = vpop.f32.mrf.mxu1  ;;  %v2919_v55 = vpop.f32.mrf.mxu0 }
 0x1f1   : > { %v12626_v0 = vadd.f32 %v2917_v44, %v1780_v29  ;;  %v10621_v25 = vld [vmem:[%s11547_s7 + $0x210] ss:$8 sps:$4 sm:$0xff]  }
 0x1f2   : > { %v1782_v46 = vpop.f32.mrf.mxu1  ;;  %v2920_v27 = vpop.f32.mrf.mxu0 }
 0x1f3   : > { %v10626_v46 = vld [vmem:[%s11547_s7 + $0x224] ss:$8 sps:$4 sm:$0xff]  }
 0x1f4   : > { %v1785_v6 = vpop.f32.mrf.mxu1  ;;  %2000 = vmatmul.mubr.bf16.gmra.mxu1 %v10938_v21  ;;  %v2923_v11 = vpop.f32.mrf.mxu0  ;;  %3138 = vmatmul.mubr.bf16.gmra.mxu0 %v10618_v9 }
 0x1f5   : > { %v1786_v56 = vadd.f32 %v1785_v6, %v12158_v63  ;;  %2009 = vmatprep.mubr.bf16.mxu1 %v10939_v59  ;;  %3147 = vmatprep.mubr.bf16.mxu0 %v10623_v49 }
 0x1f6   : > { %v1787_v2 = vpop.f32.mrf.mxu1  ;;  %v2925_v52 = vpop.f32.mrf.mxu0 }
 0x1f7   : > { %v12632_v54 = vadd.f32 %v2923_v11, %v1786_v56  ;;  %v1788_v37 = vadd.f32 %v1787_v2, %v12166_v17  ;;  %v10940_v11 = vld [vmem:[%s11547_s7 + $0x1d0] ss:$8 sps:$4 sm:$0xff]   ;;  %v10941_v2 = vld [vmem:[%s11547_s7 + $0x1e4] ss:$8 sps:$4 sm:$0xff]  }
 0x1f8   : > { %v1789_v44 = vpop.f32.mrf.mxu1  ;;  %v2927_v29 = vpop.f32.mrf.mxu0 }
 0x1f9   : > { %v12636_v55 = vadd.f32 %v2925_v52, %v1788_v37  ;;  %v1790_v9 = vadd.f32 %v1789_v44, %v12170_v41  ;;  %v16874_v44 = vld [vmem:[#allocation22_spill] sm:$0xff] }
 0x1fa   : > { %v1791_v63 = vpop.f32.mrf.mxu1  ;;  %v2929_v27 = vpop.f32.mrf.mxu0 }
 0x1fb   : > { %v12640_v6 = vadd.f32 %v2927_v29, %v1790_v9  ;;  %v1792_v49 = vadd.f32 %v1791_v63, %v12174_v5  ;;  %v10702_v29 = vld [vmem:[%s16770_s1 + $0x480] ss:$8 sps:$4 sm:$0xff]  }
 0x1fc   : > { %v1795_v21 = vpop.f32.mrf.mxu1  ;;  %2010 = vmatmul.mubr.bf16.gmra.mxu1 %v10940_v11  ;;  %v2933_v17 = vpop.f32.mrf.mxu0  ;;  %3148 = vmatmul.mubr.bf16.gmra.mxu0 %v10621_v25  ;;  %v10704_v25 = vld [vmem:[%s16770_s1 + $0x484] ss:$8 sps:$4 sm:$0xff]   ;;  %v10624_v63 = vld [vmem:[%s11547_s7 + $0x220] ss:$8 sps:$4 sm:$0xff]  }
 0x1fd   : > { %v12644_v56 = vadd.f32 %v2929_v27, %v1792_v49  ;;  %v1796_v59 = vadd.f32 %v1795_v21, %v12178_v15  ;;  %2017 = vmatprep.mubr.bf16.mxu1 %v10941_v2  ;;  %3155 = vmatprep.mubr.bf16.mxu0 %v10626_v46  ;;  %v10635_v27 = vld [vmem:[%s11547_s7 + $0x234] ss:$8 sps:$4 sm:$0xff]   ;;  %v10707_v49 = vld [vmem:[%s16770_s1 + $0x184] ss:$8 sps:$4 sm:$0xff]   ;;  %v10942_v2 = vld [vmem:[%s11547_s7 + $0x1e0] ss:$8 sps:$4 sm:$0xff]  }
 0x1fe   : > { %v1797_v41 = vpop.f32.mrf.mxu1  ;;  %v2935_v52 = vpop.f32.mrf.mxu0  ;;  %3718 = vmatprep.subr.bf16.mxu1 %v10704_v25  ;;  %4391 = vmatprep.subr.bf16.mxu0 %v10707_v49 }
 0x1ff   : > { %16872 = vst [vmem:[#allocation102_spill] sm:$0xff] %v12644_v56  ;;  %v12648_v37 = vadd.f32 %v2933_v17, %v1796_v59  ;;  %v1798_v5 = vadd.f32 %v1797_v41, %v16874_v44  ;;  %3719 = vmatpush2.bf16.msra.mxu1 %v10702_v29  ;;  %v10705_v17 = vld [vmem:[%s16770_s1 + $0x180] ss:$8 sps:$4 sm:$0xff]   ;;  %v10943_v44 = vld [vmem:[%s11547_s7 + $0x1f4] ss:$8 sps:$4 sm:$0xff]  }
 0x200   : > { %v1799_v9 = vpop.f32.mrf.mxu1  ;;  %v2937_v15 = vpop.f32.mrf.mxu0  ;;  %4392 = vmatpush2.bf16.msra.mxu0 %v10705_v17 }
 0x201   : > { %16873 = vst [vmem:[#allocation103_spill] sm:$0xff] %v12648_v37  ;;  %v12658_v46 = vadd.f32 %v2935_v52, %v1798_v5  ;;  %v16877_v9 = vld [vmem:[#allocation25_spill] sm:$0xff] }
 0x202   : > { %v1800_v21 = vpop.f32.mrf.mxu1  ;;  %v2938_v11 = vpop.f32.mrf.mxu0  ;;  %v16881_v37 = vld [vmem:[#allocation29_spill] sm:$0xff] }
 0x203   : > { %16875 = vst [vmem:[#allocation22_spill] sm:$0xff] %v12658_v46  ;;  %v10633_v11 = vld [vmem:[%s11547_s7 + $0x230] ss:$8 sps:$4 sm:$0xff]  }
 0x204   : > { %v1803_v59 = vpop.f32.mrf.mxu1  ;;  %2018 = vmatmul.mubr.bf16.gmra.mxu1 %v10942_v2  ;;  %v2941_v41 = vpop.f32.mrf.mxu0  ;;  %3156 = vmatmul.mubr.bf16.gmra.mxu0 %v10624_v63  ;;  %v16879_v63 = vld [vmem:[#allocation27_spill] sm:$0xff] }
 0x205   : > { %v1804_v52 = vadd.f32 %v1803_v59, %v12208_v13  ;;  %2027 = vmatprep.mubr.bf16.mxu1 %v10943_v44  ;;  %3165 = vmatprep.mubr.bf16.mxu0 %v10635_v27  ;;  %v10638_v13 = vld [vmem:[%s11547_s7 + $0x244] ss:$8 sps:$4 sm:$0xff]  }
 0x206   : > { %v1805_v5 = vpop.f32.mrf.mxu1  ;;  %v2943_v29 = vpop.f32.mrf.mxu0 }
 0x207   : > { %v12670_v25 = vadd.f32 %v2941_v41, %v1804_v52  ;;  %v1806_v15 = vadd.f32 %v1805_v5, %v16877_v9  ;;  %v10944_v41 = vld [vmem:[%s11547_s7 + $0x1f0] ss:$8 sps:$4 sm:$0xff]  }
 0x208   : > { %v1807_v49 = vpop.f32.mrf.mxu1  ;;  %v2945_v21 = vpop.f32.mrf.mxu0 }
 0x209   : > { %16876 = vst [vmem:[#allocation104_spill] sm:$0xff] %v12670_v25  ;;  %v12674_v2 = vadd.f32 %v2943_v29, %v1806_v15  ;;  %v1808_v46 = vadd.f32 %v1807_v49, %v16879_v63  ;;  %v16883_v29 = vld [vmem:[#allocation31_spill] sm:$0xff]  ;;  %v10945_v15 = vld [vmem:[%s11547_s7 + $0x204] ss:$8 sps:$4 sm:$0xff]  }
 0x20a   : > { %v1809_v59 = vpop.f32.mrf.mxu1  ;;  %v2947_v44 = vpop.f32.mrf.mxu0  ;;  %v11108_v25 = vld [vmem:[%s11547_s7 + $0x110] ss:$8 sps:$4 sm:$0xff]  }
 0x20b   : > { %16878 = vst [vmem:[#allocation25_spill] sm:$0xff] %v12674_v2  ;;  %v12678_v27 = vadd.f32 %v2945_v21, %v1808_v46  ;;  %v1810_v56 = vadd.f32 %v1809_v59, %v16881_v37 }
 0x20c   : > { %v1813_v17 = vpop.f32.mrf.mxu1  ;;  %2028 = vmatmul.mubr.bf16.gmra.mxu1 %v10944_v41  ;;  %v2951_v52 = vpop.f32.mrf.mxu0  ;;  %3166 = vmatmul.mubr.bf16.gmra.mxu0 %v10633_v11  ;;  %v10636_v41 = vld [vmem:[%s11547_s7 + $0x240] ss:$8 sps:$4 sm:$0xff]  }
 0x20d   : > { %16880 = vst [vmem:[#allocation27_spill] sm:$0xff] %v12678_v27  ;;  %v12682_v5 = vadd.f32 %v2947_v44, %v1810_v56  ;;  %v1814_v9 = vadd.f32 %v1813_v17, %v16883_v29  ;;  %2035 = vmatprep.mubr.bf16.mxu1 %v10945_v15  ;;  %3173 = vmatprep.mubr.bf16.mxu0 %v10638_v13  ;;  %v10641_v56 = vld [vmem:[%s11547_s7 + $0x254] ss:$8 sps:$4 sm:$0xff]   ;;  %v10946_v29 = vld [vmem:[%s11547_s7 + $0x200] ss:$8 sps:$4 sm:$0xff]  }
 0x20e   : > { %v1815_v49 = vpop.f32.mrf.mxu1  ;;  %v2953_v46 = vpop.f32.mrf.mxu0 }
 0x20f   : > { %16882 = vst [vmem:[#allocation29_spill] sm:$0xff] %v12682_v5  ;;  %v12686_v21 = vadd.f32 %v2951_v52, %v1814_v9  ;;  %v1816_v37 = vadd.f32 %v1815_v49, %v12236_v39  ;;  %v10947_v9 = vld [vmem:[%s11547_s7 + $0x214] ss:$8 sps:$4 sm:$0xff]  }
 0x210   : > { %v1817_v63 = vpop.f32.mrf.mxu1  ;;  %v2955_v59 = vpop.f32.mrf.mxu0 }
 0x211   : > { %16884 = vst [vmem:[#allocation31_spill] sm:$0xff] %v12686_v21  ;;  %v12690_v27 = vadd.f32 %v2953_v46, %v1816_v37  ;;  %v10716_v37 = vld [vmem:[%s16770_s1 + $0x774] ss:$8 sps:$4 sm:$0xff]  }
 0x212   : > { %v1818_v11 = vpop.f32.mrf.mxu1  ;;  %v2956_v44 = vpop.f32.mrf.mxu0  ;;  %5067 = vmatprep.subr.bf16.mxu1 %v10716_v37 }
 0x213   : > { %16885 = vst [vmem:[#allocation105_spill] sm:$0xff] %v12690_v27  ;;  %v10639_v11 = vld [vmem:[%s11547_s7 + $0x250] ss:$8 sps:$4 sm:$0xff]   ;;  %v10719_v44 = vld [vmem:[%s16770_s1 + $0x574] ss:$8 sps:$4 sm:$0xff]  }
 0x214   : > { %v1821_v17 = vpop.f32.mrf.mxu1  ;;  %2036 = vmatmul.mubr.bf16.gmra.mxu1 %v10946_v29  ;;  %v2959_v13 = vpop.f32.mrf.mxu0  ;;  %3174 = vmatmul.mubr.bf16.gmra.mxu0 %v10636_v41 }
 0x215   : > { %v1822_v52 = vadd.f32 %v1821_v17, %v12240_v19  ;;  %2045 = vmatprep.mubr.bf16.mxu1 %v10947_v9  ;;  %3183 = vmatprep.mubr.bf16.mxu0 %v10641_v56  ;;  %v10650_v56 = vld [vmem:[%s11547_s7 + $0x264] ss:$8 sps:$4 sm:$0xff]   ;;  %v10948_v9 = vld [vmem:[%s11547_s7 + $0x210] ss:$8 sps:$4 sm:$0xff]  }
 0x216   : > { %v1823_v39 = vpop.f32.mrf.mxu1  ;;  %v2961_v15 = vpop.f32.mrf.mxu0  ;;  %5998 = vmatprep.subr.bf16.mxu0 %v10719_v44 }
 0x217   : > { %v12696_v49 = vadd.f32 %v2959_v13, %v1822_v52  ;;  %v1824_v46 = vadd.f32 %v1823_v39, %v12246_v7 }
 0x218   : > { %v1825_v63 = vpop.f32.mrf.mxu1  ;;  %v2963_v59 = vpop.f32.mrf.mxu0 }
 0x219   : > { %16886 = vst [vmem:[#allocation106_spill] sm:$0xff] %v12696_v49  ;;  %v12703_v41 = vadd.f32 %v2961_v15, %v1824_v46  ;;  %v1826_v19 = vadd.f32 %v1825_v63, %v12256_v23  ;;  %v10949_v46 = vld [vmem:[%s11547_s7 + $0x224] ss:$8 sps:$4 sm:$0xff]  }
 0x21a   : > { %v1827_v7 = vpop.f32.mrf.mxu1  ;;  %v2965_v17 = vpop.f32.mrf.mxu0 }
 0x21b   : > { %16887 = vst [vmem:[#allocation107_spill] sm:$0xff] %v12703_v41  ;;  %v12710_v29 = vadd.f32 %v2963_v59, %v1826_v19  ;;  %v1828_v13 = vadd.f32 %v1827_v7, %v12263_v14  ;;  %v10648_v7 = vld [vmem:[%s11547_s7 + $0x260] ss:$8 sps:$4 sm:$0xff]  }
 0x21c   : > { %v1831_v52 = vpop.f32.mrf.mxu1  ;;  %2046 = vmatmul.mubr.bf16.gmra.mxu1 %v10948_v9  ;;  %v2969_v23 = vpop.f32.mrf.mxu0  ;;  %3184 = vmatmul.mubr.bf16.gmra.mxu0 %v10639_v11  ;;  %v10653_v11 = vld [vmem:[%s11547_s7 + $0x274] ss:$8 sps:$4 sm:$0xff]  }
 0x21d   : > { %16888 = vst [vmem:[#allocation108_spill] sm:$0xff] %v12710_v29  ;;  %v12714_v39 = vadd.f32 %v2965_v17, %v1828_v13  ;;  %v1832_v15 = vadd.f32 %v1831_v52, %v12270_v4  ;;  %2053 = vmatprep.mubr.bf16.mxu1 %v10949_v46  ;;  %3191 = vmatprep.mubr.bf16.mxu0 %v10650_v56  ;;  %v10950_v52 = vld [vmem:[%s11547_s7 + $0x220] ss:$8 sps:$4 sm:$0xff]  }
 0x21e   : > { %v1833_v37 = vpop.f32.mrf.mxu1  ;;  %v2971_v63 = vpop.f32.mrf.mxu0 }
 0x21f   : > { %16889 = vst [vmem:[#allocation109_spill] sm:$0xff] %v12714_v39  ;;  %v12718_v14 = vadd.f32 %v2969_v23, %v1832_v15  ;;  %v1834_v59 = vadd.f32 %v1833_v37, %v12278_v51  ;;  %v10951_v15 = vld [vmem:[%s11547_s7 + $0x234] ss:$8 sps:$4 sm:$0xff]  }
 0x220   : > { %v1835_v19 = vpop.f32.mrf.mxu1  ;;  %v2973_v44 = vpop.f32.mrf.mxu0 }
 0x221   : > { %16890 = vst [vmem:[#allocation110_spill] sm:$0xff] %v12718_v14  ;;  %v12722_v9 = vadd.f32 %v2971_v63, %v1834_v59  ;;  %v10651_v44 = vld [vmem:[%s11547_s7 + $0x270] ss:$8 sps:$4 sm:$0xff]   ;;  %v11043_v14 = vld [vmem:[%s11547_s7 + $0x214] ss:$8 sps:$4 sm:$0xff]  }
 0x222   : > { %v1836_v17 = vpop.f32.mrf.mxu1  ;;  %v2974_v13 = vpop.f32.mrf.mxu0 }
 0x223   : > { %16891 = vst [vmem:[#allocation111_spill] sm:$0xff] %v12722_v9  ;;  %v10656_v13 = vld [vmem:[%s11547_s7 + $0x284] ss:$8 sps:$4 sm:$0xff]  }
 0x224   : > { %v1839_v4 = vpop.f32.mrf.mxu1  ;;  %2054 = vmatmul.mubr.bf16.gmra.mxu1 %v10950_v52  ;;  %v2977_v56 = vpop.f32.mrf.mxu0  ;;  %3192 = vmatmul.mubr.bf16.gmra.mxu0 %v10648_v7 }
 0x225   : > { %v1840_v23 = vadd.f32 %v1839_v4, %v12282_v35  ;;  %2063 = vmatprep.mubr.bf16.mxu1 %v10951_v15  ;;  %3201 = vmatprep.mubr.bf16.mxu0 %v10653_v11 }
 0x226   : > { %v1841_v51 = vpop.f32.mrf.mxu1  ;;  %v2979_v46 = vpop.f32.mrf.mxu0 }
 0x227   : > { %v12728_v37 = vadd.f32 %v2977_v56, %v1840_v23  ;;  %v1842_v63 = vadd.f32 %v1841_v51, %v12288_v16  ;;  %v10952_v56 = vld [vmem:[%s11547_s7 + $0x230] ss:$8 sps:$4 sm:$0xff]  }
 0x228   : > { %v1843_v59 = vpop.f32.mrf.mxu1  ;;  %v2981_v19 = vpop.f32.mrf.mxu0 }
 0x229   : > { %16892 = vst [vmem:[#allocation112_spill] sm:$0xff] %v12728_v37  ;;  %v12732_v17 = vadd.f32 %v2979_v46, %v1842_v63  ;;  %v1844_v7 = vadd.f32 %v1843_v59, %v12292_v45  ;;  %v10953_v45 = vld [vmem:[%s11547_s7 + $0x244] ss:$8 sps:$4 sm:$0xff]  }
 0x22a   : > { %v1845_v35 = vpop.f32.mrf.mxu1  ;;  %v2983_v4 = vpop.f32.mrf.mxu0 }
 0x22b   : > { %16893 = vst [vmem:[#allocation113_spill] sm:$0xff] %v12732_v17  ;;  %v12736_v52 = vadd.f32 %v2981_v19, %v1844_v7  ;;  %v1846_v11 = vadd.f32 %v1845_v35, %v12296_v57  ;;  %v10654_v35 = vld [vmem:[%s11547_s7 + $0x280] ss:$8 sps:$4 sm:$0xff]  }
 0x22c   : > { %v1849_v15 = vpop.f32.mrf.mxu1  ;;  %2064 = vmatmul.mubr.bf16.gmra.mxu1 %v10952_v56  ;;  %v2987_v16 = vpop.f32.mrf.mxu0  ;;  %3202 = vmatmul.mubr.bf16.gmra.mxu0 %v10651_v44  ;;  %v10665_v44 = vld [vmem:[%s11547_s7 + $0x294] ss:$8 sps:$4 sm:$0xff]  }
 0x22d   : > { %16894 = vst [vmem:[#allocation114_spill] sm:$0xff] %v12736_v52  ;;  %v12740_v23 = vadd.f32 %v2983_v4, %v1846_v11  ;;  %v1850_v51 = vadd.f32 %v1849_v15, %v12300_v61  ;;  %2071 = vmatprep.mubr.bf16.mxu1 %v10953_v45  ;;  %3209 = vmatprep.mubr.bf16.mxu0 %v10656_v13  ;;  %v10954_v15 = vld [vmem:[%s11547_s7 + $0x240] ss:$8 sps:$4 sm:$0xff]  }
 0x22e   : > { %v1851_v46 = vpop.f32.mrf.mxu1  ;;  %v2989_v63 = vpop.f32.mrf.mxu0 }
 0x22f   : > { %16895 = vst [vmem:[#allocation115_spill] sm:$0xff] %v12740_v23  ;;  %v12744_v59 = vadd.f32 %v2987_v16, %v1850_v51  ;;  %v1852_v57 = vadd.f32 %v1851_v46, %v12307_v22  ;;  %v10955_v51 = vld [vmem:[%s11547_s7 + $0x254] ss:$8 sps:$4 sm:$0xff]  }
 0x230   : > { %v1853_v19 = vpop.f32.mrf.mxu1  ;;  %v2991_v7 = vpop.f32.mrf.mxu0 }
 0x231   : > { %16896 = vst [vmem:[#allocation116_spill] sm:$0xff] %v12744_v59  ;;  %v12748_v56 = vadd.f32 %v2989_v63, %v1852_v57  ;;  %v16899_v63 = vld [vmem:[#allocation47_spill] sm:$0xff] }
 0x232   : > { %v1854_v4 = vpop.f32.mrf.mxu1  ;;  %v2992_v11 = vpop.f32.mrf.mxu0 }
 0x233   : > { %16897 = vst [vmem:[#allocation117_spill] sm:$0xff] %v12748_v56  ;;  %v10663_v4 = vld [vmem:[%s11547_s7 + $0x290] ss:$8 sps:$4 sm:$0xff]   ;;  %v10668_v56 = vld [vmem:[%s11547_s7 + $0x2a4] ss:$8 sps:$4 sm:$0xff]  }
 0x234   : > { %v1857_v61 = vpop.f32.mrf.mxu1  ;;  %2072 = vmatmul.mubr.bf16.gmra.mxu1 %v10954_v15  ;;  %v2995_v13 = vpop.f32.mrf.mxu0  ;;  %3210 = vmatmul.mubr.bf16.gmra.mxu0 %v10654_v35  ;;  %v16901_v15 = vld [vmem:[#allocation49_spill] sm:$0xff] }
 0x235   : > { %v1858_v16 = vadd.f32 %v1857_v61, %v12323_v18  ;;  %2081 = vmatprep.mubr.bf16.mxu1 %v10955_v51  ;;  %3219 = vmatprep.mubr.bf16.mxu0 %v10665_v44  ;;  %v16903_v44 = vld [vmem:[#allocation51_spill] sm:$0xff] }
 0x236   : > { %v1859_v22 = vpop.f32.mrf.mxu1  ;;  %v2997_v45 = vpop.f32.mrf.mxu0 }
 0x237   : > { %v12754_v46 = vadd.f32 %v2995_v13, %v1858_v16  ;;  %v1860_v57 = vadd.f32 %v1859_v22, %v16899_v63  ;;  %v10956_v13 = vld [vmem:[%s11547_s7 + $0x250] ss:$8 sps:$4 sm:$0xff]  }
 0x238   : > { %v1861_v19 = vpop.f32.mrf.mxu1  ;;  %v2999_v7 = vpop.f32.mrf.mxu0 }
 0x239   : > { %16898 = vst [vmem:[#allocation118_spill] sm:$0xff] %v12754_v46  ;;  %v12758_v11 = vadd.f32 %v2997_v45, %v1860_v57  ;;  %v1862_v35 = vadd.f32 %v1861_v19, %v16901_v15  ;;  %v16905_v45 = vld [vmem:[#allocation53_spill] sm:$0xff] }
 0x23a   : > { %v1863_v18 = vpop.f32.mrf.mxu1  ;;  %v3001_v61 = vpop.f32.mrf.mxu0  ;;  %v10957_v57 = vld [vmem:[%s11547_s7 + $0x264] ss:$8 sps:$4 sm:$0xff]  }
 0x23b   : > { %16900 = vst [vmem:[#allocation47_spill] sm:$0xff] %v12758_v11  ;;  %v12762_v51 = vadd.f32 %v2999_v7, %v1862_v35  ;;  %v1864_v59 = vadd.f32 %v1863_v18, %v16903_v44  ;;  %v16907_v35 = vld [vmem:[#allocation55_spill] sm:$0xff] }
 0x23c   : > { %v1867_v23 = vpop.f32.mrf.mxu1  ;;  %2082 = vmatmul.mubr.bf16.gmra.mxu1 %v10956_v13  ;;  %v3005_v16 = vpop.f32.mrf.mxu0  ;;  %3220 = vmatmul.mubr.bf16.gmra.mxu0 %v10663_v4 }
 0x23d   : > { %16902 = vst [vmem:[#allocation49_spill] sm:$0xff] %v12762_v51  ;;  %v12766_v22 = vadd.f32 %v3001_v61, %v1864_v59  ;;  %v1868_v63 = vadd.f32 %v1867_v23, %v16905_v45  ;;  %2089 = vmatprep.mubr.bf16.mxu1 %v10957_v57  ;;  %3227 = vmatprep.mubr.bf16.mxu0 %v10668_v56  ;;  %v10666_v51 = vld [vmem:[%s11547_s7 + $0x2a0] ss:$8 sps:$4 sm:$0xff]   ;;  %v10671_v59 = vld [vmem:[%s11547_s7 + $0x2b4] ss:$8 sps:$4 sm:$0xff]  }
 0x23e   : > { %v1869_v19 = vpop.f32.mrf.mxu1  ;;  %v3007_v7 = vpop.f32.mrf.mxu0  ;;  %v10958_v45 = vld [vmem:[%s11547_s7 + $0x260] ss:$8 sps:$4 sm:$0xff]  }
 0x23f   : > { %16904 = vst [vmem:[#allocation51_spill] sm:$0xff] %v12766_v22  ;;  %v12770_v15 = vadd.f32 %v3005_v16, %v1868_v63  ;;  %v1870_v18 = vadd.f32 %v1869_v19, %v16907_v35  ;;  %v10959_v63 = vld [vmem:[%s11547_s7 + $0x274] ss:$8 sps:$4 sm:$0xff]  }
 0x240   : > { %v1871_v44 = vpop.f32.mrf.mxu1  ;;  %v3009_v13 = vpop.f32.mrf.mxu0 }
 0x241   : > { %16906 = vst [vmem:[#allocation53_spill] sm:$0xff] %v12770_v15  ;;  %v12774_v11 = vadd.f32 %v3007_v7, %v1870_v18  ;;  %v10669_v13 = vld [vmem:[%s11547_s7 + $0x2b0] ss:$8 sps:$4 sm:$0xff]  }
 0x242   : > { %v1872_v4 = vpop.f32.mrf.mxu1  ;;  %v3010_v61 = vpop.f32.mrf.mxu0 }
 0x243   : > { %16908 = vst [vmem:[#allocation55_spill] sm:$0xff] %v12774_v11  ;;  %v16911_v61 = vld [vmem:[#allocation59_spill] sm:$0xff] }
 0x244   : > { %v1875_v23 = vpop.f32.mrf.mxu1  ;;  %2090 = vmatmul.mubr.bf16.gmra.mxu1 %v10958_v45  ;;  %v3013_v56 = vpop.f32.mrf.mxu0  ;;  %3228 = vmatmul.mubr.bf16.gmra.mxu0 %v10666_v51  ;;  %v10680_v45 = vld [vmem:[%s11547_s7 + $0x2c4] ss:$8 sps:$4 sm:$0xff]  }
 0x245   : > { %v1876_v16 = vadd.f32 %v1875_v23, %v12355_v33  ;;  %2099 = vmatprep.mubr.bf16.mxu1 %v10959_v63  ;;  %3237 = vmatprep.mubr.bf16.mxu0 %v10671_v59  ;;  %v16913_v59 = vld [vmem:[#allocation61_spill] sm:$0xff] }
 0x246   : > { %v1877_v57 = vpop.f32.mrf.mxu1  ;;  %v3015_v19 = vpop.f32.mrf.mxu0 }
 0x247   : > { %v12780_v7 = vadd.f32 %v3013_v56, %v1876_v16  ;;  %v1878_v35 = vadd.f32 %v1877_v57, %v12363_v3  ;;  %v10960_v56 = vld [vmem:[%s11547_s7 + $0x270] ss:$8 sps:$4 sm:$0xff]  }
 0x248   : > { %v1879_v18 = vpop.f32.mrf.mxu1  ;;  %v3017_v44 = vpop.f32.mrf.mxu0  ;;  %v16915_v57 = vld [vmem:[#allocation63_spill] sm:$0xff] }
 0x249   : > { %16909 = vst [vmem:[#allocation119_spill] sm:$0xff] %v12780_v7  ;;  %v12784_v4 = vadd.f32 %v3015_v19, %v1878_v35  ;;  %v1880_v51 = vadd.f32 %v1879_v18, %v16911_v61  ;;  %v10961_v35 = vld [vmem:[%s11547_s7 + $0x284] ss:$8 sps:$4 sm:$0xff]  }
 0x24a   : > { %v1881_v33 = vpop.f32.mrf.mxu1  ;;  %v3019_v23 = vpop.f32.mrf.mxu0 }
 0x24b   : > { %16910 = vst [vmem:[#allocation120_spill] sm:$0xff] %v12784_v4  ;;  %v12788_v63 = vadd.f32 %v3017_v44, %v1880_v51  ;;  %v1882_v11 = vadd.f32 %v1881_v33, %v16913_v59 }
 0x24c   : > { %v1885_v15 = vpop.f32.mrf.mxu1  ;;  %2100 = vmatmul.mubr.bf16.gmra.mxu1 %v10960_v56  ;;  %v3023_v3 = vpop.f32.mrf.mxu0  ;;  %3238 = vmatmul.mubr.bf16.gmra.mxu0 %v10669_v13  ;;  %v10678_v56 = vld [vmem:[%s11547_s7 + $0x2c0] ss:$8 sps:$4 sm:$0xff]  }
 0x24d   : > { %16912 = vst [vmem:[#allocation59_spill] sm:$0xff] %v12788_v63  ;;  %v12792_v16 = vadd.f32 %v3019_v23, %v1882_v11  ;;  %v1886_v19 = vadd.f32 %v1885_v15, %v16915_v57  ;;  %2107 = vmatprep.mubr.bf16.mxu1 %v10961_v35  ;;  %3245 = vmatprep.mubr.bf16.mxu0 %v10680_v45  ;;  %v10683_v11 = vld [vmem:[%s11547_s7 + $0x2d4] ss:$8 sps:$4 sm:$0xff]   ;;  %v10962_v57 = vld [vmem:[%s11547_s7 + $0x280] ss:$8 sps:$4 sm:$0xff]  }
 0x24e   : > { %v1887_v18 = vpop.f32.mrf.mxu1  ;;  %v3025_v44 = vpop.f32.mrf.mxu0 }
 0x24f   : > { %16914 = vst [vmem:[#allocation61_spill] sm:$0xff] %v12792_v16  ;;  %v12796_v61 = vadd.f32 %v3023_v3, %v1886_v19  ;;  %v1888_v51 = vadd.f32 %v1887_v18, %v12395_v10  ;;  %v10963_v19 = vld [vmem:[%s11547_s7 + $0x294] ss:$8 sps:$4 sm:$0xff]  }
 0x250   : > { %v1889_v33 = vpop.f32.mrf.mxu1  ;;  %v3027_v59 = vpop.f32.mrf.mxu0 }
 0x251   : > { %16916 = vst [vmem:[#allocation63_spill] sm:$0xff] %v12796_v61  ;;  %v12800_v63 = vadd.f32 %v3025_v44, %v1888_v51  ;;  %v10681_v59 = vld [vmem:[%s11547_s7 + $0x2d0] ss:$8 sps:$4 sm:$0xff]  }
 0x252   : > { %v1890_v13 = vpop.f32.mrf.mxu1  ;;  %v3028_v23 = vpop.f32.mrf.mxu0 }
 0x253   : > { %16917 = vst [vmem:[#allocation121_spill] sm:$0xff] %v12800_v63  ;;  %v10686_v23 = vld [vmem:[%s11547_s7 + $0x2e4] ss:$8 sps:$4 sm:$0xff]  }
 0x254   : > { %v1893_v15 = vpop.f32.mrf.mxu1  ;;  %2108 = vmatmul.mubr.bf16.gmra.mxu1 %v10962_v57  ;;  %v3031_v45 = vpop.f32.mrf.mxu0  ;;  %3246 = vmatmul.mubr.bf16.gmra.mxu0 %v10678_v56 }
 0x255   : > { %v1894_v3 = vadd.f32 %v1893_v15, %v12399_v47  ;;  %2117 = vmatprep.mubr.bf16.mxu1 %v10963_v19  ;;  %3255 = vmatprep.mubr.bf16.mxu0 %v10683_v11 }
 0x256   : > { %v1895_v10 = vpop.f32.mrf.mxu1  ;;  %v3033_v35 = vpop.f32.mrf.mxu0 }
 0x257   : > { %v12806_v18 = vadd.f32 %v3031_v45, %v1894_v3  ;;  %v1896_v44 = vadd.f32 %v1895_v10, %v12407_v24  ;;  %v10964_v45 = vld [vmem:[%s11547_s7 + $0x290] ss:$8 sps:$4 sm:$0xff]   ;;  %v16922_v10 = vld [vmem:[#allocation70_spill] sm:$0xff] }
 0x258   : > { %v1897_v51 = vpop.f32.mrf.mxu1  ;;  %v3035_v33 = vpop.f32.mrf.mxu0 }
 0x259   : > { %16918 = vst [vmem:[#allocation122_spill] sm:$0xff] %v12806_v18  ;;  %v12810_v13 = vadd.f32 %v3033_v35, %v1896_v44  ;;  %v1898_v56 = vadd.f32 %v1897_v51, %v12411_v1  ;;  %v10965_v1 = vld [vmem:[%s11547_s7 + $0x2a4] ss:$8 sps:$4 sm:$0xff]  }
 0x25a   : > { %v1899_v47 = vpop.f32.mrf.mxu1  ;;  %v3037_v15 = vpop.f32.mrf.mxu0  ;;  %v11037_v18 = vld [vmem:[%s11547_s7 + $0x1e4] ss:$8 sps:$4 sm:$0xff]  }
 0x25b   : > { %16919 = vst [vmem:[#allocation123_spill] sm:$0xff] %v12810_v13  ;;  %v12814_v57 = vadd.f32 %v3035_v33, %v1898_v56  ;;  %v1900_v11 = vadd.f32 %v1899_v47, %v12415_v12  ;;  %v16924_v12 = vld [vmem:[#allocation72_spill] sm:$0xff] }
 0x25c   : > { %v1903_v19 = vpop.f32.mrf.mxu1  ;;  %2118 = vmatmul.mubr.bf16.gmra.mxu1 %v10964_v45  ;;  %v3041_v24 = vpop.f32.mrf.mxu0  ;;  %3256 = vmatmul.mubr.bf16.gmra.mxu0 %v10681_v59  ;;  %v10695_v59 = vld [vmem:[%s11547_s7 + $0x2f4] ss:$8 sps:$4 sm:$0xff]  }
 0x25d   : > { %16920 = vst [vmem:[#allocation124_spill] sm:$0xff] %v12814_v57  ;;  %v12818_v3 = vadd.f32 %v3037_v15, %v1900_v11  ;;  %v1904_v35 = vadd.f32 %v1903_v19, %v16922_v10  ;;  %2125 = vmatprep.mubr.bf16.mxu1 %v10965_v1  ;;  %3263 = vmatprep.mubr.bf16.mxu0 %v10686_v23  ;;  %v10684_v57 = vld [vmem:[%s11547_s7 + $0x2e0] ss:$8 sps:$4 sm:$0xff]  }
 0x25e   : > { %v1905_v44 = vpop.f32.mrf.mxu1  ;;  %v3043_v51 = vpop.f32.mrf.mxu0  ;;  %v10966_v10 = vld [vmem:[%s11547_s7 + $0x2a0] ss:$8 sps:$4 sm:$0xff]  }
 0x25f   : > { %16921 = vst [vmem:[#allocation125_spill] sm:$0xff] %v12818_v3  ;;  %v12822_v33 = vadd.f32 %v3041_v24, %v1904_v35  ;;  %v1906_v56 = vadd.f32 %v1905_v44, %v16924_v12  ;;  %v10967_v35 = vld [vmem:[%s11547_s7 + $0x2b4] ss:$8 sps:$4 sm:$0xff]  }
 0x260   : > { %v1907_v47 = vpop.f32.mrf.mxu1  ;;  %v3045_v45 = vpop.f32.mrf.mxu0 }
 0x261   : > { %16923 = vst [vmem:[#allocation70_spill] sm:$0xff] %v12822_v33  ;;  %v12826_v13 = vadd.f32 %v3043_v51, %v1906_v56  ;;  %v10693_v45 = vld [vmem:[%s11547_s7 + $0x2f0] ss:$8 sps:$4 sm:$0xff]  }
 0x262   : > { %v1908_v15 = vpop.f32.mrf.mxu1  ;;  %v3046_v11 = vpop.f32.mrf.mxu0 }
 0x263   : > { %16925 = vst [vmem:[#allocation72_spill] sm:$0xff] %v12826_v13  ;;  %v10698_v11 = vld [vmem:[%s11547_s7 + $0x304] ss:$8 sps:$4 sm:$0xff]  }
 0x264   : > { %v1911_v19 = vpop.f32.mrf.mxu1  ;;  %2126 = vmatmul.mubr.bf16.gmra.mxu1 %v10966_v10  ;;  %v3049_v23 = vpop.f32.mrf.mxu0  ;;  %3264 = vmatmul.mubr.bf16.gmra.mxu0 %v10684_v57 }
 0x265   : > { %v1912_v24 = vadd.f32 %v1911_v19, %v12443_v30  ;;  %2135 = vmatprep.mubr.bf16.mxu1 %v10967_v35  ;;  %3273 = vmatprep.mubr.bf16.mxu0 %v10695_v59 }
 0x266   : > { %v1913_v1 = vpop.f32.mrf.mxu1  ;;  %v3051_v44 = vpop.f32.mrf.mxu0 }
 0x267   : > { %v12832_v51 = vadd.f32 %v3049_v23, %v1912_v24  ;;  %v1914_v12 = vadd.f32 %v1913_v1, %v12451_v20  ;;  %v10968_v23 = vld [vmem:[%s11547_s7 + $0x2b0] ss:$8 sps:$4 sm:$0xff]   ;;  %v16930_v1 = vld [vmem:[#allocation78_spill] sm:$0xff] }
 0x268   : > { %v1915_v56 = vpop.f32.mrf.mxu1  ;;  %v3053_v47 = vpop.f32.mrf.mxu0 }
 0x269   : > { %16926 = vst [vmem:[#allocation126_spill] sm:$0xff] %v12832_v51  ;;  %v12836_v15 = vadd.f32 %v3051_v44, %v1914_v12  ;;  %v1916_v57 = vadd.f32 %v1915_v56, %v12455_v53  ;;  %v10969_v53 = vld [vmem:[%s11547_s7 + $0x2c4] ss:$8 sps:$4 sm:$0xff]   ;;  %v10991_v51 = vld [vmem:[%s11547_s7 + $0x74] ss:$8 sps:$4 sm:$0xff]  }
 0x26a   : > { %v1917_v30 = vpop.f32.mrf.mxu1  ;;  %v3055_v19 = vpop.f32.mrf.mxu0 }
 0x26b   : > { %16927 = vst [vmem:[#allocation127_spill] sm:$0xff] %v12836_v15  ;;  %v12840_v10 = vadd.f32 %v3053_v47, %v1916_v57  ;;  %v1918_v59 = vadd.f32 %v1917_v30, %v12459_v28 }
 0x26c   : > { %v1921_v35 = vpop.f32.mrf.mxu1  ;;  %2136 = vmatmul.mubr.bf16.gmra.mxu1 %v10968_v23  ;;  %v3059_v20 = vpop.f32.mrf.mxu0  ;;  %3274 = vmatmul.mubr.bf16.gmra.mxu0 %v10693_v45  ;;  %v10696_v23 = vld [vmem:[%s11547_s7 + $0x300] ss:$8 sps:$4 sm:$0xff]   ;;  %v10701_v45 = vld [vmem:[%s11547_s7 + $0x314] ss:$8 sps:$4 sm:$0xff]  }
 0x26d   : > { %16928 = vst [vmem:[#allocation128_spill] sm:$0xff] %v12840_v10  ;;  %v12844_v24 = vadd.f32 %v3055_v19, %v1918_v59  ;;  %v1922_v44 = vadd.f32 %v1921_v35, %v16930_v1  ;;  %2143 = vmatprep.mubr.bf16.mxu1 %v10969_v53  ;;  %3281 = vmatprep.mubr.bf16.mxu0 %v10698_v11  ;;  %v10970_v1 = vld [vmem:[%s11547_s7 + $0x2c0] ss:$8 sps:$4 sm:$0xff]  }
 0x26e   : > { %v1923_v12 = vpop.f32.mrf.mxu1  ;;  %v3061_v56 = vpop.f32.mrf.mxu0  ;;  %v16933_v53 = vld [vmem:[#allocation81_spill] sm:$0xff] }
 0x26f   : > { %16929 = vst [vmem:[#allocation129_spill] sm:$0xff] %v12844_v24  ;;  %v12848_v47 = vadd.f32 %v3059_v20, %v1922_v44  ;;  %v1924_v28 = vadd.f32 %v1923_v12, %v12471_v38  ;;  %v10971_v44 = vld [vmem:[%s11547_s7 + $0x2d4] ss:$8 sps:$4 sm:$0xff]  }
 0x270   : > { %v1925_v57 = vpop.f32.mrf.mxu1  ;;  %v3063_v30 = vpop.f32.mrf.mxu0 }
 0x271   : > { %16931 = vst [vmem:[#allocation78_spill] sm:$0xff] %v12848_v47  ;;  %v12852_v10 = vadd.f32 %v3061_v56, %v1924_v28  ;;  %v16935_v28 = vld [vmem:[#allocation83_spill] sm:$0xff]  ;;  %v10710_v47 = vld [vmem:[%s11547_s7 + $0x324] ss:$8 sps:$4 sm:$0xff]  }
 0x272   : > { %v1926_v19 = vpop.f32.mrf.mxu1  ;;  %v3064_v59 = vpop.f32.mrf.mxu0 }
 0x273   : > { %16932 = vst [vmem:[#allocation130_spill] sm:$0xff] %v12852_v10  ;;  %v10699_v59 = vld [vmem:[%s11547_s7 + $0x310] ss:$8 sps:$4 sm:$0xff]   ;;  %v16937_v10 = vld [vmem:[#allocation85_spill] sm:$0xff] }
 0x274   : > { %v1929_v35 = vpop.f32.mrf.mxu1  ;;  %2144 = vmatmul.mubr.bf16.gmra.mxu1 %v10970_v1  ;;  %v3067_v11 = vpop.f32.mrf.mxu0  ;;  %3282 = vmatmul.mubr.bf16.gmra.mxu0 %v10696_v23 }
 0x275   : > { %v1930_v20 = vadd.f32 %v1929_v35, %v16933_v53  ;;  %2153 = vmatprep.mubr.bf16.mxu1 %v10971_v44  ;;  %3291 = vmatprep.mubr.bf16.mxu0 %v10701_v45  ;;  %v16939_v45 = vld [vmem:[#allocation87_spill] sm:$0xff] }
 0x276   : > { %v1931_v38 = vpop.f32.mrf.mxu1  ;;  %v3069_v12 = vpop.f32.mrf.mxu0 }
 0x277   : > { %v12858_v56 = vadd.f32 %v3067_v11, %v1930_v20  ;;  %v1932_v57 = vadd.f32 %v1931_v38, %v16935_v28  ;;  %v10972_v11 = vld [vmem:[%s11547_s7 + $0x2d0] ss:$8 sps:$4 sm:$0xff]  }
 0x278   : > { %v1933_v30 = vpop.f32.mrf.mxu1  ;;  %v3071_v19 = vpop.f32.mrf.mxu0 }
 0x279   : > { %16934 = vst [vmem:[#allocation81_spill] sm:$0xff] %v12858_v56  ;;  %v12862_v1 = vadd.f32 %v3069_v12, %v1932_v57  ;;  %v1934_v23 = vadd.f32 %v1933_v30, %v16937_v10  ;;  %v16941_v12 = vld [vmem:[#allocation89_spill] sm:$0xff] }
 0x27a   : > { %v1935_v35 = vpop.f32.mrf.mxu1  ;;  %v3073_v53 = vpop.f32.mrf.mxu0  ;;  %v10973_v10 = vld [vmem:[%s11547_s7 + $0x2e4] ss:$8 sps:$4 sm:$0xff]  }
 0x27b   : > { %16936 = vst [vmem:[#allocation83_spill] sm:$0xff] %v12862_v1  ;;  %v12866_v44 = vadd.f32 %v3071_v19, %v1934_v23  ;;  %v1936_v24 = vadd.f32 %v1935_v35, %v16939_v45 }
 0x27c   : > { %v1939_v15 = vpop.f32.mrf.mxu1  ;;  %2154 = vmatmul.mubr.bf16.gmra.mxu1 %v10972_v11  ;;  %v3077_v20 = vpop.f32.mrf.mxu0  ;;  %3292 = vmatmul.mubr.bf16.gmra.mxu0 %v10699_v59  ;;  %v10708_v11 = vld [vmem:[%s11547_s7 + $0x320] ss:$8 sps:$4 sm:$0xff]  }
 0x27d   : > { %16938 = vst [vmem:[#allocation85_spill] sm:$0xff] %v12866_v44  ;;  %v12870_v38 = vadd.f32 %v3073_v53, %v1936_v24  ;;  %v1940_v28 = vadd.f32 %v1939_v15, %v16941_v12  ;;  %2161 = vmatprep.mubr.bf16.mxu1 %v10973_v10  ;;  %3299 = vmatprep.mubr.bf16.mxu0 %v10710_v47  ;;  %v10713_v24 = vld [vmem:[%s11547_s7 + $0x334] ss:$8 sps:$4 sm:$0xff]   ;;  %v10974_v12 = vld [vmem:[%s11547_s7 + $0x2e0] ss:$8 sps:$4 sm:$0xff]  }
 0x27e   : > { %v1941_v57 = vpop.f32.mrf.mxu1  ;;  %v3079_v30 = vpop.f32.mrf.mxu0 }
 0x27f   : > { %16940 = vst [vmem:[#allocation87_spill] sm:$0xff] %v12870_v38  ;;  %v12874_v19 = vadd.f32 %v3077_v20, %v1940_v28  ;;  %v1942_v23 = vadd.f32 %v1941_v57, %v12515_v43  ;;  %v10975_v20 = vld [vmem:[%s11547_s7 + $0x2f4] ss:$8 sps:$4 sm:$0xff]  }
 0x280   : > { %v1943_v35 = vpop.f32.mrf.mxu1  ;;  %v3081_v45 = vpop.f32.mrf.mxu0  ;;  %v16958_v38 = vld [vmem:[#allocation7_spill] sm:$0xff] }
 0x281   : > { %16942 = vst [vmem:[#allocation89_spill] sm:$0xff] %v12874_v19  ;;  %v12878_v44 = vadd.f32 %v3079_v30, %v1942_v23  ;;  %v10711_v45 = vld [vmem:[%s11547_s7 + $0x330] ss:$8 sps:$4 sm:$0xff]   ;;  %v12899_v19 = vld [vmem:[%s11547_s7 + $0x24] ss:$8 sps:$4 sm:$0xff]  }
 0x282   : > { %v1944_v59 = vpop.f32.mrf.mxu1  ;;  %v3082_v53 = vpop.f32.mrf.mxu0 }
 0x283   : > { %16943 = vst [vmem:[#allocation131_spill] sm:$0xff] %v12878_v44 }
 0x284   : > { %v1947_v15 = vpop.f32.mrf.mxu1  ;;  %2162 = vmatmul.mubr.bf16.gmra.mxu1 %v10974_v12  ;;  %v3085_v47 = vpop.f32.mrf.mxu0  ;;  %3300 = vmatmul.mubr.bf16.gmra.mxu0 %v10708_v11  ;;  %v16946_v11 = vld [vmem:[#allocation94_spill] sm:$0xff] }
 0x285   : > { %v1948_v10 = vadd.f32 %v1947_v15, %v12521_v36  ;;  %2171 = vmatprep.mubr.bf16.mxu1 %v10975_v20  ;;  %3309 = vmatprep.mubr.bf16.mxu0 %v10713_v24  ;;  %v16948_v24 = vld [vmem:[#allocation96_spill] sm:$0xff] }
 0x286   : > { %v1949_v43 = vpop.f32.mrf.mxu1  ;;  %v3087_v28 = vpop.f32.mrf.mxu0 }
 0x287   : > { %v12884_v57 = vadd.f32 %v3085_v47, %v1948_v10  ;;  %v1950_v30 = vadd.f32 %v1949_v43, %v12527_v50  ;;  %v10976_v47 = vld [vmem:[%s11547_s7 + $0x2f0] ss:$8 sps:$4 sm:$0xff]   ;;  %v16950_v43 = vld [vmem:[#allocation98_spill] sm:$0xff] }
 0x288   : > { %v1951_v23 = vpop.f32.mrf.mxu1  ;;  %v3089_v35 = vpop.f32.mrf.mxu0 }
 0x289   : > { %16944 = vst [vmem:[#allocation132_spill] sm:$0xff] %v12884_v57  ;;  %v12888_v59 = vadd.f32 %v3087_v28, %v1950_v30  ;;  %v1952_v53 = vadd.f32 %v1951_v23, %v16946_v11  ;;  %v10978_v28 = vld [vmem:[%s11547_s7 + $0x4] ss:$8 sps:$4 sm:$0xff]   ;;  %v16952_v11 = vld [vmem:[#allocation100_spill] sm:$0xff] }
 0x28a   : > { %v1953_v36 = vpop.f32.mrf.mxu1  ;;  %v3091_v15 = vpop.f32.mrf.mxu0 }
 0x28b   : > { %16945 = vst [vmem:[#allocation133_spill] sm:$0xff] %v12888_v59  ;;  %v12891_v12 = vadd.f32 %v3089_v35, %v1952_v53  ;;  %v1954_v20 = vadd.f32 %v1953_v36, %v16948_v24  ;;  %v10717_v24 = vld [vmem:[%s16770_s1 + $0x570] ss:$8 sps:$4 sm:$0xff]  }
 0x28c   : > { %v1957_v44 = vpop.f32.mrf.mxu1  ;;  %2172 = vmatmul.mubr.bf16.gmra.mxu1 %v10976_v47  ;;  %v3095_v10 = vpop.f32.mrf.mxu0  ;;  %3310 = vmatmul.mubr.bf16.gmra.mxu0 %v10711_v45 }
 0x28d   : > { %16947 = vst [vmem:[#allocation94_spill] sm:$0xff] %v12891_v12  ;;  %v12895_v50 = vadd.f32 %v3091_v15, %v1954_v20  ;;  %v1958_v57 = vadd.f32 %v1957_v44, %v16950_v43  ;;  %3720 = vmatprep.mubr.bf16.mxu1 %v12899_v19  ;;  %4393 = vmatprep.mubr.bf16.mxu0 %v10978_v28  ;;  %v10714_v44 = vld [vmem:[%s16770_s1 + $0x770] ss:$8 sps:$4 sm:$0xff]  }
 0x28e   : > { %v1959_v30 = vpop.f32.mrf.mxu1  ;;  %v3097_v23 = vpop.f32.mrf.mxu0 }
 0x28f   : > { %16949 = vst [vmem:[#allocation96_spill] sm:$0xff] %v12895_v50  ;;  %v12903_v35 = vadd.f32 %v3095_v10, %v1958_v57  ;;  %v1960_v53 = vadd.f32 %v1959_v30, %v16952_v11  ;;  %v10722_v57 = vld [vmem:[%s16770_s1 + $0x764] ss:$8 sps:$4 sm:$0xff]   ;;  %v12921_v30 = vld [vmem:[%s11547_s7 + $0x20] ss:$8 sps:$4 sm:$0xff]  }
 0x290   : > { %v1961_v36 = vpop.f32.mrf.mxu1  ;;  %v3099_v45 = vpop.f32.mrf.mxu0  ;;  %v10725_v10 = vld [vmem:[%s16770_s1 + $0x564] ss:$8 sps:$4 sm:$0xff]  }
 0x291   : > { %16951 = vst [vmem:[#allocation98_spill] sm:$0xff] %v12903_v35  ;;  %v12906_v15 = vadd.f32 %v3097_v23, %v1960_v53  ;;  %v10980_v23 = vld [vmem:[%s11547_s7] ss:$8 sps:$4 sm:$0xff]   ;;  %v10982_v35 = vld [vmem:[%s11547_s7 + $0x14] ss:$8 sps:$4 sm:$0xff]  }
 0x292   : > { %v1962_v20 = vpop.f32.mrf.mxu1  ;;  %v3100_v47 = vpop.f32.mrf.mxu0  ;;  %v16954_v11 = vld [vmem:[#allocation5_spill] sm:$0xff] }
 0x293   : > { %16953 = vst [vmem:[#allocation100_spill] sm:$0xff] %v12906_v15  ;;  %v10720_v36 = vld [vmem:[%s16770_s1 + $0x760] ss:$8 sps:$4 sm:$0xff]   ;;  %v12933_v15 = vld [vmem:[%s11547_s7 + $0x34] ss:$8 sps:$4 sm:$0xff]  }
 0x294   : > { %v1965_v43 = vpop.f32.mrf.mxu1  ;;  %v3103_v28 = vpop.f32.mrf.mxu0  ;;  %3721 = vmatmul.mubr.bf16.vlgmr.msra.gmra.mxu1 %v12921_v30  ;;  %4394 = vmatmul.mubr.bf16.vlgmr.msra.gmra.mxu0 %v10980_v23  ;;  %v10723_v45 = vld [vmem:[%s16770_s1 + $0x560] ss:$8 sps:$4 sm:$0xff]  }
 0x295   : > { %v1966_v53 = vadd.f32 %v1965_v43, %v16954_v11  ;;  %5068 = vmatpush1.bf16.msra.mxu1 %v10714_v44  ;;  %5999 = vmatpush1.bf16.msra.mxu0 %v10717_v24  ;;  %v10728_v44 = vld [vmem:[%s16770_s1 + $0x754] ss:$8 sps:$4 sm:$0xff]   ;;  %v16956_v23 = vld [vmem:[#allocation6_spill] sm:$0xff] }
 0x296   : > { %v1967_v20 = vpop.f32.mrf.mxu1  ;;  %v3105_v47 = vpop.f32.mrf.mxu0  ;;  %3730 = vmatprep.mubr.bf16.mxu1 %v12933_v15  ;;  %4403 = vmatprep.mubr.bf16.mxu0 %v10982_v35  ;;  %v10731_v24 = vld [vmem:[%s16770_s1 + $0x554] ss:$8 sps:$4 sm:$0xff]  }
 0x297   : > { %v12943_v43 = vadd.f32 %v3103_v28, %v1966_v53  ;;  %v1968_v11 = vadd.f32 %v1967_v20, %v16956_v23  ;;  %5069 = vmatprep.subr.bf16.mxu1 %v10722_v57  ;;  %6000 = vmatprep.subr.bf16.mxu0 %v10725_v10  ;;  %v10726_v28 = vld [vmem:[%s16770_s1 + $0x750] ss:$8 sps:$4 sm:$0xff]   ;;  %v12973_v23 = vld [vmem:[%s11547_s7 + $0x44] ss:$8 sps:$4 sm:$0xff]  }
 0x298   : > { %v1969_v50 = vpop.f32.mrf.mxu1  ;;  %v3107_v12 = vpop.f32.mrf.mxu0  ;;  %v10729_v57 = vld [vmem:[%s16770_s1 + $0x550] ss:$8 sps:$4 sm:$0xff]  }
 0x299   : > { %16955 = vst [vmem:[#allocation5_spill] sm:$0xff] %v12943_v43  ;;  %v12946_v59 = vadd.f32 %v3105_v47, %v1968_v11  ;;  %v1970_v35 = vadd.f32 %v1969_v50, %v16958_v38  ;;  %5070 = vmatpush1.bf16.msra.mxu1 %v10720_v36  ;;  %6001 = vmatpush1.bf16.msra.mxu0 %v10723_v45  ;;  %v16960_v53 = vld [vmem:[#allocation8_spill] sm:$0xff]  ;;  %v10734_v50 = vld [vmem:[%s16770_s1 + $0x744] ss:$8 sps:$4 sm:$0xff]  }
 0x29a   : > { %v1971_v1 = vpop.f32.mrf.mxu1  ;;  %v3109_v56 = vpop.f32.mrf.mxu0  ;;  %5071 = vmatprep.subr.bf16.mxu1 %v10728_v44  ;;  %6002 = vmatprep.subr.bf16.mxu0 %v10731_v24  ;;  %v10737_v36 = vld [vmem:[%s16770_s1 + $0x544] ss:$8 sps:$4 sm:$0xff]   ;;  %v12965_v47 = vld [vmem:[%s11547_s7 + $0x30] ss:$8 sps:$4 sm:$0xff]  }
 0x29b   : > { %16957 = vst [vmem:[#allocation6_spill] sm:$0xff] %v12946_v59  ;;  %v12955_v10 = vadd.f32 %v3107_v12, %v1970_v35  ;;  %v1972_v38 = vadd.f32 %v1971_v1, %v16960_v53  ;;  %v10984_v44 = vld [vmem:[%s11547_s7 + $0x10] ss:$8 sps:$4 sm:$0xff]   ;;  %v16962_v24 = vld [vmem:[#allocation9_spill] sm:$0xff] }
 0x29c   : > { %v1975_v45 = vpop.f32.mrf.mxu1  ;;  %v3113_v20 = vpop.f32.mrf.mxu0  ;;  %3731 = vmatmul.mubr.bf16.gmra.mxu1 %v12965_v47  ;;  %4404 = vmatmul.mubr.bf16.gmra.mxu0 %v10984_v44  ;;  %v10732_v53 = vld [vmem:[%s16770_s1 + $0x740] ss:$8 sps:$4 sm:$0xff]   ;;  %v10989_v59 = vld [vmem:[%s11547_s7 + $0x64] ss:$8 sps:$4 sm:$0xff]  }
 0x29d   : > { %16959 = vst [vmem:[#allocation7_spill] sm:$0xff] %v12955_v10  ;;  %v12969_v12 = vadd.f32 %v3109_v56, %v1972_v38  ;;  %v1976_v1 = vadd.f32 %v1975_v45, %v16962_v24  ;;  %3740 = vmatprep.mubr.bf16.mxu1 %v12973_v23  ;;  %4413 = vmatprep.mubr.bf16.mxu0 %v12899_v19  ;;  %v10735_v56 = vld [vmem:[%s16770_s1 + $0x540] ss:$8 sps:$4 sm:$0xff]   ;;  %v10740_v19 = vld [vmem:[%s16770_s1 + $0x734] ss:$8 sps:$4 sm:$0xff]  }
 0x29e   : > { %v1977_v11 = vpop.f32.mrf.mxu1  ;;  %v3115_v35 = vpop.f32.mrf.mxu0  ;;  %5072 = vmatpush1.bf16.msra.mxu1 %v10726_v28  ;;  %6003 = vmatpush1.bf16.msra.mxu0 %v10729_v57  ;;  %v16964_v45 = vld [vmem:[#allocation10_spill] sm:$0xff]  ;;  %v10743_v28 = vld [vmem:[%s16770_s1 + $0x534] ss:$8 sps:$4 sm:$0xff]  }
 0x29f   : > { %16961 = vst [vmem:[#allocation8_spill] sm:$0xff] %v12969_v12  ;;  %v12983_v38 = vadd.f32 %v3113_v20, %v1976_v1  ;;  %v1978_v44 = vadd.f32 %v1977_v11, %v16964_v45  ;;  %5073 = vmatprep.subr.bf16.mxu1 %v10734_v50  ;;  %6004 = vmatprep.subr.bf16.mxu0 %v10737_v36  ;;  %v10738_v50 = vld [vmem:[%s16770_s1 + $0x730] ss:$8 sps:$4 sm:$0xff]   ;;  %v10746_v1 = vld [vmem:[%s16770_s1 + $0x724] ss:$8 sps:$4 sm:$0xff]  }
 0x2a0   : > { %v1979_v57 = vpop.f32.mrf.mxu1  ;;  %v3117_v24 = vpop.f32.mrf.mxu0  ;;  %v10741_v36 = vld [vmem:[%s16770_s1 + $0x530] ss:$8 sps:$4 sm:$0xff]  }
 0x2a1   : > { %16963 = vst [vmem:[#allocation9_spill] sm:$0xff] %v12983_v38  ;;  %v12992_v12 = vadd.f32 %v3115_v35, %v1978_v44  ;;  %v10987_v44 = vld [vmem:[%s11547_s7 + $0x54] ss:$8 sps:$4 sm:$0xff]   ;;  %v10744_v57 = vld [vmem:[%s16770_s1 + $0x720] ss:$8 sps:$4 sm:$0xff]  }
 0x2a2   : > { %v1980_v10 = vpop.f32.mrf.mxu1  ;;  %v3118_v20 = vpop.f32.mrf.mxu0  ;;  %5074 = vmatpush1.bf16.msra.mxu1 %v10732_v53  ;;  %6005 = vmatpush1.bf16.msra.mxu0 %v10735_v56  ;;  %v10986_v53 = vld [vmem:[%s11547_s7 + $0x40] ss:$8 sps:$4 sm:$0xff]   ;;  %v16966_v56 = vld [vmem:[#allocation11_spill] sm:$0xff] }
 0x2a3   : > { %16965 = vst [vmem:[#allocation10_spill] sm:$0xff] %v12992_v12  ;;  %5075 = vmatprep.subr.bf16.mxu1 %v10740_v19  ;;  %6006 = vmatprep.subr.bf16.mxu0 %v10743_v28  ;;  %v10749_v10 = vld [vmem:[%s16770_s1 + $0x524] ss:$8 sps:$4 sm:$0xff]   ;;  %v10747_v24 = vld [vmem:[%s16770_s1 + $0x520] ss:$8 sps:$4 sm:$0xff]  }
 0x2a4   : > { %v1983_v11 = vpop.f32.mrf.mxu1  ;;  %v3121_v35 = vpop.f32.mrf.mxu0  ;;  %3741 = vmatmul.mubr.bf16.gmra.mxu1 %v10986_v53  ;;  %4414 = vmatmul.mubr.bf16.gmra.mxu0 %v12921_v30  ;;  %v16968_v30 = vld [vmem:[#allocation12_spill] sm:$0xff]  ;;  %v16970_v12 = vld [vmem:[#allocation13_spill] sm:$0xff] }
 0x2a5   : > { %v1984_v45 = vadd.f32 %v1983_v11, %v16966_v56  ;;  %3750 = vmatprep.mubr.bf16.mxu1 %v10987_v44  ;;  %4423 = vmatprep.mubr.bf16.mxu0 %v12933_v15  ;;  %v10752_v15 = vld [vmem:[%s16770_s1 + $0x714] ss:$8 sps:$4 sm:$0xff]  }
 0x2a6   : > { %v1985_v19 = vpop.f32.mrf.mxu1  ;;  %v3123_v28 = vpop.f32.mrf.mxu0  ;;  %5076 = vmatpush1.bf16.msra.mxu1 %v10738_v50  ;;  %6007 = vmatpush1.bf16.msra.mxu0 %v10741_v36 }
 0x2a7   : > { %v13017_v20 = vadd.f32 %v3121_v35, %v1984_v45  ;;  %v1986_v11 = vadd.f32 %v1985_v19, %v16968_v30  ;;  %5077 = vmatprep.subr.bf16.mxu1 %v10746_v1  ;;  %6008 = vmatprep.subr.bf16.mxu0 %v10749_v10  ;;  %v10755_v35 = vld [vmem:[%s16770_s1 + $0x514] ss:$8 sps:$4 sm:$0xff]   ;;  %v10750_v1 = vld [vmem:[%s16770_s1 + $0x710] ss:$8 sps:$4 sm:$0xff]  }
 0x2a8   : > { %v1987_v50 = vpop.f32.mrf.mxu1  ;;  %v3125_v36 = vpop.f32.mrf.mxu0  ;;  %v10753_v10 = vld [vmem:[%s16770_s1 + $0x510] ss:$8 sps:$4 sm:$0xff]  }
 0x2a9   : > { %16967 = vst [vmem:[#allocation11_spill] sm:$0xff] %v13017_v20  ;;  %v13023_v56 = vadd.f32 %v3123_v28, %v1986_v11  ;;  %v1988_v38 = vadd.f32 %v1987_v50, %v16970_v12  ;;  %v16972_v12 = vld [vmem:[#allocation14_spill] sm:$0xff]  ;;  %v10988_v50 = vld [vmem:[%s11547_s7 + $0x50] ss:$8 sps:$4 sm:$0xff]  }
 0x2aa   : > { %v1989_v45 = vpop.f32.mrf.mxu1  ;;  %v3127_v20 = vpop.f32.mrf.mxu0  ;;  %5078 = vmatpush1.bf16.msra.mxu1 %v10744_v57  ;;  %6009 = vmatpush1.bf16.msra.mxu0 %v10747_v24  ;;  %v16974_v24 = vld [vmem:[#allocation15_spill] sm:$0xff] }
 0x2ab   : > { %16969 = vst [vmem:[#allocation12_spill] sm:$0xff] %v13023_v56  ;;  %v13035_v19 = vadd.f32 %v3125_v36, %v1988_v38  ;;  %v1990_v28 = vadd.f32 %v1989_v45, %v16972_v12  ;;  %5079 = vmatprep.subr.bf16.mxu1 %v10752_v15  ;;  %6010 = vmatprep.subr.bf16.mxu0 %v10755_v35  ;;  %v16976_v35 = vld [vmem:[#allocation16_spill] sm:$0xff] }
 0x2ac   : > { %v1993_v30 = vpop.f32.mrf.mxu1  ;;  %v3131_v11 = vpop.f32.mrf.mxu0  ;;  %3751 = vmatmul.mubr.bf16.gmra.mxu1 %v10988_v50  ;;  %4424 = vmatmul.mubr.bf16.gmra.mxu0 %v12965_v47 }
 0x2ad   : > { %16971 = vst [vmem:[#allocation13_spill] sm:$0xff] %v13035_v19  ;;  %v13040_v57 = vadd.f32 %v3127_v20, %v1990_v28  ;;  %v1994_v56 = vadd.f32 %v1993_v30, %v16974_v24  ;;  %3760 = vmatprep.mubr.bf16.mxu1 %v10989_v59  ;;  %4433 = vmatprep.mubr.bf16.mxu0 %v12973_v23  ;;  %v10990_v19 = vld [vmem:[%s11547_s7 + $0x60] ss:$8 sps:$4 sm:$0xff]  }
 0x2ae   : > { %v1995_v38 = vpop.f32.mrf.mxu1  ;;  %v3133_v36 = vpop.f32.mrf.mxu0  ;;  %5080 = vmatpush1.bf16.msra.mxu1 %v10750_v1  ;;  %6011 = vmatpush1.bf16.msra.mxu0 %v10753_v10  ;;  %v16978_v23 = vld [vmem:[#allocation17_spill] sm:$0xff] }
 0x2af   : > { %16973 = vst [vmem:[#allocation14_spill] sm:$0xff] %v13040_v57  ;;  %v13045_v15 = vadd.f32 %v3131_v11, %v1994_v56  ;;  %v1996_v45 = vadd.f32 %v1995_v38, %v16976_v35  ;;  %v16980_v11 = vld [vmem:[#allocation18_spill] sm:$0xff] }
 0x2b0   : > { %v1997_v12 = vpop.f32.mrf.mxu1  ;;  %v3135_v47 = vpop.f32.mrf.mxu0 }
 0x2b1   : > { %16975 = vst [vmem:[#allocation15_spill] sm:$0xff] %v13045_v15  ;;  %v13048_v20 = vadd.f32 %v3133_v36, %v1996_v45  ;;  %v16982_v12 = vld [vmem:[#allocation19_spill] sm:$0xff] }
 0x2b2   : > { %v1998_v28 = vpop.f32.mrf.mxu1  ;;  %v3136_v30 = vpop.f32.mrf.mxu0  ;;  %v10992_v15 = vld [vmem:[%s11547_s7 + $0x70] ss:$8 sps:$4 sm:$0xff]  }
 0x2b3   : > { %16977 = vst [vmem:[#allocation16_spill] sm:$0xff] %v13048_v20 }
 0x2b4   : > { %v2001_v24 = vpop.f32.mrf.mxu1  ;;  %v3139_v57 = vpop.f32.mrf.mxu0  ;;  %3761 = vmatmul.mubr.bf16.gmra.mxu1 %v10990_v19  ;;  %4434 = vmatmul.mubr.bf16.gmra.mxu0 %v10986_v53 }
 0x2b5   : > { %v2002_v43 = vadd.f32 %v2001_v24, %v16978_v23  ;;  %3770 = vmatprep.mubr.bf16.mxu1 %v10991_v51  ;;  %4443 = vmatprep.mubr.bf16.mxu0 %v10987_v44  ;;  %v16984_v24 = vld [vmem:[#allocation20_spill] sm:$0xff] }
 0x2b6   : > { %v2003_v56 = vpop.f32.mrf.mxu1  ;;  %v3141_v1 = vpop.f32.mrf.mxu0 }
 0x2b7   : > { %v13053_v10 = vadd.f32 %v3139_v57, %v2002_v43  ;;  %v2004_v38 = vadd.f32 %v2003_v56, %v16980_v11  ;;  %v16986_v57 = vld [vmem:[#allocation21_spill] sm:$0xff] }
 0x2b8   : > { %v2005_v36 = vpop.f32.mrf.mxu1  ;;  %v3143_v35 = vpop.f32.mrf.mxu0  ;;  %v10993_v11 = vld [vmem:[%s11547_s7 + $0x84] ss:$8 sps:$4 sm:$0xff]  }
 0x2b9   : > { %16979 = vst [vmem:[#allocation17_spill] sm:$0xff] %v13053_v10  ;;  %v13056_v45 = vadd.f32 %v3141_v1, %v2004_v38  ;;  %v2006_v47 = vadd.f32 %v2005_v36, %v16982_v12 }
 0x2ba   : > { %v2007_v53 = vpop.f32.mrf.mxu1  ;;  %v3145_v28 = vpop.f32.mrf.mxu0 }
 0x2bb   : > { %16981 = vst [vmem:[#allocation18_spill] sm:$0xff] %v13056_v45  ;;  %v13059_v30 = vadd.f32 %v3143_v35, %v2006_v47  ;;  %v2008_v23 = vadd.f32 %v2007_v53, %v16984_v24  ;;  %v16988_v35 = vld [vmem:[#allocation23_spill] sm:$0xff]  ;;  %v10756_v47 = vld [vmem:[%s16770_s1 + $0x700] ss:$8 sps:$4 sm:$0xff]  }
 0x2bc   : > { %v2011_v44 = vpop.f32.mrf.mxu1  ;;  %v3149_v20 = vpop.f32.mrf.mxu0  ;;  %3771 = vmatmul.mubr.bf16.gmra.mxu1 %v10992_v15  ;;  %4444 = vmatmul.mubr.bf16.gmra.mxu0 %v10988_v50  ;;  %v10758_v50 = vld [vmem:[%s16770_s1 + $0x704] ss:$8 sps:$4 sm:$0xff]  }
 0x2bd   : > { %16983 = vst [vmem:[#allocation19_spill] sm:$0xff] %v13059_v30  ;;  %v13063_v43 = vadd.f32 %v3145_v28, %v2008_v23  ;;  %v2012_v56 = vadd.f32 %v2011_v44, %v16986_v57  ;;  %3780 = vmatprep.mubr.bf16.mxu1 %v10993_v11  ;;  %4453 = vmatprep.mubr.bf16.mxu0 %v10989_v59  ;;  %v10761_v59 = vld [vmem:[%s16770_s1 + $0x504] ss:$8 sps:$4 sm:$0xff]   ;;  %v10759_v44 = vld [vmem:[%s16770_s1 + $0x500] ss:$8 sps:$4 sm:$0xff]  }
 0x2be   : > { %v2013_v1 = vpop.f32.mrf.mxu1  ;;  %v3151_v38 = vpop.f32.mrf.mxu0  ;;  %5081 = vmatprep.subr.bf16.mxu1 %v10758_v50  ;;  %6012 = vmatprep.subr.bf16.mxu0 %v10761_v59 }
 0x2bf   : > { %16985 = vst [vmem:[#allocation20_spill] sm:$0xff] %v13063_v43  ;;  %v13067_v36 = vadd.f32 %v3149_v20, %v2012_v56  ;;  %v2014_v12 = vadd.f32 %v2013_v1, %v16988_v35  ;;  %5082 = vmatpush1.bf16.msra.mxu1 %v10756_v47  ;;  %v10994_v1 = vld [vmem:[%s11547_s7 + $0x80] ss:$8 sps:$4 sm:$0xff]   ;;  %6013 = vmatpush1.bf16.msra.mxu0 %v10759_v44  ;;  %v10996_v44 = vld [vmem:[%s11547_s7 + $0x90] ss:$8 sps:$4 sm:$0xff]  }
 0x2c0   : > { %v2015_v53 = vpop.f32.mrf.mxu1  ;;  %v3153_v28 = vpop.f32.mrf.mxu0 }
 0x2c1   : > { %16987 = vst [vmem:[#allocation21_spill] sm:$0xff] %v13067_v36  ;;  %v13076_v24 = vadd.f32 %v3151_v38, %v2014_v12  ;;  %v16990_v38 = vld [vmem:[#allocation24_spill] sm:$0xff]  ;;  %v16992_v28 = vld [vmem:[#allocation26_spill] sm:$0xff] }
 0x2c2   : > { %v2016_v20 = vpop.f32.mrf.mxu1  ;;  %v3154_v23 = vpop.f32.mrf.mxu0  ;;  %v10995_v12 = vld [vmem:[%s11547_s7 + $0x94] ss:$8 sps:$4 sm:$0xff]  }
 0x2c3   : > { %16989 = vst [vmem:[#allocation23_spill] sm:$0xff] %v13076_v24  ;;  %v16994_v36 = vld [vmem:[#allocation28_spill] sm:$0xff] }
 0x2c4   : > { %v2019_v57 = vpop.f32.mrf.mxu1  ;;  %v3157_v56 = vpop.f32.mrf.mxu0  ;;  %3781 = vmatmul.mubr.bf16.gmra.mxu1 %v10994_v1  ;;  %4454 = vmatmul.mubr.bf16.gmra.mxu0 %v10990_v19 }
 0x2c5   : > { %v2020_v35 = vadd.f32 %v2019_v57, %v16990_v38  ;;  %3790 = vmatprep.mubr.bf16.mxu1 %v10995_v12  ;;  %4463 = vmatprep.mubr.bf16.mxu0 %v10991_v51  ;;  %v16996_v51 = vld [vmem:[#allocation30_spill] sm:$0xff] }
 0x2c6   : > { %v2021_v50 = vpop.f32.mrf.mxu1  ;;  %v3159_v53 = vpop.f32.mrf.mxu0 }
 0x2c7   : > { %v13087_v47 = vadd.f32 %v3157_v56, %v2020_v35  ;;  %v2022_v20 = vadd.f32 %v2021_v50, %v16992_v28  ;;  %v16998_v35 = vld [vmem:[#allocation32_spill] sm:$0xff] }
 0x2c8   : > { %v2023_v59 = vpop.f32.mrf.mxu1  ;;  %v3161_v23 = vpop.f32.mrf.mxu0 }
 0x2c9   : > { %16991 = vst [vmem:[#allocation24_spill] sm:$0xff] %v13087_v47  ;;  %v13090_v24 = vadd.f32 %v3159_v53, %v2022_v20  ;;  %v2024_v19 = vadd.f32 %v2023_v59, %v16994_v36  ;;  %v10997_v53 = vld [vmem:[%s11547_s7 + $0xa4] ss:$8 sps:$4 sm:$0xff]   ;;  %v11004_v47 = vld [vmem:[%s11547_s7 + $0xd0] ss:$8 sps:$4 sm:$0xff]  }
 0x2ca   : > { %v2025_v43 = vpop.f32.mrf.mxu1  ;;  %v3163_v57 = vpop.f32.mrf.mxu0  ;;  %v17000_v59 = vld [vmem:[#allocation33_spill] sm:$0xff] }
 0x2cb   : > { %16993 = vst [vmem:[#allocation26_spill] sm:$0xff] %v13090_v24  ;;  %v13093_v38 = vadd.f32 %v3161_v23, %v2024_v19  ;;  %v2026_v30 = vadd.f32 %v2025_v43, %v16996_v51 }
 0x2cc   : > { %v2029_v45 = vpop.f32.mrf.mxu1  ;;  %v3167_v10 = vpop.f32.mrf.mxu0  ;;  %3791 = vmatmul.mubr.bf16.gmra.mxu1 %v10996_v44  ;;  %4464 = vmatmul.mubr.bf16.gmra.mxu0 %v10992_v15 }
 0x2cd   : > { %16995 = vst [vmem:[#allocation28_spill] sm:$0xff] %v13093_v38  ;;  %v13097_v56 = vadd.f32 %v3163_v57, %v2026_v30  ;;  %v2030_v50 = vadd.f32 %v2029_v45, %v16998_v35  ;;  %3800 = vmatprep.mubr.bf16.mxu1 %v10997_v53  ;;  %4473 = vmatprep.mubr.bf16.mxu0 %v10993_v11  ;;  %v10998_v38 = vld [vmem:[%s11547_s7 + $0xa0] ss:$8 sps:$4 sm:$0xff]   ;;  %v10999_v35 = vld [vmem:[%s11547_s7 + $0xb4] ss:$8 sps:$4 sm:$0xff]  }
 0x2ce   : > { %v2031_v36 = vpop.f32.mrf.mxu1  ;;  %v3169_v28 = vpop.f32.mrf.mxu0  ;;  %v17002_v45 = vld [vmem:[#allocation34_spill] sm:$0xff] }
 0x2cf   : > { %16997 = vst [vmem:[#allocation30_spill] sm:$0xff] %v13097_v56  ;;  %v13101_v20 = vadd.f32 %v3167_v10, %v2030_v50  ;;  %v2032_v43 = vadd.f32 %v2031_v36, %v17000_v59  ;;  %v10762_v10 = vld [vmem:[%s16770_s1 + $0x7f0] ss:$8 sps:$4 sm:$0xff]   ;;  %v10764_v50 = vld [vmem:[%s16770_s1 + $0x7f4] ss:$8 sps:$4 sm:$0xff]  }
 0x2d0   : > { %v2033_v23 = vpop.f32.mrf.mxu1  ;;  %v3171_v19 = vpop.f32.mrf.mxu0  ;;  %5083 = vmatprep.subr.bf16.mxu1 %v10764_v50 }
 0x2d1   : > { %16999 = vst [vmem:[#allocation32_spill] sm:$0xff] %v13101_v20  ;;  %v13104_v51 = vadd.f32 %v3169_v28, %v2032_v43  ;;  %v17004_v43 = vld [vmem:[#allocation35_spill] sm:$0xff]  ;;  %5084 = vmatpush2.bf16.msra.mxu1 %v10762_v10  ;;  %v17010_v10 = vld [vmem:[#allocation38_spill] sm:$0xff] }
 0x2d2   : > { %v2034_v15 = vpop.f32.mrf.mxu1  ;;  %v3172_v30 = vpop.f32.mrf.mxu0  ;;  %v11000_v20 = vld [vmem:[%s11547_s7 + $0xb0] ss:$8 sps:$4 sm:$0xff]  }
 0x2d3   : > { %17001 = vst [vmem:[#allocation33_spill] sm:$0xff] %v13104_v51 }
 0x2d4   : > { %v2037_v57 = vpop.f32.mrf.mxu1  ;;  %v3175_v56 = vpop.f32.mrf.mxu0  ;;  %3801 = vmatmul.mubr.bf16.gmra.mxu1 %v10998_v38  ;;  %4474 = vmatmul.mubr.bf16.gmra.mxu0 %v10994_v1  ;;  %v10765_v1 = vld [vmem:[%s16770_s1 + $0x5f0] ss:$8 sps:$4 sm:$0xff]  }
 0x2d5   : > { %v2038_v11 = vadd.f32 %v2037_v57, %v17002_v45  ;;  %3810 = vmatprep.mubr.bf16.mxu1 %v10999_v35  ;;  %4483 = vmatprep.mubr.bf16.mxu0 %v10995_v12  ;;  %v10767_v12 = vld [vmem:[%s16770_s1 + $0x5f4] ss:$8 sps:$4 sm:$0xff]  }
 0x2d6   : > { %v2039_v36 = vpop.f32.mrf.mxu1  ;;  %v3177_v28 = vpop.f32.mrf.mxu0  ;;  %6014 = vmatprep.subr.bf16.mxu0 %v10767_v12 }
 0x2d7   : > { %v13115_v59 = vadd.f32 %v3175_v56, %v2038_v11  ;;  %v2040_v23 = vadd.f32 %v2039_v36, %v17004_v43  ;;  %v17006_v56 = vld [vmem:[#allocation36_spill] sm:$0xff]  ;;  %6015 = vmatpush2.bf16.msra.mxu0 %v10765_v1  ;;  %v17008_v36 = vld [vmem:[#allocation37_spill] sm:$0xff] }
 0x2d8   : > { %v2041_v19 = vpop.f32.mrf.mxu1  ;;  %v3179_v15 = vpop.f32.mrf.mxu0 }
 0x2d9   : > { %17003 = vst [vmem:[#allocation34_spill] sm:$0xff] %v13115_v59  ;;  %v13124_v30 = vadd.f32 %v3177_v28, %v2040_v23  ;;  %v2042_v57 = vadd.f32 %v2041_v19, %v17006_v56  ;;  %v11001_v23 = vld [vmem:[%s11547_s7 + $0xc4] ss:$8 sps:$4 sm:$0xff]  }
 0x2da   : > { %v2043_v45 = vpop.f32.mrf.mxu1  ;;  %v3181_v11 = vpop.f32.mrf.mxu0 }
 0x2db   : > { %17005 = vst [vmem:[#allocation35_spill] sm:$0xff] %v13124_v30  ;;  %v13127_v50 = vadd.f32 %v3179_v15, %v2042_v57  ;;  %v2044_v43 = vadd.f32 %v2043_v45, %v17008_v36  ;;  %v17012_v15 = vld [vmem:[#allocation39_spill] sm:$0xff] }
 0x2dc   : > { %v2047_v59 = vpop.f32.mrf.mxu1  ;;  %v3185_v51 = vpop.f32.mrf.mxu0  ;;  %3811 = vmatmul.mubr.bf16.gmra.mxu1 %v11000_v20  ;;  %4484 = vmatmul.mubr.bf16.gmra.mxu0 %v10996_v44 }
 0x2dd   : > { %17007 = vst [vmem:[#allocation36_spill] sm:$0xff] %v13127_v50  ;;  %v13131_v24 = vadd.f32 %v3181_v11, %v2044_v43  ;;  %v2048_v28 = vadd.f32 %v2047_v59, %v17010_v10  ;;  %3820 = vmatprep.mubr.bf16.mxu1 %v11001_v23  ;;  %4493 = vmatprep.mubr.bf16.mxu0 %v10997_v53  ;;  %v11002_v50 = vld [vmem:[%s11547_s7 + $0xc0] ss:$8 sps:$4 sm:$0xff]   ;;  %v17014_v59 = vld [vmem:[#allocation40_spill] sm:$0xff] }
 0x2de   : > { %v2049_v12 = vpop.f32.mrf.mxu1  ;;  %v3187_v1 = vpop.f32.mrf.mxu0  ;;  %v11003_v10 = vld [vmem:[%s11547_s7 + $0xd4] ss:$8 sps:$4 sm:$0xff]  }
 0x2df   : > { %17009 = vst [vmem:[#allocation37_spill] sm:$0xff] %v13131_v24  ;;  %v13135_v19 = vadd.f32 %v3185_v51, %v2048_v28  ;;  %v2050_v56 = vadd.f32 %v2049_v12, %v17012_v15  ;;  %v17016_v15 = vld [vmem:[#allocation41_spill] sm:$0xff] }
 0x2e0   : > { %v2051_v57 = vpop.f32.mrf.mxu1  ;;  %v3189_v45 = vpop.f32.mrf.mxu0 }
 0x2e1   : > { %17011 = vst [vmem:[#allocation38_spill] sm:$0xff] %v13135_v19  ;;  %v13138_v36 = vadd.f32 %v3187_v1, %v2050_v56 }
 0x2e2   : > { %v2052_v44 = vpop.f32.mrf.mxu1  ;;  %v3190_v11 = vpop.f32.mrf.mxu0 }
 0x2e3   : > { %17013 = vst [vmem:[#allocation39_spill] sm:$0xff] %v13138_v36  ;;  %v17018_v44 = vld [vmem:[#allocation42_spill] sm:$0xff] }
 0x2e4   : > { %v2055_v43 = vpop.f32.mrf.mxu1  ;;  %v3193_v24 = vpop.f32.mrf.mxu0  ;;  %3821 = vmatmul.mubr.bf16.gmra.mxu1 %v11002_v50  ;;  %4494 = vmatmul.mubr.bf16.gmra.mxu0 %v10998_v38 }
 0x2e5   : > { %v2056_v53 = vadd.f32 %v2055_v43, %v17014_v59  ;;  %3830 = vmatprep.mubr.bf16.mxu1 %v11003_v10  ;;  %4503 = vmatprep.mubr.bf16.mxu0 %v10999_v35  ;;  %v17020_v59 = vld [vmem:[#allocation43_spill] sm:$0xff] }
 0x2e6   : > { %v2057_v51 = vpop.f32.mrf.mxu1  ;;  %v3195_v28 = vpop.f32.mrf.mxu0 }
 0x2e7   : > { %v13143_v12 = vadd.f32 %v3193_v24, %v2056_v53  ;;  %v2058_v1 = vadd.f32 %v2057_v51, %v17016_v15  ;;  %v17022_v53 = vld [vmem:[#allocation44_spill] sm:$0xff]  ;;  %v11005_v15 = vld [vmem:[%s11547_s7 + $0xe4] ss:$8 sps:$4 sm:$0xff]  }
 0x2e8   : > { %v2059_v56 = vpop.f32.mrf.mxu1  ;;  %v3197_v57 = vpop.f32.mrf.mxu0 }
 0x2e9   : > { %17015 = vst [vmem:[#allocation40_spill] sm:$0xff] %v13143_v12  ;;  %v13146_v45 = vadd.f32 %v3195_v28, %v2058_v1  ;;  %v2060_v11 = vadd.f32 %v2059_v56, %v17018_v44  ;;  %v10768_v28 = vld [vmem:[%s16770_s1 + $0x7e0] ss:$8 sps:$4 sm:$0xff]   ;;  %v10770_v1 = vld [vmem:[%s16770_s1 + $0x7e4] ss:$8 sps:$4 sm:$0xff]  }
 0x2ea   : > { %v2061_v38 = vpop.f32.mrf.mxu1  ;;  %v3199_v36 = vpop.f32.mrf.mxu0  ;;  %5085 = vmatprep.subr.bf16.mxu1 %v10770_v1  ;;  %v11006_v1 = vld [vmem:[%s11547_s7 + $0xe0] ss:$8 sps:$4 sm:$0xff]   ;;  %v11008_v12 = vld [vmem:[%s11547_s7 + $0xf0] ss:$8 sps:$4 sm:$0xff]  }
 0x2eb   : > { %17017 = vst [vmem:[#allocation41_spill] sm:$0xff] %v13146_v45  ;;  %v13149_v43 = vadd.f32 %v3197_v57, %v2060_v11  ;;  %v2062_v19 = vadd.f32 %v2061_v38, %v17020_v59  ;;  %5086 = vmatpush2.bf16.msra.mxu1 %v10768_v28 }
 0x2ec   : > { %v2065_v35 = vpop.f32.mrf.mxu1  ;;  %v3203_v30 = vpop.f32.mrf.mxu0  ;;  %3831 = vmatmul.mubr.bf16.gmra.mxu1 %v11004_v47  ;;  %4504 = vmatmul.mubr.bf16.gmra.mxu0 %v11000_v20  ;;  %v17024_v20 = vld [vmem:[#allocation45_spill] sm:$0xff] }
 0x2ed   : > { %17019 = vst [vmem:[#allocation42_spill] sm:$0xff] %v13149_v43  ;;  %v13153_v24 = vadd.f32 %v3199_v36, %v2062_v19  ;;  %v2066_v51 = vadd.f32 %v2065_v35, %v17022_v53  ;;  %3840 = vmatprep.mubr.bf16.mxu1 %v11005_v15  ;;  %4513 = vmatprep.mubr.bf16.mxu0 %v11001_v23  ;;  %v10771_v23 = vld [vmem:[%s16770_s1 + $0x5e0] ss:$8 sps:$4 sm:$0xff]   ;;  %v10773_v36 = vld [vmem:[%s16770_s1 + $0x5e4] ss:$8 sps:$4 sm:$0xff]  }
 0x2ee   : > { %v2067_v56 = vpop.f32.mrf.mxu1  ;;  %v3205_v57 = vpop.f32.mrf.mxu0  ;;  %6016 = vmatprep.subr.bf16.mxu0 %v10773_v36 }
 0x2ef   : > { %17021 = vst [vmem:[#allocation43_spill] sm:$0xff] %v13153_v24  ;;  %v13163_v44 = vadd.f32 %v3203_v30, %v2066_v51  ;;  %v2068_v19 = vadd.f32 %v2067_v56, %v17024_v20  ;;  %6017 = vmatpush2.bf16.msra.mxu0 %v10771_v23  ;;  %v17026_v56 = vld [vmem:[#allocation46_spill] sm:$0xff] }
 0x2f0   : > { %v2069_v11 = vpop.f32.mrf.mxu1  ;;  %v3207_v38 = vpop.f32.mrf.mxu0 }
 0x2f1   : > { %17023 = vst [vmem:[#allocation44_spill] sm:$0xff] %v13163_v44  ;;  %v13172_v59 = vadd.f32 %v3205_v57, %v2068_v19  ;;  %v11007_v44 = vld [vmem:[%s11547_s7 + $0xf4] ss:$8 sps:$4 sm:$0xff]  }
 0x2f2   : > { %v2070_v30 = vpop.f32.mrf.mxu1  ;;  %v3208_v35 = vpop.f32.mrf.mxu0  ;;  %v17028_v57 = vld [vmem:[#allocation48_spill] sm:$0xff] }
 0x2f3   : > { %17025 = vst [vmem:[#allocation45_spill] sm:$0xff] %v13172_v59  ;;  %v17030_v35 = vld [vmem:[#allocation50_spill] sm:$0xff] }
 0x2f4   : > { %v2073_v53 = vpop.f32.mrf.mxu1  ;;  %v3211_v51 = vpop.f32.mrf.mxu0  ;;  %3841 = vmatmul.mubr.bf16.gmra.mxu1 %v11006_v1  ;;  %4514 = vmatmul.mubr.bf16.gmra.mxu0 %v11002_v50 }
 0x2f5   : > { %v2074_v20 = vadd.f32 %v2073_v53, %v17026_v56  ;;  %3850 = vmatprep.mubr.bf16.mxu1 %v11007_v44  ;;  %4523 = vmatprep.mubr.bf16.mxu0 %v11003_v10  ;;  %v17032_v56 = vld [vmem:[#allocation52_spill] sm:$0xff] }
 0x2f6   : > { %v2075_v11 = vpop.f32.mrf.mxu1  ;;  %v3213_v38 = vpop.f32.mrf.mxu0 }
 0x2f7   : > { %v13177_v28 = vadd.f32 %v3211_v51, %v2074_v20  ;;  %v2076_v19 = vadd.f32 %v2075_v11, %v17028_v57  ;;  %v17034_v20 = vld [vmem:[#allocation54_spill] sm:$0xff] }
 0x2f8   : > { %v2077_v36 = vpop.f32.mrf.mxu1  ;;  %v3215_v23 = vpop.f32.mrf.mxu0 }
 0x2f9   : > { %17027 = vst [vmem:[#allocation46_spill] sm:$0xff] %v13177_v28  ;;  %v13180_v30 = vadd.f32 %v3213_v38, %v2076_v19  ;;  %v2078_v59 = vadd.f32 %v2077_v36, %v17030_v35  ;;  %v11009_v38 = vld [vmem:[%s11547_s7 + $0x104] ss:$8 sps:$4 sm:$0xff]   ;;  %v17036_v36 = vld [vmem:[#allocation56_spill] sm:$0xff] }
 0x2fa   : > { %v2079_v50 = vpop.f32.mrf.mxu1  ;;  %v3217_v24 = vpop.f32.mrf.mxu0  ;;  %v11016_v28 = vld [vmem:[%s11547_s7 + $0x130] ss:$8 sps:$4 sm:$0xff]  }
 0x2fb   : > { %17029 = vst [vmem:[#allocation48_spill] sm:$0xff] %v13180_v30  ;;  %v13183_v53 = vadd.f32 %v3215_v23, %v2078_v59  ;;  %v2080_v43 = vadd.f32 %v2079_v50, %v17032_v56 }
 0x2fc   : > { %v2083_v10 = vpop.f32.mrf.mxu1  ;;  %v3221_v45 = vpop.f32.mrf.mxu0  ;;  %3851 = vmatmul.mubr.bf16.gmra.mxu1 %v11008_v12  ;;  %4524 = vmatmul.mubr.bf16.gmra.mxu0 %v11004_v47 }
 0x2fd   : > { %17031 = vst [vmem:[#allocation50_spill] sm:$0xff] %v13183_v53  ;;  %v13187_v51 = vadd.f32 %v3217_v24, %v2080_v43  ;;  %v2084_v11 = vadd.f32 %v2083_v10, %v17034_v20  ;;  %3860 = vmatprep.mubr.bf16.mxu1 %v11009_v38  ;;  %4533 = vmatprep.mubr.bf16.mxu0 %v11005_v15  ;;  %v11010_v53 = vld [vmem:[%s11547_s7 + $0x100] ss:$8 sps:$4 sm:$0xff]   ;;  %v11011_v20 = vld [vmem:[%s11547_s7 + $0x114] ss:$8 sps:$4 sm:$0xff]  }
 0x2fe   : > { %v2085_v57 = vpop.f32.mrf.mxu1  ;;  %v3223_v19 = vpop.f32.mrf.mxu0  ;;  %v17038_v10 = vld [vmem:[#allocation57_spill] sm:$0xff] }
 0x2ff   : > { %17033 = vst [vmem:[#allocation52_spill] sm:$0xff] %v13187_v51  ;;  %v13191_v59 = vadd.f32 %v3221_v45, %v2084_v11  ;;  %v2086_v23 = vadd.f32 %v2085_v57, %v17036_v36  ;;  %v10774_v45 = vld [vmem:[%s16770_s1 + $0x7d0] ss:$8 sps:$4 sm:$0xff]   ;;  %v10776_v11 = vld [vmem:[%s16770_s1 + $0x7d4] ss:$8 sps:$4 sm:$0xff]  }
 0x300   : > { %v2087_v35 = vpop.f32.mrf.mxu1  ;;  %v3225_v50 = vpop.f32.mrf.mxu0  ;;  %5087 = vmatprep.subr.bf16.mxu1 %v10776_v11 }
 0x301   : > { %17035 = vst [vmem:[#allocation54_spill] sm:$0xff] %v13191_v59  ;;  %v13194_v56 = vadd.f32 %v3223_v19, %v2086_v23  ;;  %v17040_v23 = vld [vmem:[#allocation58_spill] sm:$0xff]  ;;  %5088 = vmatpush2.bf16.msra.mxu1 %v10774_v45  ;;  %v11012_v59 = vld [vmem:[%s11547_s7 + $0x110] ss:$8 sps:$4 sm:$0xff]  }
 0x302   : > { %v2088_v47 = vpop.f32.mrf.mxu1  ;;  %v3226_v43 = vpop.f32.mrf.mxu0  ;;  %v17046_v45 = vld [vmem:[#allocation64_spill] sm:$0xff] }
 0x303   : > { %17037 = vst [vmem:[#allocation56_spill] sm:$0xff] %v13194_v56 }
 0x304   : > { %v2091_v24 = vpop.f32.mrf.mxu1  ;;  %v3229_v51 = vpop.f32.mrf.mxu0  ;;  %3861 = vmatmul.mubr.bf16.gmra.mxu1 %v11010_v53  ;;  %4534 = vmatmul.mubr.bf16.gmra.mxu0 %v11006_v1  ;;  %v10779_v1 = vld [vmem:[%s16770_s1 + $0x5d4] ss:$8 sps:$4 sm:$0xff]  }
 0x305   : > { %v2092_v15 = vadd.f32 %v2091_v24, %v17038_v10  ;;  %3870 = vmatprep.mubr.bf16.mxu1 %v11011_v20  ;;  %4543 = vmatprep.mubr.bf16.mxu0 %v11007_v44  ;;  %v10777_v44 = vld [vmem:[%s16770_s1 + $0x5d0] ss:$8 sps:$4 sm:$0xff]  }
 0x306   : > { %v2093_v57 = vpop.f32.mrf.mxu1  ;;  %v3231_v19 = vpop.f32.mrf.mxu0  ;;  %6018 = vmatprep.subr.bf16.mxu0 %v10779_v1 }
 0x307   : > { %v13205_v36 = vadd.f32 %v3229_v51, %v2092_v15  ;;  %v2094_v35 = vadd.f32 %v2093_v57, %v17040_v23  ;;  %v17042_v51 = vld [vmem:[#allocation60_spill] sm:$0xff]  ;;  %6019 = vmatpush2.bf16.msra.mxu0 %v10777_v44  ;;  %v17044_v57 = vld [vmem:[#allocation62_spill] sm:$0xff] }
 0x308   : > { %v2095_v50 = vpop.f32.mrf.mxu1  ;;  %v3233_v47 = vpop.f32.mrf.mxu0 }
 0x309   : > { %17039 = vst [vmem:[#allocation57_spill] sm:$0xff] %v13205_v36  ;;  %v13214_v43 = vadd.f32 %v3231_v19, %v2094_v35  ;;  %v2096_v24 = vadd.f32 %v2095_v50, %v17042_v51  ;;  %v11013_v35 = vld [vmem:[%s11547_s7 + $0x124] ss:$8 sps:$4 sm:$0xff]  }
 0x30a   : > { %v2097_v10 = vpop.f32.mrf.mxu1  ;;  %v3235_v15 = vpop.f32.mrf.mxu0 }
 0x30b   : > { %17041 = vst [vmem:[#allocation58_spill] sm:$0xff] %v13214_v43  ;;  %v13217_v11 = vadd.f32 %v3233_v47, %v2096_v24  ;;  %v2098_v23 = vadd.f32 %v2097_v10, %v17044_v57  ;;  %v17048_v47 = vld [vmem:[#allocation65_spill] sm:$0xff] }
 0x30c   : > { %v2101_v36 = vpop.f32.mrf.mxu1  ;;  %v3239_v56 = vpop.f32.mrf.mxu0  ;;  %3871 = vmatmul.mubr.bf16.gmra.mxu1 %v11012_v59  ;;  %4544 = vmatmul.mubr.bf16.gmra.mxu0 %v11008_v12 }
 0x30d   : > { %17043 = vst [vmem:[#allocation60_spill] sm:$0xff] %v13217_v11  ;;  %v13221_v30 = vadd.f32 %v3235_v15, %v2098_v23  ;;  %v2102_v19 = vadd.f32 %v2101_v36, %v17046_v45  ;;  %3880 = vmatprep.mubr.bf16.mxu1 %v11013_v35  ;;  %4553 = vmatprep.mubr.bf16.mxu0 %v11009_v38  ;;  %v11014_v11 = vld [vmem:[%s11547_s7 + $0x120] ss:$8 sps:$4 sm:$0xff]   ;;  %v11015_v45 = vld [vmem:[%s11547_s7 + $0x134] ss:$8 sps:$4 sm:$0xff]  }
 0x30e   : > { %v2103_v1 = vpop.f32.mrf.mxu1  ;;  %v3241_v44 = vpop.f32.mrf.mxu0  ;;  %v17050_v36 = vld [vmem:[#allocation66_spill] sm:$0xff] }
 0x30f   : > { %17045 = vst [vmem:[#allocation62_spill] sm:$0xff] %v13221_v30  ;;  %v13225_v50 = vadd.f32 %v3239_v56, %v2102_v19  ;;  %v2104_v51 = vadd.f32 %v2103_v1, %v17048_v47  ;;  %v17052_v47 = vld [vmem:[#allocation67_spill] sm:$0xff] }
 0x310   : > { %v2105_v24 = vpop.f32.mrf.mxu1  ;;  %v3243_v10 = vpop.f32.mrf.mxu0 }
 0x311   : > { %17047 = vst [vmem:[#allocation64_spill] sm:$0xff] %v13225_v50  ;;  %v13228_v57 = vadd.f32 %v3241_v44, %v2104_v51 }
 0x312   : > { %v2106_v12 = vpop.f32.mrf.mxu1  ;;  %v3244_v15 = vpop.f32.mrf.mxu0 }
 0x313   : > { %17049 = vst [vmem:[#allocation65_spill] sm:$0xff] %v13228_v57  ;;  %v17054_v12 = vld [vmem:[#allocation68_spill] sm:$0xff] }
 0x314   : > { %v2109_v23 = vpop.f32.mrf.mxu1  ;;  %v3247_v30 = vpop.f32.mrf.mxu0  ;;  %3881 = vmatmul.mubr.bf16.gmra.mxu1 %v11014_v11  ;;  %4554 = vmatmul.mubr.bf16.gmra.mxu0 %v11010_v53 }
 0x315   : > { %v2110_v38 = vadd.f32 %v2109_v23, %v17050_v36  ;;  %3890 = vmatprep.mubr.bf16.mxu1 %v11015_v45  ;;  %4563 = vmatprep.mubr.bf16.mxu0 %v11011_v20  ;;  %v17056_v36 = vld [vmem:[#allocation69_spill] sm:$0xff] }
 0x316   : > { %v2111_v56 = vpop.f32.mrf.mxu1  ;;  %v3249_v19 = vpop.f32.mrf.mxu0 }
 0x317   : > { %v13233_v1 = vadd.f32 %v3247_v30, %v2110_v38  ;;  %v2112_v44 = vadd.f32 %v2111_v56, %v17052_v47  ;;  %v17058_v38 = vld [vmem:[#allocation71_spill] sm:$0xff]  ;;  %v11017_v47 = vld [vmem:[%s11547_s7 + $0x144] ss:$8 sps:$4 sm:$0xff]  }
 0x318   : > { %v2113_v51 = vpop.f32.mrf.mxu1  ;;  %v3251_v24 = vpop.f32.mrf.mxu0 }
 0x319   : > { %17051 = vst [vmem:[#allocation66_spill] sm:$0xff] %v13233_v1  ;;  %v13236_v10 = vadd.f32 %v3249_v19, %v2112_v44  ;;  %v2114_v15 = vadd.f32 %v2113_v51, %v17054_v12  ;;  %v10780_v19 = vld [vmem:[%s16770_s1 + $0x7c0] ss:$8 sps:$4 sm:$0xff]   ;;  %v10782_v44 = vld [vmem:[%s16770_s1 + $0x7c4] ss:$8 sps:$4 sm:$0xff]  }
 0x31a   : > { %v2115_v53 = vpop.f32.mrf.mxu1  ;;  %v3253_v57 = vpop.f32.mrf.mxu0  ;;  %5089 = vmatprep.subr.bf16.mxu1 %v10782_v44  ;;  %v11018_v44 = vld [vmem:[%s11547_s7 + $0x140] ss:$8 sps:$4 sm:$0xff]   ;;  %v11020_v1 = vld [vmem:[%s11547_s7 + $0x150] ss:$8 sps:$4 sm:$0xff]  }
 0x31b   : > { %17053 = vst [vmem:[#allocation67_spill] sm:$0xff] %v13236_v10  ;;  %v13239_v23 = vadd.f32 %v3251_v24, %v2114_v15  ;;  %v2116_v50 = vadd.f32 %v2115_v53, %v17056_v36  ;;  %5090 = vmatpush2.bf16.msra.mxu1 %v10780_v19 }
 0x31c   : > { %v2119_v20 = vpop.f32.mrf.mxu1  ;;  %v3257_v43 = vpop.f32.mrf.mxu0  ;;  %3891 = vmatmul.mubr.bf16.gmra.mxu1 %v11016_v28  ;;  %4564 = vmatmul.mubr.bf16.gmra.mxu0 %v11012_v59  ;;  %v17060_v59 = vld [vmem:[#allocation73_spill] sm:$0xff] }
 0x31d   : > { %17055 = vst [vmem:[#allocation68_spill] sm:$0xff] %v13239_v23  ;;  %v13243_v30 = vadd.f32 %v3253_v57, %v2116_v50  ;;  %v2120_v56 = vadd.f32 %v2119_v20, %v17058_v38  ;;  %3900 = vmatprep.mubr.bf16.mxu1 %v11017_v47  ;;  %4573 = vmatprep.mubr.bf16.mxu0 %v11013_v35  ;;  %v10783_v35 = vld [vmem:[%s16770_s1 + $0x5c0] ss:$8 sps:$4 sm:$0xff]   ;;  %v10785_v57 = vld [vmem:[%s16770_s1 + $0x5c4] ss:$8 sps:$4 sm:$0xff]  }
 0x31e   : > { %v2121_v51 = vpop.f32.mrf.mxu1  ;;  %v3259_v24 = vpop.f32.mrf.mxu0  ;;  %6020 = vmatprep.subr.bf16.mxu0 %v10785_v57 }
 0x31f   : > { %17057 = vst [vmem:[#allocation69_spill] sm:$0xff] %v13243_v30  ;;  %v13253_v12 = vadd.f32 %v3257_v43, %v2120_v56  ;;  %v2122_v50 = vadd.f32 %v2121_v51, %v17060_v59  ;;  %6021 = vmatpush2.bf16.msra.mxu0 %v10783_v35  ;;  %v17062_v51 = vld [vmem:[#allocation74_spill] sm:$0xff] }
 0x320   : > { %v2123_v15 = vpop.f32.mrf.mxu1  ;;  %v3261_v53 = vpop.f32.mrf.mxu0 }
 0x321   : > { %17059 = vst [vmem:[#allocation71_spill] sm:$0xff] %v13253_v12  ;;  %v13262_v36 = vadd.f32 %v3259_v24, %v2122_v50  ;;  %v11019_v12 = vld [vmem:[%s11547_s7 + $0x154] ss:$8 sps:$4 sm:$0xff]  }
 0x322   : > { %v2124_v43 = vpop.f32.mrf.mxu1  ;;  %v3262_v20 = vpop.f32.mrf.mxu0  ;;  %v17064_v24 = vld [vmem:[#allocation75_spill] sm:$0xff] }
 0x323   : > { %17061 = vst [vmem:[#allocation73_spill] sm:$0xff] %v13262_v36  ;;  %v17066_v20 = vld [vmem:[#allocation76_spill] sm:$0xff] }
 0x324   : > { %v2127_v38 = vpop.f32.mrf.mxu1  ;;  %v3265_v56 = vpop.f32.mrf.mxu0  ;;  %3901 = vmatmul.mubr.bf16.gmra.mxu1 %v11018_v44  ;;  %4574 = vmatmul.mubr.bf16.gmra.mxu0 %v11014_v11 }
 0x325   : > { %v2128_v59 = vadd.f32 %v2127_v38, %v17062_v51  ;;  %3910 = vmatprep.mubr.bf16.mxu1 %v11019_v12  ;;  %4583 = vmatprep.mubr.bf16.mxu0 %v11015_v45  ;;  %v17068_v51 = vld [vmem:[#allocation77_spill] sm:$0xff] }
 0x326   : > { %v2129_v15 = vpop.f32.mrf.mxu1  ;;  %v3267_v53 = vpop.f32.mrf.mxu0 }
 0x327   : > { %v13267_v19 = vadd.f32 %v3265_v56, %v2128_v59  ;;  %v2130_v50 = vadd.f32 %v2129_v15, %v17064_v24  ;;  %v17070_v59 = vld [vmem:[#allocation79_spill] sm:$0xff] }
 0x328   : > { %v2131_v57 = vpop.f32.mrf.mxu1  ;;  %v3269_v35 = vpop.f32.mrf.mxu0 }
 0x329   : > { %17063 = vst [vmem:[#allocation74_spill] sm:$0xff] %v13267_v19  ;;  %v13270_v43 = vadd.f32 %v3267_v53, %v2130_v50  ;;  %v2132_v36 = vadd.f32 %v2131_v57, %v17066_v20  ;;  %v11021_v53 = vld [vmem:[%s11547_s7 + $0x164] ss:$8 sps:$4 sm:$0xff]   ;;  %v17072_v57 = vld [vmem:[#allocation80_spill] sm:$0xff] }
 0x32a   : > { %v2133_v11 = vpop.f32.mrf.mxu1  ;;  %v3271_v30 = vpop.f32.mrf.mxu0  ;;  %v11028_v19 = vld [vmem:[%s11547_s7 + $0x190] ss:$8 sps:$4 sm:$0xff]  }
 0x32b   : > { %17065 = vst [vmem:[#allocation75_spill] sm:$0xff] %v13270_v43  ;;  %v13273_v38 = vadd.f32 %v3269_v35, %v2132_v36  ;;  %v2134_v23 = vadd.f32 %v2133_v11, %v17068_v51 }
 0x32c   : > { %v2137_v45 = vpop.f32.mrf.mxu1  ;;  %v3275_v10 = vpop.f32.mrf.mxu0  ;;  %3911 = vmatmul.mubr.bf16.gmra.mxu1 %v11020_v1  ;;  %4584 = vmatmul.mubr.bf16.gmra.mxu0 %v11016_v28 }
 0x32d   : > { %17067 = vst [vmem:[#allocation76_spill] sm:$0xff] %v13273_v38  ;;  %v13277_v56 = vadd.f32 %v3271_v30, %v2134_v23  ;;  %v2138_v15 = vadd.f32 %v2137_v45, %v17070_v59  ;;  %3920 = vmatprep.mubr.bf16.mxu1 %v11021_v53  ;;  %4593 = vmatprep.mubr.bf16.mxu0 %v11017_v47  ;;  %v11022_v38 = vld [vmem:[%s11547_s7 + $0x160] ss:$8 sps:$4 sm:$0xff]   ;;  %v11023_v59 = vld [vmem:[%s11547_s7 + $0x174] ss:$8 sps:$4 sm:$0xff]  }
 0x32e   : > { %v2139_v24 = vpop.f32.mrf.mxu1  ;;  %v3277_v50 = vpop.f32.mrf.mxu0  ;;  %v17074_v45 = vld [vmem:[#allocation82_spill] sm:$0xff] }
 0x32f   : > { %17069 = vst [vmem:[#allocation77_spill] sm:$0xff] %v13277_v56  ;;  %v13281_v36 = vadd.f32 %v3275_v10, %v2138_v15  ;;  %v2140_v35 = vadd.f32 %v2139_v24, %v17072_v57  ;;  %v10786_v10 = vld [vmem:[%s16770_s1 + $0x7b0] ss:$8 sps:$4 sm:$0xff]   ;;  %v10788_v15 = vld [vmem:[%s16770_s1 + $0x7b4] ss:$8 sps:$4 sm:$0xff]  }
 0x330   : > { %v2141_v20 = vpop.f32.mrf.mxu1  ;;  %v3279_v11 = vpop.f32.mrf.mxu0  ;;  %5091 = vmatprep.subr.bf16.mxu1 %v10788_v15 }
 0x331   : > { %17071 = vst [vmem:[#allocation79_spill] sm:$0xff] %v13281_v36  ;;  %v13284_v51 = vadd.f32 %v3277_v50, %v2140_v35  ;;  %v17076_v35 = vld [vmem:[#allocation84_spill] sm:$0xff]  ;;  %5092 = vmatpush2.bf16.msra.mxu1 %v10786_v10  ;;  %v17082_v10 = vld [vmem:[#allocation90_spill] sm:$0xff] }
 0x332   : > { %v2142_v28 = vpop.f32.mrf.mxu1  ;;  %v3280_v23 = vpop.f32.mrf.mxu0  ;;  %v11024_v36 = vld [vmem:[%s11547_s7 + $0x170] ss:$8 sps:$4 sm:$0xff]  }
 0x333   : > { %17073 = vst [vmem:[#allocation80_spill] sm:$0xff] %v13284_v51 }
 0x334   : > { %v2145_v30 = vpop.f32.mrf.mxu1  ;;  %v3283_v56 = vpop.f32.mrf.mxu0  ;;  %3921 = vmatmul.mubr.bf16.gmra.mxu1 %v11022_v38  ;;  %4594 = vmatmul.mubr.bf16.gmra.mxu0 %v11018_v44  ;;  %v10791_v44 = vld [vmem:[%s16770_s1 + $0x5b4] ss:$8 sps:$4 sm:$0xff]  }
 0x335   : > { %v2146_v47 = vadd.f32 %v2145_v30, %v17074_v45  ;;  %3930 = vmatprep.mubr.bf16.mxu1 %v11023_v59  ;;  %4603 = vmatprep.mubr.bf16.mxu0 %v11019_v12  ;;  %v10789_v12 = vld [vmem:[%s16770_s1 + $0x5b0] ss:$8 sps:$4 sm:$0xff]  }
 0x336   : > { %v2147_v24 = vpop.f32.mrf.mxu1  ;;  %v3285_v50 = vpop.f32.mrf.mxu0  ;;  %6022 = vmatprep.subr.bf16.mxu0 %v10791_v44 }
 0x337   : > { %v13295_v57 = vadd.f32 %v3283_v56, %v2146_v47  ;;  %v2148_v20 = vadd.f32 %v2147_v24, %v17076_v35  ;;  %v17078_v56 = vld [vmem:[#allocation86_spill] sm:$0xff]  ;;  %6023 = vmatpush2.bf16.msra.mxu0 %v10789_v12  ;;  %v17080_v24 = vld [vmem:[#allocation88_spill] sm:$0xff] }
 0x338   : > { %v2149_v11 = vpop.f32.mrf.mxu1  ;;  %v3287_v28 = vpop.f32.mrf.mxu0 }
 0x339   : > { %17075 = vst [vmem:[#allocation82_spill] sm:$0xff] %v13295_v57  ;;  %v13304_v23 = vadd.f32 %v3285_v50, %v2148_v20  ;;  %v2150_v30 = vadd.f32 %v2149_v11, %v17078_v56  ;;  %v11025_v20 = vld [vmem:[%s11547_s7 + $0x184] ss:$8 sps:$4 sm:$0xff]  }
 0x33a   : > { %v2151_v45 = vpop.f32.mrf.mxu1  ;;  %v3289_v47 = vpop.f32.mrf.mxu0 }
 0x33b   : > { %17077 = vst [vmem:[#allocation84_spill] sm:$0xff] %v13304_v23  ;;  %v13307_v15 = vadd.f32 %v3287_v28, %v2150_v30  ;;  %v2152_v35 = vadd.f32 %v2151_v45, %v17080_v24  ;;  %v17084_v28 = vld [vmem:[#allocation91_spill] sm:$0xff] }
 0x33c   : > { %v2155_v57 = vpop.f32.mrf.mxu1  ;;  %v3293_v51 = vpop.f32.mrf.mxu0  ;;  %3931 = vmatmul.mubr.bf16.gmra.mxu1 %v11024_v36  ;;  %4604 = vmatmul.mubr.bf16.gmra.mxu0 %v11020_v1 }
 0x33d   : > { %17079 = vst [vmem:[#allocation86_spill] sm:$0xff] %v13307_v15  ;;  %v13311_v43 = vadd.f32 %v3289_v47, %v2152_v35  ;;  %v2156_v50 = vadd.f32 %v2155_v57, %v17082_v10  ;;  %3940 = vmatprep.mubr.bf16.mxu1 %v11025_v20  ;;  %4613 = vmatprep.mubr.bf16.mxu0 %v11021_v53  ;;  %v11026_v15 = vld [vmem:[%s11547_s7 + $0x180] ss:$8 sps:$4 sm:$0xff]   ;;  %v17086_v57 = vld [vmem:[#allocation92_spill] sm:$0xff] }
 0x33e   : > { %v2157_v44 = vpop.f32.mrf.mxu1  ;;  %v3295_v12 = vpop.f32.mrf.mxu0  ;;  %v11027_v10 = vld [vmem:[%s11547_s7 + $0x194] ss:$8 sps:$4 sm:$0xff]  }
 0x33f   : > { %17081 = vst [vmem:[#allocation88_spill] sm:$0xff] %v13311_v43  ;;  %v13315_v11 = vadd.f32 %v3293_v51, %v2156_v50  ;;  %v2158_v56 = vadd.f32 %v2157_v44, %v17084_v28  ;;  %v17088_v28 = vld [vmem:[#allocation93_spill] sm:$0xff] }
 0x340   : > { %v2159_v30 = vpop.f32.mrf.mxu1  ;;  %v3297_v45 = vpop.f32.mrf.mxu0 }
 0x341   : > { %17083 = vst [vmem:[#allocation90_spill] sm:$0xff] %v13315_v11  ;;  %v13318_v24 = vadd.f32 %v3295_v12, %v2158_v56 }
 0x342   : > { %v2160_v1 = vpop.f32.mrf.mxu1  ;;  %v3298_v47 = vpop.f32.mrf.mxu0 }
 0x343   : > { %17085 = vst [vmem:[#allocation91_spill] sm:$0xff] %v13318_v24  ;;  %v17090_v1 = vld [vmem:[#allocation95_spill] sm:$0xff] }
 0x344   : > { %v2163_v35 = vpop.f32.mrf.mxu1  ;;  %v3301_v43 = vpop.f32.mrf.mxu0  ;;  %3941 = vmatmul.mubr.bf16.gmra.mxu1 %v11026_v15  ;;  %4614 = vmatmul.mubr.bf16.gmra.mxu0 %v11022_v38 }
 0x345   : > { %v2164_v53 = vadd.f32 %v2163_v35, %v17086_v57  ;;  %3950 = vmatprep.mubr.bf16.mxu1 %v11027_v10  ;;  %4623 = vmatprep.mubr.bf16.mxu0 %v11023_v59  ;;  %v17092_v57 = vld [vmem:[#allocation97_spill] sm:$0xff] }
 0x346   : > { %v2165_v51 = vpop.f32.mrf.mxu1  ;;  %v3303_v50 = vpop.f32.mrf.mxu0 }
 0x347   : > { %v13323_v44 = vadd.f32 %v3301_v43, %v2164_v53  ;;  %v2166_v12 = vadd.f32 %v2165_v51, %v17088_v28  ;;  %v17094_v53 = vld [vmem:[#allocation99_spill] sm:$0xff]  ;;  %v11029_v28 = vld [vmem:[%s11547_s7 + $0x1a4] ss:$8 sps:$4 sm:$0xff]  }
 0x348   : > { %v2167_v56 = vpop.f32.mrf.mxu1  ;;  %v3305_v30 = vpop.f32.mrf.mxu0 }
 0x349   : > { %17087 = vst [vmem:[#allocation92_spill] sm:$0xff] %v13323_v44  ;;  %v13326_v45 = vadd.f32 %v3303_v50, %v2166_v12  ;;  %v2168_v47 = vadd.f32 %v2167_v56, %v17090_v1  ;;  %v10792_v50 = vld [vmem:[%s16770_s1 + $0x7a0] ss:$8 sps:$4 sm:$0xff]   ;;  %v10794_v12 = vld [vmem:[%s16770_s1 + $0x7a4] ss:$8 sps:$4 sm:$0xff]  }
 0x34a   : > { %v2169_v38 = vpop.f32.mrf.mxu1  ;;  %v3307_v24 = vpop.f32.mrf.mxu0  ;;  %5093 = vmatprep.subr.bf16.mxu1 %v10794_v12 }
 0x34b   : > { %17089 = vst [vmem:[#allocation93_spill] sm:$0xff] %v13326_v45  ;;  %v13329_v35 = vadd.f32 %v3305_v30, %v2168_v47  ;;  %v2170_v11 = vadd.f32 %v2169_v38, %v17092_v57  ;;  %5094 = vmatpush2.bf16.msra.mxu1 %v10792_v50 }
 0x34c   : > { %v2173_v59 = vpop.f32.mrf.mxu1  ;;  %v3311_v23 = vpop.f32.mrf.mxu0  ;;  %3951 = vmatmul.mubr.bf16.gmra.mxu1 %v11028_v19  ;;  %4624 = vmatmul.mubr.bf16.gmra.mxu0 %v11024_v36  ;;  %v17096_v36 = vld [vmem:[#allocation101_spill] sm:$0xff] }
 0x34d   : > { %17091 = vst [vmem:[#allocation95_spill] sm:$0xff] %v13329_v35  ;;  %v13333_v43 = vadd.f32 %v3307_v24, %v2170_v11  ;;  %v2174_v51 = vadd.f32 %v2173_v59, %v17094_v53  ;;  %3960 = vmatprep.mubr.bf16.mxu1 %v11029_v28  ;;  %4633 = vmatprep.mubr.bf16.mxu0 %v11025_v20  ;;  %v10795_v20 = vld [vmem:[%s16770_s1 + $0x5a0] ss:$8 sps:$4 sm:$0xff]   ;;  %v10797_v24 = vld [vmem:[%s16770_s1 + $0x5a4] ss:$8 sps:$4 sm:$0xff]  }
 0x34e   : > { %v2175_v56 = vpop.f32.mrf.mxu1  ;;  %v3313_v30 = vpop.f32.mrf.mxu0  ;;  %6024 = vmatprep.subr.bf16.mxu0 %v10797_v24 }
 0x34f   : > { %17093 = vst [vmem:[#allocation97_spill] sm:$0xff] %v13333_v43  ;;  %v13343_v1 = vadd.f32 %v3311_v23, %v2174_v51  ;;  %v2176_v11 = vadd.f32 %v2175_v56, %v17096_v36  ;;  %6025 = vmatpush2.bf16.msra.mxu0 %v10795_v20  ;;  %v11030_v51 = vld [vmem:[%s11547_s7 + $0x1a0] ss:$8 sps:$4 sm:$0xff]   ;;  %v11031_v36 = vld [vmem:[%s11547_s7 + $0x1b4] ss:$8 sps:$4 sm:$0xff]  }
 0x350   : > { %v2177_v47 = vpop.f32.mrf.mxu1  ;;  %v3315_v38 = vpop.f32.mrf.mxu0 }
 0x351   : > { %17095 = vst [vmem:[#allocation99_spill] sm:$0xff] %v13343_v1  ;;  %v13352_v57 = vadd.f32 %v3313_v30, %v2176_v11 }
 0x352   : > { %v2178_v23 = vpop.f32.mrf.mxu1  ;;  %v3316_v59 = vpop.f32.mrf.mxu0 }
 0x353   : > { %17097 = vst [vmem:[#allocation101_spill] sm:$0xff] %v13352_v57 }
 0x354   : > { %v3722_v53 = vpop.f32.mrf.mxu1  ;;  %3961 = vmatmul.mubr.bf16.gmra.mxu1 %v11030_v51  ;;  %v4395_v12 = vpop.f32.mrf.mxu0  ;;  %4634 = vmatmul.mubr.bf16.gmra.mxu0 %v11026_v15  ;;  %v11032_v15 = vld [vmem:[%s11547_s7 + $0x1b0] ss:$8 sps:$4 sm:$0xff]  }
 0x355   : > { %v13355_v56 = vadd.f32 %v4395_v12, %v3722_v53  ;;  %3970 = vmatprep.mubr.bf16.mxu1 %v11031_v36  ;;  %4643 = vmatprep.mubr.bf16.mxu0 %v11027_v10  ;;  %v11033_v12 = vld [vmem:[%s11547_s7 + $0x1c4] ss:$8 sps:$4 sm:$0xff]  }
 0x356   : > { %v3724_v47 = vpop.f32.mrf.mxu1  ;;  %v4397_v50 = vpop.f32.mrf.mxu0 }
 0x357   : > { %v13358_v30 = vadd.f32 %v4397_v50, %v3724_v47 }
 0x358   : > { %v3726_v11 = vpop.f32.mrf.mxu1  ;;  %v4399_v24 = vpop.f32.mrf.mxu0 }
 0x359   : > { %v13360_v38 = vadd.f32 %v4399_v24, %v3726_v11 }
 0x35a   : > { %v3728_v20 = vpop.f32.mrf.mxu1  ;;  %v4401_v23 = vpop.f32.mrf.mxu0 }
 0x35b   : > { %v13362_v59 = vadd.f32 %v4401_v23, %v3728_v20 }
 0x35c   : > { %v3732_v57 = vpop.f32.mrf.mxu1  ;;  %3971 = vmatmul.mubr.bf16.gmra.mxu1 %v11032_v15  ;;  %v4405_v53 = vpop.f32.mrf.mxu0  ;;  %4644 = vmatmul.mubr.bf16.gmra.mxu0 %v11028_v19  ;;  %v11034_v19 = vld [vmem:[%s11547_s7 + $0x1c0] ss:$8 sps:$4 sm:$0xff]  }
 0x35d   : > { %v13365_v10 = vadd.f32 %v4405_v53, %v3732_v57  ;;  %3980 = vmatprep.mubr.bf16.mxu1 %v11033_v12  ;;  %4653 = vmatprep.mubr.bf16.mxu0 %v11029_v28  ;;  %v11035_v28 = vld [vmem:[%s11547_s7 + $0x1d4] ss:$8 sps:$4 sm:$0xff]  }
 0x35e   : > { %v3734_v47 = vpop.f32.mrf.mxu1  ;;  %v4407_v50 = vpop.f32.mrf.mxu0 }
 0x35f   : > { %v13368_v11 = vadd.f32 %v4407_v50, %v3734_v47  ;;  %v10798_v47 = vld [vmem:[%s16770_s1 + $0x790] ss:$8 sps:$4 sm:$0xff]  }
 0x360   : > { %v3736_v24 = vpop.f32.mrf.mxu1  ;;  %v4409_v1 = vpop.f32.mrf.mxu0 }
 0x361   : > { %v13370_v20 = vadd.f32 %v4409_v1, %v3736_v24  ;;  %v10800_v1 = vld [vmem:[%s16770_s1 + $0x794] ss:$8 sps:$4 sm:$0xff]  }
 0x362   : > { %v3738_v23 = vpop.f32.mrf.mxu1  ;;  %v4411_v43 = vpop.f32.mrf.mxu0  ;;  %5095 = vmatprep.subr.bf16.mxu1 %v10800_v1 }
 0x363   : > { %v13372_v35 = vadd.f32 %v4411_v43, %v3738_v23  ;;  %5096 = vmatpush2.bf16.msra.mxu1 %v10798_v47 }
 0x364   : > { %v3742_v45 = vpop.f32.mrf.mxu1  ;;  %3981 = vmatmul.mubr.bf16.gmra.mxu1 %v11034_v19  ;;  %v4415_v57 = vpop.f32.mrf.mxu0  ;;  %4654 = vmatmul.mubr.bf16.gmra.mxu0 %v11030_v51  ;;  %v10803_v51 = vld [vmem:[%s16770_s1 + $0x594] ss:$8 sps:$4 sm:$0xff]  }
 0x365   : > { %v13375_v53 = vadd.f32 %v4415_v57, %v3742_v45  ;;  %3990 = vmatprep.mubr.bf16.mxu1 %v11035_v28  ;;  %4663 = vmatprep.mubr.bf16.mxu0 %v11031_v36  ;;  %v10801_v45 = vld [vmem:[%s16770_s1 + $0x590] ss:$8 sps:$4 sm:$0xff]  }
 0x366   : > { %v3744_v43 = vpop.f32.mrf.mxu1  ;;  %v4417_v50 = vpop.f32.mrf.mxu0  ;;  %6026 = vmatprep.subr.bf16.mxu0 %v10803_v51 }
 0x367   : > { %v13384_v24 = vadd.f32 %v4417_v50, %v3744_v43  ;;  %6027 = vmatpush2.bf16.msra.mxu0 %v10801_v45  ;;  %v11036_v50 = vld [vmem:[%s11547_s7 + $0x1d0] ss:$8 sps:$4 sm:$0xff]  }
 0x368   : > { %v3746_v36 = vpop.f32.mrf.mxu1  ;;  %v4419_v23 = vpop.f32.mrf.mxu0 }
 0x369   : > { %v13392_v57 = vadd.f32 %v4419_v23, %v3746_v36 }
 0x36a   : > { %v3748_v44 = vpop.f32.mrf.mxu1  ;;  %v4421_v13 = vpop.f32.mrf.mxu0 }
 0x36b   : > { %v13394_v43 = vadd.f32 %v4421_v13, %v3748_v44 }
 0x36c   : > { %v3752_v1 = vpop.f32.mrf.mxu1  ;;  %3991 = vmatmul.mubr.bf16.gmra.mxu1 %v11036_v50  ;;  %v4425_v33 = vpop.f32.mrf.mxu0  ;;  %4664 = vmatmul.mubr.bf16.gmra.mxu0 %v11032_v15  ;;  %v11038_v15 = vld [vmem:[%s11547_s7 + $0x1e0] ss:$8 sps:$4 sm:$0xff]  }
 0x36d   : > { %v13397_v3 = vadd.f32 %v4425_v33, %v3752_v1  ;;  %4000 = vmatprep.mubr.bf16.mxu1 %v11037_v18  ;;  %4673 = vmatprep.mubr.bf16.mxu0 %v11033_v12  ;;  %v11039_v1 = vld [vmem:[%s11547_s7 + $0x1f4] ss:$8 sps:$4 sm:$0xff]  }
 0x36e   : > { %v3754_v47 = vpop.f32.mrf.mxu1  ;;  %v4427_v36 = vpop.f32.mrf.mxu0 }
 0x36f   : > { %v13400_v51 = vadd.f32 %v4427_v36, %v3754_v47 }
 0x370   : > { %v3756_v23 = vpop.f32.mrf.mxu1  ;;  %v4429_v45 = vpop.f32.mrf.mxu0 }
 0x371   : > { %v13402_v13 = vadd.f32 %v4429_v45, %v3756_v23 }
 0x372   : > { %v3758_v44 = vpop.f32.mrf.mxu1  ;;  %v4431_v63 = vpop.f32.mrf.mxu0 }
 0x373   : > { %v13404_v61 = vadd.f32 %v4431_v63, %v3758_v44 }
 0x374   : > { %v3762_v16 = vpop.f32.mrf.mxu1  ;;  %4001 = vmatmul.mubr.bf16.gmra.mxu1 %v11038_v15  ;;  %v4435_v33 = vpop.f32.mrf.mxu0  ;;  %4674 = vmatmul.mubr.bf16.gmra.mxu0 %v11034_v19  ;;  %v11040_v19 = vld [vmem:[%s11547_s7 + $0x1f0] ss:$8 sps:$4 sm:$0xff]  }
 0x375   : > { %v13407_v12 = vadd.f32 %v4435_v33, %v3762_v16  ;;  %4010 = vmatprep.mubr.bf16.mxu1 %v11039_v1  ;;  %4683 = vmatprep.mubr.bf16.mxu0 %v11035_v28  ;;  %v11041_v28 = vld [vmem:[%s11547_s7 + $0x204] ss:$8 sps:$4 sm:$0xff]  }
 0x376   : > { %v3764_v47 = vpop.f32.mrf.mxu1  ;;  %v4437_v36 = vpop.f32.mrf.mxu0 }
 0x377   : > { %v13410_v23 = vadd.f32 %v4437_v36, %v3764_v47  ;;  %v10804_v47 = vld [vmem:[%s16770_s1 + $0x780] ss:$8 sps:$4 sm:$0xff]  }
 0x378   : > { %v3766_v45 = vpop.f32.mrf.mxu1  ;;  %v4439_v4 = vpop.f32.mrf.mxu0 }
 0x379   : > { %v13412_v63 = vadd.f32 %v4439_v4, %v3766_v45  ;;  %v10806_v4 = vld [vmem:[%s16770_s1 + $0x784] ss:$8 sps:$4 sm:$0xff]  }
 0x37a   : > { %v3768_v44 = vpop.f32.mrf.mxu1  ;;  %v4441_v7 = vpop.f32.mrf.mxu0  ;;  %5097 = vmatprep.subr.bf16.mxu1 %v10806_v4 }
 0x37b   : > { %v13414_v22 = vadd.f32 %v4441_v7, %v3768_v44  ;;  %5098 = vmatpush2.bf16.msra.mxu1 %v10804_v47 }
 0x37c   : > { %v3772_v46 = vpop.f32.mrf.mxu1  ;;  %4011 = vmatmul.mubr.bf16.gmra.mxu1 %v11040_v19  ;;  %v4445_v16 = vpop.f32.mrf.mxu0  ;;  %4684 = vmatmul.mubr.bf16.gmra.mxu0 %v11036_v50 }
 0x37d   : > { %v13417_v33 = vadd.f32 %v4445_v16, %v3772_v46  ;;  %4020 = vmatprep.mubr.bf16.mxu1 %v11041_v28  ;;  %4693 = vmatprep.mubr.bf16.mxu0 %v11037_v18  ;;  %v10807_v46 = vld [vmem:[%s16770_s1 + $0x580] ss:$8 sps:$4 sm:$0xff]   ;;  %v10809_v18 = vld [vmem:[%s16770_s1 + $0x584] ss:$8 sps:$4 sm:$0xff]  }
 0x37e   : > { %v3774_v7 = vpop.f32.mrf.mxu1  ;;  %v4447_v36 = vpop.f32.mrf.mxu0  ;;  %6028 = vmatprep.subr.bf16.mxu0 %v10809_v18 }
 0x37f   : > { %v13426_v45 = vadd.f32 %v4447_v36, %v3774_v7  ;;  %6029 = vmatpush2.bf16.msra.mxu0 %v10807_v46  ;;  %v11042_v36 = vld [vmem:[%s11547_s7 + $0x200] ss:$8 sps:$4 sm:$0xff]  }
 0x380   : > { %v3776_v50 = vpop.f32.mrf.mxu1  ;;  %v4449_v44 = vpop.f32.mrf.mxu0 }
 0x381   : > { %v13434_v16 = vadd.f32 %v4449_v44, %v3776_v50 }
 0x382   : > { %v3778_v52 = vpop.f32.mrf.mxu1  ;;  %v4451_v17 = vpop.f32.mrf.mxu0 }
 0x383   : > { %v13436_v7 = vadd.f32 %v4451_v17, %v3778_v52 }
 0x384   : > { %v3782_v4 = vpop.f32.mrf.mxu1  ;;  %4021 = vmatmul.mubr.bf16.gmra.mxu1 %v11042_v36  ;;  %v4455_v37 = vpop.f32.mrf.mxu0  ;;  %4694 = vmatmul.mubr.bf16.gmra.mxu0 %v11038_v15  ;;  %v11044_v15 = vld [vmem:[%s11547_s7 + $0x210] ss:$8 sps:$4 sm:$0xff]  }
 0x385   : > { %v13439_v9 = vadd.f32 %v4455_v37, %v3782_v4  ;;  %4030 = vmatprep.mubr.bf16.mxu1 %v11043_v14  ;;  %4703 = vmatprep.mubr.bf16.mxu0 %v11039_v1  ;;  %v11045_v4 = vld [vmem:[%s11547_s7 + $0x224] ss:$8 sps:$4 sm:$0xff]  }
 0x386   : > { %v3784_v47 = vpop.f32.mrf.mxu1  ;;  %v4457_v50 = vpop.f32.mrf.mxu0 }
 0x387   : > { %v13442_v18 = vadd.f32 %v4457_v50, %v3784_v47 }
 0x388   : > { %v3786_v44 = vpop.f32.mrf.mxu1  ;;  %v4459_v46 = vpop.f32.mrf.mxu0 }
 0x389   : > { %v13444_v17 = vadd.f32 %v4459_v46, %v3786_v44 }
 0x38a   : > { %v3788_v52 = vpop.f32.mrf.mxu1  ;;  %v4461_v39 = vpop.f32.mrf.mxu0 }
 0x38b   : > { %v13446_v29 = vadd.f32 %v4461_v39, %v3788_v52 }
 0x38c   : > { %v3792_v41 = vpop.f32.mrf.mxu1  ;;  %4031 = vmatmul.mubr.bf16.gmra.mxu1 %v11044_v15  ;;  %v4465_v37 = vpop.f32.mrf.mxu0  ;;  %4704 = vmatmul.mubr.bf16.gmra.mxu0 %v11040_v19  ;;  %v11046_v19 = vld [vmem:[%s11547_s7 + $0x220] ss:$8 sps:$4 sm:$0xff]  }
 0x38d   : > { %v13449_v1 = vadd.f32 %v4465_v37, %v3792_v41  ;;  %4040 = vmatprep.mubr.bf16.mxu1 %v11045_v4  ;;  %4713 = vmatprep.mubr.bf16.mxu0 %v11041_v28  ;;  %v11047_v28 = vld [vmem:[%s11547_s7 + $0x234] ss:$8 sps:$4 sm:$0xff]  }
 0x38e   : > { %v3794_v47 = vpop.f32.mrf.mxu1  ;;  %v4467_v50 = vpop.f32.mrf.mxu0 }
 0x38f   : > { %v13452_v44 = vadd.f32 %v4467_v50, %v3794_v47 }
 0x390   : > { %v3796_v46 = vpop.f32.mrf.mxu1  ;;  %v4469_v49 = vpop.f32.mrf.mxu0 }
 0x391   : > { %17098 = vst [vmem:[#allocation134_spill] sm:$0xff] %v13452_v44  ;;  %v13454_v39 = vadd.f32 %v4469_v49, %v3796_v46  ;;  %v10812_v49 = vld [vmem:[%s16770_s1 + $0x274] ss:$8 sps:$4 sm:$0xff]  }
 0x392   : > { %v3798_v52 = vpop.f32.mrf.mxu1  ;;  %v4471_v27 = vpop.f32.mrf.mxu0  ;;  %6671 = vmatprep.subr.bf16.mxu1 %v10812_v49 }
 0x393   : > { %17099 = vst [vmem:[#allocation135_spill] sm:$0xff] %v13454_v39  ;;  %v13456_v21 = vadd.f32 %v4471_v27, %v3798_v52  ;;  %v10815_v27 = vld [vmem:[%s16770_s1 + $0x874] ss:$8 sps:$4 sm:$0xff]   ;;  %v11048_v39 = vld [vmem:[%s11547_s7 + $0x230] ss:$8 sps:$4 sm:$0xff]  }
 0x394   : > { %v3802_v5 = vpop.f32.mrf.mxu1  ;;  %4041 = vmatmul.mubr.bf16.gmra.mxu1 %v11046_v19  ;;  %v4475_v41 = vpop.f32.mrf.mxu0  ;;  %4714 = vmatmul.mubr.bf16.gmra.mxu0 %v11042_v36 }
 0x395   : > { %17100 = vst [vmem:[#allocation136_spill] sm:$0xff] %v13456_v21  ;;  %v13459_v37 = vadd.f32 %v4475_v41, %v3802_v5  ;;  %4050 = vmatprep.mubr.bf16.mxu1 %v11047_v28  ;;  %4723 = vmatprep.mubr.bf16.mxu0 %v11043_v14 }
 0x396   : > { %v3804_v47 = vpop.f32.mrf.mxu1  ;;  %v4477_v50 = vpop.f32.mrf.mxu0  ;;  %7377 = vmatprep.subr.bf16.mxu0 %v10815_v27 }
 0x397   : > { %17101 = vst [vmem:[#allocation137_spill] sm:$0xff] %v13459_v37  ;;  %v13465_v46 = vadd.f32 %v4477_v50, %v3804_v47  ;;  %v11049_v50 = vld [vmem:[%s11547_s7 + $0x244] ss:$8 sps:$4 sm:$0xff]  }
 0x398   : > { %v3806_v5 = vpop.f32.mrf.mxu1  ;;  %v4479_v36 = vpop.f32.mrf.mxu0 }
 0x399   : > { %17102 = vst [vmem:[#allocation138_spill] sm:$0xff] %v13465_v46  ;;  %v13470_v52 = vadd.f32 %v4479_v36, %v3806_v5 }
 0x39a   : > { %v3808_v14 = vpop.f32.mrf.mxu1  ;;  %v4481_v41 = vpop.f32.mrf.mxu0 }
 0x39b   : > { %17103 = vst [vmem:[#allocation139_spill] sm:$0xff] %v13470_v52  ;;  %v13472_v37 = vadd.f32 %v4481_v41, %v3808_v14 }
 0x39c   : > { %v3812_v21 = vpop.f32.mrf.mxu1  ;;  %4051 = vmatmul.mubr.bf16.gmra.mxu1 %v11048_v39  ;;  %v4485_v47 = vpop.f32.mrf.mxu0  ;;  %4724 = vmatmul.mubr.bf16.gmra.mxu0 %v11044_v15  ;;  %v11050_v15 = vld [vmem:[%s11547_s7 + $0x240] ss:$8 sps:$4 sm:$0xff]  }
 0x39d   : > { %17104 = vst [vmem:[#allocation140_spill] sm:$0xff] %v13472_v37  ;;  %v13475_v49 = vadd.f32 %v4485_v47, %v3812_v21  ;;  %4060 = vmatprep.mubr.bf16.mxu1 %v11049_v50  ;;  %4733 = vmatprep.mubr.bf16.mxu0 %v11045_v4  ;;  %v11051_v47 = vld [vmem:[%s11547_s7 + $0x254] ss:$8 sps:$4 sm:$0xff]  }
 0x39e   : > { %v3814_v46 = vpop.f32.mrf.mxu1  ;;  %v4487_v5 = vpop.f32.mrf.mxu0 }
 0x39f   : > { %17105 = vst [vmem:[#allocation141_spill] sm:$0xff] %v13475_v49  ;;  %v13478_v36 = vadd.f32 %v4487_v5, %v3814_v46 }
 0x3a0   : > { %v3816_v27 = vpop.f32.mrf.mxu1  ;;  %v4489_v52 = vpop.f32.mrf.mxu0 }
 0x3a1   : > { %17106 = vst [vmem:[#allocation142_spill] sm:$0xff] %v13478_v36  ;;  %v13480_v14 = vadd.f32 %v4489_v52, %v3816_v27 }
 0x3a2   : > { %v3818_v41 = vpop.f32.mrf.mxu1  ;;  %v4491_v37 = vpop.f32.mrf.mxu0 }
 0x3a3   : > { %17107 = vst [vmem:[#allocation143_spill] sm:$0xff] %v13480_v14  ;;  %v13482_v2 = vadd.f32 %v4491_v37, %v3818_v41 }
 0x3a4   : > { %v3822_v44 = vpop.f32.mrf.mxu1  ;;  %4061 = vmatmul.mubr.bf16.gmra.mxu1 %v11050_v15  ;;  %v4495_v21 = vpop.f32.mrf.mxu0  ;;  %4734 = vmatmul.mubr.bf16.gmra.mxu0 %v11046_v19  ;;  %v11052_v19 = vld [vmem:[%s11547_s7 + $0x250] ss:$8 sps:$4 sm:$0xff]  }
 0x3a5   : > { %17108 = vst [vmem:[#allocation144_spill] sm:$0xff] %v13482_v2  ;;  %v13485_v4 = vadd.f32 %v4495_v21, %v3822_v44  ;;  %4070 = vmatprep.mubr.bf16.mxu1 %v11051_v47  ;;  %4743 = vmatprep.mubr.bf16.mxu0 %v11047_v28  ;;  %v11053_v21 = vld [vmem:[%s11547_s7 + $0x264] ss:$8 sps:$4 sm:$0xff]  }
 0x3a6   : > { %v3824_v46 = vpop.f32.mrf.mxu1  ;;  %v4497_v5 = vpop.f32.mrf.mxu0 }
 0x3a7   : > { %17109 = vst [vmem:[#allocation145_spill] sm:$0xff] %v13485_v4  ;;  %v13488_v52 = vadd.f32 %v4497_v5, %v3824_v46 }
 0x3a8   : > { %v3826_v27 = vpop.f32.mrf.mxu1  ;;  %v4499_v14 = vpop.f32.mrf.mxu0 }
 0x3a9   : > { %17110 = vst [vmem:[#allocation146_spill] sm:$0xff] %v13488_v52  ;;  %v13490_v37 = vadd.f32 %v4499_v14, %v3826_v27 }
 0x3aa   : > { %v3828_v41 = vpop.f32.mrf.mxu1  ;;  %v4501_v2 = vpop.f32.mrf.mxu0 }
 0x3ab   : > { %17111 = vst [vmem:[#allocation147_spill] sm:$0xff] %v13490_v37  ;;  %v13492_v36 = vadd.f32 %v4501_v2, %v3828_v41 }
 0x3ac   : > { %v3832_v49 = vpop.f32.mrf.mxu1  ;;  %4071 = vmatmul.mubr.bf16.gmra.mxu1 %v11052_v19  ;;  %v4505_v44 = vpop.f32.mrf.mxu0  ;;  %4744 = vmatmul.mubr.bf16.gmra.mxu0 %v11048_v39  ;;  %v11054_v39 = vld [vmem:[%s11547_s7 + $0x260] ss:$8 sps:$4 sm:$0xff]  }
 0x3ad   : > { %17112 = vst [vmem:[#allocation148_spill] sm:$0xff] %v13492_v36  ;;  %v13495_v28 = vadd.f32 %v4505_v44, %v3832_v49  ;;  %4080 = vmatprep.mubr.bf16.mxu1 %v11053_v21  ;;  %4753 = vmatprep.mubr.bf16.mxu0 %v11049_v50  ;;  %v11055_v44 = vld [vmem:[%s11547_s7 + $0x274] ss:$8 sps:$4 sm:$0xff]  }
 0x3ae   : > { %v3834_v46 = vpop.f32.mrf.mxu1  ;;  %v4507_v5 = vpop.f32.mrf.mxu0 }
 0x3af   : > { %17113 = vst [vmem:[#allocation149_spill] sm:$0xff] %v13495_v28  ;;  %v13498_v14 = vadd.f32 %v4507_v5, %v3834_v46 }
 0x3b0   : > { %v3836_v27 = vpop.f32.mrf.mxu1  ;;  %v4509_v37 = vpop.f32.mrf.mxu0 }
 0x3b1   : > { %17114 = vst [vmem:[#allocation150_spill] sm:$0xff] %v13498_v14  ;;  %v13500_v2 = vadd.f32 %v4509_v37, %v3836_v27 }
 0x3b2   : > { %v3838_v41 = vpop.f32.mrf.mxu1  ;;  %v4511_v36 = vpop.f32.mrf.mxu0 }
 0x3b3   : > { %17115 = vst [vmem:[#allocation151_spill] sm:$0xff] %v13500_v2  ;;  %v13502_v52 = vadd.f32 %v4511_v36, %v3838_v41 }
 0x3b4   : > { %v3842_v4 = vpop.f32.mrf.mxu1  ;;  %4081 = vmatmul.mubr.bf16.gmra.mxu1 %v11054_v39  ;;  %v4515_v49 = vpop.f32.mrf.mxu0  ;;  %4754 = vmatmul.mubr.bf16.gmra.mxu0 %v11050_v15  ;;  %v11056_v15 = vld [vmem:[%s11547_s7 + $0x270] ss:$8 sps:$4 sm:$0xff]  }
 0x3b5   : > { %17116 = vst [vmem:[#allocation152_spill] sm:$0xff] %v13502_v52  ;;  %v13505_v50 = vadd.f32 %v4515_v49, %v3842_v4  ;;  %4090 = vmatprep.mubr.bf16.mxu1 %v11055_v44  ;;  %4763 = vmatprep.mubr.bf16.mxu0 %v11051_v47  ;;  %v11057_v49 = vld [vmem:[%s11547_s7 + $0x284] ss:$8 sps:$4 sm:$0xff]  }
 0x3b6   : > { %v3844_v46 = vpop.f32.mrf.mxu1  ;;  %v4517_v5 = vpop.f32.mrf.mxu0 }
 0x3b7   : > { %17117 = vst [vmem:[#allocation153_spill] sm:$0xff] %v13505_v50  ;;  %v13508_v37 = vadd.f32 %v4517_v5, %v3844_v46 }
 0x3b8   : > { %v3846_v27 = vpop.f32.mrf.mxu1  ;;  %v4519_v2 = vpop.f32.mrf.mxu0 }
 0x3b9   : > { %17118 = vst [vmem:[#allocation154_spill] sm:$0xff] %v13508_v37  ;;  %v13510_v36 = vadd.f32 %v4519_v2, %v3846_v27 }
 0x3ba   : > { %v3848_v41 = vpop.f32.mrf.mxu1  ;;  %v4521_v52 = vpop.f32.mrf.mxu0 }
 0x3bb   : > { %17119 = vst [vmem:[#allocation155_spill] sm:$0xff] %v13510_v36  ;;  %v13512_v14 = vadd.f32 %v4521_v52, %v3848_v41 }
 0x3bc   : > { %v3852_v28 = vpop.f32.mrf.mxu1  ;;  %4091 = vmatmul.mubr.bf16.gmra.mxu1 %v11056_v15  ;;  %v4525_v4 = vpop.f32.mrf.mxu0  ;;  %4764 = vmatmul.mubr.bf16.gmra.mxu0 %v11052_v19  ;;  %v11058_v19 = vld [vmem:[%s11547_s7 + $0x280] ss:$8 sps:$4 sm:$0xff]  }
 0x3bd   : > { %17120 = vst [vmem:[#allocation156_spill] sm:$0xff] %v13512_v14  ;;  %v13515_v47 = vadd.f32 %v4525_v4, %v3852_v28  ;;  %4100 = vmatprep.mubr.bf16.mxu1 %v11057_v49  ;;  %4773 = vmatprep.mubr.bf16.mxu0 %v11053_v21  ;;  %v11059_v4 = vld [vmem:[%s11547_s7 + $0x294] ss:$8 sps:$4 sm:$0xff]  }
 0x3be   : > { %v3854_v46 = vpop.f32.mrf.mxu1  ;;  %v4527_v5 = vpop.f32.mrf.mxu0 }
 0x3bf   : > { %17121 = vst [vmem:[#allocation157_spill] sm:$0xff] %v13515_v47  ;;  %v13518_v2 = vadd.f32 %v4527_v5, %v3854_v46 }
 0x3c0   : > { %v3856_v27 = vpop.f32.mrf.mxu1  ;;  %v4529_v36 = vpop.f32.mrf.mxu0 }
 0x3c1   : > { %17122 = vst [vmem:[#allocation158_spill] sm:$0xff] %v13518_v2  ;;  %v13520_v52 = vadd.f32 %v4529_v36, %v3856_v27 }
 0x3c2   : > { %v3858_v41 = vpop.f32.mrf.mxu1  ;;  %v4531_v14 = vpop.f32.mrf.mxu0 }
 0x3c3   : > { %17123 = vst [vmem:[#allocation159_spill] sm:$0xff] %v13520_v52  ;;  %v13522_v37 = vadd.f32 %v4531_v14, %v3858_v41 }
 0x3c4   : > { %v3862_v50 = vpop.f32.mrf.mxu1  ;;  %4101 = vmatmul.mubr.bf16.gmra.mxu1 %v11058_v19  ;;  %v4535_v28 = vpop.f32.mrf.mxu0  ;;  %4774 = vmatmul.mubr.bf16.gmra.mxu0 %v11054_v39  ;;  %v11060_v39 = vld [vmem:[%s11547_s7 + $0x290] ss:$8 sps:$4 sm:$0xff]  }
 0x3c5   : > { %17124 = vst [vmem:[#allocation160_spill] sm:$0xff] %v13522_v37  ;;  %v13525_v21 = vadd.f32 %v4535_v28, %v3862_v50  ;;  %4110 = vmatprep.mubr.bf16.mxu1 %v11059_v4  ;;  %4783 = vmatprep.mubr.bf16.mxu0 %v11055_v44  ;;  %v11061_v28 = vld [vmem:[%s11547_s7 + $0x2a4] ss:$8 sps:$4 sm:$0xff]  }
 0x3c6   : > { %v3864_v46 = vpop.f32.mrf.mxu1  ;;  %v4537_v5 = vpop.f32.mrf.mxu0 }
 0x3c7   : > { %17125 = vst [vmem:[#allocation161_spill] sm:$0xff] %v13525_v21  ;;  %v13528_v36 = vadd.f32 %v4537_v5, %v3864_v46 }
 0x3c8   : > { %v3866_v27 = vpop.f32.mrf.mxu1  ;;  %v4539_v52 = vpop.f32.mrf.mxu0 }
 0x3c9   : > { %17126 = vst [vmem:[#allocation162_spill] sm:$0xff] %v13528_v36  ;;  %v13530_v14 = vadd.f32 %v4539_v52, %v3866_v27 }
 0x3ca   : > { %v3868_v41 = vpop.f32.mrf.mxu1  ;;  %v4541_v37 = vpop.f32.mrf.mxu0 }
 0x3cb   : > { %17127 = vst [vmem:[#allocation163_spill] sm:$0xff] %v13530_v14  ;;  %v13532_v2 = vadd.f32 %v4541_v37, %v3868_v41 }
 0x3cc   : > { %v3872_v47 = vpop.f32.mrf.mxu1  ;;  %4111 = vmatmul.mubr.bf16.gmra.mxu1 %v11060_v39  ;;  %v4545_v50 = vpop.f32.mrf.mxu0  ;;  %4784 = vmatmul.mubr.bf16.gmra.mxu0 %v11056_v15  ;;  %v11062_v15 = vld [vmem:[%s11547_s7 + $0x2a0] ss:$8 sps:$4 sm:$0xff]  }
 0x3cd   : > { %17128 = vst [vmem:[#allocation164_spill] sm:$0xff] %v13532_v2  ;;  %v13535_v44 = vadd.f32 %v4545_v50, %v3872_v47  ;;  %4120 = vmatprep.mubr.bf16.mxu1 %v11061_v28  ;;  %4793 = vmatprep.mubr.bf16.mxu0 %v11057_v49  ;;  %v11063_v50 = vld [vmem:[%s11547_s7 + $0x2b4] ss:$8 sps:$4 sm:$0xff]  }
 0x3ce   : > { %v3874_v46 = vpop.f32.mrf.mxu1  ;;  %v4547_v5 = vpop.f32.mrf.mxu0 }
 0x3cf   : > { %17129 = vst [vmem:[#allocation165_spill] sm:$0xff] %v13535_v44  ;;  %v13538_v52 = vadd.f32 %v4547_v5, %v3874_v46 }
 0x3d0   : > { %v3876_v27 = vpop.f32.mrf.mxu1  ;;  %v4549_v14 = vpop.f32.mrf.mxu0 }
 0x3d1   : > { %17130 = vst [vmem:[#allocation166_spill] sm:$0xff] %v13538_v52  ;;  %v13540_v37 = vadd.f32 %v4549_v14, %v3876_v27 }
 0x3d2   : > { %v3878_v41 = vpop.f32.mrf.mxu1  ;;  %v4551_v2 = vpop.f32.mrf.mxu0 }
 0x3d3   : > { %17131 = vst [vmem:[#allocation167_spill] sm:$0xff] %v13540_v37  ;;  %v13542_v36 = vadd.f32 %v4551_v2, %v3878_v41 }
 0x3d4   : > { %v3882_v21 = vpop.f32.mrf.mxu1  ;;  %4121 = vmatmul.mubr.bf16.gmra.mxu1 %v11062_v15  ;;  %v4555_v47 = vpop.f32.mrf.mxu0  ;;  %4794 = vmatmul.mubr.bf16.gmra.mxu0 %v11058_v19  ;;  %v11064_v19 = vld [vmem:[%s11547_s7 + $0x2b0] ss:$8 sps:$4 sm:$0xff]  }
 0x3d5   : > { %17132 = vst [vmem:[#allocation168_spill] sm:$0xff] %v13542_v36  ;;  %v13545_v49 = vadd.f32 %v4555_v47, %v3882_v21  ;;  %4130 = vmatprep.mubr.bf16.mxu1 %v11063_v50  ;;  %4803 = vmatprep.mubr.bf16.mxu0 %v11059_v4  ;;  %v11065_v47 = vld [vmem:[%s11547_s7 + $0x2c4] ss:$8 sps:$4 sm:$0xff]  }
 0x3d6   : > { %v3884_v46 = vpop.f32.mrf.mxu1  ;;  %v4557_v5 = vpop.f32.mrf.mxu0 }
 0x3d7   : > { %17133 = vst [vmem:[#allocation169_spill] sm:$0xff] %v13545_v49  ;;  %v13548_v14 = vadd.f32 %v4557_v5, %v3884_v46 }
 0x3d8   : > { %v3886_v27 = vpop.f32.mrf.mxu1  ;;  %v4559_v37 = vpop.f32.mrf.mxu0 }
 0x3d9   : > { %17134 = vst [vmem:[#allocation170_spill] sm:$0xff] %v13548_v14  ;;  %v13550_v2 = vadd.f32 %v4559_v37, %v3886_v27 }
 0x3da   : > { %v3888_v41 = vpop.f32.mrf.mxu1  ;;  %v4561_v36 = vpop.f32.mrf.mxu0 }
 0x3db   : > { %17135 = vst [vmem:[#allocation171_spill] sm:$0xff] %v13550_v2  ;;  %v13552_v52 = vadd.f32 %v4561_v36, %v3888_v41 }
 0x3dc   : > { %v3892_v44 = vpop.f32.mrf.mxu1  ;;  %4131 = vmatmul.mubr.bf16.gmra.mxu1 %v11064_v19  ;;  %v4565_v21 = vpop.f32.mrf.mxu0  ;;  %4804 = vmatmul.mubr.bf16.gmra.mxu0 %v11060_v39  ;;  %v11066_v39 = vld [vmem:[%s11547_s7 + $0x2c0] ss:$8 sps:$4 sm:$0xff]  }
 0x3dd   : > { %17136 = vst [vmem:[#allocation172_spill] sm:$0xff] %v13552_v52  ;;  %v13555_v4 = vadd.f32 %v4565_v21, %v3892_v44  ;;  %4140 = vmatprep.mubr.bf16.mxu1 %v11065_v47  ;;  %4813 = vmatprep.mubr.bf16.mxu0 %v11061_v28  ;;  %v11067_v21 = vld [vmem:[%s11547_s7 + $0x2d4] ss:$8 sps:$4 sm:$0xff]  }
 0x3de   : > { %v3894_v46 = vpop.f32.mrf.mxu1  ;;  %v4567_v5 = vpop.f32.mrf.mxu0 }
 0x3df   : > { %17137 = vst [vmem:[#allocation173_spill] sm:$0xff] %v13555_v4  ;;  %v13558_v37 = vadd.f32 %v4567_v5, %v3894_v46 }
 0x3e0   : > { %v3896_v27 = vpop.f32.mrf.mxu1  ;;  %v4569_v2 = vpop.f32.mrf.mxu0 }
 0x3e1   : > { %17138 = vst [vmem:[#allocation174_spill] sm:$0xff] %v13558_v37  ;;  %v13560_v36 = vadd.f32 %v4569_v2, %v3896_v27 }
 0x3e2   : > { %v3898_v41 = vpop.f32.mrf.mxu1  ;;  %v4571_v52 = vpop.f32.mrf.mxu0 }
 0x3e3   : > { %17139 = vst [vmem:[#allocation175_spill] sm:$0xff] %v13560_v36  ;;  %v13562_v14 = vadd.f32 %v4571_v52, %v3898_v41 }
 0x3e4   : > { %v3902_v49 = vpop.f32.mrf.mxu1  ;;  %4141 = vmatmul.mubr.bf16.gmra.mxu1 %v11066_v39  ;;  %v4575_v44 = vpop.f32.mrf.mxu0  ;;  %4814 = vmatmul.mubr.bf16.gmra.mxu0 %v11062_v15  ;;  %v11068_v15 = vld [vmem:[%s11547_s7 + $0x2d0] ss:$8 sps:$4 sm:$0xff]  }
 0x3e5   : > { %17140 = vst [vmem:[#allocation176_spill] sm:$0xff] %v13562_v14  ;;  %v13565_v28 = vadd.f32 %v4575_v44, %v3902_v49  ;;  %4150 = vmatprep.mubr.bf16.mxu1 %v11067_v21  ;;  %4823 = vmatprep.mubr.bf16.mxu0 %v11063_v50  ;;  %v11069_v44 = vld [vmem:[%s11547_s7 + $0x2e4] ss:$8 sps:$4 sm:$0xff]  }
 0x3e6   : > { %v3904_v46 = vpop.f32.mrf.mxu1  ;;  %v4577_v5 = vpop.f32.mrf.mxu0 }
 0x3e7   : > { %17141 = vst [vmem:[#allocation177_spill] sm:$0xff] %v13565_v28  ;;  %v13568_v2 = vadd.f32 %v4577_v5, %v3904_v46 }
 0x3e8   : > { %v3906_v27 = vpop.f32.mrf.mxu1  ;;  %v4579_v36 = vpop.f32.mrf.mxu0 }
 0x3e9   : > { %17142 = vst [vmem:[#allocation178_spill] sm:$0xff] %v13568_v2  ;;  %v13570_v52 = vadd.f32 %v4579_v36, %v3906_v27 }
 0x3ea   : > { %v3908_v41 = vpop.f32.mrf.mxu1  ;;  %v4581_v14 = vpop.f32.mrf.mxu0 }
 0x3eb   : > { %17143 = vst [vmem:[#allocation179_spill] sm:$0xff] %v13570_v52  ;;  %v13572_v37 = vadd.f32 %v4581_v14, %v3908_v41 }
 0x3ec   : > { %v3912_v4 = vpop.f32.mrf.mxu1  ;;  %4151 = vmatmul.mubr.bf16.gmra.mxu1 %v11068_v15  ;;  %v4585_v49 = vpop.f32.mrf.mxu0  ;;  %4824 = vmatmul.mubr.bf16.gmra.mxu0 %v11064_v19  ;;  %v11070_v19 = vld [vmem:[%s11547_s7 + $0x2e0] ss:$8 sps:$4 sm:$0xff]  }
 0x3ed   : > { %17144 = vst [vmem:[#allocation180_spill] sm:$0xff] %v13572_v37  ;;  %v13575_v50 = vadd.f32 %v4585_v49, %v3912_v4  ;;  %4160 = vmatprep.mubr.bf16.mxu1 %v11069_v44  ;;  %4833 = vmatprep.mubr.bf16.mxu0 %v11065_v47  ;;  %v11071_v49 = vld [vmem:[%s11547_s7 + $0x2f4] ss:$8 sps:$4 sm:$0xff]  }
 0x3ee   : > { %v3914_v46 = vpop.f32.mrf.mxu1  ;;  %v4587_v5 = vpop.f32.mrf.mxu0 }
 0x3ef   : > { %17145 = vst [vmem:[#allocation181_spill] sm:$0xff] %v13575_v50  ;;  %v13578_v36 = vadd.f32 %v4587_v5, %v3914_v46 }
 0x3f0   : > { %v3916_v27 = vpop.f32.mrf.mxu1  ;;  %v4589_v52 = vpop.f32.mrf.mxu0 }
 0x3f1   : > { %17146 = vst [vmem:[#allocation182_spill] sm:$0xff] %v13578_v36  ;;  %v13580_v14 = vadd.f32 %v4589_v52, %v3916_v27 }
 0x3f2   : > { %v3918_v41 = vpop.f32.mrf.mxu1  ;;  %v4591_v37 = vpop.f32.mrf.mxu0 }
 0x3f3   : > { %17147 = vst [vmem:[#allocation183_spill] sm:$0xff] %v13580_v14  ;;  %v13582_v2 = vadd.f32 %v4591_v37, %v3918_v41 }
 0x3f4   : > { %v3922_v28 = vpop.f32.mrf.mxu1  ;;  %4161 = vmatmul.mubr.bf16.gmra.mxu1 %v11070_v19  ;;  %v4595_v4 = vpop.f32.mrf.mxu0  ;;  %4834 = vmatmul.mubr.bf16.gmra.mxu0 %v11066_v39  ;;  %v11072_v39 = vld [vmem:[%s11547_s7 + $0x2f0] ss:$8 sps:$4 sm:$0xff]  }
 0x3f5   : > { %17148 = vst [vmem:[#allocation184_spill] sm:$0xff] %v13582_v2  ;;  %v13585_v47 = vadd.f32 %v4595_v4, %v3922_v28  ;;  %4170 = vmatprep.mubr.bf16.mxu1 %v11071_v49  ;;  %4843 = vmatprep.mubr.bf16.mxu0 %v11067_v21  ;;  %v11073_v4 = vld [vmem:[%s11547_s7 + $0x304] ss:$8 sps:$4 sm:$0xff]  }
 0x3f6   : > { %v3924_v46 = vpop.f32.mrf.mxu1  ;;  %v4597_v5 = vpop.f32.mrf.mxu0 }
 0x3f7   : > { %17149 = vst [vmem:[#allocation185_spill] sm:$0xff] %v13585_v47  ;;  %v13588_v52 = vadd.f32 %v4597_v5, %v3924_v46 }
 0x3f8   : > { %v3926_v27 = vpop.f32.mrf.mxu1  ;;  %v4599_v14 = vpop.f32.mrf.mxu0 }
 0x3f9   : > { %17150 = vst [vmem:[#allocation186_spill] sm:$0xff] %v13588_v52  ;;  %v13590_v37 = vadd.f32 %v4599_v14, %v3926_v27 }
 0x3fa   : > { %v3928_v41 = vpop.f32.mrf.mxu1  ;;  %v4601_v2 = vpop.f32.mrf.mxu0 }
 0x3fb   : > { %17151 = vst [vmem:[#allocation187_spill] sm:$0xff] %v13590_v37  ;;  %v13592_v36 = vadd.f32 %v4601_v2, %v3928_v41 }
 0x3fc   : > { %v3932_v50 = vpop.f32.mrf.mxu1  ;;  %4171 = vmatmul.mubr.bf16.gmra.mxu1 %v11072_v39  ;;  %v4605_v28 = vpop.f32.mrf.mxu0  ;;  %4844 = vmatmul.mubr.bf16.gmra.mxu0 %v11068_v15  ;;  %v11074_v15 = vld [vmem:[%s11547_s7 + $0x300] ss:$8 sps:$4 sm:$0xff]  }
 0x3fd   : > { %17152 = vst [vmem:[#allocation188_spill] sm:$0xff] %v13592_v36  ;;  %v13595_v21 = vadd.f32 %v4605_v28, %v3932_v50  ;;  %4180 = vmatprep.mubr.bf16.mxu1 %v11073_v4  ;;  %4853 = vmatprep.mubr.bf16.mxu0 %v11069_v44  ;;  %v11075_v28 = vld [vmem:[%s11547_s7 + $0x314] ss:$8 sps:$4 sm:$0xff]  }
 0x3fe   : > { %v3934_v46 = vpop.f32.mrf.mxu1  ;;  %v4607_v5 = vpop.f32.mrf.mxu0 }
 0x3ff   : > { %17153 = vst [vmem:[#allocation189_spill] sm:$0xff] %v13595_v21  ;;  %v13598_v14 = vadd.f32 %v4607_v5, %v3934_v46  ;;  %v11090_v21 = vld [vmem:[%s11547_s7 + $0x80] ss:$8 sps:$4 sm:$0xff]  }
 0x400   : > { %v3936_v27 = vpop.f32.mrf.mxu1  ;;  %v4609_v37 = vpop.f32.mrf.mxu0 }
 0x401   : > { %17154 = vst [vmem:[#allocation190_spill] sm:$0xff] %v13598_v14  ;;  %v13600_v2 = vadd.f32 %v4609_v37, %v3936_v27  ;;  %v10822_v14 = vld [vmem:[%s16770_s1 + $0x250] ss:$8 sps:$4 sm:$0xff]  }
 0x402   : > { %v3938_v41 = vpop.f32.mrf.mxu1  ;;  %v4611_v36 = vpop.f32.mrf.mxu0 }
 0x403   : > { %17155 = vst [vmem:[#allocation191_spill] sm:$0xff] %v13600_v2  ;;  %v13602_v52 = vadd.f32 %v4611_v36, %v3938_v41 }
 0x404   : > { %v3942_v47 = vpop.f32.mrf.mxu1  ;;  %4181 = vmatmul.mubr.bf16.gmra.mxu1 %v11074_v15  ;;  %v4615_v50 = vpop.f32.mrf.mxu0  ;;  %4854 = vmatmul.mubr.bf16.gmra.mxu0 %v11070_v19 }
 0x405   : > { %17156 = vst [vmem:[#allocation192_spill] sm:$0xff] %v13602_v52  ;;  %v13605_v44 = vadd.f32 %v4615_v50, %v3942_v47  ;;  %4190 = vmatprep.mubr.bf16.mxu1 %v11075_v28  ;;  %4863 = vmatprep.mubr.bf16.mxu0 %v11071_v49  ;;  %v11076_v47 = vld [vmem:[%s11547_s7 + $0x310] ss:$8 sps:$4 sm:$0xff]   ;;  %v11077_v28 = vld [vmem:[%s11547_s7 + $0x44] ss:$8 sps:$4 sm:$0xff]  }
 0x406   : > { %v3944_v4 = vpop.f32.mrf.mxu1  ;;  %v4617_v46 = vpop.f32.mrf.mxu0 }
 0x407   : > { %17157 = vst [vmem:[#allocation193_spill] sm:$0xff] %v13605_v44  ;;  %v13608_v37 = vadd.f32 %v4617_v46, %v3944_v4  ;;  %v11078_v44 = vld [vmem:[%s11547_s7 + $0x24] ss:$8 sps:$4 sm:$0xff]  }
 0x408   : > { %v3946_v5 = vpop.f32.mrf.mxu1  ;;  %v4619_v36 = vpop.f32.mrf.mxu0 }
 0x409   : > { %17158 = vst [vmem:[#allocation194_spill] sm:$0xff] %v13608_v37  ;;  %v13610_v27 = vadd.f32 %v4619_v36, %v3946_v5  ;;  %v11082_v37 = vld [vmem:[%s11547_s7 + $0x34] ss:$8 sps:$4 sm:$0xff]  }
 0x40a   : > { %v3948_v41 = vpop.f32.mrf.mxu1  ;;  %v4621_v15 = vpop.f32.mrf.mxu0 }
 0x40b   : > { %17159 = vst [vmem:[#allocation195_spill] sm:$0xff] %v13610_v27  ;;  %v13612_v52 = vadd.f32 %v4621_v15, %v3948_v41  ;;  %v13651_v27 = vld [vmem:[%s11547_s7 + $0x54] ss:$8 sps:$4 sm:$0xff]  }
 0x40c   : > { %v3952_v19 = vpop.f32.mrf.mxu1  ;;  %4191 = vmatmul.mubr.bf16.gmra.mxu1 %v11076_v47  ;;  %v4625_v50 = vpop.f32.mrf.mxu0  ;;  %4864 = vmatmul.mubr.bf16.gmra.mxu0 %v11072_v39  ;;  %v10810_v39 = vld [vmem:[%s16770_s1 + $0x270] ss:$8 sps:$4 sm:$0xff]  }
 0x40d   : > { %17160 = vst [vmem:[#allocation196_spill] sm:$0xff] %v13612_v52  ;;  %v13615_v49 = vadd.f32 %v4625_v50, %v3952_v19  ;;  %5099 = vmatprep.mubr.bf16.mxu1 %v11077_v28  ;;  %6030 = vmatprep.mubr.bf16.mxu0 %v11078_v44  ;;  %v10813_v19 = vld [vmem:[%s16770_s1 + $0x870] ss:$8 sps:$4 sm:$0xff]  }
 0x40e   : > { %v3954_v4 = vpop.f32.mrf.mxu1  ;;  %v4627_v46 = vpop.f32.mrf.mxu0 }
 0x40f   : > { %17161 = vst [vmem:[#allocation197_spill] sm:$0xff] %v13615_v49  ;;  %v13619_v5 = vadd.f32 %v4627_v46, %v3954_v4  ;;  %v10818_v4 = vld [vmem:[%s16770_s1 + $0x264] ss:$8 sps:$4 sm:$0xff]  }
 0x410   : > { %v3956_v36 = vpop.f32.mrf.mxu1  ;;  %v4629_v41 = vpop.f32.mrf.mxu0  ;;  %v10821_v46 = vld [vmem:[%s16770_s1 + $0x864] ss:$8 sps:$4 sm:$0xff]  }
 0x411   : > { %17162 = vst [vmem:[#allocation198_spill] sm:$0xff] %v13619_v5  ;;  %v13621_v15 = vadd.f32 %v4629_v41, %v3956_v36  ;;  %v11080_v5 = vld [vmem:[%s11547_s7 + $0x20] ss:$8 sps:$4 sm:$0xff]  }
 0x412   : > { %v3958_v47 = vpop.f32.mrf.mxu1  ;;  %v4631_v44 = vpop.f32.mrf.mxu0 }
 0x413   : > { %17163 = vst [vmem:[#allocation199_spill] sm:$0xff] %v13621_v15  ;;  %v13629_v50 = vadd.f32 %v4631_v44, %v3958_v47  ;;  %v13638_v15 = vld [vmem:[%s11547_s7 + $0x40] ss:$8 sps:$4 sm:$0xff]  }
 0x414   : > { %v3962_v36 = vpop.f32.mrf.mxu1  ;;  %v4635_v41 = vpop.f32.mrf.mxu0  ;;  %5100 = vmatmul.mubr.bf16.vlgmr.msra.gmra.mxu1 %v13638_v15  ;;  %6031 = vmatmul.mubr.bf16.vlgmr.msra.gmra.mxu0 %v11080_v5  ;;  %v10816_v44 = vld [vmem:[%s16770_s1 + $0x260] ss:$8 sps:$4 sm:$0xff]   ;;  %v10824_v5 = vld [vmem:[%s16770_s1 + $0x254] ss:$8 sps:$4 sm:$0xff]  }
 0x415   : > { %17164 = vst [vmem:[#allocation200_spill] sm:$0xff] %v13629_v50  ;;  %v13642_v47 = vadd.f32 %v4635_v41, %v3962_v36  ;;  %6672 = vmatpush1.bf16.msra.mxu1 %v10810_v39  ;;  %7378 = vmatpush1.bf16.msra.mxu0 %v10813_v19  ;;  %v10819_v50 = vld [vmem:[%s16770_s1 + $0x860] ss:$8 sps:$4 sm:$0xff]   ;;  %v10827_v39 = vld [vmem:[%s16770_s1 + $0x854] ss:$8 sps:$4 sm:$0xff]  }
 0x416   : > { %v3964_v49 = vpop.f32.mrf.mxu1  ;;  %v4637_v52 = vpop.f32.mrf.mxu0  ;;  %5109 = vmatprep.mubr.bf16.mxu1 %v13651_v27  ;;  %6040 = vmatprep.mubr.bf16.mxu0 %v11082_v37 }
 0x417   : > { %17165 = vst [vmem:[#allocation201_spill] sm:$0xff] %v13642_v47  ;;  %v13661_v19 = vadd.f32 %v4637_v52, %v3964_v49  ;;  %6673 = vmatprep.subr.bf16.mxu1 %v10818_v4  ;;  %7379 = vmatprep.subr.bf16.mxu0 %v10821_v46  ;;  %v10825_v52 = vld [vmem:[%s16770_s1 + $0x850] ss:$8 sps:$4 sm:$0xff]   ;;  %v10830_v4 = vld [vmem:[%s16770_s1 + $0x244] ss:$8 sps:$4 sm:$0xff]  }
 0x418   : > { %v3966_v36 = vpop.f32.mrf.mxu1  ;;  %v4639_v41 = vpop.f32.mrf.mxu0 }
 0x419   : > { %17166 = vst [vmem:[#allocation202_spill] sm:$0xff] %v13661_v19  ;;  %v13663_v47 = vadd.f32 %v4639_v41, %v3966_v36  ;;  %6674 = vmatpush1.bf16.msra.mxu1 %v10816_v44  ;;  %7380 = vmatpush1.bf16.msra.mxu0 %v10819_v50  ;;  %v10833_v50 = vld [vmem:[%s16770_s1 + $0x844] ss:$8 sps:$4 sm:$0xff]   ;;  %v13680_v36 = vld [vmem:[%s11547_s7 + $0x50] ss:$8 sps:$4 sm:$0xff]  }
 0x41a   : > { %v3968_v37 = vpop.f32.mrf.mxu1  ;;  %v4641_v2 = vpop.f32.mrf.mxu0  ;;  %6675 = vmatprep.subr.bf16.mxu1 %v10824_v5  ;;  %7381 = vmatprep.subr.bf16.mxu0 %v10827_v39  ;;  %v11084_v5 = vld [vmem:[%s11547_s7 + $0x30] ss:$8 sps:$4 sm:$0xff]  }
 0x41b   : > { %17167 = vst [vmem:[#allocation203_spill] sm:$0xff] %v13663_v47  ;;  %v13671_v49 = vadd.f32 %v4641_v2, %v3968_v37  ;;  %v13687_v2 = vld [vmem:[%s11547_s7 + $0x64] ss:$8 sps:$4 sm:$0xff]   ;;  %v10831_v47 = vld [vmem:[%s16770_s1 + $0x840] ss:$8 sps:$4 sm:$0xff]  }
 0x41c   : > { %v3972_v46 = vpop.f32.mrf.mxu1  ;;  %v4645_v44 = vpop.f32.mrf.mxu0  ;;  %5110 = vmatmul.mubr.bf16.gmra.mxu1 %v13680_v36  ;;  %6041 = vmatmul.mubr.bf16.gmra.mxu0 %v11084_v5 }
 0x41d   : > { %17168 = vst [vmem:[#allocation204_spill] sm:$0xff] %v13671_v49  ;;  %v13684_v41 = vadd.f32 %v4645_v44, %v3972_v46  ;;  %5119 = vmatprep.mubr.bf16.mxu1 %v13687_v2  ;;  %6050 = vmatprep.mubr.bf16.mxu0 %v11077_v28  ;;  %v10828_v49 = vld [vmem:[%s16770_s1 + $0x240] ss:$8 sps:$4 sm:$0xff]   ;;  %v10836_v28 = vld [vmem:[%s16770_s1 + $0x234] ss:$8 sps:$4 sm:$0xff]  }
 0x41e   : > { %v3974_v39 = vpop.f32.mrf.mxu1  ;;  %v4647_v37 = vpop.f32.mrf.mxu0  ;;  %6676 = vmatpush1.bf16.msra.mxu1 %v10822_v14  ;;  %7382 = vmatpush1.bf16.msra.mxu0 %v10825_v52  ;;  %v10839_v14 = vld [vmem:[%s16770_s1 + $0x834] ss:$8 sps:$4 sm:$0xff]  }
 0x41f   : > { %17169 = vst [vmem:[#allocation205_spill] sm:$0xff] %v13684_v41  ;;  %v13696_v5 = vadd.f32 %v4647_v37, %v3974_v39  ;;  %6677 = vmatprep.subr.bf16.mxu1 %v10830_v4  ;;  %7383 = vmatprep.subr.bf16.mxu0 %v10833_v50  ;;  %v10834_v4 = vld [vmem:[%s16770_s1 + $0x230] ss:$8 sps:$4 sm:$0xff]   ;;  %v10842_v37 = vld [vmem:[%s16770_s1 + $0x224] ss:$8 sps:$4 sm:$0xff]  }
 0x420   : > { %v3976_v52 = vpop.f32.mrf.mxu1  ;;  %v4649_v46 = vpop.f32.mrf.mxu0  ;;  %v10837_v50 = vld [vmem:[%s16770_s1 + $0x830] ss:$8 sps:$4 sm:$0xff]  }
 0x421   : > { %17170 = vst [vmem:[#allocation206_spill] sm:$0xff] %v13696_v5  ;;  %v13704_v44 = vadd.f32 %v4649_v46, %v3976_v52  ;;  %v11086_v46 = vld [vmem:[%s11547_s7 + $0x60] ss:$8 sps:$4 sm:$0xff]  }
 0x422   : > { %v3978_v41 = vpop.f32.mrf.mxu1  ;;  %v4651_v19 = vpop.f32.mrf.mxu0  ;;  %6678 = vmatpush1.bf16.msra.mxu1 %v10828_v49  ;;  %7384 = vmatpush1.bf16.msra.mxu0 %v10831_v47  ;;  %v10845_v47 = vld [vmem:[%s16770_s1 + $0x824] ss:$8 sps:$4 sm:$0xff]  }
 0x423   : > { %17171 = vst [vmem:[#allocation207_spill] sm:$0xff] %v13704_v44  ;;  %v13712_v39 = vadd.f32 %v4651_v19, %v3978_v41  ;;  %6679 = vmatprep.subr.bf16.mxu1 %v10836_v28  ;;  %7385 = vmatprep.subr.bf16.mxu0 %v10839_v14  ;;  %v11087_v19 = vld [vmem:[%s11547_s7 + $0x74] ss:$8 sps:$4 sm:$0xff]   ;;  %v10840_v14 = vld [vmem:[%s16770_s1 + $0x220] ss:$8 sps:$4 sm:$0xff]  }
 0x424   : > { %v3982_v49 = vpop.f32.mrf.mxu1  ;;  %v4655_v52 = vpop.f32.mrf.mxu0  ;;  %5120 = vmatmul.mubr.bf16.gmra.mxu1 %v11086_v46  ;;  %6051 = vmatmul.mubr.bf16.gmra.mxu0 %v13638_v15  ;;  %v10851_v15 = vld [vmem:[%s16770_s1 + $0x814] ss:$8 sps:$4 sm:$0xff]  }
 0x425   : > { %17172 = vst [vmem:[#allocation208_spill] sm:$0xff] %v13712_v39  ;;  %v13722_v44 = vadd.f32 %v4655_v52, %v3982_v49  ;;  %5129 = vmatprep.mubr.bf16.mxu1 %v11087_v19  ;;  %6060 = vmatprep.mubr.bf16.mxu0 %v13651_v27  ;;  %v10843_v39 = vld [vmem:[%s16770_s1 + $0x820] ss:$8 sps:$4 sm:$0xff]   ;;  %v10848_v27 = vld [vmem:[%s16770_s1 + $0x214] ss:$8 sps:$4 sm:$0xff]  }
 0x426   : > { %v3984_v41 = vpop.f32.mrf.mxu1  ;;  %v4657_v28 = vpop.f32.mrf.mxu0  ;;  %6680 = vmatpush1.bf16.msra.mxu1 %v10834_v4  ;;  %7386 = vmatpush1.bf16.msra.mxu0 %v10837_v50 }
 0x427   : > { %17173 = vst [vmem:[#allocation209_spill] sm:$0xff] %v13722_v44  ;;  %v13732_v5 = vadd.f32 %v4657_v28, %v3984_v41  ;;  %6681 = vmatprep.subr.bf16.mxu1 %v10842_v37  ;;  %7387 = vmatprep.subr.bf16.mxu0 %v10845_v47  ;;  %v10846_v37 = vld [vmem:[%s16770_s1 + $0x210] ss:$8 sps:$4 sm:$0xff]  }
 0x428   : > { %v3986_v4 = vpop.f32.mrf.mxu1  ;;  %v4659_v50 = vpop.f32.mrf.mxu0  ;;  %v10849_v47 = vld [vmem:[%s16770_s1 + $0x810] ss:$8 sps:$4 sm:$0xff]  }
 0x429   : > { %17174 = vst [vmem:[#allocation210_spill] sm:$0xff] %v13732_v5  ;;  %v13740_v49 = vadd.f32 %v4659_v50, %v3986_v4  ;;  %v11088_v50 = vld [vmem:[%s11547_s7 + $0x70] ss:$8 sps:$4 sm:$0xff]  }
 0x42a   : > { %v3988_v52 = vpop.f32.mrf.mxu1  ;;  %v4661_v44 = vpop.f32.mrf.mxu0  ;;  %6682 = vmatpush1.bf16.msra.mxu1 %v10840_v14  ;;  %7388 = vmatpush1.bf16.msra.mxu0 %v10843_v39  ;;  %v11089_v39 = vld [vmem:[%s11547_s7 + $0x84] ss:$8 sps:$4 sm:$0xff]  }
 0x42b   : > { %17175 = vst [vmem:[#allocation211_spill] sm:$0xff] %v13740_v49  ;;  %v13748_v41 = vadd.f32 %v4661_v44, %v3988_v52  ;;  %6683 = vmatprep.subr.bf16.mxu1 %v10848_v27  ;;  %7389 = vmatprep.subr.bf16.mxu0 %v10851_v15 }
 0x42c   : > { %v3992_v28 = vpop.f32.mrf.mxu1  ;;  %v4665_v4 = vpop.f32.mrf.mxu0  ;;  %5130 = vmatmul.mubr.bf16.gmra.mxu1 %v11088_v50  ;;  %6061 = vmatmul.mubr.bf16.gmra.mxu0 %v13680_v36 }
 0x42d   : > { %17176 = vst [vmem:[#allocation212_spill] sm:$0xff] %v13748_v41  ;;  %v13752_v14 = vadd.f32 %v4665_v4, %v3992_v28  ;;  %5139 = vmatprep.mubr.bf16.mxu1 %v11089_v39  ;;  %6070 = vmatprep.mubr.bf16.mxu0 %v13687_v2 }
 0x42e   : > { %v3994_v49 = vpop.f32.mrf.mxu1  ;;  %v4667_v5 = vpop.f32.mrf.mxu0  ;;  %6684 = vmatpush1.bf16.msra.mxu1 %v10846_v37  ;;  %7390 = vmatpush1.bf16.msra.mxu0 %v10849_v47  ;;  %v11091_v37 = vld [vmem:[%s11547_s7 + $0x94] ss:$8 sps:$4 sm:$0xff]  }
 0x42f   : > { %17177 = vst [vmem:[#allocation213_spill] sm:$0xff] %v13752_v14  ;;  %v13756_v44 = vadd.f32 %v4667_v5, %v3994_v49 }
 0x430   : > { %v3996_v27 = vpop.f32.mrf.mxu1  ;;  %v4669_v15 = vpop.f32.mrf.mxu0 }
 0x431   : > { %17178 = vst [vmem:[#allocation214_spill] sm:$0xff] %v13756_v44  ;;  %v13758_v52 = vadd.f32 %v4669_v15, %v3996_v27 }
 0x432   : > { %v3998_v41 = vpop.f32.mrf.mxu1  ;;  %v4671_v36 = vpop.f32.mrf.mxu0 }
 0x433   : > { %17179 = vst [vmem:[#allocation215_spill] sm:$0xff] %v13758_v52  ;;  %v13760_v28 = vadd.f32 %v4671_v36, %v3998_v41 }
 0x434   : > { %v4002_v4 = vpop.f32.mrf.mxu1  ;;  %v4675_v14 = vpop.f32.mrf.mxu0  ;;  %5140 = vmatmul.mubr.bf16.gmra.mxu1 %v11090_v21  ;;  %6071 = vmatmul.mubr.bf16.gmra.mxu0 %v11086_v46 }
 0x435   : > { %17180 = vst [vmem:[#allocation216_spill] sm:$0xff] %v13760_v28  ;;  %v13763_v2 = vadd.f32 %v4675_v14, %v4002_v4  ;;  %5149 = vmatprep.mubr.bf16.mxu1 %v11091_v37  ;;  %6080 = vmatprep.mubr.bf16.mxu0 %v11087_v19  ;;  %v11092_v14 = vld [vmem:[%s11547_s7 + $0x90] ss:$8 sps:$4 sm:$0xff]   ;;  %v11093_v19 = vld [vmem:[%s11547_s7 + $0xa4] ss:$8 sps:$4 sm:$0xff]  }
 0x436   : > { %v4004_v5 = vpop.f32.mrf.mxu1  ;;  %v4677_v49 = vpop.f32.mrf.mxu0 }
 0x437   : > { %17181 = vst [vmem:[#allocation217_spill] sm:$0xff] %v13763_v2  ;;  %v13766_v47 = vadd.f32 %v4677_v49, %v4004_v5  ;;  %v10852_v5 = vld [vmem:[%s16770_s1 + $0x200] ss:$8 sps:$4 sm:$0xff]   ;;  %v10854_v49 = vld [vmem:[%s16770_s1 + $0x204] ss:$8 sps:$4 sm:$0xff]  }
 0x438   : > { %v4006_v27 = vpop.f32.mrf.mxu1  ;;  %v4679_v15 = vpop.f32.mrf.mxu0  ;;  %6685 = vmatprep.subr.bf16.mxu1 %v10854_v49 }
 0x439   : > { %17182 = vst [vmem:[#allocation218_spill] sm:$0xff] %v13766_v47  ;;  %v13768_v41 = vadd.f32 %v4679_v15, %v4006_v27  ;;  %6686 = vmatpush1.bf16.msra.mxu1 %v10852_v5  ;;  %v11095_v47 = vld [vmem:[%s11547_s7 + $0xb4] ss:$8 sps:$4 sm:$0xff]  }
 0x43a   : > { %v4008_v36 = vpop.f32.mrf.mxu1  ;;  %v4681_v28 = vpop.f32.mrf.mxu0 }
 0x43b   : > { %17183 = vst [vmem:[#allocation219_spill] sm:$0xff] %v13768_v41  ;;  %v13770_v52 = vadd.f32 %v4681_v28, %v4008_v36 }
 0x43c   : > { %v4012_v46 = vpop.f32.mrf.mxu1  ;;  %v4685_v44 = vpop.f32.mrf.mxu0  ;;  %5150 = vmatmul.mubr.bf16.gmra.mxu1 %v11092_v14  ;;  %6081 = vmatmul.mubr.bf16.gmra.mxu0 %v11088_v50  ;;  %v10855_v50 = vld [vmem:[%s16770_s1 + $0x800] ss:$8 sps:$4 sm:$0xff]  }
 0x43d   : > { %17184 = vst [vmem:[#allocation220_spill] sm:$0xff] %v13770_v52  ;;  %v13773_v4 = vadd.f32 %v4685_v44, %v4012_v46  ;;  %5159 = vmatprep.mubr.bf16.mxu1 %v11093_v19  ;;  %6090 = vmatprep.mubr.bf16.mxu0 %v11089_v39  ;;  %v10857_v39 = vld [vmem:[%s16770_s1 + $0x804] ss:$8 sps:$4 sm:$0xff]  }
 0x43e   : > { %v4014_v28 = vpop.f32.mrf.mxu1  ;;  %v4687_v27 = vpop.f32.mrf.mxu0  ;;  %7391 = vmatprep.subr.bf16.mxu0 %v10857_v39 }
 0x43f   : > { %17185 = vst [vmem:[#allocation221_spill] sm:$0xff] %v13773_v4  ;;  %v13782_v15 = vadd.f32 %v4687_v27, %v4014_v28  ;;  %7392 = vmatpush1.bf16.msra.mxu0 %v10855_v50 }
 0x440   : > { %v4016_v44 = vpop.f32.mrf.mxu1  ;;  %v4689_v36 = vpop.f32.mrf.mxu0 }
 0x441   : > { %17186 = vst [vmem:[#allocation222_spill] sm:$0xff] %v13782_v15  ;;  %v13790_v46 = vadd.f32 %v4689_v36, %v4016_v44  ;;  %v11094_v15 = vld [vmem:[%s11547_s7 + $0xa0] ss:$8 sps:$4 sm:$0xff]  }
 0x442   : > { %v4018_v4 = vpop.f32.mrf.mxu1  ;;  %v4691_v52 = vpop.f32.mrf.mxu0 }
 0x443   : > { %17187 = vst [vmem:[#allocation223_spill] sm:$0xff] %v13790_v46  ;;  %v13792_v28 = vadd.f32 %v4691_v52, %v4018_v4 }
 0x444   : > { %v4022_v49 = vpop.f32.mrf.mxu1  ;;  %v4695_v27 = vpop.f32.mrf.mxu0  ;;  %5160 = vmatmul.mubr.bf16.gmra.mxu1 %v11094_v15  ;;  %6091 = vmatmul.mubr.bf16.gmra.mxu0 %v11090_v21 }
 0x445   : > { %17188 = vst [vmem:[#allocation224_spill] sm:$0xff] %v13792_v28  ;;  %v13795_v41 = vadd.f32 %v4695_v27, %v4022_v49  ;;  %5169 = vmatprep.mubr.bf16.mxu1 %v11095_v47  ;;  %6100 = vmatprep.mubr.bf16.mxu0 %v11091_v37  ;;  %v11096_v49 = vld [vmem:[%s11547_s7 + $0xb0] ss:$8 sps:$4 sm:$0xff]   ;;  %v11097_v27 = vld [vmem:[%s11547_s7 + $0xc4] ss:$8 sps:$4 sm:$0xff]  }
 0x446   : > { %v4024_v5 = vpop.f32.mrf.mxu1  ;;  %v4697_v44 = vpop.f32.mrf.mxu0 }
 0x447   : > { %17189 = vst [vmem:[#allocation225_spill] sm:$0xff] %v13795_v41  ;;  %v13798_v39 = vadd.f32 %v4697_v44, %v4024_v5 }
 0x448   : > { %v4026_v36 = vpop.f32.mrf.mxu1  ;;  %v4699_v50 = vpop.f32.mrf.mxu0 }
 0x449   : > { %17190 = vst [vmem:[#allocation226_spill] sm:$0xff] %v13798_v39  ;;  %v13800_v52 = vadd.f32 %v4699_v50, %v4026_v36 }
 0x44a   : > { %v4028_v4 = vpop.f32.mrf.mxu1  ;;  %v4701_v28 = vpop.f32.mrf.mxu0 }
 0x44b   : > { %17191 = vst [vmem:[#allocation227_spill] sm:$0xff] %v13800_v52  ;;  %v13802_v46 = vadd.f32 %v4701_v28, %v4028_v4 }
 0x44c   : > { %v4032_v21 = vpop.f32.mrf.mxu1  ;;  %v4705_v2 = vpop.f32.mrf.mxu0  ;;  %5170 = vmatmul.mubr.bf16.gmra.mxu1 %v11096_v49  ;;  %6101 = vmatmul.mubr.bf16.gmra.mxu0 %v11092_v14 }
 0x44d   : > { %17192 = vst [vmem:[#allocation228_spill] sm:$0xff] %v13802_v46  ;;  %v13805_v37 = vadd.f32 %v4705_v2, %v4032_v21  ;;  %5179 = vmatprep.mubr.bf16.mxu1 %v11097_v27  ;;  %6110 = vmatprep.mubr.bf16.mxu0 %v11093_v19  ;;  %v11098_v2 = vld [vmem:[%s11547_s7 + $0xc0] ss:$8 sps:$4 sm:$0xff]   ;;  %v11099_v19 = vld [vmem:[%s11547_s7 + $0xd4] ss:$8 sps:$4 sm:$0xff]  }
 0x44e   : > { %v4034_v5 = vpop.f32.mrf.mxu1  ;;  %v4707_v44 = vpop.f32.mrf.mxu0 }
 0x44f   : > { %17193 = vst [vmem:[#allocation229_spill] sm:$0xff] %v13805_v37  ;;  %v13808_v36 = vadd.f32 %v4707_v44, %v4034_v5 }
 0x450   : > { %v4036_v50 = vpop.f32.mrf.mxu1  ;;  %v4709_v52 = vpop.f32.mrf.mxu0 }
 0x451   : > { %17194 = vst [vmem:[#allocation230_spill] sm:$0xff] %v13808_v36  ;;  %v13810_v28 = vadd.f32 %v4709_v52, %v4036_v50  ;;  %v10860_v52 = vld [vmem:[%s16770_s1 + $0x2f4] ss:$8 sps:$4 sm:$0xff]  }
 0x452   : > { %v4038_v4 = vpop.f32.mrf.mxu1  ;;  %v4711_v46 = vpop.f32.mrf.mxu0  ;;  %6687 = vmatprep.subr.bf16.mxu1 %v10860_v52 }
 0x453   : > { %17195 = vst [vmem:[#allocation231_spill] sm:$0xff] %v13810_v28  ;;  %v13812_v39 = vadd.f32 %v4711_v46, %v4038_v4  ;;  %v10858_v46 = vld [vmem:[%s16770_s1 + $0x2f0] ss:$8 sps:$4 sm:$0xff]  }
 0x454   : > { %v4042_v14 = vpop.f32.mrf.mxu1  ;;  %v4715_v41 = vpop.f32.mrf.mxu0  ;;  %5180 = vmatmul.mubr.bf16.gmra.mxu1 %v11098_v2  ;;  %6111 = vmatmul.mubr.bf16.gmra.mxu0 %v11094_v15 }
 0x455   : > { %17196 = vst [vmem:[#allocation232_spill] sm:$0xff] %v13812_v39  ;;  %v13815_v21 = vadd.f32 %v4715_v41, %v4042_v14  ;;  %5189 = vmatprep.mubr.bf16.mxu1 %v11099_v19  ;;  %6120 = vmatprep.mubr.bf16.mxu0 %v11095_v47  ;;  %v10863_v47 = vld [vmem:[%s16770_s1 + $0x8f4] ss:$8 sps:$4 sm:$0xff]   ;;  %v11100_v39 = vld [vmem:[%s11547_s7 + $0xd0] ss:$8 sps:$4 sm:$0xff]  }
 0x456   : > { %v4044_v5 = vpop.f32.mrf.mxu1  ;;  %v4717_v44 = vpop.f32.mrf.mxu0  ;;  %6688 = vmatpush2.bf16.msra.mxu1 %v10858_v46  ;;  %7393 = vmatprep.subr.bf16.mxu0 %v10863_v47 }
 0x457   : > { %17197 = vst [vmem:[#allocation233_spill] sm:$0xff] %v13815_v21  ;;  %v13818_v36 = vadd.f32 %v4717_v44, %v4044_v5  ;;  %v10861_v5 = vld [vmem:[%s16770_s1 + $0x8f0] ss:$8 sps:$4 sm:$0xff]  }
 0x458   : > { %v4046_v50 = vpop.f32.mrf.mxu1  ;;  %v4719_v15 = vpop.f32.mrf.mxu0  ;;  %7394 = vmatpush2.bf16.msra.mxu0 %v10861_v5 }
 0x459   : > { %17198 = vst [vmem:[#allocation234_spill] sm:$0xff] %v13818_v36  ;;  %v13826_v41 = vadd.f32 %v4719_v15, %v4046_v50  ;;  %v11101_v50 = vld [vmem:[%s11547_s7 + $0xe4] ss:$8 sps:$4 sm:$0xff]  }
 0x45a   : > { %v4048_v4 = vpop.f32.mrf.mxu1  ;;  %v4721_v14 = vpop.f32.mrf.mxu0 }
 0x45b   : > { %17199 = vst [vmem:[#allocation235_spill] sm:$0xff] %v13826_v41  ;;  %v13834_v44 = vadd.f32 %v4721_v14, %v4048_v4 }
 0x45c   : > { %v4052_v36 = vpop.f32.mrf.mxu1  ;;  %v4725_v21 = vpop.f32.mrf.mxu0  ;;  %5190 = vmatmul.mubr.bf16.gmra.mxu1 %v11100_v39  ;;  %6121 = vmatmul.mubr.bf16.gmra.mxu0 %v11096_v49 }
 0x45d   : > { %17200 = vst [vmem:[#allocation236_spill] sm:$0xff] %v13834_v44  ;;  %v13837_v52 = vadd.f32 %v4725_v21, %v4052_v36  ;;  %5199 = vmatprep.mubr.bf16.mxu1 %v11101_v50  ;;  %6130 = vmatprep.mubr.bf16.mxu0 %v11097_v27  ;;  %v11102_v21 = vld [vmem:[%s11547_s7 + $0xe0] ss:$8 sps:$4 sm:$0xff]  }
 0x45e   : > { %v4054_v15 = vpop.f32.mrf.mxu1  ;;  %v4727_v46 = vpop.f32.mrf.mxu0 }
 0x45f   : > { %17201 = vst [vmem:[#allocation237_spill] sm:$0xff] %v13837_v52  ;;  %v13840_v41 = vadd.f32 %v4727_v46, %v4054_v15  ;;  %v11103_v52 = vld [vmem:[%s11547_s7 + $0xf4] ss:$8 sps:$4 sm:$0xff]  }
 0x460   : > { %v4056_v4 = vpop.f32.mrf.mxu1  ;;  %v4729_v14 = vpop.f32.mrf.mxu0 }
 0x461   : > { %17202 = vst [vmem:[#allocation238_spill] sm:$0xff] %v13840_v41  ;;  %v13842_v47 = vadd.f32 %v4729_v14, %v4056_v4 }
 0x462   : > { %v4058_v44 = vpop.f32.mrf.mxu1  ;;  %v4731_v28 = vpop.f32.mrf.mxu0 }
 0x463   : > { %17203 = vst [vmem:[#allocation239_spill] sm:$0xff] %v13842_v47  ;;  %v13844_v37 = vadd.f32 %v4731_v28, %v4058_v44 }
 0x464   : > { %v4062_v49 = vpop.f32.mrf.mxu1  ;;  %v4735_v36 = vpop.f32.mrf.mxu0  ;;  %5200 = vmatmul.mubr.bf16.gmra.mxu1 %v11102_v21  ;;  %6131 = vmatmul.mubr.bf16.gmra.mxu0 %v11098_v2 }
 0x465   : > { %17204 = vst [vmem:[#allocation240_spill] sm:$0xff] %v13844_v37  ;;  %v13847_v27 = vadd.f32 %v4735_v36, %v4062_v49  ;;  %5209 = vmatprep.mubr.bf16.mxu1 %v11103_v52  ;;  %6140 = vmatprep.mubr.bf16.mxu0 %v11099_v19  ;;  %v11104_v49 = vld [vmem:[%s11547_s7 + $0xf0] ss:$8 sps:$4 sm:$0xff]   ;;  %v11105_v19 = vld [vmem:[%s11547_s7 + $0x104] ss:$8 sps:$4 sm:$0xff]  }
 0x466   : > { %v4064_v5 = vpop.f32.mrf.mxu1  ;;  %v4737_v15 = vpop.f32.mrf.mxu0 }
 0x467   : > { %17205 = vst [vmem:[#allocation241_spill] sm:$0xff] %v13847_v27  ;;  %v13850_v46 = vadd.f32 %v4737_v15, %v4064_v5 }
 0x468   : > { %v4066_v4 = vpop.f32.mrf.mxu1  ;;  %v4739_v14 = vpop.f32.mrf.mxu0 }
 0x469   : > { %17206 = vst [vmem:[#allocation242_spill] sm:$0xff] %v13850_v46  ;;  %v13852_v28 = vadd.f32 %v4739_v14, %v4066_v4 }
 0x46a   : > { %v4068_v44 = vpop.f32.mrf.mxu1  ;;  %v4741_v37 = vpop.f32.mrf.mxu0 }
 0x46b   : > { %17207 = vst [vmem:[#allocation243_spill] sm:$0xff] %v13852_v28  ;;  %v13854_v47 = vadd.f32 %v4741_v37, %v4068_v44 }
 0x46c   : > { %v4072_v2 = vpop.f32.mrf.mxu1  ;;  %v4745_v41 = vpop.f32.mrf.mxu0  ;;  %5210 = vmatmul.mubr.bf16.gmra.mxu1 %v11104_v49  ;;  %6141 = vmatmul.mubr.bf16.gmra.mxu0 %v11100_v39  ;;  %v10866_v39 = vld [vmem:[%s16770_s1 + $0x2e4] ss:$8 sps:$4 sm:$0xff]  }
 0x46d   : > { %17208 = vst [vmem:[#allocation244_spill] sm:$0xff] %v13854_v47  ;;  %v13857_v36 = vadd.f32 %v4745_v41, %v4072_v2  ;;  %5219 = vmatprep.mubr.bf16.mxu1 %v11105_v19  ;;  %6150 = vmatprep.mubr.bf16.mxu0 %v11101_v50  ;;  %v10864_v50 = vld [vmem:[%s16770_s1 + $0x2e0] ss:$8 sps:$4 sm:$0xff]  }
 0x46e   : > { %v4074_v5 = vpop.f32.mrf.mxu1  ;;  %v4747_v15 = vpop.f32.mrf.mxu0  ;;  %6689 = vmatprep.subr.bf16.mxu1 %v10866_v39 }
 0x46f   : > { %17209 = vst [vmem:[#allocation245_spill] sm:$0xff] %v13857_v36  ;;  %v13860_v46 = vadd.f32 %v4747_v15, %v4074_v5  ;;  %v11106_v15 = vld [vmem:[%s11547_s7 + $0x100] ss:$8 sps:$4 sm:$0xff]   ;;  %6690 = vmatpush2.bf16.msra.mxu1 %v10864_v50 }
 0x470   : > { %v4076_v4 = vpop.f32.mrf.mxu1  ;;  %v4749_v14 = vpop.f32.mrf.mxu0 }
 0x471   : > { %17210 = vst [vmem:[#allocation246_spill] sm:$0xff] %v13860_v46  ;;  %v13862_v37 = vadd.f32 %v4749_v14, %v4076_v4  ;;  %v10867_v4 = vld [vmem:[%s16770_s1 + $0x8e0] ss:$8 sps:$4 sm:$0xff]   ;;  %v10869_v14 = vld [vmem:[%s16770_s1 + $0x8e4] ss:$8 sps:$4 sm:$0xff]  }
 0x472   : > { %v4078_v44 = vpop.f32.mrf.mxu1  ;;  %v4751_v47 = vpop.f32.mrf.mxu0  ;;  %7395 = vmatprep.subr.bf16.mxu0 %v10869_v14 }
 0x473   : > { %17211 = vst [vmem:[#allocation247_spill] sm:$0xff] %v13862_v37  ;;  %v13867_v41 = vadd.f32 %v4751_v47, %v4078_v44  ;;  %v11107_v47 = vld [vmem:[%s11547_s7 + $0x114] ss:$8 sps:$4 sm:$0xff]   ;;  %7396 = vmatpush2.bf16.msra.mxu0 %v10867_v4 }
 0x474   : > { %v4082_v2 = vpop.f32.mrf.mxu1  ;;  %v4755_v5 = vpop.f32.mrf.mxu0  ;;  %5220 = vmatmul.mubr.bf16.gmra.mxu1 %v11106_v15  ;;  %6151 = vmatmul.mubr.bf16.gmra.mxu0 %v11102_v21 }
 0x475   : > { %17212 = vst [vmem:[#allocation248_spill] sm:$0xff] %v13867_v41  ;;  %v13879_v37 = vadd.f32 %v4755_v5, %v4082_v2  ;;  %5229 = vmatprep.mubr.bf16.mxu1 %v11107_v47  ;;  %6160 = vmatprep.mubr.bf16.mxu0 %v11103_v52 }
 0x476   : > { %v4084_v44 = vpop.f32.mrf.mxu1  ;;  %v4757_v41 = vpop.f32.mrf.mxu0 }
 0x477   : > { %17213 = vst [vmem:[#allocation249_spill] sm:$0xff] %v13879_v37  ;;  %v13882_v21 = vadd.f32 %v4757_v41, %v4084_v44  ;;  %v11109_v41 = vld [vmem:[%s11547_s7 + $0x124] ss:$8 sps:$4 sm:$0xff]  }
 0x478   : > { %v4086_v46 = vpop.f32.mrf.mxu1  ;;  %v4759_v36 = vpop.f32.mrf.mxu0 }
 0x479   : > { %17214 = vst [vmem:[#allocation250_spill] sm:$0xff] %v13882_v21  ;;  %v13884_v28 = vadd.f32 %v4759_v36, %v4086_v46  ;;  %v11120_v21 = vld [vmem:[%s11547_s7 + $0x170] ss:$8 sps:$4 sm:$0xff]  }
 0x47a   : > { %v4088_v27 = vpop.f32.mrf.mxu1  ;;  %v4761_v2 = vpop.f32.mrf.mxu0 }
 0x47b   : > { %17215 = vst [vmem:[#allocation251_spill] sm:$0xff] %v13884_v28  ;;  %v13886_v5 = vadd.f32 %v4761_v2, %v4088_v27 }
 0x47c   : > { %v4092_v37 = vpop.f32.mrf.mxu1  ;;  %v4765_v52 = vpop.f32.mrf.mxu0  ;;  %5230 = vmatmul.mubr.bf16.gmra.mxu1 %v11108_v25  ;;  %6161 = vmatmul.mubr.bf16.gmra.mxu0 %v11104_v49 }
 0x47d   : > { %17216 = vst [vmem:[#allocation252_spill] sm:$0xff] %v13886_v5  ;;  %v13889_v39 = vadd.f32 %v4765_v52, %v4092_v37  ;;  %5239 = vmatprep.mubr.bf16.mxu1 %v11109_v41  ;;  %6170 = vmatprep.mubr.bf16.mxu0 %v11105_v19  ;;  %v11110_v37 = vld [vmem:[%s11547_s7 + $0x120] ss:$8 sps:$4 sm:$0xff]   ;;  %v11111_v19 = vld [vmem:[%s11547_s7 + $0x134] ss:$8 sps:$4 sm:$0xff]  }
 0x47e   : > { %v4094_v50 = vpop.f32.mrf.mxu1  ;;  %v4767_v4 = vpop.f32.mrf.mxu0 }
 0x47f   : > { %17217 = vst [vmem:[#allocation253_spill] sm:$0xff] %v13889_v39  ;;  %v13892_v46 = vadd.f32 %v4767_v4, %v4094_v50 }
 0x480   : > { %v4096_v36 = vpop.f32.mrf.mxu1  ;;  %v4769_v14 = vpop.f32.mrf.mxu0 }
 0x481   : > { %17218 = vst [vmem:[#allocation254_spill] sm:$0xff] %v13892_v46  ;;  %v13894_v27 = vadd.f32 %v4769_v14, %v4096_v36 }
 0x482   : > { %v4098_v44 = vpop.f32.mrf.mxu1  ;;  %v4771_v2 = vpop.f32.mrf.mxu0 }
 0x483   : > { %17219 = vst [vmem:[#allocation255_spill] sm:$0xff] %v13894_v27  ;;  %v13896_v5 = vadd.f32 %v4771_v2, %v4098_v44  ;;  %v10870_v44 = vld [vmem:[%s16770_s1 + $0x2d0] ss:$8 sps:$4 sm:$0xff]  }
 0x484   : > { %v4102_v49 = vpop.f32.mrf.mxu1  ;;  %v4775_v28 = vpop.f32.mrf.mxu0  ;;  %5240 = vmatmul.mubr.bf16.gmra.mxu1 %v11110_v37  ;;  %6171 = vmatmul.mubr.bf16.gmra.mxu0 %v11106_v15  ;;  %v10872_v15 = vld [vmem:[%s16770_s1 + $0x2d4] ss:$8 sps:$4 sm:$0xff]  }
 0x485   : > { %17220 = vst [vmem:[#allocation256_spill] sm:$0xff] %v13896_v5  ;;  %v13899_v52 = vadd.f32 %v4775_v28, %v4102_v49  ;;  %5249 = vmatprep.mubr.bf16.mxu1 %v11111_v19  ;;  %6180 = vmatprep.mubr.bf16.mxu0 %v11107_v47  ;;  %v10875_v47 = vld [vmem:[%s16770_s1 + $0x8d4] ss:$8 sps:$4 sm:$0xff]   ;;  %v11112_v5 = vld [vmem:[%s11547_s7 + $0x130] ss:$8 sps:$4 sm:$0xff]  }
 0x486   : > { %v4104_v50 = vpop.f32.mrf.mxu1  ;;  %v4777_v4 = vpop.f32.mrf.mxu0  ;;  %6691 = vmatprep.subr.bf16.mxu1 %v10872_v15  ;;  %7397 = vmatprep.subr.bf16.mxu0 %v10875_v47 }
 0x487   : > { %17221 = vst [vmem:[#allocation257_spill] sm:$0xff] %v13899_v52  ;;  %v13902_v46 = vadd.f32 %v4777_v4, %v4104_v50  ;;  %v10873_v50 = vld [vmem:[%s16770_s1 + $0x8d0] ss:$8 sps:$4 sm:$0xff]   ;;  %6692 = vmatpush2.bf16.msra.mxu1 %v10870_v44 }
 0x488   : > { %v4106_v36 = vpop.f32.mrf.mxu1  ;;  %v4779_v14 = vpop.f32.mrf.mxu0  ;;  %7398 = vmatpush2.bf16.msra.mxu0 %v10873_v50 }
 0x489   : > { %17222 = vst [vmem:[#allocation258_spill] sm:$0xff] %v13902_v46  ;;  %v13910_v28 = vadd.f32 %v4779_v14, %v4106_v36  ;;  %v11113_v14 = vld [vmem:[%s11547_s7 + $0x144] ss:$8 sps:$4 sm:$0xff]  }
 0x48a   : > { %v4108_v2 = vpop.f32.mrf.mxu1  ;;  %v4781_v49 = vpop.f32.mrf.mxu0 }
 0x48b   : > { %17223 = vst [vmem:[#allocation259_spill] sm:$0xff] %v13910_v28  ;;  %v13918_v4 = vadd.f32 %v4781_v49, %v4108_v2 }
 0x48c   : > { %v4112_v46 = vpop.f32.mrf.mxu1  ;;  %v4785_v52 = vpop.f32.mrf.mxu0  ;;  %5250 = vmatmul.mubr.bf16.gmra.mxu1 %v11112_v5  ;;  %6181 = vmatmul.mubr.bf16.gmra.mxu0 %v11108_v25 }
 0x48d   : > { %17224 = vst [vmem:[#allocation260_spill] sm:$0xff] %v13918_v4  ;;  %v13921_v36 = vadd.f32 %v4785_v52, %v4112_v46  ;;  %5259 = vmatprep.mubr.bf16.mxu1 %v11113_v14  ;;  %6190 = vmatprep.mubr.bf16.mxu0 %v11109_v41  ;;  %v11114_v52 = vld [vmem:[%s11547_s7 + $0x140] ss:$8 sps:$4 sm:$0xff]  }
 0x48e   : > { %v4114_v15 = vpop.f32.mrf.mxu1  ;;  %v4787_v28 = vpop.f32.mrf.mxu0 }
 0x48f   : > { %17225 = vst [vmem:[#allocation261_spill] sm:$0xff] %v13921_v36  ;;  %v13924_v27 = vadd.f32 %v4787_v28, %v4114_v15  ;;  %v11115_v36 = vld [vmem:[%s11547_s7 + $0x154] ss:$8 sps:$4 sm:$0xff]  }
 0x490   : > { %v4116_v2 = vpop.f32.mrf.mxu1  ;;  %v4789_v44 = vpop.f32.mrf.mxu0 }
 0x491   : > { %17226 = vst [vmem:[#allocation262_spill] sm:$0xff] %v13924_v27  ;;  %v13926_v47 = vadd.f32 %v4789_v44, %v4116_v2 }
 0x492   : > { %v4118_v49 = vpop.f32.mrf.mxu1  ;;  %v4791_v4 = vpop.f32.mrf.mxu0 }
 0x493   : > { %17227 = vst [vmem:[#allocation263_spill] sm:$0xff] %v13926_v47  ;;  %v13928_v39 = vadd.f32 %v4791_v4, %v4118_v49 }
 0x494   : > { %v4122_v25 = vpop.f32.mrf.mxu1  ;;  %v4795_v46 = vpop.f32.mrf.mxu0  ;;  %5260 = vmatmul.mubr.bf16.gmra.mxu1 %v11114_v52  ;;  %6191 = vmatmul.mubr.bf16.gmra.mxu0 %v11110_v37 }
 0x495   : > { %17228 = vst [vmem:[#allocation264_spill] sm:$0xff] %v13928_v39  ;;  %v13931_v41 = vadd.f32 %v4795_v46, %v4122_v25  ;;  %5269 = vmatprep.mubr.bf16.mxu1 %v11115_v36  ;;  %6200 = vmatprep.mubr.bf16.mxu0 %v11111_v19  ;;  %v11116_v25 = vld [vmem:[%s11547_s7 + $0x150] ss:$8 sps:$4 sm:$0xff]   ;;  %v11117_v19 = vld [vmem:[%s11547_s7 + $0x164] ss:$8 sps:$4 sm:$0xff]  }
 0x496   : > { %v4124_v28 = vpop.f32.mrf.mxu1  ;;  %v4797_v50 = vpop.f32.mrf.mxu0 }
 0x497   : > { %17229 = vst [vmem:[#allocation265_spill] sm:$0xff] %v13931_v41  ;;  %v13934_v15 = vadd.f32 %v4797_v50, %v4124_v28 }
 0x498   : > { %v4126_v2 = vpop.f32.mrf.mxu1  ;;  %v4799_v44 = vpop.f32.mrf.mxu0 }
 0x499   : > { %17230 = vst [vmem:[#allocation266_spill] sm:$0xff] %v13934_v15  ;;  %v13936_v4 = vadd.f32 %v4799_v44, %v4126_v2 }
 0x49a   : > { %v4128_v49 = vpop.f32.mrf.mxu1  ;;  %v4801_v39 = vpop.f32.mrf.mxu0 }
 0x49b   : > { %17231 = vst [vmem:[#allocation267_spill] sm:$0xff] %v13936_v4  ;;  %v13938_v47 = vadd.f32 %v4801_v39, %v4128_v49 }
 0x49c   : > { %v4132_v37 = vpop.f32.mrf.mxu1  ;;  %v4805_v27 = vpop.f32.mrf.mxu0  ;;  %5270 = vmatmul.mubr.bf16.gmra.mxu1 %v11116_v25  ;;  %6201 = vmatmul.mubr.bf16.gmra.mxu0 %v11112_v5  ;;  %v10878_v5 = vld [vmem:[%s16770_s1 + $0x2c4] ss:$8 sps:$4 sm:$0xff]  }
 0x49d   : > { %17232 = vst [vmem:[#allocation268_spill] sm:$0xff] %v13938_v47  ;;  %v13941_v46 = vadd.f32 %v4805_v27, %v4132_v37  ;;  %5279 = vmatprep.mubr.bf16.mxu1 %v11117_v19  ;;  %6210 = vmatprep.mubr.bf16.mxu0 %v11113_v14  ;;  %v10876_v14 = vld [vmem:[%s16770_s1 + $0x2c0] ss:$8 sps:$4 sm:$0xff]  }
 0x49e   : > { %v4134_v28 = vpop.f32.mrf.mxu1  ;;  %v4807_v50 = vpop.f32.mrf.mxu0  ;;  %6693 = vmatprep.subr.bf16.mxu1 %v10878_v5 }
 0x49f   : > { %17233 = vst [vmem:[#allocation269_spill] sm:$0xff] %v13941_v46  ;;  %v13944_v15 = vadd.f32 %v4807_v50, %v4134_v28  ;;  %v11118_v50 = vld [vmem:[%s11547_s7 + $0x160] ss:$8 sps:$4 sm:$0xff]   ;;  %6694 = vmatpush2.bf16.msra.mxu1 %v10876_v14 }
 0x4a0   : > { %v4136_v2 = vpop.f32.mrf.mxu1  ;;  %v4809_v44 = vpop.f32.mrf.mxu0 }
 0x4a1   : > { %17234 = vst [vmem:[#allocation270_spill] sm:$0xff] %v13944_v15  ;;  %v13946_v39 = vadd.f32 %v4809_v44, %v4136_v2  ;;  %v10879_v2 = vld [vmem:[%s16770_s1 + $0x8c0] ss:$8 sps:$4 sm:$0xff]   ;;  %v10881_v44 = vld [vmem:[%s16770_s1 + $0x8c4] ss:$8 sps:$4 sm:$0xff]  }
 0x4a2   : > { %v4138_v49 = vpop.f32.mrf.mxu1  ;;  %v4811_v47 = vpop.f32.mrf.mxu0  ;;  %7399 = vmatprep.subr.bf16.mxu0 %v10881_v44 }
 0x4a3   : > { %17235 = vst [vmem:[#allocation271_spill] sm:$0xff] %v13946_v39  ;;  %v13951_v27 = vadd.f32 %v4811_v47, %v4138_v49  ;;  %v11119_v47 = vld [vmem:[%s11547_s7 + $0x174] ss:$8 sps:$4 sm:$0xff]   ;;  %7400 = vmatpush2.bf16.msra.mxu0 %v10879_v2 }
 0x4a4   : > { %v4142_v37 = vpop.f32.mrf.mxu1  ;;  %v4815_v28 = vpop.f32.mrf.mxu0  ;;  %5280 = vmatmul.mubr.bf16.gmra.mxu1 %v11118_v50  ;;  %6211 = vmatmul.mubr.bf16.gmra.mxu0 %v11114_v52 }
 0x4a5   : > { %17236 = vst [vmem:[#allocation272_spill] sm:$0xff] %v13951_v27  ;;  %v13963_v39 = vadd.f32 %v4815_v28, %v4142_v37  ;;  %5289 = vmatprep.mubr.bf16.mxu1 %v11119_v47  ;;  %6220 = vmatprep.mubr.bf16.mxu0 %v11115_v36 }
 0x4a6   : > { %v4144_v49 = vpop.f32.mrf.mxu1  ;;  %v4817_v27 = vpop.f32.mrf.mxu0 }
 0x4a7   : > { %17237 = vst [vmem:[#allocation273_spill] sm:$0xff] %v13963_v39  ;;  %v13966_v52 = vadd.f32 %v4817_v27, %v4144_v49  ;;  %v11121_v27 = vld [vmem:[%s11547_s7 + $0x184] ss:$8 sps:$4 sm:$0xff]  }
 0x4a8   : > { %v4146_v15 = vpop.f32.mrf.mxu1  ;;  %v4819_v46 = vpop.f32.mrf.mxu0 }
 0x4a9   : > { %v13968_v4 = vadd.f32 %v4819_v46, %v4146_v15 }
 0x4aa   : > { %v4148_v41 = vpop.f32.mrf.mxu1  ;;  %v4821_v37 = vpop.f32.mrf.mxu0 }
 0x4ab   : > { %17238 = vst [vmem:[#allocation274_spill] sm:$0xff] %v13968_v4  ;;  %v13970_v28 = vadd.f32 %v4821_v37, %v4148_v41 }
 0x4ac   : > { %v4152_v39 = vpop.f32.mrf.mxu1  ;;  %v4825_v36 = vpop.f32.mrf.mxu0  ;;  %5290 = vmatmul.mubr.bf16.gmra.mxu1 %v11120_v21  ;;  %6221 = vmatmul.mubr.bf16.gmra.mxu0 %v11116_v25 }
 0x4ad   : > { %17239 = vst [vmem:[#allocation275_spill] sm:$0xff] %v13970_v28  ;;  %v13973_v5 = vadd.f32 %v4825_v36, %v4152_v39  ;;  %5299 = vmatprep.mubr.bf16.mxu1 %v11121_v27  ;;  %6230 = vmatprep.mubr.bf16.mxu0 %v11117_v19  ;;  %v11122_v39 = vld [vmem:[%s11547_s7 + $0x180] ss:$8 sps:$4 sm:$0xff]   ;;  %v11123_v19 = vld [vmem:[%s11547_s7 + $0x194] ss:$8 sps:$4 sm:$0xff]  }
 0x4ae   : > { %v4154_v14 = vpop.f32.mrf.mxu1  ;;  %v4827_v2 = vpop.f32.mrf.mxu0 }
 0x4af   : > { %17240 = vst [vmem:[#allocation276_spill] sm:$0xff] %v13973_v5  ;;  %v13976_v15 = vadd.f32 %v4827_v2, %v4154_v14 }
 0x4b0   : > { %v4156_v46 = vpop.f32.mrf.mxu1  ;;  %v4829_v44 = vpop.f32.mrf.mxu0 }
 0x4b1   : > { %17241 = vst [vmem:[#allocation277_spill] sm:$0xff] %v13976_v15  ;;  %v13978_v41 = vadd.f32 %v4829_v44, %v4156_v46 }
 0x4b2   : > { %v4158_v49 = vpop.f32.mrf.mxu1  ;;  %v4831_v37 = vpop.f32.mrf.mxu0 }
 0x4b3   : > { %17242 = vst [vmem:[#allocation278_spill] sm:$0xff] %v13978_v41  ;;  %v13980_v28 = vadd.f32 %v4831_v37, %v4158_v49  ;;  %v10882_v49 = vld [vmem:[%s16770_s1 + $0x2b0] ss:$8 sps:$4 sm:$0xff]  }
 0x4b4   : > { %v4162_v25 = vpop.f32.mrf.mxu1  ;;  %v4835_v4 = vpop.f32.mrf.mxu0  ;;  %5300 = vmatmul.mubr.bf16.gmra.mxu1 %v11122_v39  ;;  %6231 = vmatmul.mubr.bf16.gmra.mxu0 %v11118_v50  ;;  %v10884_v50 = vld [vmem:[%s16770_s1 + $0x2b4] ss:$8 sps:$4 sm:$0xff]  }
 0x4b5   : > { %17243 = vst [vmem:[#allocation279_spill] sm:$0xff] %v13980_v28  ;;  %v13983_v36 = vadd.f32 %v4835_v4, %v4162_v25  ;;  %5309 = vmatprep.mubr.bf16.mxu1 %v11123_v19  ;;  %6240 = vmatprep.mubr.bf16.mxu0 %v11119_v47  ;;  %v10887_v47 = vld [vmem:[%s16770_s1 + $0x8b4] ss:$8 sps:$4 sm:$0xff]   ;;  %v11124_v28 = vld [vmem:[%s11547_s7 + $0x190] ss:$8 sps:$4 sm:$0xff]  }
 0x4b6   : > { %v4164_v14 = vpop.f32.mrf.mxu1  ;;  %v4837_v2 = vpop.f32.mrf.mxu0  ;;  %6695 = vmatprep.subr.bf16.mxu1 %v10884_v50  ;;  %7401 = vmatprep.subr.bf16.mxu0 %v10887_v47 }
 0x4b7   : > { %17244 = vst [vmem:[#allocation280_spill] sm:$0xff] %v13983_v36  ;;  %v13986_v15 = vadd.f32 %v4837_v2, %v4164_v14  ;;  %v10885_v14 = vld [vmem:[%s16770_s1 + $0x8b0] ss:$8 sps:$4 sm:$0xff]   ;;  %6696 = vmatpush2.bf16.msra.mxu1 %v10882_v49 }
 0x4b8   : > { %v4166_v46 = vpop.f32.mrf.mxu1  ;;  %v4839_v44 = vpop.f32.mrf.mxu0  ;;  %7402 = vmatpush2.bf16.msra.mxu0 %v10885_v14 }
 0x4b9   : > { %17245 = vst [vmem:[#allocation281_spill] sm:$0xff] %v13986_v15  ;;  %v13994_v4 = vadd.f32 %v4839_v44, %v4166_v46  ;;  %v11125_v44 = vld [vmem:[%s11547_s7 + $0x1a4] ss:$8 sps:$4 sm:$0xff]  }
 0x4ba   : > { %v4168_v37 = vpop.f32.mrf.mxu1  ;;  %v4841_v25 = vpop.f32.mrf.mxu0 }
 0x4bb   : > { %17246 = vst [vmem:[#allocation282_spill] sm:$0xff] %v13994_v4  ;;  %v14002_v2 = vadd.f32 %v4841_v25, %v4168_v37 }
 0x4bc   : > { %v4172_v15 = vpop.f32.mrf.mxu1  ;;  %v4845_v36 = vpop.f32.mrf.mxu0  ;;  %5310 = vmatmul.mubr.bf16.gmra.mxu1 %v11124_v28  ;;  %6241 = vmatmul.mubr.bf16.gmra.mxu0 %v11120_v21 }
 0x4bd   : > { %17247 = vst [vmem:[#allocation283_spill] sm:$0xff] %v14002_v2  ;;  %v14005_v46 = vadd.f32 %v4845_v36, %v4172_v15  ;;  %5319 = vmatprep.mubr.bf16.mxu1 %v11125_v44  ;;  %6250 = vmatprep.mubr.bf16.mxu0 %v11121_v27  ;;  %v11126_v36 = vld [vmem:[%s11547_s7 + $0x1a0] ss:$8 sps:$4 sm:$0xff]   ;;  %v11127_v44 = vld [vmem:[%s11547_s7 + $0x1b4] ss:$8 sps:$4 sm:$0xff]  }
 0x4be   : > { %v4174_v50 = vpop.f32.mrf.mxu1  ;;  %v4847_v4 = vpop.f32.mrf.mxu0 }
 0x4bf   : > { %v14008_v41 = vadd.f32 %v4847_v4, %v4174_v50 }
 0x4c0   : > { %v4176_v37 = vpop.f32.mrf.mxu1  ;;  %v4849_v49 = vpop.f32.mrf.mxu0 }
 0x4c1   : > { %v14010_v47 = vadd.f32 %v4849_v49, %v4176_v37 }
 0x4c2   : > { %v4178_v25 = vpop.f32.mrf.mxu1  ;;  %v4851_v2 = vpop.f32.mrf.mxu0 }
 0x4c3   : > { %v14012_v5 = vadd.f32 %v4851_v2, %v4178_v25 }
 0x4c4   : > { %v4182_v21 = vpop.f32.mrf.mxu1  ;;  %v4855_v15 = vpop.f32.mrf.mxu0  ;;  %5320 = vmatmul.mubr.bf16.gmra.mxu1 %v11126_v36  ;;  %6251 = vmatmul.mubr.bf16.gmra.mxu0 %v11122_v39 }
 0x4c5   : > { %17248 = vst [vmem:[#allocation284_spill] sm:$0xff] %v14012_v5  ;;  %v14015_v27 = vadd.f32 %v4855_v15, %v4182_v21  ;;  %5329 = vmatprep.mubr.bf16.mxu1 %v11127_v44  ;;  %6260 = vmatprep.mubr.bf16.mxu0 %v11123_v19  ;;  %v11128_v15 = vld [vmem:[%s11547_s7 + $0x1b0] ss:$8 sps:$4 sm:$0xff]   ;;  %v11129_v44 = vld [vmem:[%s11547_s7 + $0x1c4] ss:$8 sps:$4 sm:$0xff]  }
 0x4c6   : > { %v4184_v4 = vpop.f32.mrf.mxu1  ;;  %v4857_v14 = vpop.f32.mrf.mxu0 }
 0x4c7   : > { %v14018_v50 = vadd.f32 %v4857_v14, %v4184_v4  ;;  %v11130_v4 = vld [vmem:[%s11547_s7 + $0x1a4] ss:$8 sps:$4 sm:$0xff]  }
 0x4c8   : > { %v4186_v37 = vpop.f32.mrf.mxu1  ;;  %v4859_v2 = vpop.f32.mrf.mxu0 }
 0x4c9   : > { %17249 = vst [vmem:[#allocation285_spill] sm:$0xff] %v14018_v50  ;;  %v14020_v49 = vadd.f32 %v4859_v2, %v4186_v37 }
 0x4ca   : > { %v4188_v25 = vpop.f32.mrf.mxu1  ;;  %v4861_v5 = vpop.f32.mrf.mxu0 }
 0x4cb   : > { %17250 = vst [vmem:[#allocation286_spill] sm:$0xff] %v14020_v49  ;;  %v14022_v36 = vadd.f32 %v4861_v5, %v4188_v25 }
 0x4cc   : > { %v4192_v39 = vpop.f32.mrf.mxu1  ;;  %v4865_v21 = vpop.f32.mrf.mxu0  ;;  %5330 = vmatmul.mubr.bf16.gmra.mxu1 %v11128_v15  ;;  %6261 = vmatmul.mubr.bf16.gmra.mxu0 %v11124_v28  ;;  %v8274_v28 = vlaneseq }
 0x4cd   : > { %17251 = vst [vmem:[#allocation287_spill] sm:$0xff] %v14022_v36  ;;  %v14025_v19 = vadd.f32 %v4865_v21, %v4192_v39  ;;  %5339 = vmatprep.mubr.bf16.mxu1 %v11129_v44  ;;  %6270 = vmatprep.mubr.bf16.mxu0 %v11130_v4  ;;  %v10890_v39 = vld [vmem:[%s16770_s1 + $0x2a4] ss:$8 sps:$4 sm:$0xff]   ;;  %v10888_v44 = vld [vmem:[%s16770_s1 + $0x2a0] ss:$8 sps:$4 sm:$0xff]  }
 0x4ce   : > { %v4194_v14 = vpop.f32.mrf.mxu1  ;;  %v4867_v37 = vpop.f32.mrf.mxu0  ;;  %6697 = vmatprep.subr.bf16.mxu1 %v10890_v39 }
 0x4cf   : > { %17252 = vst [vmem:[#allocation288_spill] sm:$0xff] %v14025_v19  ;;  %v14029_v2 = vadd.f32 %v4867_v37, %v4194_v14  ;;  %v11131_v14 = vld [vmem:[%s11547_s7 + $0x1c0] ss:$8 sps:$4 sm:$0xff]   ;;  %6698 = vmatpush2.bf16.msra.mxu1 %v10888_v44 }
 0x4d0   : > { %v4196_v49 = vpop.f32.mrf.mxu1  ;;  %v4869_v5 = vpop.f32.mrf.mxu0  ;;  %v11132_v37 = vld [vmem:[%s11547_s7 + $0x1a0] ss:$8 sps:$4 sm:$0xff]  }
 0x4d1   : > { %17253 = vst [vmem:[#allocation289_spill] sm:$0xff] %v14029_v2  ;;  %v14031_v25 = vadd.f32 %v4869_v5, %v4196_v49  ;;  %v10891_v5 = vld [vmem:[%s16770_s1 + $0x8a0] ss:$8 sps:$4 sm:$0xff]  }
 0x4d2   : > { %v4198_v36 = vpop.f32.mrf.mxu1  ;;  %v4871_v15 = vpop.f32.mrf.mxu0 }
 0x4d3   : > { %17254 = vst [vmem:[#allocation290_spill] sm:$0xff] %v14031_v25  ;;  %v14036_v21 = vadd.f32 %v4871_v15, %v4198_v36  ;;  %v10893_v36 = vld [vmem:[%s16770_s1 + $0x8a4] ss:$8 sps:$4 sm:$0xff]   ;;  %v11134_v25 = vld [vmem:[%s11547_s7 + $0x1b4] ss:$8 sps:$4 sm:$0xff]  }
 0x4d4   : > { %v5101_v4 = vpop.f32.mrf.mxu1  ;;  %5340 = vmatmul.mubr.bf16.gmra.mxu1 %v11131_v14  ;;  %v14042_v49 = vpop.f32.mrf.mxu0  ;;  %6271 = vmatmul.mubr.bf16.gmra.mxu0 %v11132_v37 }
 0x4d5   : > { %17255 = vst [vmem:[#allocation291_spill] sm:$0xff] %v14036_v21  ;;  %17256 = vst [vmem:[#allocation292_spill] sm:$0xff] %v14042_v49  ;;  %v5580_v15 = vadd.f32 %v5101_v4, %v13355_v56  ;;  %v11133_v21 = vld [vmem:[%s11547_s7 + $0x1d4] ss:$8 sps:$4 sm:$0xff]   ;;  %6280 = vmatprep.mubr.bf16.mxu0 %v11134_v25  ;;  %v14056_v49 = vshrl.u32 %v8274_v28, 7  ;;  %7403 = vmatprep.subr.bf16.mxu0 %v10893_v36 }
 0x4d6   : > { %5349 = vmatprep.mubr.bf16.mxu1 %v11133_v21  ;;  %v5103_v2 = vpop.f32.mrf.mxu1  ;;  %v14054_v14 = vpop.f32.mrf.mxu0  ;;  %7404 = vmatpush2.bf16.msra.mxu0 %v10891_v5  ;;  %v11136_v5 = vld [vmem:[%s11547_s7 + $0x1b0] ss:$8 sps:$4 sm:$0xff]  }
 0x4d7   : > { %v5581_v37 = vadd.f32 %v5103_v2, %v13358_v30  ;;  %vm8276_vm0 = vcmp.lt.s32.totalorder %v14056_v49, 7  ;;  %v8082_v28 = vrot.slane %v5580_v15, 1  ;;  %v11135_v2 = vld [vmem:[%s11547_s7 + $0x1d0] ss:$8 sps:$4 sm:$0xff]   ;;  %v11138_v15 = vld [vmem:[%s11547_s7 + $0x1c4] ss:$8 sps:$4 sm:$0xff]  }
 0x4d8   : > { %v5105_v19 = vpop.f32.mrf.mxu1  ;;  %v14059_v50 = vpop.f32.mrf.mxu0  ;;  %vm8757_vm1 = vcmp.lt.s32.totalorder %v14056_v49, 6 }
 0x4d9   : > { %17257 = vst [vmem:[#allocation293_spill] sm:$0xff] %v14059_v50  ;;  %v5582_v56 = vadd.f32 %v5105_v19, %v13360_v38  ;;  %v8083_v36 = vrot.slane %v5581_v37, 1 }
 0x4da   : > { %v5107_v25 = vpop.f32.mrf.mxu1  ;;  %v14063_v21 = vpop.f32.mrf.mxu0 }
 0x4db   : > { %17258 = vst [vmem:[#allocation294_spill] sm:$0xff] %v14063_v21  ;;  %v8084_v39 = vrot.slane %v5582_v56, 1  ;;  %v5583_v4 = vadd.f32 %v5107_v25, %v13362_v59  ;;  %v11137_v21 = vld [vmem:[%s11547_s7 + $0x1e4] ss:$8 sps:$4 sm:$0xff]  }
 0x4dc   : > { %v5111_v30 = vpop.f32.mrf.mxu1  ;;  %5350 = vmatmul.mubr.bf16.gmra.mxu1 %v11135_v2  ;;  %v14067_v44 = vpop.f32.mrf.mxu0  ;;  %6281 = vmatmul.mubr.bf16.gmra.mxu0 %v11136_v5 }
 0x4dd   : > { %v8419_v38 = vsel %vm8276_vm0, %v8082_v28, %v8084_v39  ;;  %v8085_v19 = vrot.slane %v5583_v4, 1  ;;  %v5584_v50 = vadd.f32 %v5111_v30, %v13365_v10  ;;  %5359 = vmatprep.mubr.bf16.mxu1 %v11137_v21  ;;  %6290 = vmatprep.mubr.bf16.mxu0 %v11138_v15 }
 0x4de   : > { %v14076_v59 = vadd.f32 %v8419_v38, %v12568_v32  ;;  %v5113_v56 = vpop.f32.mrf.mxu1  ;;  %v14078_v25 = vpop.f32.mrf.mxu0 }
 0x4df   : > { %v8420_v2 = vsel %vm8276_vm0, %v8083_v36, %v8085_v19  ;;  %v8086_v37 = vrot.slane %v5584_v50, 1  ;;  %v5585_v28 = vadd.f32 %v5113_v56, %v13368_v11 }
 0x4e0   : > { %v14084_v4 = vadd.f32 %v8420_v2, %v12572_v60  ;;  %v5115_v10 = vpop.f32.mrf.mxu1  ;;  %v14086_v21 = vpop.f32.mrf.mxu0  ;;  %v11139_v2 = vld [vmem:[%s11547_s7 + $0x1e0] ss:$8 sps:$4 sm:$0xff]  }
 0x4e1   : > { %v8417_v32 = vsel %vm8276_vm0, %v8084_v39, %v8086_v37  ;;  %v8087_v30 = vrot.slane %v5585_v28, 1  ;;  %v5586_v5 = vadd.f32 %v5115_v10, %v13370_v20 }
 0x4e2   : > { %v14092_v38 = vadd.f32 %v8417_v32, %v12576_v62  ;;  %v5117_v50 = vpop.f32.mrf.mxu1  ;;  %v14094_v36 = vpop.f32.mrf.mxu0  ;;  %v11140_v62 = vld [vmem:[%s11547_s7 + $0x1c0] ss:$8 sps:$4 sm:$0xff]  }
 0x4e3   : > { %v8418_v60 = vsel %vm8276_vm0, %v8085_v19, %v8087_v30  ;;  %v8088_v11 = vrot.slane %v5586_v5, 1  ;;  %v5587_v15 = vadd.f32 %v5117_v50, %v13372_v35  ;;  %v11141_v19 = vld [vmem:[%s11547_s7 + $0x1f4] ss:$8 sps:$4 sm:$0xff]  }
 0x4e4   : > { %v14100_v56 = vadd.f32 %v8418_v60, %v12580_v26  ;;  %v5121_v39 = vpop.f32.mrf.mxu1  ;;  %5360 = vmatmul.mubr.bf16.gmra.mxu1 %v11139_v2  ;;  %v14103_v20 = vpop.f32.mrf.mxu0  ;;  %6291 = vmatmul.mubr.bf16.gmra.mxu0 %v11140_v62  ;;  %v11142_v5 = vld [vmem:[%s11547_s7 + $0x1d4] ss:$8 sps:$4 sm:$0xff]   ;;  %v10897_v62 = vld [vmem:[%s16770_s1 + $0x890] ss:$8 sps:$4 sm:$0xff]  }
 0x4e5   : > { %v8415_v28 = vsel %vm8276_vm0, %v8086_v37, %v8088_v11  ;;  %v8089_v10 = vrot.slane %v5587_v15, 1  ;;  %v5588_v32 = vadd.f32 %v5121_v39, %v13375_v53  ;;  %5369 = vmatprep.mubr.bf16.mxu1 %v11141_v19  ;;  %6300 = vmatprep.mubr.bf16.mxu0 %v11142_v5  ;;  %v10896_v15 = vld [vmem:[%s16770_s1 + $0x294] ss:$8 sps:$4 sm:$0xff]   ;;  %v11143_v5 = vld [vmem:[%s11547_s7 + $0x1f0] ss:$8 sps:$4 sm:$0xff]  }
 0x4e6   : > { %v14112_v26 = vadd.f32 %v8415_v28, %v12584_v40  ;;  %v5123_v35 = vpop.f32.mrf.mxu1  ;;  %v14114_v50 = vpop.f32.mrf.mxu0  ;;  %v10894_v40 = vld [vmem:[%s16770_s1 + $0x290] ss:$8 sps:$4 sm:$0xff]   ;;  %6699 = vmatprep.subr.bf16.mxu1 %v10896_v15 }
 0x4e7   : > { %v8416_v60 = vsel %vm8276_vm0, %v8087_v30, %v8089_v10  ;;  %v5589_v2 = vadd.f32 %v5123_v35, %v13384_v24  ;;  %v8090_v28 = vrot.slane %v5588_v32, 1  ;;  %6700 = vmatpush2.bf16.msra.mxu1 %v10894_v40 }
 0x4e8   : > { %v14120_v37 = vadd.f32 %v8416_v60, %v12588_v42  ;;  %v5125_v11 = vpop.f32.mrf.mxu1  ;;  %v14122_v53 = vpop.f32.mrf.mxu0  ;;  %v10899_v42 = vld [vmem:[%s16770_s1 + $0x894] ss:$8 sps:$4 sm:$0xff]   ;;  %v11144_v60 = vld [vmem:[%s11547_s7 + $0x1d0] ss:$8 sps:$4 sm:$0xff]  }
 0x4e9   : > { %v5590_v30 = vadd.f32 %v5125_v11, %v13392_v57  ;;  %7405 = vmatprep.subr.bf16.mxu0 %v10899_v42  ;;  %v8091_v11 = vrot.slane %v5589_v2, 1 }
 0x4ea   : > { %17259 = vst [vmem:[#allocation295_spill] sm:$0xff] %v14120_v37  ;;  %v5127_v24 = vpop.f32.mrf.mxu1  ;;  %v14134_v39 = vpop.f32.mrf.mxu0  ;;  %v11146_v37 = vld [vmem:[%s11547_s7 + $0x1e4] ss:$8 sps:$4 sm:$0xff]   ;;  %7406 = vmatpush2.bf16.msra.mxu0 %v10897_v62 }
 0x4eb   : > { %17260 = vst [vmem:[#allocation296_spill] sm:$0xff] %v14134_v39  ;;  %v8092_v10 = vrot.slane %v5590_v30, 1  ;;  %v5591_v19 = vadd.f32 %v5127_v24, %v13394_v43  ;;  %v11145_v30 = vld [vmem:[%s11547_s7 + $0x204] ss:$8 sps:$4 sm:$0xff]  }
 0x4ec   : > { %v5131_v57 = vpop.f32.mrf.mxu1  ;;  %5370 = vmatmul.mubr.bf16.gmra.mxu1 %v11143_v5  ;;  %v14141_v35 = vpop.f32.mrf.mxu0  ;;  %6301 = vmatmul.mubr.bf16.gmra.mxu0 %v11144_v60 }
 0x4ed   : > { %v8413_v15 = vsel %vm8276_vm0, %v8090_v28, %v8092_v10  ;;  %v8093_v39 = vrot.slane %v5591_v19, 1  ;;  %v5592_v32 = vadd.f32 %v5131_v57, %v13397_v3  ;;  %5379 = vmatprep.mubr.bf16.mxu1 %v11145_v30  ;;  %6310 = vmatprep.mubr.bf16.mxu0 %v11146_v37  ;;  %v11147_v30 = vld [vmem:[%s11547_s7 + $0x200] ss:$8 sps:$4 sm:$0xff]  }
 0x4ee   : > { %v14150_v43 = vadd.f32 %v8413_v15, %v12594_v31  ;;  %v5133_v40 = vpop.f32.mrf.mxu1  ;;  %v14152_v42 = vpop.f32.mrf.mxu0 }
 0x4ef   : > { %v8414_v2 = vsel %vm8276_vm0, %v8091_v11, %v8093_v39  ;;  %v8094_v24 = vrot.slane %v5592_v32, 1  ;;  %v5593_v28 = vadd.f32 %v5133_v40, %v13400_v51 }
 0x4f0   : > { %v14158_v3 = vadd.f32 %v8414_v2, %v12604_v58  ;;  %v5135_v19 = vpop.f32.mrf.mxu1  ;;  %v14160_v37 = vpop.f32.mrf.mxu0 }
 0x4f1   : > { %v8411_v31 = vsel %vm8276_vm0, %v8092_v10, %v8094_v24  ;;  %v8095_v57 = vrot.slane %v5593_v28, 1  ;;  %v5594_v62 = vadd.f32 %v5135_v19, %v13402_v13  ;;  %v11150_v19 = vld [vmem:[%s11547_s7 + $0x1f4] ss:$8 sps:$4 sm:$0xff]  }
 0x4f2   : > { %v14166_v5 = vadd.f32 %v8411_v31, %v12614_v34  ;;  %v5137_v60 = vpop.f32.mrf.mxu1  ;;  %v14168_v11 = vpop.f32.mrf.mxu0  ;;  %v11148_v34 = vld [vmem:[%s11547_s7 + $0x1e0] ss:$8 sps:$4 sm:$0xff]  }
 0x4f3   : > { %v8412_v58 = vsel %vm8276_vm0, %v8093_v39, %v8095_v57  ;;  %v8096_v51 = vrot.slane %v5594_v62, 1  ;;  %v5595_v15 = vadd.f32 %v5137_v60, %v13404_v61  ;;  %v11149_v39 = vld [vmem:[%s11547_s7 + $0x214] ss:$8 sps:$4 sm:$0xff]  }
 0x4f4   : > { %v14174_v32 = vadd.f32 %v8412_v58, %v12618_v48  ;;  %v5141_v10 = vpop.f32.mrf.mxu1  ;;  %5380 = vmatmul.mubr.bf16.gmra.mxu1 %v11147_v30  ;;  %v14177_v13 = vpop.f32.mrf.mxu0  ;;  %6311 = vmatmul.mubr.bf16.gmra.mxu0 %v11148_v34 }
 0x4f5   : > { %v8409_v40 = vsel %vm8276_vm0, %v8094_v24, %v8096_v51  ;;  %v8097_v2 = vrot.slane %v5595_v15, 1  ;;  %v5596_v28 = vadd.f32 %v5141_v10, %v13407_v12  ;;  %5389 = vmatprep.mubr.bf16.mxu1 %v11149_v39  ;;  %6320 = vmatprep.mubr.bf16.mxu0 %v11150_v19 }
 0x4f6   : > { %v14186_v48 = vadd.f32 %v8409_v40, %v12622_v8  ;;  %v5143_v61 = vpop.f32.mrf.mxu1  ;;  %v14188_v31 = vpop.f32.mrf.mxu0  ;;  %v11151_v40 = vld [vmem:[%s11547_s7 + $0x210] ss:$8 sps:$4 sm:$0xff]  }
 0x4f7   : > { %v8410_v62 = vsel %vm8276_vm0, %v8095_v57, %v8097_v2  ;;  %v5597_v24 = vadd.f32 %v5143_v61, %v13410_v23  ;;  %v8098_v10 = vrot.slane %v5596_v28, 1  ;;  %v11153_v61 = vld [vmem:[%s11547_s7 + $0x224] ss:$8 sps:$4 sm:$0xff]  }
 0x4f8   : > { %v14194_v60 = vadd.f32 %v8410_v62, %v12626_v0  ;;  %v5145_v12 = vpop.f32.mrf.mxu1  ;;  %v14196_v58 = vpop.f32.mrf.mxu0  ;;  %v11152_v0 = vld [vmem:[%s11547_s7 + $0x1f0] ss:$8 sps:$4 sm:$0xff]   ;;  %v11154_v28 = vld [vmem:[%s11547_s7 + $0x204] ss:$8 sps:$4 sm:$0xff]  }
 0x4f9   : > { %v5598_v51 = vadd.f32 %v5145_v12, %v13412_v63  ;;  %v8099_v2 = vrot.slane %v5597_v24, 1 }
 0x4fa   : > { %v5147_v8 = vpop.f32.mrf.mxu1  ;;  %v14199_v15 = vpop.f32.mrf.mxu0 }
 0x4fb   : > { %v8100_v30 = vrot.slane %v5598_v51, 1  ;;  %v5599_v34 = vadd.f32 %v5147_v8, %v13414_v22 }
 0x4fc   : > { %v5151_v57 = vpop.f32.mrf.mxu1  ;;  %5390 = vmatmul.mubr.bf16.gmra.mxu1 %v11151_v40  ;;  %v14203_v23 = vpop.f32.mrf.mxu0  ;;  %6321 = vmatmul.mubr.bf16.gmra.mxu0 %v11152_v0 }
 0x4fd   : > { %v8407_v63 = vsel %vm8276_vm0, %v8098_v10, %v8100_v30  ;;  %v8101_v39 = vrot.slane %v5599_v34, 1  ;;  %v5600_v19 = vadd.f32 %v5151_v57, %v13417_v33  ;;  %5399 = vmatprep.mubr.bf16.mxu1 %v11153_v61  ;;  %6330 = vmatprep.mubr.bf16.mxu0 %v11154_v28 }
 0x4fe   : > { %v14212_v22 = vadd.f32 %v8407_v63, %v12632_v54  ;;  %v5153_v62 = vpop.f32.mrf.mxu1  ;;  %v14214_v12 = vpop.f32.mrf.mxu0 }
 0x4ff   : > { %v8408_v51 = vsel %vm8276_vm0, %v8099_v2, %v8101_v39  ;;  %v8102_v24 = vrot.slane %v5600_v19, 1  ;;  %v5601_v8 = vadd.f32 %v5153_v62, %v13426_v45  ;;  %v11155_v62 = vld [vmem:[%s11547_s7 + $0x220] ss:$8 sps:$4 sm:$0xff]  }
 0x500   : > { %v14220_v10 = vadd.f32 %v8408_v51, %v12636_v55  ;;  %v5155_v33 = vpop.f32.mrf.mxu1  ;;  %v14222_v34 = vpop.f32.mrf.mxu0  ;;  %v10902_v55 = vld [vmem:[%s16770_s1 + $0x284] ss:$8 sps:$4 sm:$0xff]  }
 0x501   : > { %17262 = vst [vmem:[#allocation298_spill] sm:$0xff] %v14222_v34  ;;  %v8405_v54 = vsel %vm8276_vm0, %v8100_v30, %v8102_v24  ;;  %v8103_v57 = vrot.slane %v5601_v8, 1  ;;  %v5602_v40 = vadd.f32 %v5155_v33, %v13434_v16  ;;  %v17265_v16 = vld [vmem:[#allocation102_spill] sm:$0xff]  ;;  %6701 = vmatprep.subr.bf16.mxu1 %v10902_v55 }
 0x502   : > { %17261 = vst [vmem:[#allocation297_spill] sm:$0xff] %v14220_v10  ;;  %v14228_v0 = vadd.f32 %v8405_v54, %v12640_v6  ;;  %v5157_v2 = vpop.f32.mrf.mxu1  ;;  %v14230_v63 = vpop.f32.mrf.mxu0  ;;  %v10900_v6 = vld [vmem:[%s16770_s1 + $0x280] ss:$8 sps:$4 sm:$0xff]  }
 0x503   : > { %17264 = vst [vmem:[#allocation300_spill] sm:$0xff] %v14230_v63  ;;  %v8406_v45 = vsel %vm8276_vm0, %v8101_v39, %v8103_v57  ;;  %v8104_v19 = vrot.slane %v5602_v40, 1  ;;  %v5603_v30 = vadd.f32 %v5157_v2, %v13436_v7  ;;  %v11156_v8 = vld [vmem:[%s11547_s7 + $0x200] ss:$8 sps:$4 sm:$0xff]   ;;  %v10905_v7 = vld [vmem:[%s16770_s1 + $0x884] ss:$8 sps:$4 sm:$0xff]   ;;  %6702 = vmatpush2.bf16.msra.mxu1 %v10900_v6 }
 0x504   : > { %17263 = vst [vmem:[#allocation299_spill] sm:$0xff] %v14228_v0  ;;  %v14242_v61 = vadd.f32 %v8406_v45, %v17265_v16  ;;  %v5161_v28 = vpop.f32.mrf.mxu1  ;;  %5400 = vmatmul.mubr.bf16.gmra.mxu1 %v11155_v62  ;;  %v14245_v51 = vpop.f32.mrf.mxu0  ;;  %6331 = vmatmul.mubr.bf16.gmra.mxu0 %v11156_v8  ;;  %v10903_v39 = vld [vmem:[%s16770_s1 + $0x880] ss:$8 sps:$4 sm:$0xff]   ;;  %v11157_v2 = vld [vmem:[%s11547_s7 + $0x234] ss:$8 sps:$4 sm:$0xff]  }
 0x505   : > { %17267 = vst [vmem:[#allocation301_spill] sm:$0xff] %v14245_v51  ;;  %v8403_v33 = vsel %vm8276_vm0, %v8102_v24, %v8104_v19  ;;  %v8105_v54 = vrot.slane %v5603_v30, 1  ;;  %v5604_v40 = vadd.f32 %v5161_v28, %v13439_v9  ;;  %5409 = vmatprep.mubr.bf16.mxu1 %v11157_v2  ;;  %v11158_v45 = vld [vmem:[%s11547_s7 + $0x214] ss:$8 sps:$4 sm:$0xff]   ;;  %7407 = vmatprep.subr.bf16.mxu0 %v10905_v7  ;;  %v17271_v9 = vld [vmem:[#allocation22_spill] sm:$0xff] }
 0x506   : > { %17266 = vst [vmem:[#allocation102_spill] sm:$0xff] %v14242_v61  ;;  %6340 = vmatprep.mubr.bf16.mxu0 %v11158_v45  ;;  %v17268_v16 = vld [vmem:[#allocation103_spill] sm:$0xff]  ;;  %v5163_v8 = vpop.f32.mrf.mxu1  ;;  %v14262_v61 = vpop.f32.mrf.mxu0  ;;  %7408 = vmatpush2.bf16.msra.mxu0 %v10903_v39  ;;  %v17553_v0 = vld [vmem:[#allocation212_spill] sm:$0xff] }
 0x507   : > { %v14260_v62 = vadd.f32 %v8403_v33, %v17268_v16  ;;  %17270 = vst [vmem:[#allocation302_spill] sm:$0xff] %v14262_v61  ;;  %v8404_v51 = vsel %vm8276_vm0, %v8103_v57, %v8105_v54  ;;  %v5605_v24 = vadd.f32 %v5163_v8, %v13442_v18  ;;  %v8106_v7 = vrot.slane %v5604_v40, 1  ;;  %v11159_v6 = vld [vmem:[%s11547_s7 + $0x230] ss:$8 sps:$4 sm:$0xff]   ;;  %v11162_v40 = vld [vmem:[%s11547_s7 + $0x224] ss:$8 sps:$4 sm:$0xff]  }
 0x508   : > { %v14268_v19 = vadd.f32 %v8404_v51, %v17271_v9  ;;  %v5165_v30 = vpop.f32.mrf.mxu1  ;;  %v14270_v28 = vpop.f32.mrf.mxu0  ;;  %v11160_v51 = vld [vmem:[%s11547_s7 + $0x210] ss:$8 sps:$4 sm:$0xff]   ;;  %v11161_v9 = vld [vmem:[%s11547_s7 + $0x244] ss:$8 sps:$4 sm:$0xff]  }
 0x509   : > { %17269 = vst [vmem:[#allocation103_spill] sm:$0xff] %v14260_v62  ;;  %17273 = vst [vmem:[#allocation303_spill] sm:$0xff] %v14270_v28  ;;  %v5606_v33 = vadd.f32 %v5165_v30, %v13444_v17  ;;  %v8107_v45 = vrot.slane %v5605_v24, 1  ;;  %v17276_v30 = vld [vmem:[#allocation104_spill] sm:$0xff]  ;;  %v17536_v62 = vld [vmem:[#allocation7_spill] sm:$0xff] }
 0x50a   : > { %17272 = vst [vmem:[#allocation22_spill] sm:$0xff] %v14268_v19  ;;  %v5167_v55 = vpop.f32.mrf.mxu1  ;;  %v14273_v2 = vpop.f32.mrf.mxu0  ;;  %v17525_v19 = vld [vmem:[#allocation204_spill] sm:$0xff] }
 0x50b   : > { %17274 = vst [vmem:[#allocation304_spill] sm:$0xff] %v14273_v2  ;;  %v8108_v57 = vrot.slane %v5606_v33, 1  ;;  %v5607_v18 = vadd.f32 %v5167_v55, %v13446_v29 }
 0x50c   : > { %v5171_v54 = vpop.f32.mrf.mxu1  ;;  %5410 = vmatmul.mubr.bf16.gmra.mxu1 %v11159_v6  ;;  %v14277_v39 = vpop.f32.mrf.mxu0  ;;  %6341 = vmatmul.mubr.bf16.gmra.mxu0 %v11160_v51  ;;  %v17279_v51 = vld [vmem:[#allocation134_spill] sm:$0xff] }
 0x50d   : > { %17275 = vst [vmem:[#allocation305_spill] sm:$0xff] %v14277_v39  ;;  %v8401_v17 = vsel %vm8276_vm0, %v8106_v7, %v8108_v57  ;;  %v8109_v16 = vrot.slane %v5607_v18, 1  ;;  %v5608_v8 = vadd.f32 %v5171_v54, %v13449_v1  ;;  %5419 = vmatprep.mubr.bf16.mxu1 %v11161_v9  ;;  %6350 = vmatprep.mubr.bf16.mxu0 %v11162_v40  ;;  %v17280_v18 = vld [vmem:[#allocation25_spill] sm:$0xff]  ;;  %v17283_v40 = vld [vmem:[#allocation135_spill] sm:$0xff] }
 0x50e   : > { %v14286_v29 = vadd.f32 %v8401_v17, %v17276_v30  ;;  %v5173_v33 = vpop.f32.mrf.mxu1  ;;  %v14288_v55 = vpop.f32.mrf.mxu0 }
 0x50f   : > { %17278 = vst [vmem:[#allocation306_spill] sm:$0xff] %v14288_v55  ;;  %v8402_v6 = vsel %vm8276_vm0, %v8107_v45, %v8109_v16  ;;  %v8110_v24 = vrot.slane %v5608_v8, 1  ;;  %v5609_v7 = vadd.f32 %v5173_v33, %v17279_v51  ;;  %v17287_v51 = vld [vmem:[#allocation136_spill] sm:$0xff] }
 0x510   : > { %17277 = vst [vmem:[#allocation104_spill] sm:$0xff] %v14286_v29  ;;  %v14294_v39 = vadd.f32 %v8402_v6, %v17280_v18  ;;  %v5175_v1 = vpop.f32.mrf.mxu1  ;;  %v14296_v54 = vpop.f32.mrf.mxu0  ;;  %v17284_v29 = vld [vmem:[#allocation27_spill] sm:$0xff] }
 0x511   : > { %17282 = vst [vmem:[#allocation25_spill] sm:$0xff] %v14296_v54  ;;  %v8399_v17 = vsel %vm8276_vm0, %v8108_v57, %v8110_v24  ;;  %v8111_v9 = vrot.slane %v5609_v7, 1  ;;  %v5610_v30 = vadd.f32 %v5175_v1, %v17283_v40  ;;  %v11163_v7 = vld [vmem:[%s11547_s7 + $0x240] ss:$8 sps:$4 sm:$0xff]  }
 0x512   : > { %17281 = vst [vmem:[#allocation134_spill] sm:$0xff] %v14294_v39  ;;  %v14302_v55 = vadd.f32 %v8399_v17, %v17284_v29  ;;  %v5177_v45 = vpop.f32.mrf.mxu1  ;;  %v14304_v8 = vpop.f32.mrf.mxu0  ;;  %v17288_v39 = vld [vmem:[#allocation29_spill] sm:$0xff] }
 0x513   : > { %17286 = vst [vmem:[#allocation27_spill] sm:$0xff] %v14304_v8  ;;  %v8400_v33 = vsel %vm8276_vm0, %v8109_v16, %v8111_v9  ;;  %v8112_v6 = vrot.slane %v5610_v30, 1  ;;  %v5611_v18 = vadd.f32 %v5177_v45, %v17287_v51  ;;  %v11164_v29 = vld [vmem:[%s11547_s7 + $0x220] ss:$8 sps:$4 sm:$0xff]   ;;  %v11165_v16 = vld [vmem:[%s11547_s7 + $0x254] ss:$8 sps:$4 sm:$0xff]  }
 0x514   : > { %17285 = vst [vmem:[#allocation135_spill] sm:$0xff] %v14302_v55  ;;  %v14310_v54 = vadd.f32 %v8400_v33, %v17288_v39  ;;  %v5181_v57 = vpop.f32.mrf.mxu1  ;;  %5420 = vmatmul.mubr.bf16.gmra.mxu1 %v11163_v7  ;;  %v14313_v1 = vpop.f32.mrf.mxu0  ;;  %6351 = vmatmul.mubr.bf16.gmra.mxu0 %v11164_v29  ;;  %v17291_v55 = vld [vmem:[#allocation137_spill] sm:$0xff]  ;;  %v11166_v30 = vld [vmem:[%s11547_s7 + $0x234] ss:$8 sps:$4 sm:$0xff]   ;;  %v17295_v29 = vld [vmem:[#allocation138_spill] sm:$0xff] }
 0x515   : > { %17290 = vst [vmem:[#allocation29_spill] sm:$0xff] %v14313_v1  ;;  %v8397_v17 = vsel %vm8276_vm0, %v8110_v24, %v8112_v6  ;;  %v8113_v40 = vrot.slane %v5611_v18, 1  ;;  %v5612_v8 = vadd.f32 %v5181_v57, %v17291_v55  ;;  %5429 = vmatprep.mubr.bf16.mxu1 %v11165_v16  ;;  %6360 = vmatprep.mubr.bf16.mxu0 %v11166_v30  ;;  %v17292_v45 = vld [vmem:[#allocation31_spill] sm:$0xff]  ;;  %v17296_v6 = vld [vmem:[#allocation105_spill] sm:$0xff] }
 0x516   : > { %17289 = vst [vmem:[#allocation136_spill] sm:$0xff] %v14310_v54  ;;  %v14322_v39 = vadd.f32 %v8397_v17, %v17292_v45  ;;  %v5183_v33 = vpop.f32.mrf.mxu1  ;;  %v14324_v51 = vpop.f32.mrf.mxu0  ;;  %v17299_v16 = vld [vmem:[#allocation139_spill] sm:$0xff]  ;;  %v17301_v54 = vld [vmem:[#allocation140_spill] sm:$0xff] }
 0x517   : > { %17294 = vst [vmem:[#allocation31_spill] sm:$0xff] %v14324_v51  ;;  %v8398_v7 = vsel %vm8276_vm0, %v8111_v9, %v8113_v40  ;;  %v5613_v24 = vadd.f32 %v5183_v33, %v17295_v29  ;;  %v11167_v40 = vld [vmem:[%s11547_s7 + $0x250] ss:$8 sps:$4 sm:$0xff]  }
 0x518   : > { %17293 = vst [vmem:[#allocation137_spill] sm:$0xff] %v14322_v39  ;;  %v14330_v18 = vadd.f32 %v8398_v7, %v17296_v6  ;;  %v5185_v55 = vpop.f32.mrf.mxu1  ;;  %v14332_v57 = vpop.f32.mrf.mxu0  ;;  %v8114_v39 = vrot.slane %v5612_v8, 1  ;;  %v11168_v7 = vld [vmem:[%s11547_s7 + $0x230] ss:$8 sps:$4 sm:$0xff]   ;;  %v11170_v8 = vld [vmem:[%s11547_s7 + $0x244] ss:$8 sps:$4 sm:$0xff]  }
 0x519   : > { %17298 = vst [vmem:[#allocation105_spill] sm:$0xff] %v14332_v57  ;;  %v5614_v30 = vadd.f32 %v5185_v55, %v17299_v16  ;;  %v8115_v29 = vrot.slane %v5613_v24, 1  ;;  %v17303_v16 = vld [vmem:[#allocation141_spill] sm:$0xff] }
 0x51a   : > { %17297 = vst [vmem:[#allocation138_spill] sm:$0xff] %v14330_v18  ;;  %v5187_v17 = vpop.f32.mrf.mxu1  ;;  %v14335_v45 = vpop.f32.mrf.mxu0 }
 0x51b   : > { %17300 = vst [vmem:[#allocation139_spill] sm:$0xff] %v14335_v45  ;;  %v8116_v51 = vrot.slane %v5614_v30, 1  ;;  %v5615_v1 = vadd.f32 %v5187_v17, %v17301_v54  ;;  %v11169_v45 = vld [vmem:[%s11547_s7 + $0x264] ss:$8 sps:$4 sm:$0xff]  }
 0x51c   : > { %v5191_v9 = vpop.f32.mrf.mxu1  ;;  %5430 = vmatmul.mubr.bf16.gmra.mxu1 %v11167_v40  ;;  %v14339_v33 = vpop.f32.mrf.mxu0  ;;  %6361 = vmatmul.mubr.bf16.gmra.mxu0 %v11168_v7  ;;  %v17304_v30 = vld [vmem:[#allocation106_spill] sm:$0xff] }
 0x51d   : > { %17302 = vst [vmem:[#allocation140_spill] sm:$0xff] %v14339_v33  ;;  %v8395_v6 = vsel %vm8276_vm0, %v8114_v39, %v8116_v51  ;;  %v8117_v55 = vrot.slane %v5615_v1, 1  ;;  %v5616_v18 = vadd.f32 %v5191_v9, %v17303_v16  ;;  %5439 = vmatprep.mubr.bf16.mxu1 %v11169_v45  ;;  %6370 = vmatprep.mubr.bf16.mxu0 %v11170_v8  ;;  %v17307_v33 = vld [vmem:[#allocation142_spill] sm:$0xff]  ;;  %v17308_v1 = vld [vmem:[#allocation107_spill] sm:$0xff] }
 0x51e   : > { %v14348_v54 = vadd.f32 %v8395_v6, %v17304_v30  ;;  %v5193_v17 = vpop.f32.mrf.mxu1  ;;  %v14350_v40 = vpop.f32.mrf.mxu0  ;;  %v17311_v8 = vld [vmem:[#allocation143_spill] sm:$0xff] }
 0x51f   : > { %17306 = vst [vmem:[#allocation106_spill] sm:$0xff] %v14350_v40  ;;  %v8396_v7 = vsel %vm8276_vm0, %v8115_v29, %v8117_v55  ;;  %v8118_v24 = vrot.slane %v5616_v18, 1  ;;  %v5617_v39 = vadd.f32 %v5193_v17, %v17307_v33 }
 0x520   : > { %17305 = vst [vmem:[#allocation141_spill] sm:$0xff] %v14348_v54  ;;  %v14356_v57 = vadd.f32 %v8396_v7, %v17308_v1  ;;  %v5195_v9 = vpop.f32.mrf.mxu1  ;;  %v14358_v45 = vpop.f32.mrf.mxu0  ;;  %v17312_v54 = vld [vmem:[#allocation108_spill] sm:$0xff] }
 0x521   : > { %17310 = vst [vmem:[#allocation107_spill] sm:$0xff] %v14358_v45  ;;  %v8393_v6 = vsel %vm8276_vm0, %v8116_v51, %v8118_v24  ;;  %v8119_v16 = vrot.slane %v5617_v39, 1  ;;  %v5618_v30 = vadd.f32 %v5195_v9, %v17311_v8  ;;  %v17315_v7 = vld [vmem:[#allocation144_spill] sm:$0xff]  ;;  %v11171_v39 = vld [vmem:[%s11547_s7 + $0x260] ss:$8 sps:$4 sm:$0xff]  }
 0x522   : > { %17309 = vst [vmem:[#allocation142_spill] sm:$0xff] %v14356_v57  ;;  %v14364_v40 = vadd.f32 %v8393_v6, %v17312_v54  ;;  %v5197_v18 = vpop.f32.mrf.mxu1  ;;  %v14366_v29 = vpop.f32.mrf.mxu0  ;;  %v17316_v57 = vld [vmem:[#allocation109_spill] sm:$0xff] }
 0x523   : > { %17314 = vst [vmem:[#allocation108_spill] sm:$0xff] %v14366_v29  ;;  %v8394_v33 = vsel %vm8276_vm0, %v8117_v55, %v8119_v16  ;;  %v8120_v17 = vrot.slane %v5618_v30, 1  ;;  %v5619_v1 = vadd.f32 %v5197_v18, %v17315_v7  ;;  %v11172_v54 = vld [vmem:[%s11547_s7 + $0x240] ss:$8 sps:$4 sm:$0xff]   ;;  %v11173_v55 = vld [vmem:[%s11547_s7 + $0x274] ss:$8 sps:$4 sm:$0xff]  }
 0x524   : > { %17313 = vst [vmem:[#allocation143_spill] sm:$0xff] %v14364_v40  ;;  %v14372_v45 = vadd.f32 %v8394_v33, %v17316_v57  ;;  %v5201_v51 = vpop.f32.mrf.mxu1  ;;  %5440 = vmatmul.mubr.bf16.gmra.mxu1 %v11171_v39  ;;  %v14375_v9 = vpop.f32.mrf.mxu0  ;;  %6371 = vmatmul.mubr.bf16.gmra.mxu0 %v11172_v54  ;;  %v17319_v40 = vld [vmem:[#allocation145_spill] sm:$0xff]  ;;  %v11174_v30 = vld [vmem:[%s11547_s7 + $0x254] ss:$8 sps:$4 sm:$0xff]   ;;  %v17320_v18 = vld [vmem:[#allocation110_spill] sm:$0xff] }
 0x525   : > { %17318 = vst [vmem:[#allocation109_spill] sm:$0xff] %v14375_v9  ;;  %v8391_v6 = vsel %vm8276_vm0, %v8118_v24, %v8120_v17  ;;  %v8121_v8 = vrot.slane %v5619_v1, 1  ;;  %v5620_v29 = vadd.f32 %v5201_v51, %v17319_v40  ;;  %5449 = vmatprep.mubr.bf16.mxu1 %v11173_v55  ;;  %6380 = vmatprep.mubr.bf16.mxu0 %v11174_v30  ;;  %v17323_v54 = vld [vmem:[#allocation146_spill] sm:$0xff]  ;;  %v17324_v17 = vld [vmem:[#allocation111_spill] sm:$0xff] }
 0x526   : > { %17317 = vst [vmem:[#allocation144_spill] sm:$0xff] %v14372_v45  ;;  %v14384_v57 = vadd.f32 %v8391_v6, %v17320_v18  ;;  %v5203_v33 = vpop.f32.mrf.mxu1  ;;  %v14386_v7 = vpop.f32.mrf.mxu0  ;;  %v17327_v55 = vld [vmem:[#allocation147_spill] sm:$0xff]  ;;  %v17329_v45 = vld [vmem:[#allocation148_spill] sm:$0xff] }
 0x527   : > { %17322 = vst [vmem:[#allocation110_spill] sm:$0xff] %v14386_v7  ;;  %v8392_v39 = vsel %vm8276_vm0, %v8119_v16, %v8121_v8  ;;  %v5621_v24 = vadd.f32 %v5203_v33, %v17323_v54  ;;  %v11175_v8 = vld [vmem:[%s11547_s7 + $0x270] ss:$8 sps:$4 sm:$0xff]  }
 0x528   : > { %17321 = vst [vmem:[#allocation145_spill] sm:$0xff] %v14384_v57  ;;  %v14392_v1 = vadd.f32 %v8392_v39, %v17324_v17  ;;  %v5205_v40 = vpop.f32.mrf.mxu1  ;;  %v14394_v51 = vpop.f32.mrf.mxu0  ;;  %v8122_v57 = vrot.slane %v5620_v29, 1  ;;  %v11176_v39 = vld [vmem:[%s11547_s7 + $0x250] ss:$8 sps:$4 sm:$0xff]   ;;  %v11178_v29 = vld [vmem:[%s11547_s7 + $0x264] ss:$8 sps:$4 sm:$0xff]  }
 0x529   : > { %17326 = vst [vmem:[#allocation111_spill] sm:$0xff] %v14394_v51  ;;  %v5622_v30 = vadd.f32 %v5205_v40, %v17327_v55  ;;  %v8123_v54 = vrot.slane %v5621_v24, 1  ;;  %v17331_v55 = vld [vmem:[#allocation149_spill] sm:$0xff] }
 0x52a   : > { %17325 = vst [vmem:[#allocation146_spill] sm:$0xff] %v14392_v1  ;;  %v5207_v6 = vpop.f32.mrf.mxu1  ;;  %v14397_v18 = vpop.f32.mrf.mxu0 }
 0x52b   : > { %17328 = vst [vmem:[#allocation147_spill] sm:$0xff] %v14397_v18  ;;  %v8124_v7 = vrot.slane %v5622_v30, 1  ;;  %v5623_v9 = vadd.f32 %v5207_v6, %v17329_v45  ;;  %v11177_v18 = vld [vmem:[%s11547_s7 + $0x284] ss:$8 sps:$4 sm:$0xff]   ;;  %v17332_v30 = vld [vmem:[#allocation112_spill] sm:$0xff] }
 0x52c   : > { %v5211_v16 = vpop.f32.mrf.mxu1  ;;  %5450 = vmatmul.mubr.bf16.gmra.mxu1 %v11175_v8  ;;  %v14401_v33 = vpop.f32.mrf.mxu0  ;;  %6381 = vmatmul.mubr.bf16.gmra.mxu0 %v11176_v39 }
 0x52d   : > { %17330 = vst [vmem:[#allocation148_spill] sm:$0xff] %v14401_v33  ;;  %v8389_v17 = vsel %vm8276_vm0, %v8122_v57, %v8124_v7  ;;  %v8125_v40 = vrot.slane %v5623_v9, 1  ;;  %v5624_v1 = vadd.f32 %v5211_v16, %v17331_v55  ;;  %5459 = vmatprep.mubr.bf16.mxu1 %v11177_v18  ;;  %6390 = vmatprep.mubr.bf16.mxu0 %v11178_v29  ;;  %v17335_v33 = vld [vmem:[#allocation150_spill] sm:$0xff]  ;;  %v17336_v9 = vld [vmem:[#allocation113_spill] sm:$0xff]  ;;  %v17339_v29 = vld [vmem:[#allocation151_spill] sm:$0xff] }
 0x52e   : > { %v14410_v45 = vadd.f32 %v8389_v17, %v17332_v30  ;;  %v5213_v6 = vpop.f32.mrf.mxu1  ;;  %v14412_v8 = vpop.f32.mrf.mxu0 }
 0x52f   : > { %17334 = vst [vmem:[#allocation112_spill] sm:$0xff] %v14412_v8  ;;  %v8390_v39 = vsel %vm8276_vm0, %v8123_v54, %v8125_v40  ;;  %v8126_v24 = vrot.slane %v5624_v1, 1  ;;  %v5625_v57 = vadd.f32 %v5213_v6, %v17335_v33 }
 0x530   : > { %17333 = vst [vmem:[#allocation149_spill] sm:$0xff] %v14410_v45  ;;  %v14418_v51 = vadd.f32 %v8390_v39, %v17336_v9  ;;  %v5215_v16 = vpop.f32.mrf.mxu1  ;;  %v14420_v18 = vpop.f32.mrf.mxu0  ;;  %v17340_v45 = vld [vmem:[#allocation114_spill] sm:$0xff]  ;;  %v17343_v39 = vld [vmem:[#allocation152_spill] sm:$0xff] }
 0x531   : > { %17338 = vst [vmem:[#allocation113_spill] sm:$0xff] %v14420_v18  ;;  %v8387_v17 = vsel %vm8276_vm0, %v8124_v7, %v8126_v24  ;;  %v8127_v55 = vrot.slane %v5625_v57, 1  ;;  %v5626_v30 = vadd.f32 %v5215_v16, %v17339_v29  ;;  %v11179_v57 = vld [vmem:[%s11547_s7 + $0x280] ss:$8 sps:$4 sm:$0xff]  }
 0x532   : > { %17337 = vst [vmem:[#allocation150_spill] sm:$0xff] %v14418_v51  ;;  %v14426_v8 = vadd.f32 %v8387_v17, %v17340_v45  ;;  %v5217_v1 = vpop.f32.mrf.mxu1  ;;  %v14428_v54 = vpop.f32.mrf.mxu0  ;;  %v17344_v51 = vld [vmem:[#allocation115_spill] sm:$0xff]  ;;  %v11180_v45 = vld [vmem:[%s11547_s7 + $0x260] ss:$8 sps:$4 sm:$0xff]  }
 0x533   : > { %17342 = vst [vmem:[#allocation114_spill] sm:$0xff] %v14428_v54  ;;  %v8388_v33 = vsel %vm8276_vm0, %v8125_v40, %v8127_v55  ;;  %v8128_v6 = vrot.slane %v5626_v30, 1  ;;  %v5627_v9 = vadd.f32 %v5217_v1, %v17343_v39  ;;  %v11181_v40 = vld [vmem:[%s11547_s7 + $0x294] ss:$8 sps:$4 sm:$0xff]  }
 0x534   : > { %17341 = vst [vmem:[#allocation151_spill] sm:$0xff] %v14426_v8  ;;  %v14434_v18 = vadd.f32 %v8388_v33, %v17344_v51  ;;  %v5221_v7 = vpop.f32.mrf.mxu1  ;;  %5460 = vmatmul.mubr.bf16.gmra.mxu1 %v11179_v57  ;;  %v14437_v16 = vpop.f32.mrf.mxu0  ;;  %6391 = vmatmul.mubr.bf16.gmra.mxu0 %v11180_v45  ;;  %v17347_v8 = vld [vmem:[#allocation153_spill] sm:$0xff]  ;;  %v11182_v30 = vld [vmem:[%s11547_s7 + $0x274] ss:$8 sps:$4 sm:$0xff]   ;;  %v17351_v45 = vld [vmem:[#allocation154_spill] sm:$0xff] }
 0x535   : > { %17346 = vst [vmem:[#allocation115_spill] sm:$0xff] %v14437_v16  ;;  %v8385_v17 = vsel %vm8276_vm0, %v8126_v24, %v8128_v6  ;;  %v8129_v29 = vrot.slane %v5627_v9, 1  ;;  %v5628_v54 = vadd.f32 %v5221_v7, %v17347_v8  ;;  %5469 = vmatprep.mubr.bf16.mxu1 %v11181_v40  ;;  %6400 = vmatprep.mubr.bf16.mxu0 %v11182_v30  ;;  %v17348_v1 = vld [vmem:[#allocation116_spill] sm:$0xff]  ;;  %v17352_v6 = vld [vmem:[#allocation117_spill] sm:$0xff]  ;;  %v17355_v40 = vld [vmem:[#allocation155_spill] sm:$0xff] }
 0x536   : > { %17345 = vst [vmem:[#allocation152_spill] sm:$0xff] %v14434_v18  ;;  %v14446_v51 = vadd.f32 %v8385_v17, %v17348_v1  ;;  %v5223_v33 = vpop.f32.mrf.mxu1  ;;  %v14448_v39 = vpop.f32.mrf.mxu0  ;;  %v17357_v18 = vld [vmem:[#allocation156_spill] sm:$0xff] }
 0x537   : > { %17350 = vst [vmem:[#allocation116_spill] sm:$0xff] %v14448_v39  ;;  %v8386_v57 = vsel %vm8276_vm0, %v8127_v55, %v8129_v29  ;;  %v5629_v24 = vadd.f32 %v5223_v33, %v17351_v45  ;;  %v11183_v29 = vld [vmem:[%s11547_s7 + $0x290] ss:$8 sps:$4 sm:$0xff]  }
 0x538   : > { %17349 = vst [vmem:[#allocation153_spill] sm:$0xff] %v14446_v51  ;;  %v14454_v9 = vadd.f32 %v8386_v57, %v17352_v6  ;;  %v5225_v8 = vpop.f32.mrf.mxu1  ;;  %v14456_v7 = vpop.f32.mrf.mxu0  ;;  %v8130_v51 = vrot.slane %v5628_v54, 1  ;;  %v11184_v57 = vld [vmem:[%s11547_s7 + $0x270] ss:$8 sps:$4 sm:$0xff]   ;;  %v11186_v54 = vld [vmem:[%s11547_s7 + $0x284] ss:$8 sps:$4 sm:$0xff]  }
 0x539   : > { %17354 = vst [vmem:[#allocation117_spill] sm:$0xff] %v14456_v7  ;;  %v5630_v30 = vadd.f32 %v5225_v8, %v17355_v40  ;;  %v8131_v45 = vrot.slane %v5629_v24, 1  ;;  %v17359_v40 = vld [vmem:[#allocation157_spill] sm:$0xff] }
 0x53a   : > { %17353 = vst [vmem:[#allocation154_spill] sm:$0xff] %v14454_v9  ;;  %v5227_v17 = vpop.f32.mrf.mxu1  ;;  %v14459_v1 = vpop.f32.mrf.mxu0 }
 0x53b   : > { %17356 = vst [vmem:[#allocation155_spill] sm:$0xff] %v14459_v1  ;;  %v8132_v39 = vrot.slane %v5630_v30, 1  ;;  %v5631_v16 = vadd.f32 %v5227_v17, %v17357_v18  ;;  %v11185_v1 = vld [vmem:[%s11547_s7 + $0x2a4] ss:$8 sps:$4 sm:$0xff]  }
 0x53c   : > { %v5231_v55 = vpop.f32.mrf.mxu1  ;;  %5470 = vmatmul.mubr.bf16.gmra.mxu1 %v11183_v29  ;;  %v14463_v33 = vpop.f32.mrf.mxu0  ;;  %6401 = vmatmul.mubr.bf16.gmra.mxu0 %v11184_v57  ;;  %v17360_v30 = vld [vmem:[#allocation118_spill] sm:$0xff] }
 0x53d   : > { %17358 = vst [vmem:[#allocation156_spill] sm:$0xff] %v14463_v33  ;;  %v8383_v6 = vsel %vm8276_vm0, %v8130_v51, %v8132_v39  ;;  %v8133_v8 = vrot.slane %v5631_v16, 1  ;;  %v5632_v9 = vadd.f32 %v5231_v55, %v17359_v40  ;;  %5479 = vmatprep.mubr.bf16.mxu1 %v11185_v1  ;;  %6410 = vmatprep.mubr.bf16.mxu0 %v11186_v54  ;;  %v17363_v33 = vld [vmem:[#allocation158_spill] sm:$0xff]  ;;  %v17364_v16 = vld [vmem:[#allocation47_spill] sm:$0xff] }
 0x53e   : > { %v14472_v18 = vadd.f32 %v8383_v6, %v17360_v30  ;;  %v5233_v17 = vpop.f32.mrf.mxu1  ;;  %v14474_v29 = vpop.f32.mrf.mxu0  ;;  %v17367_v54 = vld [vmem:[#allocation159_spill] sm:$0xff] }
 0x53f   : > { %17362 = vst [vmem:[#allocation118_spill] sm:$0xff] %v14474_v29  ;;  %v8384_v57 = vsel %vm8276_vm0, %v8131_v45, %v8133_v8  ;;  %v8134_v24 = vrot.slane %v5632_v9, 1  ;;  %v5633_v51 = vadd.f32 %v5233_v17, %v17363_v33 }
 0x540   : > { %17361 = vst [vmem:[#allocation157_spill] sm:$0xff] %v14472_v18  ;;  %v14480_v7 = vadd.f32 %v8384_v57, %v17364_v16  ;;  %v5235_v55 = vpop.f32.mrf.mxu1  ;;  %v14482_v1 = vpop.f32.mrf.mxu0  ;;  %v17368_v18 = vld [vmem:[#allocation49_spill] sm:$0xff]  ;;  %v17371_v57 = vld [vmem:[#allocation160_spill] sm:$0xff] }
 0x541   : > { %17366 = vst [vmem:[#allocation47_spill] sm:$0xff] %v14482_v1  ;;  %v8381_v6 = vsel %vm8276_vm0, %v8132_v39, %v8134_v24  ;;  %v8135_v40 = vrot.slane %v5633_v51, 1  ;;  %v5634_v30 = vadd.f32 %v5235_v55, %v17367_v54  ;;  %v11187_v51 = vld [vmem:[%s11547_s7 + $0x2a0] ss:$8 sps:$4 sm:$0xff]  }
 0x542   : > { %17365 = vst [vmem:[#allocation158_spill] sm:$0xff] %v14480_v7  ;;  %v14488_v29 = vadd.f32 %v8381_v6, %v17368_v18  ;;  %v5237_v9 = vpop.f32.mrf.mxu1  ;;  %v14490_v45 = vpop.f32.mrf.mxu0  ;;  %v17372_v7 = vld [vmem:[#allocation51_spill] sm:$0xff]  ;;  %v11188_v18 = vld [vmem:[%s11547_s7 + $0x280] ss:$8 sps:$4 sm:$0xff]  }
 0x543   : > { %17370 = vst [vmem:[#allocation49_spill] sm:$0xff] %v14490_v45  ;;  %v8382_v33 = vsel %vm8276_vm0, %v8133_v8, %v8135_v40  ;;  %v8136_v17 = vrot.slane %v5634_v30, 1  ;;  %v5635_v16 = vadd.f32 %v5237_v9, %v17371_v57  ;;  %v11189_v8 = vld [vmem:[%s11547_s7 + $0x2b4] ss:$8 sps:$4 sm:$0xff]   ;;  %v17376_v9 = vld [vmem:[#allocation53_spill] sm:$0xff] }
 0x544   : > { %17369 = vst [vmem:[#allocation159_spill] sm:$0xff] %v14488_v29  ;;  %v14496_v1 = vadd.f32 %v8382_v33, %v17372_v7  ;;  %v5241_v39 = vpop.f32.mrf.mxu1  ;;  %5480 = vmatmul.mubr.bf16.gmra.mxu1 %v11187_v51  ;;  %v14499_v55 = vpop.f32.mrf.mxu0  ;;  %6411 = vmatmul.mubr.bf16.gmra.mxu0 %v11188_v18  ;;  %v17375_v29 = vld [vmem:[#allocation161_spill] sm:$0xff]  ;;  %v11190_v30 = vld [vmem:[%s11547_s7 + $0x294] ss:$8 sps:$4 sm:$0xff]   ;;  %v17379_v18 = vld [vmem:[#allocation162_spill] sm:$0xff] }
 0x545   : > { %17374 = vst [vmem:[#allocation51_spill] sm:$0xff] %v14499_v55  ;;  %v8379_v6 = vsel %vm8276_vm0, %v8134_v24, %v8136_v17  ;;  %v8137_v54 = vrot.slane %v5635_v16, 1  ;;  %v5636_v45 = vadd.f32 %v5241_v39, %v17375_v29  ;;  %5489 = vmatprep.mubr.bf16.mxu1 %v11189_v8  ;;  %6420 = vmatprep.mubr.bf16.mxu0 %v11190_v30  ;;  %v17380_v17 = vld [vmem:[#allocation55_spill] sm:$0xff] }
 0x546   : > { %17373 = vst [vmem:[#allocation160_spill] sm:$0xff] %v14496_v1  ;;  %v14508_v7 = vadd.f32 %v8379_v6, %v17376_v9  ;;  %v5243_v33 = vpop.f32.mrf.mxu1  ;;  %v14510_v57 = vpop.f32.mrf.mxu0  ;;  %v17383_v8 = vld [vmem:[#allocation163_spill] sm:$0xff]  ;;  %v17385_v1 = vld [vmem:[#allocation164_spill] sm:$0xff] }
 0x547   : > { %17378 = vst [vmem:[#allocation53_spill] sm:$0xff] %v14510_v57  ;;  %v8380_v51 = vsel %vm8276_vm0, %v8135_v40, %v8137_v54  ;;  %v5637_v24 = vadd.f32 %v5243_v33, %v17379_v18  ;;  %v11191_v54 = vld [vmem:[%s11547_s7 + $0x2b0] ss:$8 sps:$4 sm:$0xff]  }
 0x548   : > { %17377 = vst [vmem:[#allocation161_spill] sm:$0xff] %v14508_v7  ;;  %v14516_v16 = vadd.f32 %v8380_v51, %v17380_v17  ;;  %v5245_v29 = vpop.f32.mrf.mxu1  ;;  %v14518_v39 = vpop.f32.mrf.mxu0  ;;  %v8138_v7 = vrot.slane %v5636_v45, 1  ;;  %v11192_v51 = vld [vmem:[%s11547_s7 + $0x290] ss:$8 sps:$4 sm:$0xff]   ;;  %v11194_v45 = vld [vmem:[%s11547_s7 + $0x2a4] ss:$8 sps:$4 sm:$0xff]  }
 0x549   : > { %17382 = vst [vmem:[#allocation55_spill] sm:$0xff] %v14518_v39  ;;  %v5638_v30 = vadd.f32 %v5245_v29, %v17383_v8  ;;  %v8139_v18 = vrot.slane %v5637_v24, 1  ;;  %v17387_v8 = vld [vmem:[#allocation165_spill] sm:$0xff] }
 0x54a   : > { %17381 = vst [vmem:[#allocation162_spill] sm:$0xff] %v14516_v16  ;;  %v5247_v6 = vpop.f32.mrf.mxu1  ;;  %v14521_v9 = vpop.f32.mrf.mxu0 }
 0x54b   : > { %17384 = vst [vmem:[#allocation163_spill] sm:$0xff] %v14521_v9  ;;  %v8140_v57 = vrot.slane %v5638_v30, 1  ;;  %v5639_v55 = vadd.f32 %v5247_v6, %v17385_v1  ;;  %v11193_v9 = vld [vmem:[%s11547_s7 + $0x2c4] ss:$8 sps:$4 sm:$0xff]   ;;  %v17388_v30 = vld [vmem:[#allocation119_spill] sm:$0xff] }
 0x54c   : > { %v5251_v40 = vpop.f32.mrf.mxu1  ;;  %5490 = vmatmul.mubr.bf16.gmra.mxu1 %v11191_v54  ;;  %v14525_v33 = vpop.f32.mrf.mxu0  ;;  %6421 = vmatmul.mubr.bf16.gmra.mxu0 %v11192_v51 }
 0x54d   : > { %17386 = vst [vmem:[#allocation164_spill] sm:$0xff] %v14525_v33  ;;  %v8377_v17 = vsel %vm8276_vm0, %v8138_v7, %v8140_v57  ;;  %v8141_v29 = vrot.slane %v5639_v55, 1  ;;  %v5640_v16 = vadd.f32 %v5251_v40, %v17387_v8  ;;  %5499 = vmatprep.mubr.bf16.mxu1 %v11193_v9  ;;  %6430 = vmatprep.mubr.bf16.mxu0 %v11194_v45  ;;  %v17391_v33 = vld [vmem:[#allocation166_spill] sm:$0xff]  ;;  %v17392_v55 = vld [vmem:[#allocation120_spill] sm:$0xff]  ;;  %v17395_v45 = vld [vmem:[#allocation167_spill] sm:$0xff] }
 0x54e   : > { %v14534_v1 = vadd.f32 %v8377_v17, %v17388_v30  ;;  %v5253_v6 = vpop.f32.mrf.mxu1  ;;  %v14536_v54 = vpop.f32.mrf.mxu0 }
 0x54f   : > { %17390 = vst [vmem:[#allocation119_spill] sm:$0xff] %v14536_v54  ;;  %v8378_v51 = vsel %vm8276_vm0, %v8139_v18, %v8141_v29  ;;  %v8142_v24 = vrot.slane %v5640_v16, 1  ;;  %v5641_v7 = vadd.f32 %v5253_v6, %v17391_v33 }
 0x550   : > { %17389 = vst [vmem:[#allocation165_spill] sm:$0xff] %v14534_v1  ;;  %v14542_v39 = vadd.f32 %v8378_v51, %v17392_v55  ;;  %v5255_v40 = vpop.f32.mrf.mxu1  ;;  %v14544_v9 = vpop.f32.mrf.mxu0  ;;  %v17396_v1 = vld [vmem:[#allocation59_spill] sm:$0xff]  ;;  %v17399_v51 = vld [vmem:[#allocation168_spill] sm:$0xff] }
 0x551   : > { %17394 = vst [vmem:[#allocation120_spill] sm:$0xff] %v14544_v9  ;;  %v8375_v17 = vsel %vm8276_vm0, %v8140_v57, %v8142_v24  ;;  %v8143_v8 = vrot.slane %v5641_v7, 1  ;;  %v5642_v30 = vadd.f32 %v5255_v40, %v17395_v45  ;;  %v11195_v7 = vld [vmem:[%s11547_s7 + $0x2c0] ss:$8 sps:$4 sm:$0xff]  }
 0x552   : > { %17393 = vst [vmem:[#allocation166_spill] sm:$0xff] %v14542_v39  ;;  %v14550_v54 = vadd.f32 %v8375_v17, %v17396_v1  ;;  %v5257_v16 = vpop.f32.mrf.mxu1  ;;  %v14552_v18 = vpop.f32.mrf.mxu0  ;;  %v17400_v39 = vld [vmem:[#allocation61_spill] sm:$0xff] }
 0x553   : > { %17398 = vst [vmem:[#allocation59_spill] sm:$0xff] %v14552_v18  ;;  %v8376_v33 = vsel %vm8276_vm0, %v8141_v29, %v8143_v8  ;;  %v8144_v6 = vrot.slane %v5642_v30, 1  ;;  %v5643_v55 = vadd.f32 %v5257_v16, %v17399_v51  ;;  %v11196_v1 = vld [vmem:[%s11547_s7 + $0x2a0] ss:$8 sps:$4 sm:$0xff]   ;;  %v11197_v29 = vld [vmem:[%s11547_s7 + $0x2d4] ss:$8 sps:$4 sm:$0xff]  }
 0x554   : > { %17397 = vst [vmem:[#allocation167_spill] sm:$0xff] %v14550_v54  ;;  %v14558_v9 = vadd.f32 %v8376_v33, %v17400_v39  ;;  %v5261_v57 = vpop.f32.mrf.mxu1  ;;  %5500 = vmatmul.mubr.bf16.gmra.mxu1 %v11195_v7  ;;  %v14561_v40 = vpop.f32.mrf.mxu0  ;;  %6431 = vmatmul.mubr.bf16.gmra.mxu0 %v11196_v1  ;;  %v17403_v54 = vld [vmem:[#allocation169_spill] sm:$0xff]  ;;  %v11198_v30 = vld [vmem:[%s11547_s7 + $0x2b4] ss:$8 sps:$4 sm:$0xff]   ;;  %v17407_v1 = vld [vmem:[#allocation170_spill] sm:$0xff] }
 0x555   : > { %17402 = vst [vmem:[#allocation61_spill] sm:$0xff] %v14561_v40  ;;  %v8373_v17 = vsel %vm8276_vm0, %v8142_v24, %v8144_v6  ;;  %v8145_v45 = vrot.slane %v5643_v55, 1  ;;  %v5644_v18 = vadd.f32 %v5261_v57, %v17403_v54  ;;  %5509 = vmatprep.mubr.bf16.mxu1 %v11197_v29  ;;  %6440 = vmatprep.mubr.bf16.mxu0 %v11198_v30  ;;  %v17404_v16 = vld [vmem:[#allocation63_spill] sm:$0xff]  ;;  %v17408_v6 = vld [vmem:[#allocation121_spill] sm:$0xff] }
 0x556   : > { %17401 = vst [vmem:[#allocation168_spill] sm:$0xff] %v14558_v9  ;;  %v14570_v39 = vadd.f32 %v8373_v17, %v17404_v16  ;;  %v5263_v33 = vpop.f32.mrf.mxu1  ;;  %v14572_v51 = vpop.f32.mrf.mxu0  ;;  %v17411_v29 = vld [vmem:[#allocation171_spill] sm:$0xff]  ;;  %v17413_v9 = vld [vmem:[#allocation172_spill] sm:$0xff] }
 0x557   : > { %17406 = vst [vmem:[#allocation63_spill] sm:$0xff] %v14572_v51  ;;  %v8374_v7 = vsel %vm8276_vm0, %v8143_v8, %v8145_v45  ;;  %v5645_v24 = vadd.f32 %v5263_v33, %v17407_v1  ;;  %v11199_v45 = vld [vmem:[%s11547_s7 + $0x2d0] ss:$8 sps:$4 sm:$0xff]  }
 0x558   : > { %17405 = vst [vmem:[#allocation169_spill] sm:$0xff] %v14570_v39  ;;  %v14578_v55 = vadd.f32 %v8374_v7, %v17408_v6  ;;  %v5265_v54 = vpop.f32.mrf.mxu1  ;;  %v14580_v57 = vpop.f32.mrf.mxu0  ;;  %v8146_v39 = vrot.slane %v5644_v18, 1  ;;  %v11200_v7 = vld [vmem:[%s11547_s7 + $0x2b0] ss:$8 sps:$4 sm:$0xff]   ;;  %v11202_v18 = vld [vmem:[%s11547_s7 + $0x2c4] ss:$8 sps:$4 sm:$0xff]  }
 0x559   : > { %17410 = vst [vmem:[#allocation121_spill] sm:$0xff] %v14580_v57  ;;  %v5646_v30 = vadd.f32 %v5265_v54, %v17411_v29  ;;  %v8147_v1 = vrot.slane %v5645_v24, 1  ;;  %v17415_v29 = vld [vmem:[#allocation173_spill] sm:$0xff] }
 0x55a   : > { %17409 = vst [vmem:[#allocation170_spill] sm:$0xff] %v14578_v55  ;;  %v5267_v17 = vpop.f32.mrf.mxu1  ;;  %v14583_v16 = vpop.f32.mrf.mxu0 }
 0x55b   : > { %17412 = vst [vmem:[#allocation171_spill] sm:$0xff] %v14583_v16  ;;  %v8148_v51 = vrot.slane %v5646_v30, 1  ;;  %v5647_v40 = vadd.f32 %v5267_v17, %v17413_v9  ;;  %v11201_v16 = vld [vmem:[%s11547_s7 + $0x2e4] ss:$8 sps:$4 sm:$0xff]  }
 0x55c   : > { %v5271_v8 = vpop.f32.mrf.mxu1  ;;  %5510 = vmatmul.mubr.bf16.gmra.mxu1 %v11199_v45  ;;  %v14587_v33 = vpop.f32.mrf.mxu0  ;;  %6441 = vmatmul.mubr.bf16.gmra.mxu0 %v11200_v7  ;;  %v17416_v30 = vld [vmem:[#allocation122_spill] sm:$0xff] }
 0x55d   : > { %17414 = vst [vmem:[#allocation172_spill] sm:$0xff] %v14587_v33  ;;  %v8371_v6 = vsel %vm8276_vm0, %v8146_v39, %v8148_v51  ;;  %v8149_v54 = vrot.slane %v5647_v40, 1  ;;  %v5648_v55 = vadd.f32 %v5271_v8, %v17415_v29  ;;  %5519 = vmatprep.mubr.bf16.mxu1 %v11201_v16  ;;  %6450 = vmatprep.mubr.bf16.mxu0 %v11202_v18  ;;  %v17419_v33 = vld [vmem:[#allocation174_spill] sm:$0xff]  ;;  %v17420_v40 = vld [vmem:[#allocation123_spill] sm:$0xff] }
 0x55e   : > { %v14596_v9 = vadd.f32 %v8371_v6, %v17416_v30  ;;  %v5273_v17 = vpop.f32.mrf.mxu1  ;;  %v14598_v45 = vpop.f32.mrf.mxu0  ;;  %v17423_v18 = vld [vmem:[#allocation175_spill] sm:$0xff] }
 0x55f   : > { %17418 = vst [vmem:[#allocation122_spill] sm:$0xff] %v14598_v45  ;;  %v8372_v7 = vsel %vm8276_vm0, %v8147_v1, %v8149_v54  ;;  %v8150_v24 = vrot.slane %v5648_v55, 1  ;;  %v5649_v39 = vadd.f32 %v5273_v17, %v17419_v33 }
 0x560   : > { %17417 = vst [vmem:[#allocation173_spill] sm:$0xff] %v14596_v9  ;;  %v14604_v57 = vadd.f32 %v8372_v7, %v17420_v40  ;;  %v5275_v8 = vpop.f32.mrf.mxu1  ;;  %v14606_v16 = vpop.f32.mrf.mxu0  ;;  %v17424_v9 = vld [vmem:[#allocation124_spill] sm:$0xff] }
 0x561   : > { %17422 = vst [vmem:[#allocation123_spill] sm:$0xff] %v14606_v16  ;;  %v8369_v6 = vsel %vm8276_vm0, %v8148_v51, %v8150_v24  ;;  %v8151_v29 = vrot.slane %v5649_v39, 1  ;;  %v5650_v30 = vadd.f32 %v5275_v8, %v17423_v18  ;;  %v17427_v7 = vld [vmem:[#allocation176_spill] sm:$0xff]  ;;  %v11203_v39 = vld [vmem:[%s11547_s7 + $0x2e0] ss:$8 sps:$4 sm:$0xff]  }
 0x562   : > { %17421 = vst [vmem:[#allocation174_spill] sm:$0xff] %v14604_v57  ;;  %v14612_v45 = vadd.f32 %v8369_v6, %v17424_v9  ;;  %v5277_v55 = vpop.f32.mrf.mxu1  ;;  %v14614_v1 = vpop.f32.mrf.mxu0  ;;  %v17428_v57 = vld [vmem:[#allocation125_spill] sm:$0xff] }
 0x563   : > { %17426 = vst [vmem:[#allocation124_spill] sm:$0xff] %v14614_v1  ;;  %v8370_v33 = vsel %vm8276_vm0, %v8149_v54, %v8151_v29  ;;  %v8152_v17 = vrot.slane %v5650_v30, 1  ;;  %v5651_v40 = vadd.f32 %v5277_v55, %v17427_v7  ;;  %v11204_v9 = vld [vmem:[%s11547_s7 + $0x2c0] ss:$8 sps:$4 sm:$0xff]   ;;  %v11205_v54 = vld [vmem:[%s11547_s7 + $0x2f4] ss:$8 sps:$4 sm:$0xff]  }
 0x564   : > { %17425 = vst [vmem:[#allocation175_spill] sm:$0xff] %v14612_v45  ;;  %v14620_v16 = vadd.f32 %v8370_v33, %v17428_v57  ;;  %v5281_v51 = vpop.f32.mrf.mxu1  ;;  %5520 = vmatmul.mubr.bf16.gmra.mxu1 %v11203_v39  ;;  %v14623_v8 = vpop.f32.mrf.mxu0  ;;  %6451 = vmatmul.mubr.bf16.gmra.mxu0 %v11204_v9  ;;  %v17431_v45 = vld [vmem:[#allocation177_spill] sm:$0xff]  ;;  %v11206_v30 = vld [vmem:[%s11547_s7 + $0x2d4] ss:$8 sps:$4 sm:$0xff]   ;;  %v17432_v55 = vld [vmem:[#allocation70_spill] sm:$0xff] }
 0x565   : > { %17430 = vst [vmem:[#allocation125_spill] sm:$0xff] %v14623_v8  ;;  %v8367_v6 = vsel %vm8276_vm0, %v8150_v24, %v8152_v17  ;;  %v8153_v18 = vrot.slane %v5651_v40, 1  ;;  %v5652_v1 = vadd.f32 %v5281_v51, %v17431_v45  ;;  %5529 = vmatprep.mubr.bf16.mxu1 %v11205_v54  ;;  %6460 = vmatprep.mubr.bf16.mxu0 %v11206_v30  ;;  %v17435_v9 = vld [vmem:[#allocation178_spill] sm:$0xff]  ;;  %v17436_v17 = vld [vmem:[#allocation72_spill] sm:$0xff]  ;;  %v17439_v54 = vld [vmem:[#allocation179_spill] sm:$0xff] }
 0x566   : > { %17429 = vst [vmem:[#allocation176_spill] sm:$0xff] %v14620_v16  ;;  %v14632_v57 = vadd.f32 %v8367_v6, %v17432_v55  ;;  %v5283_v33 = vpop.f32.mrf.mxu1  ;;  %v14634_v7 = vpop.f32.mrf.mxu0  ;;  %v17441_v16 = vld [vmem:[#allocation180_spill] sm:$0xff] }
 0x567   : > { %17434 = vst [vmem:[#allocation70_spill] sm:$0xff] %v14634_v7  ;;  %v8368_v39 = vsel %vm8276_vm0, %v8151_v29, %v8153_v18  ;;  %v5653_v24 = vadd.f32 %v5283_v33, %v17435_v9  ;;  %v11207_v18 = vld [vmem:[%s11547_s7 + $0x2f0] ss:$8 sps:$4 sm:$0xff]  }
 0x568   : > { %17433 = vst [vmem:[#allocation177_spill] sm:$0xff] %v14632_v57  ;;  %v14640_v40 = vadd.f32 %v8368_v39, %v17436_v17  ;;  %v5285_v45 = vpop.f32.mrf.mxu1  ;;  %v14642_v51 = vpop.f32.mrf.mxu0  ;;  %v8154_v57 = vrot.slane %v5652_v1, 1  ;;  %v11208_v39 = vld [vmem:[%s11547_s7 + $0x2d0] ss:$8 sps:$4 sm:$0xff]   ;;  %v11210_v1 = vld [vmem:[%s11547_s7 + $0x2e4] ss:$8 sps:$4 sm:$0xff]  }
 0x569   : > { %17438 = vst [vmem:[#allocation72_spill] sm:$0xff] %v14642_v51  ;;  %v5654_v30 = vadd.f32 %v5285_v45, %v17439_v54  ;;  %v8155_v9 = vrot.slane %v5653_v24, 1  ;;  %v17443_v54 = vld [vmem:[#allocation181_spill] sm:$0xff] }
 0x56a   : > { %17437 = vst [vmem:[#allocation178_spill] sm:$0xff] %v14640_v40  ;;  %v5287_v6 = vpop.f32.mrf.mxu1  ;;  %v14645_v55 = vpop.f32.mrf.mxu0 }
 0x56b   : > { %17440 = vst [vmem:[#allocation179_spill] sm:$0xff] %v14645_v55  ;;  %v8156_v7 = vrot.slane %v5654_v30, 1  ;;  %v5655_v8 = vadd.f32 %v5287_v6, %v17441_v16  ;;  %v11209_v55 = vld [vmem:[%s11547_s7 + $0x304] ss:$8 sps:$4 sm:$0xff]  }
 0x56c   : > { %v5291_v29 = vpop.f32.mrf.mxu1  ;;  %5530 = vmatmul.mubr.bf16.gmra.mxu1 %v11207_v18  ;;  %v14649_v33 = vpop.f32.mrf.mxu0  ;;  %6461 = vmatmul.mubr.bf16.gmra.mxu0 %v11208_v39  ;;  %v17444_v30 = vld [vmem:[#allocation126_spill] sm:$0xff] }
 0x56d   : > { %17442 = vst [vmem:[#allocation180_spill] sm:$0xff] %v14649_v33  ;;  %v8365_v17 = vsel %vm8276_vm0, %v8154_v57, %v8156_v7  ;;  %v8157_v45 = vrot.slane %v5655_v8, 1  ;;  %v5656_v40 = vadd.f32 %v5291_v29, %v17443_v54  ;;  %5539 = vmatprep.mubr.bf16.mxu1 %v11209_v55  ;;  %6470 = vmatprep.mubr.bf16.mxu0 %v11210_v1  ;;  %v17447_v33 = vld [vmem:[#allocation182_spill] sm:$0xff]  ;;  %v17448_v8 = vld [vmem:[#allocation127_spill] sm:$0xff] }
 0x56e   : > { %v14658_v16 = vadd.f32 %v8365_v17, %v17444_v30  ;;  %v5293_v6 = vpop.f32.mrf.mxu1  ;;  %v14660_v18 = vpop.f32.mrf.mxu0  ;;  %v17451_v1 = vld [vmem:[#allocation183_spill] sm:$0xff] }
 0x56f   : > { %17446 = vst [vmem:[#allocation126_spill] sm:$0xff] %v14660_v18  ;;  %v8366_v39 = vsel %vm8276_vm0, %v8155_v9, %v8157_v45  ;;  %v8158_v24 = vrot.slane %v5656_v40, 1  ;;  %v5657_v57 = vadd.f32 %v5293_v6, %v17447_v33 }
 0x570   : > { %17445 = vst [vmem:[#allocation181_spill] sm:$0xff] %v14658_v16  ;;  %v14666_v51 = vadd.f32 %v8366_v39, %v17448_v8  ;;  %v5295_v29 = vpop.f32.mrf.mxu1  ;;  %v14668_v55 = vpop.f32.mrf.mxu0  ;;  %v17452_v16 = vld [vmem:[#allocation128_spill] sm:$0xff] }
 0x571   : > { %17450 = vst [vmem:[#allocation127_spill] sm:$0xff] %v14668_v55  ;;  %v8363_v17 = vsel %vm8276_vm0, %v8156_v7, %v8158_v24  ;;  %v8159_v54 = vrot.slane %v5657_v57, 1  ;;  %v5658_v30 = vadd.f32 %v5295_v29, %v17451_v1  ;;  %v17455_v39 = vld [vmem:[#allocation184_spill] sm:$0xff]  ;;  %v11211_v57 = vld [vmem:[%s11547_s7 + $0x300] ss:$8 sps:$4 sm:$0xff]  }
 0x572   : > { %17449 = vst [vmem:[#allocation182_spill] sm:$0xff] %v14666_v51  ;;  %v14674_v18 = vadd.f32 %v8363_v17, %v17452_v16  ;;  %v5297_v40 = vpop.f32.mrf.mxu1  ;;  %v14676_v9 = vpop.f32.mrf.mxu0  ;;  %v17456_v51 = vld [vmem:[#allocation129_spill] sm:$0xff] }
 0x573   : > { %17454 = vst [vmem:[#allocation128_spill] sm:$0xff] %v14676_v9  ;;  %v8364_v33 = vsel %vm8276_vm0, %v8157_v45, %v8159_v54  ;;  %v8160_v6 = vrot.slane %v5658_v30, 1  ;;  %v5659_v8 = vadd.f32 %v5297_v40, %v17455_v39  ;;  %v11212_v16 = vld [vmem:[%s11547_s7 + $0x2e0] ss:$8 sps:$4 sm:$0xff]   ;;  %v11213_v45 = vld [vmem:[%s11547_s7 + $0x314] ss:$8 sps:$4 sm:$0xff]  }
 0x574   : > { %17453 = vst [vmem:[#allocation183_spill] sm:$0xff] %v14674_v18  ;;  %v14682_v55 = vadd.f32 %v8364_v33, %v17456_v51  ;;  %v5301_v7 = vpop.f32.mrf.mxu1  ;;  %5540 = vmatmul.mubr.bf16.gmra.mxu1 %v11211_v57  ;;  %v14685_v29 = vpop.f32.mrf.mxu0  ;;  %6471 = vmatmul.mubr.bf16.gmra.mxu0 %v11212_v16  ;;  %v17459_v18 = vld [vmem:[#allocation185_spill] sm:$0xff]  ;;  %v11214_v30 = vld [vmem:[%s11547_s7 + $0x2f4] ss:$8 sps:$4 sm:$0xff]   ;;  %v17460_v40 = vld [vmem:[#allocation78_spill] sm:$0xff] }
 0x575   : > { %17458 = vst [vmem:[#allocation129_spill] sm:$0xff] %v14685_v29  ;;  %v8361_v17 = vsel %vm8276_vm0, %v8158_v24, %v8160_v6  ;;  %v8161_v1 = vrot.slane %v5659_v8, 1  ;;  %v5660_v9 = vadd.f32 %v5301_v7, %v17459_v18  ;;  %5549 = vmatprep.mubr.bf16.mxu1 %v11213_v45  ;;  %6480 = vmatprep.mubr.bf16.mxu0 %v11214_v30  ;;  %v17463_v16 = vld [vmem:[#allocation186_spill] sm:$0xff]  ;;  %v17467_v45 = vld [vmem:[#allocation187_spill] sm:$0xff] }
 0x576   : > { %17457 = vst [vmem:[#allocation184_spill] sm:$0xff] %v14682_v55  ;;  %v14694_v51 = vadd.f32 %v8361_v17, %v17460_v40  ;;  %v5303_v33 = vpop.f32.mrf.mxu1  ;;  %v14696_v39 = vpop.f32.mrf.mxu0  ;;  %v17464_v6 = vld [vmem:[#allocation130_spill] sm:$0xff]  ;;  %v17469_v55 = vld [vmem:[#allocation188_spill] sm:$0xff] }
 0x577   : > { %17462 = vst [vmem:[#allocation78_spill] sm:$0xff] %v14696_v39  ;;  %v8362_v57 = vsel %vm8276_vm0, %v8159_v54, %v8161_v1  ;;  %v5661_v24 = vadd.f32 %v5303_v33, %v17463_v16  ;;  %v11215_v1 = vld [vmem:[%s11547_s7 + $0x310] ss:$8 sps:$4 sm:$0xff]  }
 0x578   : > { %17461 = vst [vmem:[#allocation185_spill] sm:$0xff] %v14694_v51  ;;  %v14702_v8 = vadd.f32 %v8362_v57, %v17464_v6  ;;  %v5305_v18 = vpop.f32.mrf.mxu1  ;;  %v14704_v7 = vpop.f32.mrf.mxu0  ;;  %v8162_v51 = vrot.slane %v5660_v9, 1  ;;  %v11216_v57 = vld [vmem:[%s11547_s7 + $0x2f0] ss:$8 sps:$4 sm:$0xff]   ;;  %v11218_v9 = vld [vmem:[%s11547_s7 + $0x304] ss:$8 sps:$4 sm:$0xff]  }
 0x579   : > { %17466 = vst [vmem:[#allocation130_spill] sm:$0xff] %v14704_v7  ;;  %v5662_v30 = vadd.f32 %v5305_v18, %v17467_v45  ;;  %v8163_v16 = vrot.slane %v5661_v24, 1  ;;  %v17471_v45 = vld [vmem:[#allocation189_spill] sm:$0xff] }
 0x57a   : > { %17465 = vst [vmem:[#allocation186_spill] sm:$0xff] %v14702_v8  ;;  %v5307_v17 = vpop.f32.mrf.mxu1  ;;  %v14707_v40 = vpop.f32.mrf.mxu0 }
 0x57b   : > { %17468 = vst [vmem:[#allocation187_spill] sm:$0xff] %v14707_v40  ;;  %v8164_v39 = vrot.slane %v5662_v30, 1  ;;  %v5663_v29 = vadd.f32 %v5307_v17, %v17469_v55  ;;  %v11217_v40 = vld [vmem:[%s11547_s7 + $0x324] ss:$8 sps:$4 sm:$0xff]  }
 0x57c   : > { %v5311_v54 = vpop.f32.mrf.mxu1  ;;  %5550 = vmatmul.mubr.bf16.gmra.mxu1 %v11215_v1  ;;  %v14711_v33 = vpop.f32.mrf.mxu0  ;;  %6481 = vmatmul.mubr.bf16.gmra.mxu0 %v11216_v57  ;;  %v17472_v30 = vld [vmem:[#allocation81_spill] sm:$0xff] }
 0x57d   : > { %17470 = vst [vmem:[#allocation188_spill] sm:$0xff] %v14711_v33  ;;  %v8359_v6 = vsel %vm8276_vm0, %v8162_v51, %v8164_v39  ;;  %v8165_v18 = vrot.slane %v5663_v29, 1  ;;  %v5664_v8 = vadd.f32 %v5311_v54, %v17471_v45  ;;  %5559 = vmatprep.mubr.bf16.mxu1 %v11217_v40  ;;  %6490 = vmatprep.mubr.bf16.mxu0 %v11218_v9  ;;  %v17475_v33 = vld [vmem:[#allocation190_spill] sm:$0xff]  ;;  %v17476_v29 = vld [vmem:[#allocation83_spill] sm:$0xff] }
 0x57e   : > { %v14720_v55 = vadd.f32 %v8359_v6, %v17472_v30  ;;  %v5313_v17 = vpop.f32.mrf.mxu1  ;;  %v14722_v1 = vpop.f32.mrf.mxu0  ;;  %v17479_v9 = vld [vmem:[#allocation191_spill] sm:$0xff] }
 0x57f   : > { %17474 = vst [vmem:[#allocation81_spill] sm:$0xff] %v14722_v1  ;;  %v8360_v57 = vsel %vm8276_vm0, %v8163_v16, %v8165_v18  ;;  %v8166_v24 = vrot.slane %v5664_v8, 1  ;;  %v5665_v51 = vadd.f32 %v5313_v17, %v17475_v33 }
 0x580   : > { %17473 = vst [vmem:[#allocation189_spill] sm:$0xff] %v14720_v55  ;;  %v14728_v7 = vadd.f32 %v8360_v57, %v17476_v29  ;;  %v5315_v54 = vpop.f32.mrf.mxu1  ;;  %v14730_v40 = vpop.f32.mrf.mxu0  ;;  %v17480_v55 = vld [vmem:[#allocation85_spill] sm:$0xff]  ;;  %v17483_v57 = vld [vmem:[#allocation192_spill] sm:$0xff] }
 0x581   : > { %17478 = vst [vmem:[#allocation83_spill] sm:$0xff] %v14730_v40  ;;  %v8357_v6 = vsel %vm8276_vm0, %v8164_v39, %v8166_v24  ;;  %v8167_v45 = vrot.slane %v5665_v51, 1  ;;  %v5666_v30 = vadd.f32 %v5315_v54, %v17479_v9  ;;  %v11219_v51 = vld [vmem:[%s11547_s7 + $0x320] ss:$8 sps:$4 sm:$0xff]  }
 0x582   : > { %17477 = vst [vmem:[#allocation190_spill] sm:$0xff] %v14728_v7  ;;  %v14736_v1 = vadd.f32 %v8357_v6, %v17480_v55  ;;  %v5317_v8 = vpop.f32.mrf.mxu1  ;;  %v14738_v16 = vpop.f32.mrf.mxu0  ;;  %v17484_v7 = vld [vmem:[#allocation87_spill] sm:$0xff]  ;;  %v11220_v55 = vld [vmem:[%s11547_s7 + $0x300] ss:$8 sps:$4 sm:$0xff]  }
 0x583   : > { %17482 = vst [vmem:[#allocation85_spill] sm:$0xff] %v14738_v16  ;;  %v8358_v33 = vsel %vm8276_vm0, %v8165_v18, %v8167_v45  ;;  %v8168_v17 = vrot.slane %v5666_v30, 1  ;;  %v5667_v29 = vadd.f32 %v5317_v8, %v17483_v57  ;;  %v11221_v18 = vld [vmem:[%s11547_s7 + $0x334] ss:$8 sps:$4 sm:$0xff]   ;;  %v17488_v8 = vld [vmem:[#allocation89_spill] sm:$0xff] }
 0x584   : > { %17481 = vst [vmem:[#allocation191_spill] sm:$0xff] %v14736_v1  ;;  %v14744_v40 = vadd.f32 %v8358_v33, %v17484_v7  ;;  %v5321_v39 = vpop.f32.mrf.mxu1  ;;  %5560 = vmatmul.mubr.bf16.gmra.mxu1 %v11219_v51  ;;  %v14747_v54 = vpop.f32.mrf.mxu0  ;;  %6491 = vmatmul.mubr.bf16.gmra.mxu0 %v11220_v55  ;;  %v17487_v1 = vld [vmem:[#allocation193_spill] sm:$0xff]  ;;  %v11222_v30 = vld [vmem:[%s11547_s7 + $0x314] ss:$8 sps:$4 sm:$0xff]   ;;  %v17491_v55 = vld [vmem:[#allocation194_spill] sm:$0xff] }
 0x585   : > { %17486 = vst [vmem:[#allocation87_spill] sm:$0xff] %v14747_v54  ;;  %v8355_v6 = vsel %vm8276_vm0, %v8166_v24, %v8168_v17  ;;  %v8169_v9 = vrot.slane %v5667_v29, 1  ;;  %v5668_v16 = vadd.f32 %v5321_v39, %v17487_v1  ;;  %5569 = vmatprep.mubr.bf16.mxu1 %v11221_v18  ;;  %6500 = vmatprep.mubr.bf16.mxu0 %v11222_v30  ;;  %v17492_v17 = vld [vmem:[#allocation131_spill] sm:$0xff] }
 0x586   : > { %17485 = vst [vmem:[#allocation192_spill] sm:$0xff] %v14744_v40  ;;  %v14756_v7 = vadd.f32 %v8355_v6, %v17488_v8  ;;  %v5323_v33 = vpop.f32.mrf.mxu1  ;;  %v14758_v57 = vpop.f32.mrf.mxu0  ;;  %v17495_v18 = vld [vmem:[#allocation195_spill] sm:$0xff]  ;;  %v17497_v40 = vld [vmem:[#allocation196_spill] sm:$0xff] }
 0x587   : > { %17490 = vst [vmem:[#allocation89_spill] sm:$0xff] %v14758_v57  ;;  %v8356_v51 = vsel %vm8276_vm0, %v8167_v45, %v8169_v9  ;;  %v5669_v24 = vadd.f32 %v5323_v33, %v17491_v55  ;;  %v11223_v9 = vld [vmem:[%s11547_s7 + $0x330] ss:$8 sps:$4 sm:$0xff]  }
 0x588   : > { %17489 = vst [vmem:[#allocation193_spill] sm:$0xff] %v14756_v7  ;;  %v14764_v29 = vadd.f32 %v8356_v51, %v17492_v17  ;;  %v5325_v1 = vpop.f32.mrf.mxu1  ;;  %v14766_v39 = vpop.f32.mrf.mxu0  ;;  %v8170_v7 = vrot.slane %v5668_v16, 1  ;;  %v11224_v51 = vld [vmem:[%s11547_s7 + $0x310] ss:$8 sps:$4 sm:$0xff]   ;;  %v14781_v16 = vld [vmem:[%s11547_s7 + $0x44] ss:$8 sps:$4 sm:$0xff]  }
 0x589   : > { %17494 = vst [vmem:[#allocation131_spill] sm:$0xff] %v14766_v39  ;;  %v5670_v30 = vadd.f32 %v5325_v1, %v17495_v18  ;;  %v8171_v55 = vrot.slane %v5669_v24, 1  ;;  %v17499_v18 = vld [vmem:[#allocation197_spill] sm:$0xff]  ;;  %v17508_v39 = vld [vmem:[#allocation94_spill] sm:$0xff] }
 0x58a   : > { %17493 = vst [vmem:[#allocation194_spill] sm:$0xff] %v14764_v29  ;;  %v5327_v6 = vpop.f32.mrf.mxu1  ;;  %v14769_v8 = vpop.f32.mrf.mxu0 }
 0x58b   : > { %17496 = vst [vmem:[#allocation195_spill] sm:$0xff] %v14769_v8  ;;  %v8172_v57 = vrot.slane %v5670_v30, 1  ;;  %v5671_v54 = vadd.f32 %v5327_v6, %v17497_v40  ;;  %v11225_v8 = vld [vmem:[%s11547_s7 + $0x4] ss:$8 sps:$4 sm:$0xff]   ;;  %v17500_v40 = vld [vmem:[#allocation132_spill] sm:$0xff] }
 0x58c   : > { %v5331_v45 = vpop.f32.mrf.mxu1  ;;  %5570 = vmatmul.mubr.bf16.gmra.mxu1 %v11223_v9  ;;  %v14773_v33 = vpop.f32.mrf.mxu0  ;;  %6501 = vmatmul.mubr.bf16.gmra.mxu0 %v11224_v51 }
 0x58d   : > { %17498 = vst [vmem:[#allocation196_spill] sm:$0xff] %v14773_v33  ;;  %v8353_v17 = vsel %vm8276_vm0, %v8170_v7, %v8172_v57  ;;  %v8173_v1 = vrot.slane %v5671_v54, 1  ;;  %v5672_v29 = vadd.f32 %v5331_v45, %v17499_v18  ;;  %6703 = vmatprep.mubr.bf16.mxu1 %v11225_v8  ;;  %7409 = vmatprep.mubr.bf16.mxu0 %v14781_v16  ;;  %v17503_v7 = vld [vmem:[#allocation198_spill] sm:$0xff]  ;;  %v17504_v33 = vld [vmem:[#allocation133_spill] sm:$0xff] }
 0x58e   : > { %v14785_v30 = vadd.f32 %v8353_v17, %v17500_v40  ;;  %v5333_v6 = vpop.f32.mrf.mxu1  ;;  %v14787_v9 = vpop.f32.mrf.mxu0 }
 0x58f   : > { %17502 = vst [vmem:[#allocation132_spill] sm:$0xff] %v14787_v9  ;;  %v8354_v24 = vsel %vm8276_vm0, %v8171_v55, %v8173_v1  ;;  %v8174_v51 = vrot.slane %v5672_v29, 1  ;;  %v5673_v54 = vadd.f32 %v5333_v6, %v17503_v7 }
 0x590   : > { %17501 = vst [vmem:[#allocation197_spill] sm:$0xff] %v14785_v30  ;;  %v14793_v45 = vadd.f32 %v8354_v24, %v17504_v33  ;;  %v5335_v8 = vpop.f32.mrf.mxu1  ;;  %v14795_v18 = vpop.f32.mrf.mxu0  ;;  %v17507_v30 = vld [vmem:[#allocation199_spill] sm:$0xff]  ;;  %v17511_v24 = vld [vmem:[#allocation200_spill] sm:$0xff] }
 0x591   : > { %17506 = vst [vmem:[#allocation133_spill] sm:$0xff] %v14795_v18  ;;  %v8351_v17 = vsel %vm8276_vm0, %v8172_v57, %v8174_v51  ;;  %v8175_v40 = vrot.slane %v5673_v54, 1  ;;  %v5674_v9 = vadd.f32 %v5335_v8, %v17507_v30  ;;  %v11227_v30 = vld [vmem:[%s11547_s7] ss:$8 sps:$4 sm:$0xff]  }
 0x592   : > { %17505 = vst [vmem:[#allocation198_spill] sm:$0xff] %v14793_v45  ;;  %v14801_v2 = vadd.f32 %v8351_v17, %v17508_v39  ;;  %v5337_v29 = vpop.f32.mrf.mxu1  ;;  %v14803_v55 = vpop.f32.mrf.mxu0  ;;  %v17512_v45 = vld [vmem:[#allocation96_spill] sm:$0xff]  ;;  %v14815_v39 = vld [vmem:[%s11547_s7 + $0x40] ss:$8 sps:$4 sm:$0xff]  }
 0x593   : > { %17510 = vst [vmem:[#allocation94_spill] sm:$0xff] %v14803_v55  ;;  %v8352_v33 = vsel %vm8276_vm0, %v8173_v1, %v8175_v40  ;;  %v8176_v6 = vrot.slane %v5674_v9, 1  ;;  %v5675_v7 = vadd.f32 %v5337_v29, %v17511_v24  ;;  %v17515_v1 = vld [vmem:[#allocation201_spill] sm:$0xff]  ;;  %v14823_v29 = vld [vmem:[%s11547_s7 + $0x54] ss:$8 sps:$4 sm:$0xff]  }
 0x594   : > { %17509 = vst [vmem:[#allocation199_spill] sm:$0xff] %v14801_v2  ;;  %v14809_v18 = vadd.f32 %v8352_v33, %v17512_v45  ;;  %v5341_v57 = vpop.f32.mrf.mxu1  ;;  %v14811_v54 = vpop.f32.mrf.mxu0  ;;  %6704 = vmatmul.mubr.bf16.vlgmr.msra.gmra.mxu1 %v11227_v30  ;;  %7410 = vmatmul.mubr.bf16.vlgmr.msra.gmra.mxu0 %v14815_v39  ;;  %v11229_v2 = vld [vmem:[%s11547_s7 + $0x14] ss:$8 sps:$4 sm:$0xff]   ;;  %v17516_v45 = vld [vmem:[#allocation98_spill] sm:$0xff] }
 0x595   : > { %17514 = vst [vmem:[#allocation96_spill] sm:$0xff] %v14811_v54  ;;  %v8349_v8 = vsel %vm8276_vm0, %v8174_v51, %v8176_v6  ;;  %v8177_v17 = vrot.slane %v5675_v7, 1  ;;  %v5676_v9 = vadd.f32 %v5341_v57, %v17515_v1  ;;  %6713 = vmatprep.mubr.bf16.mxu1 %v11229_v2  ;;  %7419 = vmatprep.mubr.bf16.mxu0 %v14823_v29  ;;  %v17519_v6 = vld [vmem:[#allocation202_spill] sm:$0xff]  ;;  %v17520_v57 = vld [vmem:[#allocation100_spill] sm:$0xff]  ;;  %v17523_v54 = vld [vmem:[#allocation203_spill] sm:$0xff] }
 0x596   : > { %17513 = vst [vmem:[#allocation200_spill] sm:$0xff] %v14809_v18  ;;  %v14827_v33 = vadd.f32 %v8349_v8, %v17516_v45  ;;  %v5343_v24 = vpop.f32.mrf.mxu1  ;;  %v14829_v30 = vpop.f32.mrf.mxu0 }
 0x597   : > { %17518 = vst [vmem:[#allocation98_spill] sm:$0xff] %v14829_v30  ;;  %v8350_v51 = vsel %vm8276_vm0, %v8175_v40, %v8177_v17  ;;  %v5677_v7 = vadd.f32 %v5343_v24, %v17519_v6  ;;  %v11231_v24 = vld [vmem:[%s11547_s7 + $0x10] ss:$8 sps:$4 sm:$0xff]  }
 0x598   : > { %17517 = vst [vmem:[#allocation201_spill] sm:$0xff] %v14827_v33  ;;  %v14835_v1 = vadd.f32 %v8350_v51, %v17520_v57  ;;  %v5345_v2 = vpop.f32.mrf.mxu1  ;;  %v14837_v18 = vpop.f32.mrf.mxu0  ;;  %v8178_v33 = vrot.slane %v5676_v9, 1  ;;  %v14847_v51 = vld [vmem:[%s11547_s7 + $0x50] ss:$8 sps:$4 sm:$0xff]   ;;  %v11233_v9 = vld [vmem:[%s11547_s7 + $0x24] ss:$8 sps:$4 sm:$0xff]  }
 0x599   : > { %17522 = vst [vmem:[#allocation100_spill] sm:$0xff] %v14837_v18  ;;  %v5678_v55 = vadd.f32 %v5345_v2, %v17523_v54  ;;  %v8179_v6 = vrot.slane %v5677_v7, 1  ;;  %v17527_v2 = vld [vmem:[#allocation205_spill] sm:$0xff]  ;;  %v17532_v18 = vld [vmem:[#allocation6_spill] sm:$0xff] }
 0x59a   : > { %17521 = vst [vmem:[#allocation202_spill] sm:$0xff] %v14835_v1  ;;  %v5347_v8 = vpop.f32.mrf.mxu1  ;;  %v14840_v45 = vpop.f32.mrf.mxu0 }
 0x59b   : > { %17524 = vst [vmem:[#allocation203_spill] sm:$0xff] %v14840_v45  ;;  %v8180_v30 = vrot.slane %v5678_v55, 1  ;;  %v5679_v28 = vadd.f32 %v5347_v8, %v17525_v19  ;;  %v14855_v55 = vld [vmem:[%s11547_s7 + $0x64] ss:$8 sps:$4 sm:$0xff]  }
 0x59c   : > { %v5351_v40 = vpop.f32.mrf.mxu1  ;;  %v14843_v17 = vpop.f32.mrf.mxu0  ;;  %6714 = vmatmul.mubr.bf16.gmra.mxu1 %v11231_v24  ;;  %7420 = vmatmul.mubr.bf16.gmra.mxu0 %v14847_v51  ;;  %v17528_v19 = vld [vmem:[#allocation5_spill] sm:$0xff] }
 0x59d   : > { %17526 = vst [vmem:[#allocation204_spill] sm:$0xff] %v14843_v17  ;;  %v8347_v54 = vsel %vm8276_vm0, %v8178_v33, %v8180_v30  ;;  %v8181_v57 = vrot.slane %v5679_v28, 1  ;;  %v5680_v45 = vadd.f32 %v5351_v40, %v17527_v2  ;;  %6723 = vmatprep.mubr.bf16.mxu1 %v11233_v9  ;;  %7429 = vmatprep.mubr.bf16.mxu0 %v14855_v55  ;;  %v17531_v33 = vld [vmem:[#allocation206_spill] sm:$0xff] }
 0x59e   : > { %v14859_v8 = vadd.f32 %v8347_v54, %v17528_v19  ;;  %v5353_v24 = vpop.f32.mrf.mxu1  ;;  %v14861_v17 = vpop.f32.mrf.mxu0 }
 0x59f   : > { %17530 = vst [vmem:[#allocation5_spill] sm:$0xff] %v14861_v17  ;;  %v8348_v7 = vsel %vm8276_vm0, %v8179_v6, %v8181_v57  ;;  %v8182_v1 = vrot.slane %v5680_v45, 1  ;;  %v5681_v28 = vadd.f32 %v5353_v24, %v17531_v33 }
 0x5a0   : > { %17529 = vst [vmem:[#allocation205_spill] sm:$0xff] %v14859_v8  ;;  %v14867_v40 = vadd.f32 %v8348_v7, %v17532_v18  ;;  %v5355_v2 = vpop.f32.mrf.mxu1  ;;  %v14869_v9 = vpop.f32.mrf.mxu0  ;;  %v17535_v8 = vld [vmem:[#allocation207_spill] sm:$0xff]  ;;  %v17539_v7 = vld [vmem:[#allocation208_spill] sm:$0xff] }
 0x5a1   : > { %17534 = vst [vmem:[#allocation6_spill] sm:$0xff] %v14869_v9  ;;  %v8345_v54 = vsel %vm8276_vm0, %v8180_v30, %v8182_v1  ;;  %v8183_v19 = vrot.slane %v5681_v28, 1  ;;  %v5682_v17 = vadd.f32 %v5355_v2, %v17535_v8  ;;  %v11235_v8 = vld [vmem:[%s11547_s7 + $0x20] ss:$8 sps:$4 sm:$0xff]  }
 0x5a2   : > { %17533 = vst [vmem:[#allocation206_spill] sm:$0xff] %v14867_v40  ;;  %v14875_v61 = vadd.f32 %v8345_v54, %v17536_v62  ;;  %v5357_v45 = vpop.f32.mrf.mxu1  ;;  %v14877_v6 = vpop.f32.mrf.mxu0  ;;  %v17540_v40 = vld [vmem:[#allocation8_spill] sm:$0xff]  ;;  %v14889_v62 = vld [vmem:[%s11547_s7 + $0x60] ss:$8 sps:$4 sm:$0xff]  }
 0x5a3   : > { %17538 = vst [vmem:[#allocation7_spill] sm:$0xff] %v14877_v6  ;;  %v8346_v18 = vsel %vm8276_vm0, %v8181_v57, %v8183_v19  ;;  %v8184_v24 = vrot.slane %v5682_v17, 1  ;;  %v5683_v33 = vadd.f32 %v5357_v45, %v17539_v7  ;;  %v17543_v57 = vld [vmem:[#allocation209_spill] sm:$0xff]  ;;  %v14897_v45 = vld [vmem:[%s11547_s7 + $0x74] ss:$8 sps:$4 sm:$0xff]  }
 0x5a4   : > { %17537 = vst [vmem:[#allocation207_spill] sm:$0xff] %v14875_v61  ;;  %v14883_v9 = vadd.f32 %v8346_v18, %v17540_v40  ;;  %v5361_v30 = vpop.f32.mrf.mxu1  ;;  %v14885_v28 = vpop.f32.mrf.mxu0  ;;  %6724 = vmatmul.mubr.bf16.gmra.mxu1 %v11235_v8  ;;  %7430 = vmatmul.mubr.bf16.gmra.mxu0 %v14889_v62  ;;  %v11237_v61 = vld [vmem:[%s11547_s7 + $0x34] ss:$8 sps:$4 sm:$0xff]   ;;  %v17544_v40 = vld [vmem:[#allocation9_spill] sm:$0xff] }
 0x5a5   : > { %17542 = vst [vmem:[#allocation8_spill] sm:$0xff] %v14885_v28  ;;  %v8343_v2 = vsel %vm8276_vm0, %v8182_v1, %v8184_v24  ;;  %v8185_v54 = vrot.slane %v5683_v33, 1  ;;  %v5684_v17 = vadd.f32 %v5361_v30, %v17543_v57  ;;  %6733 = vmatprep.mubr.bf16.mxu1 %v11237_v61  ;;  %7439 = vmatprep.mubr.bf16.mxu0 %v14897_v45  ;;  %v17547_v24 = vld [vmem:[#allocation210_spill] sm:$0xff]  ;;  %v17551_v28 = vld [vmem:[#allocation211_spill] sm:$0xff] }
 0x5a6   : > { %17541 = vst [vmem:[#allocation208_spill] sm:$0xff] %v14883_v9  ;;  %v14901_v18 = vadd.f32 %v8343_v2, %v17544_v40  ;;  %v5363_v7 = vpop.f32.mrf.mxu1  ;;  %v14903_v8 = vpop.f32.mrf.mxu0  ;;  %v17548_v30 = vld [vmem:[#allocation10_spill] sm:$0xff] }
 0x5a7   : > { %17546 = vst [vmem:[#allocation9_spill] sm:$0xff] %v14903_v8  ;;  %v8344_v1 = vsel %vm8276_vm0, %v8183_v19, %v8185_v54  ;;  %v5685_v33 = vadd.f32 %v5363_v7, %v17547_v24  ;;  %v11239_v54 = vld [vmem:[%s11547_s7 + $0x30] ss:$8 sps:$4 sm:$0xff]  }
 0x5a8   : > { %17545 = vst [vmem:[#allocation209_spill] sm:$0xff] %v14901_v18  ;;  %v14909_v57 = vadd.f32 %v8344_v1, %v17548_v30  ;;  %v5365_v61 = vpop.f32.mrf.mxu1  ;;  %v14911_v9 = vpop.f32.mrf.mxu0  ;;  %v8186_v18 = vrot.slane %v5684_v17, 1  ;;  %v14921_v7 = vld [vmem:[%s11547_s7 + $0x70] ss:$8 sps:$4 sm:$0xff]   ;;  %v17555_v30 = vld [vmem:[#allocation213_spill] sm:$0xff] }
 0x5a9   : > { %17550 = vst [vmem:[#allocation10_spill] sm:$0xff] %v14911_v9  ;;  %v5686_v6 = vadd.f32 %v5365_v61, %v17551_v28  ;;  %v8187_v1 = vrot.slane %v5685_v33, 1 }
 0x5aa   : > { %17549 = vst [vmem:[#allocation210_spill] sm:$0xff] %v14909_v57  ;;  %v5367_v2 = vpop.f32.mrf.mxu1  ;;  %v14914_v40 = vpop.f32.mrf.mxu0 }
 0x5ab   : > { %17552 = vst [vmem:[#allocation211_spill] sm:$0xff] %v14914_v40  ;;  %v8188_v8 = vrot.slane %v5686_v6, 1  ;;  %v5687_v63 = vadd.f32 %v5367_v2, %v17553_v0  ;;  %v14929_v6 = vld [vmem:[%s11547_s7 + $0x84] ss:$8 sps:$4 sm:$0xff]   ;;  %v17556_v0 = vld [vmem:[#allocation11_spill] sm:$0xff]  ;;  %v17560_v40 = vld [vmem:[#allocation12_spill] sm:$0xff] }
 0x5ac   : > { %v5371_v10 = vpop.f32.mrf.mxu1  ;;  %v14917_v19 = vpop.f32.mrf.mxu0  ;;  %6734 = vmatmul.mubr.bf16.gmra.mxu1 %v11239_v54  ;;  %7440 = vmatmul.mubr.bf16.gmra.mxu0 %v14921_v7 }
 0x5ad   : > { %17554 = vst [vmem:[#allocation212_spill] sm:$0xff] %v14917_v19  ;;  %v8341_v28 = vsel %vm8276_vm0, %v8186_v18, %v8188_v8  ;;  %v8189_v24 = vrot.slane %v5687_v63, 1  ;;  %v5688_v61 = vadd.f32 %v5371_v10, %v17555_v30  ;;  %6743 = vmatprep.mubr.bf16.mxu1 %v14781_v16  ;;  %7449 = vmatprep.mubr.bf16.mxu0 %v14929_v6  ;;  %v17559_v18 = vld [vmem:[#allocation214_spill] sm:$0xff] }
 0x5ae   : > { %v14933_v17 = vadd.f32 %v8341_v28, %v17556_v0  ;;  %v5373_v2 = vpop.f32.mrf.mxu1  ;;  %v14935_v54 = vpop.f32.mrf.mxu0 }
 0x5af   : > { %17558 = vst [vmem:[#allocation11_spill] sm:$0xff] %v14935_v54  ;;  %v8342_v33 = vsel %vm8276_vm0, %v8187_v1, %v8189_v24  ;;  %v8190_v19 = vrot.slane %v5688_v61, 1  ;;  %v5689_v63 = vadd.f32 %v5373_v2, %v17559_v18  ;;  %v17564_v54 = vld [vmem:[#allocation13_spill] sm:$0xff] }
 0x5b0   : > { %17557 = vst [vmem:[#allocation213_spill] sm:$0xff] %v14933_v17  ;;  %v14941_v10 = vadd.f32 %v8342_v33, %v17560_v40  ;;  %v5375_v16 = vpop.f32.mrf.mxu1  ;;  %v14943_v30 = vpop.f32.mrf.mxu0  ;;  %v17563_v17 = vld [vmem:[#allocation215_spill] sm:$0xff]  ;;  %v17567_v33 = vld [vmem:[#allocation216_spill] sm:$0xff] }
 0x5b1   : > { %17562 = vst [vmem:[#allocation12_spill] sm:$0xff] %v14943_v30  ;;  %v8339_v28 = vsel %vm8276_vm0, %v8188_v8, %v8190_v19  ;;  %v8191_v0 = vrot.slane %v5689_v63, 1  ;;  %v5690_v57 = vadd.f32 %v5375_v16, %v17563_v17  ;;  %v14963_v17 = vld [vmem:[%s11547_s7 + $0x80] ss:$8 sps:$4 sm:$0xff]  }
 0x5b2   : > { %17561 = vst [vmem:[#allocation214_spill] sm:$0xff] %v14941_v10  ;;  %v14949_v9 = vadd.f32 %v8339_v28, %v17564_v54  ;;  %v5377_v1 = vpop.f32.mrf.mxu1  ;;  %v14951_v61 = vpop.f32.mrf.mxu0  ;;  %v17568_v10 = vld [vmem:[#allocation14_spill] sm:$0xff]  ;;  %v14971_v28 = vld [vmem:[%s11547_s7 + $0x94] ss:$8 sps:$4 sm:$0xff]  }
 0x5b3   : > { %17566 = vst [vmem:[#allocation13_spill] sm:$0xff] %v14951_v61  ;;  %v8340_v40 = vsel %vm8276_vm0, %v8189_v24, %v8191_v0  ;;  %v8192_v2 = vrot.slane %v5690_v57, 1  ;;  %v5691_v18 = vadd.f32 %v5377_v1, %v17567_v33  ;;  %v17571_v24 = vld [vmem:[#allocation217_spill] sm:$0xff] }
 0x5b4   : > { %17565 = vst [vmem:[#allocation215_spill] sm:$0xff] %v14949_v9  ;;  %v14957_v30 = vadd.f32 %v8340_v40, %v17568_v10  ;;  %v5381_v8 = vpop.f32.mrf.mxu1  ;;  %v14959_v63 = vpop.f32.mrf.mxu0  ;;  %6744 = vmatmul.mubr.bf16.gmra.mxu1 %v14815_v39  ;;  %7450 = vmatmul.mubr.bf16.gmra.mxu0 %v14963_v17  ;;  %v17572_v10 = vld [vmem:[#allocation15_spill] sm:$0xff] }
 0x5b5   : > { %17570 = vst [vmem:[#allocation14_spill] sm:$0xff] %v14959_v63  ;;  %v8337_v54 = vsel %vm8276_vm0, %v8190_v19, %v8192_v2  ;;  %v8193_v16 = vrot.slane %v5691_v18, 1  ;;  %v5692_v57 = vadd.f32 %v5381_v8, %v17571_v24  ;;  %6753 = vmatprep.mubr.bf16.mxu1 %v14823_v29  ;;  %7459 = vmatprep.mubr.bf16.mxu0 %v14971_v28  ;;  %v17575_v19 = vld [vmem:[#allocation218_spill] sm:$0xff]  ;;  %v17576_v18 = vld [vmem:[#allocation16_spill] sm:$0xff] }
 0x5b6   : > { %17569 = vst [vmem:[#allocation216_spill] sm:$0xff] %v14957_v30  ;;  %v14975_v1 = vadd.f32 %v8337_v54, %v17572_v10  ;;  %v5383_v39 = vpop.f32.mrf.mxu1  ;;  %v14977_v40 = vpop.f32.mrf.mxu0  ;;  %v17579_v30 = vld [vmem:[#allocation219_spill] sm:$0xff] }
 0x5b7   : > { %17574 = vst [vmem:[#allocation15_spill] sm:$0xff] %v14977_v40  ;;  %v8338_v33 = vsel %vm8276_vm0, %v8191_v0, %v8193_v16  ;;  %v5693_v2 = vadd.f32 %v5383_v39, %v17575_v19  ;;  %v17581_v40 = vld [vmem:[#allocation220_spill] sm:$0xff]  ;;  %v17583_v19 = vld [vmem:[#allocation221_spill] sm:$0xff] }
 0x5b8   : > { %17573 = vst [vmem:[#allocation217_spill] sm:$0xff] %v14975_v1  ;;  %v14983_v8 = vadd.f32 %v8338_v33, %v17576_v18  ;;  %v5385_v29 = vpop.f32.mrf.mxu1  ;;  %v14985_v24 = vpop.f32.mrf.mxu0  ;;  %v8194_v1 = vrot.slane %v5692_v57, 1  ;;  %v14995_v16 = vld [vmem:[%s11547_s7 + $0x90] ss:$8 sps:$4 sm:$0xff]   ;;  %v17584_v57 = vld [vmem:[#allocation17_spill] sm:$0xff] }
 0x5b9   : > { %17578 = vst [vmem:[#allocation16_spill] sm:$0xff] %v14985_v24  ;;  %v5694_v63 = vadd.f32 %v5385_v29, %v17579_v30  ;;  %v8195_v39 = vrot.slane %v5693_v2, 1 }
 0x5ba   : > { %17577 = vst [vmem:[#allocation218_spill] sm:$0xff] %v14983_v8  ;;  %v5387_v54 = vpop.f32.mrf.mxu1  ;;  %v14988_v10 = vpop.f32.mrf.mxu0 }
 0x5bb   : > { %17580 = vst [vmem:[#allocation219_spill] sm:$0xff] %v14988_v10  ;;  %v8196_v9 = vrot.slane %v5694_v63, 1  ;;  %v5695_v61 = vadd.f32 %v5387_v54, %v17581_v40  ;;  %v15003_v63 = vld [vmem:[%s11547_s7 + $0xa4] ss:$8 sps:$4 sm:$0xff]  }
 0x5bc   : > { %v5391_v34 = vpop.f32.mrf.mxu1  ;;  %v14991_v0 = vpop.f32.mrf.mxu0  ;;  %6754 = vmatmul.mubr.bf16.gmra.mxu1 %v14847_v51  ;;  %7460 = vmatmul.mubr.bf16.gmra.mxu0 %v14995_v16 }
 0x5bd   : > { %17582 = vst [vmem:[#allocation220_spill] sm:$0xff] %v14991_v0  ;;  %v8335_v30 = vsel %vm8276_vm0, %v8194_v1, %v8196_v9  ;;  %v8197_v33 = vrot.slane %v5695_v61, 1  ;;  %v5696_v18 = vadd.f32 %v5391_v34, %v17583_v19  ;;  %6763 = vmatprep.mubr.bf16.mxu1 %v14855_v55  ;;  %7469 = vmatprep.mubr.bf16.mxu0 %v15003_v63  ;;  %v17587_v1 = vld [vmem:[#allocation222_spill] sm:$0xff] }
 0x5be   : > { %v15007_v40 = vadd.f32 %v8335_v30, %v17584_v57  ;;  %v5393_v51 = vpop.f32.mrf.mxu1  ;;  %v15009_v29 = vpop.f32.mrf.mxu0  ;;  %v17588_v0 = vld [vmem:[#allocation18_spill] sm:$0xff] }
 0x5bf   : > { %17586 = vst [vmem:[#allocation17_spill] sm:$0xff] %v15009_v29  ;;  %v8336_v2 = vsel %vm8276_vm0, %v8195_v39, %v8197_v33  ;;  %v8198_v54 = vrot.slane %v5696_v18, 1  ;;  %v5697_v61 = vadd.f32 %v5393_v51, %v17587_v1  ;;  %v17592_v29 = vld [vmem:[#allocation19_spill] sm:$0xff] }
 0x5c0   : > { %17585 = vst [vmem:[#allocation221_spill] sm:$0xff] %v15007_v40  ;;  %v15015_v34 = vadd.f32 %v8336_v2, %v17588_v0  ;;  %v5395_v55 = vpop.f32.mrf.mxu1  ;;  %v15017_v19 = vpop.f32.mrf.mxu0  ;;  %v17591_v40 = vld [vmem:[#allocation223_spill] sm:$0xff]  ;;  %v17595_v2 = vld [vmem:[#allocation224_spill] sm:$0xff] }
 0x5c1   : > { %17590 = vst [vmem:[#allocation18_spill] sm:$0xff] %v15017_v19  ;;  %v8333_v30 = vsel %vm8276_vm0, %v8196_v9, %v8198_v54  ;;  %v8199_v57 = vrot.slane %v5697_v61, 1  ;;  %v5698_v10 = vadd.f32 %v5395_v55, %v17591_v40  ;;  %v15037_v40 = vld [vmem:[%s11547_s7 + $0xa0] ss:$8 sps:$4 sm:$0xff]  }
 0x5c2   : > { %17589 = vst [vmem:[#allocation222_spill] sm:$0xff] %v15015_v34  ;;  %v15023_v8 = vadd.f32 %v8333_v30, %v17592_v29  ;;  %v5397_v39 = vpop.f32.mrf.mxu1  ;;  %v15025_v18 = vpop.f32.mrf.mxu0  ;;  %v17596_v34 = vld [vmem:[#allocation20_spill] sm:$0xff] }
 0x5c3   : > { %17594 = vst [vmem:[#allocation19_spill] sm:$0xff] %v15025_v18  ;;  %v8334_v0 = vsel %vm8276_vm0, %v8197_v33, %v8199_v57  ;;  %v8200_v51 = vrot.slane %v5698_v10, 1  ;;  %v5699_v1 = vadd.f32 %v5397_v39, %v17595_v2  ;;  %v17599_v33 = vld [vmem:[#allocation225_spill] sm:$0xff]  ;;  %v15045_v30 = vld [vmem:[%s11547_s7 + $0xb4] ss:$8 sps:$4 sm:$0xff]  }
 0x5c4   : > { %17593 = vst [vmem:[#allocation223_spill] sm:$0xff] %v15023_v8  ;;  %v15031_v19 = vadd.f32 %v8334_v0, %v17596_v34  ;;  %v5401_v9 = vpop.f32.mrf.mxu1  ;;  %v15033_v61 = vpop.f32.mrf.mxu0  ;;  %6764 = vmatmul.mubr.bf16.gmra.mxu1 %v14889_v62  ;;  %7470 = vmatmul.mubr.bf16.gmra.mxu0 %v15037_v40  ;;  %v17600_v34 = vld [vmem:[#allocation21_spill] sm:$0xff] }
 0x5c5   : > { %17598 = vst [vmem:[#allocation20_spill] sm:$0xff] %v15033_v61  ;;  %v8331_v29 = vsel %vm8276_vm0, %v8198_v54, %v8200_v51  ;;  %v8201_v55 = vrot.slane %v5699_v1, 1  ;;  %v5700_v10 = vadd.f32 %v5401_v9, %v17599_v33  ;;  %6773 = vmatprep.mubr.bf16.mxu1 %v14897_v45  ;;  %7479 = vmatprep.mubr.bf16.mxu0 %v15045_v30  ;;  %v17603_v54 = vld [vmem:[#allocation226_spill] sm:$0xff]  ;;  %v17604_v1 = vld [vmem:[#allocation23_spill] sm:$0xff] }
 0x5c6   : > { %17597 = vst [vmem:[#allocation224_spill] sm:$0xff] %v15031_v19  ;;  %v15049_v39 = vadd.f32 %v8331_v29, %v17600_v34  ;;  %v5403_v62 = vpop.f32.mrf.mxu1  ;;  %v15051_v0 = vpop.f32.mrf.mxu0  ;;  %v17607_v19 = vld [vmem:[#allocation227_spill] sm:$0xff] }
 0x5c7   : > { %17602 = vst [vmem:[#allocation21_spill] sm:$0xff] %v15051_v0  ;;  %v8332_v2 = vsel %vm8276_vm0, %v8199_v57, %v8201_v55  ;;  %v5701_v51 = vadd.f32 %v5403_v62, %v17603_v54  ;;  %v17609_v0 = vld [vmem:[#allocation228_spill] sm:$0xff]  ;;  %v17611_v54 = vld [vmem:[#allocation229_spill] sm:$0xff] }
 0x5c8   : > { %17601 = vst [vmem:[#allocation225_spill] sm:$0xff] %v15049_v39  ;;  %v15057_v9 = vadd.f32 %v8332_v2, %v17604_v1  ;;  %v5405_v45 = vpop.f32.mrf.mxu1  ;;  %v15059_v33 = vpop.f32.mrf.mxu0  ;;  %v8202_v39 = vrot.slane %v5700_v10, 1  ;;  %v15069_v55 = vld [vmem:[%s11547_s7 + $0xb0] ss:$8 sps:$4 sm:$0xff]  }
 0x5c9   : > { %17606 = vst [vmem:[#allocation23_spill] sm:$0xff] %v15059_v33  ;;  %v5702_v61 = vadd.f32 %v5405_v45, %v17607_v19  ;;  %v8203_v62 = vrot.slane %v5701_v51, 1  ;;  %v17612_v10 = vld [vmem:[#allocation24_spill] sm:$0xff] }
 0x5ca   : > { %17605 = vst [vmem:[#allocation226_spill] sm:$0xff] %v15057_v9  ;;  %v5407_v29 = vpop.f32.mrf.mxu1  ;;  %v15062_v34 = vpop.f32.mrf.mxu0 }
 0x5cb   : > { %17608 = vst [vmem:[#allocation227_spill] sm:$0xff] %v15062_v34  ;;  %v8204_v8 = vrot.slane %v5702_v61, 1  ;;  %v5703_v18 = vadd.f32 %v5407_v29, %v17609_v0  ;;  %v15077_v61 = vld [vmem:[%s11547_s7 + $0xc4] ss:$8 sps:$4 sm:$0xff]  }
 0x5cc   : > { %v5411_v24 = vpop.f32.mrf.mxu1  ;;  %v15065_v57 = vpop.f32.mrf.mxu0  ;;  %6774 = vmatmul.mubr.bf16.gmra.mxu1 %v14921_v7  ;;  %7480 = vmatmul.mubr.bf16.gmra.mxu0 %v15069_v55 }
 0x5cd   : > { %17610 = vst [vmem:[#allocation228_spill] sm:$0xff] %v15065_v57  ;;  %v8329_v19 = vsel %vm8276_vm0, %v8202_v39, %v8204_v8  ;;  %v8205_v2 = vrot.slane %v5703_v18, 1  ;;  %v5704_v1 = vadd.f32 %v5411_v24, %v17611_v54  ;;  %6783 = vmatprep.mubr.bf16.mxu1 %v14929_v6  ;;  %7489 = vmatprep.mubr.bf16.mxu0 %v15077_v61  ;;  %v17615_v39 = vld [vmem:[#allocation230_spill] sm:$0xff] }
 0x5ce   : > { %v15081_v0 = vadd.f32 %v8329_v19, %v17612_v10  ;;  %v5413_v7 = vpop.f32.mrf.mxu1  ;;  %v15083_v45 = vpop.f32.mrf.mxu0  ;;  %v17616_v57 = vld [vmem:[#allocation26_spill] sm:$0xff] }
 0x5cf   : > { %17614 = vst [vmem:[#allocation24_spill] sm:$0xff] %v15083_v45  ;;  %v8330_v51 = vsel %vm8276_vm0, %v8203_v62, %v8205_v2  ;;  %v8206_v29 = vrot.slane %v5704_v1, 1  ;;  %v5705_v18 = vadd.f32 %v5413_v7, %v17615_v39  ;;  %v17620_v45 = vld [vmem:[#allocation28_spill] sm:$0xff] }
 0x5d0   : > { %17613 = vst [vmem:[#allocation229_spill] sm:$0xff] %v15081_v0  ;;  %v15089_v24 = vadd.f32 %v8330_v51, %v17616_v57  ;;  %v5415_v6 = vpop.f32.mrf.mxu1  ;;  %v15091_v54 = vpop.f32.mrf.mxu0  ;;  %v17619_v0 = vld [vmem:[#allocation231_spill] sm:$0xff]  ;;  %v17623_v51 = vld [vmem:[#allocation232_spill] sm:$0xff] }
 0x5d1   : > { %17618 = vst [vmem:[#allocation26_spill] sm:$0xff] %v15091_v54  ;;  %v8327_v19 = vsel %vm8276_vm0, %v8204_v8, %v8206_v29  ;;  %v8207_v10 = vrot.slane %v5705_v18, 1  ;;  %v5706_v34 = vadd.f32 %v5415_v6, %v17619_v0  ;;  %v15111_v0 = vld [vmem:[%s11547_s7 + $0xc0] ss:$8 sps:$4 sm:$0xff]  }
 0x5d2   : > { %17617 = vst [vmem:[#allocation230_spill] sm:$0xff] %v15089_v24  ;;  %v15097_v9 = vadd.f32 %v8327_v19, %v17620_v45  ;;  %v5417_v62 = vpop.f32.mrf.mxu1  ;;  %v15099_v1 = vpop.f32.mrf.mxu0  ;;  %v17624_v24 = vld [vmem:[#allocation30_spill] sm:$0xff]  ;;  %v15119_v19 = vld [vmem:[%s11547_s7 + $0xd4] ss:$8 sps:$4 sm:$0xff]  }
 0x5d3   : > { %17622 = vst [vmem:[#allocation28_spill] sm:$0xff] %v15099_v1  ;;  %v8328_v57 = vsel %vm8276_vm0, %v8205_v2, %v8207_v10  ;;  %v8208_v7 = vrot.slane %v5706_v34, 1  ;;  %v5707_v39 = vadd.f32 %v5417_v62, %v17623_v51  ;;  %v17627_v2 = vld [vmem:[#allocation233_spill] sm:$0xff] }
 0x5d4   : > { %17621 = vst [vmem:[#allocation231_spill] sm:$0xff] %v15097_v9  ;;  %v15105_v54 = vadd.f32 %v8328_v57, %v17624_v24  ;;  %v5421_v8 = vpop.f32.mrf.mxu1  ;;  %v15107_v18 = vpop.f32.mrf.mxu0  ;;  %6784 = vmatmul.mubr.bf16.gmra.mxu1 %v14963_v17  ;;  %7490 = vmatmul.mubr.bf16.gmra.mxu0 %v15111_v0  ;;  %v17628_v24 = vld [vmem:[#allocation32_spill] sm:$0xff] }
 0x5d5   : > { %17626 = vst [vmem:[#allocation30_spill] sm:$0xff] %v15107_v18  ;;  %v8325_v45 = vsel %vm8276_vm0, %v8206_v29, %v8208_v7  ;;  %v8209_v6 = vrot.slane %v5707_v39, 1  ;;  %v5708_v34 = vadd.f32 %v5421_v8, %v17627_v2  ;;  %6793 = vmatprep.mubr.bf16.mxu1 %v14971_v28  ;;  %7499 = vmatprep.mubr.bf16.mxu0 %v15119_v19  ;;  %v17631_v29 = vld [vmem:[#allocation234_spill] sm:$0xff]  ;;  %v17632_v39 = vld [vmem:[#allocation33_spill] sm:$0xff] }
 0x5d6   : > { %17625 = vst [vmem:[#allocation232_spill] sm:$0xff] %v15105_v54  ;;  %v15123_v62 = vadd.f32 %v8325_v45, %v17628_v24  ;;  %v5423_v17 = vpop.f32.mrf.mxu1  ;;  %v15125_v57 = vpop.f32.mrf.mxu0  ;;  %v17635_v54 = vld [vmem:[#allocation235_spill] sm:$0xff] }
 0x5d7   : > { %17630 = vst [vmem:[#allocation32_spill] sm:$0xff] %v15125_v57  ;;  %v8326_v51 = vsel %vm8276_vm0, %v8207_v10, %v8209_v6  ;;  %v5709_v7 = vadd.f32 %v5423_v17, %v17631_v29  ;;  %v17637_v57 = vld [vmem:[#allocation236_spill] sm:$0xff]  ;;  %v17639_v29 = vld [vmem:[#allocation237_spill] sm:$0xff] }
 0x5d8   : > { %17629 = vst [vmem:[#allocation233_spill] sm:$0xff] %v15123_v62  ;;  %v15131_v8 = vadd.f32 %v8326_v51, %v17632_v39  ;;  %v5425_v28 = vpop.f32.mrf.mxu1  ;;  %v15133_v2 = vpop.f32.mrf.mxu0  ;;  %v8210_v62 = vrot.slane %v5708_v34, 1  ;;  %v15143_v6 = vld [vmem:[%s11547_s7 + $0xd0] ss:$8 sps:$4 sm:$0xff]   ;;  %v17640_v34 = vld [vmem:[#allocation34_spill] sm:$0xff] }
 0x5d9   : > { %17634 = vst [vmem:[#allocation33_spill] sm:$0xff] %v15133_v2  ;;  %v5710_v18 = vadd.f32 %v5425_v28, %v17635_v54  ;;  %v8211_v17 = vrot.slane %v5709_v7, 1 }
 0x5da   : > { %17633 = vst [vmem:[#allocation234_spill] sm:$0xff] %v15131_v8  ;;  %v5427_v45 = vpop.f32.mrf.mxu1  ;;  %v15136_v24 = vpop.f32.mrf.mxu0 }
 0x5db   : > { %17636 = vst [vmem:[#allocation235_spill] sm:$0xff] %v15136_v24  ;;  %v8212_v9 = vrot.slane %v5710_v18, 1  ;;  %v5711_v1 = vadd.f32 %v5427_v45, %v17637_v57  ;;  %v15151_v18 = vld [vmem:[%s11547_s7 + $0xe4] ss:$8 sps:$4 sm:$0xff]  }
 0x5dc   : > { %v5431_v33 = vpop.f32.mrf.mxu1  ;;  %v15139_v10 = vpop.f32.mrf.mxu0  ;;  %6794 = vmatmul.mubr.bf16.gmra.mxu1 %v14995_v16  ;;  %7500 = vmatmul.mubr.bf16.gmra.mxu0 %v15143_v6 }
 0x5dd   : > { %17638 = vst [vmem:[#allocation236_spill] sm:$0xff] %v15139_v10  ;;  %v8323_v54 = vsel %vm8276_vm0, %v8210_v62, %v8212_v9  ;;  %v8213_v51 = vrot.slane %v5711_v1, 1  ;;  %v5712_v39 = vadd.f32 %v5431_v33, %v17639_v29  ;;  %6803 = vmatprep.mubr.bf16.mxu1 %v15003_v63  ;;  %7509 = vmatprep.mubr.bf16.mxu0 %v15151_v18  ;;  %v17643_v62 = vld [vmem:[#allocation238_spill] sm:$0xff]  ;;  %v17644_v10 = vld [vmem:[#allocation35_spill] sm:$0xff] }
 0x5de   : > { %v15155_v57 = vadd.f32 %v8323_v54, %v17640_v34  ;;  %v5433_v16 = vpop.f32.mrf.mxu1  ;;  %v15157_v28 = vpop.f32.mrf.mxu0 }
 0x5df   : > { %17642 = vst [vmem:[#allocation34_spill] sm:$0xff] %v15157_v28  ;;  %v8324_v7 = vsel %vm8276_vm0, %v8211_v17, %v8213_v51  ;;  %v8214_v45 = vrot.slane %v5712_v39, 1  ;;  %v5713_v1 = vadd.f32 %v5433_v16, %v17643_v62  ;;  %v17648_v28 = vld [vmem:[#allocation36_spill] sm:$0xff] }
 0x5e0   : > { %17641 = vst [vmem:[#allocation237_spill] sm:$0xff] %v15155_v57  ;;  %v15163_v33 = vadd.f32 %v8324_v7, %v17644_v10  ;;  %v5435_v63 = vpop.f32.mrf.mxu1  ;;  %v15165_v29 = vpop.f32.mrf.mxu0  ;;  %v17647_v57 = vld [vmem:[#allocation239_spill] sm:$0xff]  ;;  %v17651_v7 = vld [vmem:[#allocation240_spill] sm:$0xff] }
 0x5e1   : > { %17646 = vst [vmem:[#allocation35_spill] sm:$0xff] %v15165_v29  ;;  %v8321_v54 = vsel %vm8276_vm0, %v8212_v9, %v8214_v45  ;;  %v8215_v34 = vrot.slane %v5713_v1, 1  ;;  %v5714_v24 = vadd.f32 %v5435_v63, %v17647_v57  ;;  %v15185_v57 = vld [vmem:[%s11547_s7 + $0xe0] ss:$8 sps:$4 sm:$0xff]  }
 0x5e2   : > { %17645 = vst [vmem:[#allocation238_spill] sm:$0xff] %v15163_v33  ;;  %v15171_v8 = vadd.f32 %v8321_v54, %v17648_v28  ;;  %v5437_v17 = vpop.f32.mrf.mxu1  ;;  %v15173_v39 = vpop.f32.mrf.mxu0  ;;  %v17652_v33 = vld [vmem:[#allocation37_spill] sm:$0xff]  ;;  %v15193_v54 = vld [vmem:[%s11547_s7 + $0xf4] ss:$8 sps:$4 sm:$0xff]  }
 0x5e3   : > { %17650 = vst [vmem:[#allocation36_spill] sm:$0xff] %v15173_v39  ;;  %v8322_v10 = vsel %vm8276_vm0, %v8213_v51, %v8215_v34  ;;  %v8216_v16 = vrot.slane %v5714_v24, 1  ;;  %v5715_v62 = vadd.f32 %v5437_v17, %v17651_v7  ;;  %v17655_v51 = vld [vmem:[#allocation241_spill] sm:$0xff] }
 0x5e4   : > { %17649 = vst [vmem:[#allocation239_spill] sm:$0xff] %v15171_v8  ;;  %v15179_v29 = vadd.f32 %v8322_v10, %v17652_v33  ;;  %v5441_v9 = vpop.f32.mrf.mxu1  ;;  %v15181_v1 = vpop.f32.mrf.mxu0  ;;  %6804 = vmatmul.mubr.bf16.gmra.mxu1 %v15037_v40  ;;  %7510 = vmatmul.mubr.bf16.gmra.mxu0 %v15185_v57  ;;  %v17656_v33 = vld [vmem:[#allocation38_spill] sm:$0xff] }
 0x5e5   : > { %17654 = vst [vmem:[#allocation37_spill] sm:$0xff] %v15181_v1  ;;  %v8319_v28 = vsel %vm8276_vm0, %v8214_v45, %v8216_v16  ;;  %v8217_v63 = vrot.slane %v5715_v62, 1  ;;  %v5716_v24 = vadd.f32 %v5441_v9, %v17655_v51  ;;  %6813 = vmatprep.mubr.bf16.mxu1 %v15045_v30  ;;  %7519 = vmatprep.mubr.bf16.mxu0 %v15193_v54  ;;  %v17659_v45 = vld [vmem:[#allocation242_spill] sm:$0xff]  ;;  %v17660_v62 = vld [vmem:[#allocation39_spill] sm:$0xff] }
 0x5e6   : > { %17653 = vst [vmem:[#allocation240_spill] sm:$0xff] %v15179_v29  ;;  %v15197_v17 = vadd.f32 %v8319_v28, %v17656_v33  ;;  %v5443_v40 = vpop.f32.mrf.mxu1  ;;  %v15199_v10 = vpop.f32.mrf.mxu0  ;;  %v17663_v29 = vld [vmem:[#allocation243_spill] sm:$0xff] }
 0x5e7   : > { %17658 = vst [vmem:[#allocation38_spill] sm:$0xff] %v15199_v10  ;;  %v8320_v7 = vsel %vm8276_vm0, %v8215_v34, %v8217_v63  ;;  %v5717_v16 = vadd.f32 %v5443_v40, %v17659_v45  ;;  %v17665_v10 = vld [vmem:[#allocation244_spill] sm:$0xff]  ;;  %v17667_v45 = vld [vmem:[#allocation245_spill] sm:$0xff] }
 0x5e8   : > { %17657 = vst [vmem:[#allocation241_spill] sm:$0xff] %v15197_v17  ;;  %v15205_v9 = vadd.f32 %v8320_v7, %v17660_v62  ;;  %v5445_v30 = vpop.f32.mrf.mxu1  ;;  %v15207_v51 = vpop.f32.mrf.mxu0  ;;  %v8218_v17 = vrot.slane %v5716_v24, 1  ;;  %v15217_v63 = vld [vmem:[%s11547_s7 + $0xf0] ss:$8 sps:$4 sm:$0xff]  }
 0x5e9   : > { %17662 = vst [vmem:[#allocation39_spill] sm:$0xff] %v15207_v51  ;;  %v5718_v1 = vadd.f32 %v5445_v30, %v17663_v29  ;;  %v8219_v40 = vrot.slane %v5717_v16, 1  ;;  %v17668_v24 = vld [vmem:[#allocation40_spill] sm:$0xff] }
 0x5ea   : > { %17661 = vst [vmem:[#allocation242_spill] sm:$0xff] %v15205_v9  ;;  %v5447_v28 = vpop.f32.mrf.mxu1  ;;  %v15210_v33 = vpop.f32.mrf.mxu0 }
 0x5eb   : > { %17664 = vst [vmem:[#allocation243_spill] sm:$0xff] %v15210_v33  ;;  %v8220_v8 = vrot.slane %v5718_v1, 1  ;;  %v5719_v39 = vadd.f32 %v5447_v28, %v17665_v10  ;;  %v15225_v1 = vld [vmem:[%s11547_s7 + $0x104] ss:$8 sps:$4 sm:$0xff]  }
 0x5ec   : > { %v5451_v2 = vpop.f32.mrf.mxu1  ;;  %v15213_v34 = vpop.f32.mrf.mxu0  ;;  %6814 = vmatmul.mubr.bf16.gmra.mxu1 %v15069_v55  ;;  %7520 = vmatmul.mubr.bf16.gmra.mxu0 %v15217_v63 }
 0x5ed   : > { %17666 = vst [vmem:[#allocation244_spill] sm:$0xff] %v15213_v34  ;;  %v8317_v29 = vsel %vm8276_vm0, %v8218_v17, %v8220_v8  ;;  %v8221_v7 = vrot.slane %v5719_v39, 1  ;;  %v5720_v62 = vadd.f32 %v5451_v2, %v17667_v45  ;;  %6823 = vmatprep.mubr.bf16.mxu1 %v15077_v61  ;;  %7529 = vmatprep.mubr.bf16.mxu0 %v15225_v1  ;;  %v17671_v17 = vld [vmem:[#allocation246_spill] sm:$0xff]  ;;  %v17672_v34 = vld [vmem:[#allocation41_spill] sm:$0xff] }
 0x5ee   : > { %v15229_v10 = vadd.f32 %v8317_v29, %v17668_v24  ;;  %v5453_v55 = vpop.f32.mrf.mxu1  ;;  %v15231_v30 = vpop.f32.mrf.mxu0 }
 0x5ef   : > { %17670 = vst [vmem:[#allocation40_spill] sm:$0xff] %v15231_v30  ;;  %v8318_v16 = vsel %vm8276_vm0, %v8219_v40, %v8221_v7  ;;  %v8222_v28 = vrot.slane %v5720_v62, 1  ;;  %v5721_v39 = vadd.f32 %v5453_v55, %v17671_v17  ;;  %v17676_v30 = vld [vmem:[#allocation42_spill] sm:$0xff] }
 0x5f0   : > { %17669 = vst [vmem:[#allocation245_spill] sm:$0xff] %v15229_v10  ;;  %v15237_v2 = vadd.f32 %v8318_v16, %v17672_v34  ;;  %v5455_v61 = vpop.f32.mrf.mxu1  ;;  %v15239_v45 = vpop.f32.mrf.mxu0  ;;  %v17675_v10 = vld [vmem:[#allocation247_spill] sm:$0xff]  ;;  %v17679_v16 = vld [vmem:[#allocation248_spill] sm:$0xff] }
 0x5f1   : > { %17674 = vst [vmem:[#allocation41_spill] sm:$0xff] %v15239_v45  ;;  %v8315_v29 = vsel %vm8276_vm0, %v8220_v8, %v8222_v28  ;;  %v8223_v24 = vrot.slane %v5721_v39, 1  ;;  %v5722_v33 = vadd.f32 %v5455_v61, %v17675_v10  ;;  %v15259_v10 = vld [vmem:[%s11547_s7 + $0x100] ss:$8 sps:$4 sm:$0xff]  }
 0x5f2   : > { %17673 = vst [vmem:[#allocation246_spill] sm:$0xff] %v15237_v2  ;;  %v15245_v9 = vadd.f32 %v8315_v29, %v17676_v30  ;;  %v5457_v40 = vpop.f32.mrf.mxu1  ;;  %v15247_v62 = vpop.f32.mrf.mxu0  ;;  %v17680_v2 = vld [vmem:[#allocation43_spill] sm:$0xff] }
 0x5f3   : > { %17678 = vst [vmem:[#allocation42_spill] sm:$0xff] %v15247_v62  ;;  %v8316_v34 = vsel %vm8276_vm0, %v8221_v7, %v8223_v24  ;;  %v8224_v55 = vrot.slane %v5722_v33, 1  ;;  %v5723_v17 = vadd.f32 %v5457_v40, %v17679_v16  ;;  %v17683_v7 = vld [vmem:[#allocation249_spill] sm:$0xff]  ;;  %v15267_v29 = vld [vmem:[%s11547_s7 + $0x114] ss:$8 sps:$4 sm:$0xff]  }
 0x5f4   : > { %17677 = vst [vmem:[#allocation247_spill] sm:$0xff] %v15245_v9  ;;  %v15253_v45 = vadd.f32 %v8316_v34, %v17680_v2  ;;  %v5461_v8 = vpop.f32.mrf.mxu1  ;;  %v15255_v39 = vpop.f32.mrf.mxu0  ;;  %6824 = vmatmul.mubr.bf16.gmra.mxu1 %v15111_v0  ;;  %7530 = vmatmul.mubr.bf16.gmra.mxu0 %v15259_v10  ;;  %v17684_v2 = vld [vmem:[#allocation44_spill] sm:$0xff] }
 0x5f5   : > { %17682 = vst [vmem:[#allocation43_spill] sm:$0xff] %v15255_v39  ;;  %v8313_v30 = vsel %vm8276_vm0, %v8222_v28, %v8224_v55  ;;  %v8225_v61 = vrot.slane %v5723_v17, 1  ;;  %v5724_v33 = vadd.f32 %v5461_v8, %v17683_v7  ;;  %6833 = vmatprep.mubr.bf16.mxu1 %v15119_v19  ;;  %7539 = vmatprep.mubr.bf16.mxu0 %v15267_v29  ;;  %v17687_v28 = vld [vmem:[#allocation250_spill] sm:$0xff]  ;;  %v17688_v17 = vld [vmem:[#allocation45_spill] sm:$0xff] }
 0x5f6   : > { %17681 = vst [vmem:[#allocation248_spill] sm:$0xff] %v15253_v45  ;;  %v15271_v40 = vadd.f32 %v8313_v30, %v17684_v2  ;;  %v5463_v0 = vpop.f32.mrf.mxu1  ;;  %v15273_v34 = vpop.f32.mrf.mxu0  ;;  %v17691_v45 = vld [vmem:[#allocation251_spill] sm:$0xff] }
 0x5f7   : > { %17686 = vst [vmem:[#allocation44_spill] sm:$0xff] %v15273_v34  ;;  %v8314_v16 = vsel %vm8276_vm0, %v8223_v24, %v8225_v61  ;;  %v5725_v55 = vadd.f32 %v5463_v0, %v17687_v28  ;;  %v17693_v34 = vld [vmem:[#allocation252_spill] sm:$0xff]  ;;  %v17695_v28 = vld [vmem:[#allocation253_spill] sm:$0xff] }
 0x5f8   : > { %17685 = vst [vmem:[#allocation249_spill] sm:$0xff] %v15271_v40  ;;  %v15279_v8 = vadd.f32 %v8314_v16, %v17688_v17  ;;  %v5465_v19 = vpop.f32.mrf.mxu1  ;;  %v15281_v7 = vpop.f32.mrf.mxu0  ;;  %v8226_v40 = vrot.slane %v5724_v33, 1  ;;  %v15291_v61 = vld [vmem:[%s11547_s7 + $0x110] ss:$8 sps:$4 sm:$0xff]   ;;  %v17696_v33 = vld [vmem:[#allocation46_spill] sm:$0xff] }
 0x5f9   : > { %17690 = vst [vmem:[#allocation45_spill] sm:$0xff] %v15281_v7  ;;  %v5726_v39 = vadd.f32 %v5465_v19, %v17691_v45  ;;  %v8227_v0 = vrot.slane %v5725_v55, 1 }
 0x5fa   : > { %17689 = vst [vmem:[#allocation250_spill] sm:$0xff] %v15279_v8  ;;  %v5467_v30 = vpop.f32.mrf.mxu1  ;;  %v15284_v2 = vpop.f32.mrf.mxu0 }
 0x5fb   : > { %17692 = vst [vmem:[#allocation251_spill] sm:$0xff] %v15284_v2  ;;  %v8228_v9 = vrot.slane %v5726_v39, 1  ;;  %v5727_v62 = vadd.f32 %v5467_v30, %v17693_v34  ;;  %v15299_v39 = vld [vmem:[%s11547_s7 + $0x124] ss:$8 sps:$4 sm:$0xff]  }
 0x5fc   : > { %v5471_v51 = vpop.f32.mrf.mxu1  ;;  %v15287_v24 = vpop.f32.mrf.mxu0  ;;  %6834 = vmatmul.mubr.bf16.gmra.mxu1 %v15143_v6  ;;  %7540 = vmatmul.mubr.bf16.gmra.mxu0 %v15291_v61 }
 0x5fd   : > { %17694 = vst [vmem:[#allocation252_spill] sm:$0xff] %v15287_v24  ;;  %v8311_v45 = vsel %vm8276_vm0, %v8226_v40, %v8228_v9  ;;  %v8229_v16 = vrot.slane %v5727_v62, 1  ;;  %v5728_v17 = vadd.f32 %v5471_v51, %v17695_v28  ;;  %6843 = vmatprep.mubr.bf16.mxu1 %v15151_v18  ;;  %7549 = vmatprep.mubr.bf16.mxu0 %v15299_v39  ;;  %v17699_v40 = vld [vmem:[#allocation254_spill] sm:$0xff]  ;;  %v17700_v24 = vld [vmem:[#allocation48_spill] sm:$0xff] }
 0x5fe   : > { %v15303_v34 = vadd.f32 %v8311_v45, %v17696_v33  ;;  %v5473_v6 = vpop.f32.mrf.mxu1  ;;  %v15305_v19 = vpop.f32.mrf.mxu0 }
 0x5ff   : > { %17698 = vst [vmem:[#allocation46_spill] sm:$0xff] %v15305_v19  ;;  %v8312_v55 = vsel %vm8276_vm0, %v8227_v0, %v8229_v16  ;;  %v8230_v30 = vrot.slane %v5728_v17, 1  ;;  %v5729_v62 = vadd.f32 %v5473_v6, %v17699_v40  ;;  %v17704_v19 = vld [vmem:[#allocation50_spill] sm:$0xff] }
 0x600   : > { %17697 = vst [vmem:[#allocation253_spill] sm:$0xff] %v15303_v34  ;;  %v15311_v51 = vadd.f32 %v8312_v55, %v17700_v24  ;;  %v5475_v18 = vpop.f32.mrf.mxu1  ;;  %v15313_v28 = vpop.f32.mrf.mxu0  ;;  %v17703_v34 = vld [vmem:[#allocation255_spill] sm:$0xff]  ;;  %v17707_v55 = vld [vmem:[#allocation256_spill] sm:$0xff] }
 0x601   : > { %17702 = vst [vmem:[#allocation48_spill] sm:$0xff] %v15313_v28  ;;  %v8309_v45 = vsel %vm8276_vm0, %v8228_v9, %v8230_v30  ;;  %v8231_v33 = vrot.slane %v5729_v62, 1  ;;  %v5730_v2 = vadd.f32 %v5475_v18, %v17703_v34  ;;  %v15333_v34 = vld [vmem:[%s11547_s7 + $0x120] ss:$8 sps:$4 sm:$0xff]  }
 0x602   : > { %17701 = vst [vmem:[#allocation254_spill] sm:$0xff] %v15311_v51  ;;  %v15319_v8 = vadd.f32 %v8309_v45, %v17704_v19  ;;  %v5477_v0 = vpop.f32.mrf.mxu1  ;;  %v15321_v17 = vpop.f32.mrf.mxu0  ;;  %v17708_v51 = vld [vmem:[#allocation52_spill] sm:$0xff] }
 0x603   : > { %17706 = vst [vmem:[#allocation50_spill] sm:$0xff] %v15321_v17  ;;  %v8310_v24 = vsel %vm8276_vm0, %v8229_v16, %v8231_v33  ;;  %v8232_v6 = vrot.slane %v5730_v2, 1  ;;  %v5731_v40 = vadd.f32 %v5477_v0, %v17707_v55  ;;  %v17711_v16 = vld [vmem:[#allocation257_spill] sm:$0xff]  ;;  %v15341_v45 = vld [vmem:[%s11547_s7 + $0x134] ss:$8 sps:$4 sm:$0xff]  }
 0x604   : > { %17705 = vst [vmem:[#allocation255_spill] sm:$0xff] %v15319_v8  ;;  %v15327_v28 = vadd.f32 %v8310_v24, %v17708_v51  ;;  %v5481_v9 = vpop.f32.mrf.mxu1  ;;  %v15329_v62 = vpop.f32.mrf.mxu0  ;;  %6844 = vmatmul.mubr.bf16.gmra.mxu1 %v15185_v57  ;;  %7550 = vmatmul.mubr.bf16.gmra.mxu0 %v15333_v34  ;;  %v17712_v51 = vld [vmem:[#allocation54_spill] sm:$0xff] }
 0x605   : > { %17710 = vst [vmem:[#allocation52_spill] sm:$0xff] %v15329_v62  ;;  %v8307_v19 = vsel %vm8276_vm0, %v8230_v30, %v8232_v6  ;;  %v8233_v18 = vrot.slane %v5731_v40, 1  ;;  %v5732_v2 = vadd.f32 %v5481_v9, %v17711_v16  ;;  %6853 = vmatprep.mubr.bf16.mxu1 %v15193_v54  ;;  %7559 = vmatprep.mubr.bf16.mxu0 %v15341_v45  ;;  %v17715_v30 = vld [vmem:[#allocation258_spill] sm:$0xff]  ;;  %v17716_v40 = vld [vmem:[#allocation56_spill] sm:$0xff] }
 0x606   : > { %17709 = vst [vmem:[#allocation256_spill] sm:$0xff] %v15327_v28  ;;  %v15345_v0 = vadd.f32 %v8307_v19, %v17712_v51  ;;  %v5483_v57 = vpop.f32.mrf.mxu1  ;;  %v15347_v24 = vpop.f32.mrf.mxu0  ;;  %v17719_v28 = vld [vmem:[#allocation259_spill] sm:$0xff] }
 0x607   : > { %17714 = vst [vmem:[#allocation54_spill] sm:$0xff] %v15347_v24  ;;  %v8308_v55 = vsel %vm8276_vm0, %v8231_v33, %v8233_v18  ;;  %v5733_v6 = vadd.f32 %v5483_v57, %v17715_v30  ;;  %v17721_v24 = vld [vmem:[#allocation260_spill] sm:$0xff]  ;;  %v17723_v30 = vld [vmem:[#allocation261_spill] sm:$0xff] }
 0x608   : > { %17713 = vst [vmem:[#allocation257_spill] sm:$0xff] %v15345_v0  ;;  %v15353_v9 = vadd.f32 %v8308_v55, %v17716_v40  ;;  %v5485_v54 = vpop.f32.mrf.mxu1  ;;  %v15355_v16 = vpop.f32.mrf.mxu0  ;;  %v8234_v0 = vrot.slane %v5732_v2, 1  ;;  %v15365_v18 = vld [vmem:[%s11547_s7 + $0x130] ss:$8 sps:$4 sm:$0xff]   ;;  %v17724_v2 = vld [vmem:[#allocation57_spill] sm:$0xff] }
 0x609   : > { %17718 = vst [vmem:[#allocation56_spill] sm:$0xff] %v15355_v16  ;;  %v5734_v62 = vadd.f32 %v5485_v54, %v17719_v28  ;;  %v8235_v57 = vrot.slane %v5733_v6, 1 }
 0x60a   : > { %17717 = vst [vmem:[#allocation258_spill] sm:$0xff] %v15353_v9  ;;  %v5487_v19 = vpop.f32.mrf.mxu1  ;;  %v15358_v51 = vpop.f32.mrf.mxu0 }
 0x60b   : > { %17720 = vst [vmem:[#allocation259_spill] sm:$0xff] %v15358_v51  ;;  %v8236_v8 = vrot.slane %v5734_v62, 1  ;;  %v5735_v17 = vadd.f32 %v5487_v19, %v17721_v24  ;;  %v15373_v62 = vld [vmem:[%s11547_s7 + $0x144] ss:$8 sps:$4 sm:$0xff]  }
 0x60c   : > { %v5491_v7 = vpop.f32.mrf.mxu1  ;;  %v15361_v33 = vpop.f32.mrf.mxu0  ;;  %6854 = vmatmul.mubr.bf16.gmra.mxu1 %v15217_v63  ;;  %7560 = vmatmul.mubr.bf16.gmra.mxu0 %v15365_v18 }
 0x60d   : > { %17722 = vst [vmem:[#allocation260_spill] sm:$0xff] %v15361_v33  ;;  %v8305_v28 = vsel %vm8276_vm0, %v8234_v0, %v8236_v8  ;;  %v8237_v55 = vrot.slane %v5735_v17, 1  ;;  %v5736_v40 = vadd.f32 %v5491_v7, %v17723_v30  ;;  %6863 = vmatprep.mubr.bf16.mxu1 %v15225_v1  ;;  %7569 = vmatprep.mubr.bf16.mxu0 %v15373_v62  ;;  %v17727_v0 = vld [vmem:[#allocation262_spill] sm:$0xff] }
 0x60e   : > { %v15377_v24 = vadd.f32 %v8305_v28, %v17724_v2  ;;  %v5493_v63 = vpop.f32.mrf.mxu1  ;;  %v15379_v54 = vpop.f32.mrf.mxu0  ;;  %v17728_v33 = vld [vmem:[#allocation58_spill] sm:$0xff] }
 0x60f   : > { %17726 = vst [vmem:[#allocation57_spill] sm:$0xff] %v15379_v54  ;;  %v8306_v6 = vsel %vm8276_vm0, %v8235_v57, %v8237_v55  ;;  %v8238_v19 = vrot.slane %v5736_v40, 1  ;;  %v5737_v17 = vadd.f32 %v5493_v63, %v17727_v0  ;;  %v17732_v54 = vld [vmem:[#allocation60_spill] sm:$0xff] }
 0x610   : > { %17725 = vst [vmem:[#allocation261_spill] sm:$0xff] %v15377_v24  ;;  %v15385_v7 = vadd.f32 %v8306_v6, %v17728_v33  ;;  %v5495_v1 = vpop.f32.mrf.mxu1  ;;  %v15387_v30 = vpop.f32.mrf.mxu0  ;;  %v17731_v24 = vld [vmem:[#allocation263_spill] sm:$0xff]  ;;  %v17735_v6 = vld [vmem:[#allocation264_spill] sm:$0xff] }
 0x611   : > { %17730 = vst [vmem:[#allocation58_spill] sm:$0xff] %v15387_v30  ;;  %v8303_v28 = vsel %vm8276_vm0, %v8236_v8, %v8238_v19  ;;  %v8239_v2 = vrot.slane %v5737_v17, 1  ;;  %v5738_v51 = vadd.f32 %v5495_v1, %v17731_v24  ;;  %v15407_v24 = vld [vmem:[%s11547_s7 + $0x140] ss:$8 sps:$4 sm:$0xff]  }
 0x612   : > { %17729 = vst [vmem:[#allocation262_spill] sm:$0xff] %v15385_v7  ;;  %v15393_v9 = vadd.f32 %v8303_v28, %v17732_v54  ;;  %v5497_v57 = vpop.f32.mrf.mxu1  ;;  %v15395_v40 = vpop.f32.mrf.mxu0  ;;  %v17736_v7 = vld [vmem:[#allocation62_spill] sm:$0xff]  ;;  %v15415_v28 = vld [vmem:[%s11547_s7 + $0x154] ss:$8 sps:$4 sm:$0xff]  }
 0x613   : > { %17734 = vst [vmem:[#allocation60_spill] sm:$0xff] %v15395_v40  ;;  %v8304_v33 = vsel %vm8276_vm0, %v8237_v55, %v8239_v2  ;;  %v8240_v63 = vrot.slane %v5738_v51, 1  ;;  %v5739_v0 = vadd.f32 %v5497_v57, %v17735_v6  ;;  %v17739_v55 = vld [vmem:[#allocation265_spill] sm:$0xff] }
 0x614   : > { %17733 = vst [vmem:[#allocation263_spill] sm:$0xff] %v15393_v9  ;;  %v15401_v30 = vadd.f32 %v8304_v33, %v17736_v7  ;;  %v5501_v8 = vpop.f32.mrf.mxu1  ;;  %v15403_v17 = vpop.f32.mrf.mxu0  ;;  %6864 = vmatmul.mubr.bf16.gmra.mxu1 %v15259_v10  ;;  %7570 = vmatmul.mubr.bf16.gmra.mxu0 %v15407_v24  ;;  %v17740_v7 = vld [vmem:[#allocation64_spill] sm:$0xff] }
 0x615   : > { %17738 = vst [vmem:[#allocation62_spill] sm:$0xff] %v15403_v17  ;;  %v8301_v54 = vsel %vm8276_vm0, %v8238_v19, %v8240_v63  ;;  %v8241_v1 = vrot.slane %v5739_v0, 1  ;;  %v5740_v51 = vadd.f32 %v5501_v8, %v17739_v55  ;;  %6873 = vmatprep.mubr.bf16.mxu1 %v15267_v29  ;;  %7579 = vmatprep.mubr.bf16.mxu0 %v15415_v28  ;;  %v17743_v19 = vld [vmem:[#allocation266_spill] sm:$0xff]  ;;  %v17744_v0 = vld [vmem:[#allocation65_spill] sm:$0xff] }
 0x616   : > { %17737 = vst [vmem:[#allocation264_spill] sm:$0xff] %v15401_v30  ;;  %v15419_v57 = vadd.f32 %v8301_v54, %v17740_v7  ;;  %v5503_v10 = vpop.f32.mrf.mxu1  ;;  %v15421_v33 = vpop.f32.mrf.mxu0  ;;  %v17746_v30 = vld [vmem:[#allocation267_spill] sm:$0xff] }
 0x617   : > { %17742 = vst [vmem:[#allocation64_spill] sm:$0xff] %v15421_v33  ;;  %v8302_v6 = vsel %vm8276_vm0, %v8239_v2, %v8241_v1  ;;  %v5741_v63 = vadd.f32 %v5503_v10, %v17743_v19  ;;  %v17748_v33 = vld [vmem:[#allocation268_spill] sm:$0xff]  ;;  %v17750_v19 = vld [vmem:[#allocation269_spill] sm:$0xff] }
 0x618   : > { %17741 = vst [vmem:[#allocation265_spill] sm:$0xff] %v15419_v57  ;;  %v15427_v8 = vadd.f32 %v8302_v6, %v17744_v0  ;;  %v5505_v29 = vpop.f32.mrf.mxu1  ;;  %v15429_v55 = vpop.f32.mrf.mxu0  ;;  %v8242_v57 = vrot.slane %v5740_v51, 1  ;;  %v15439_v1 = vld [vmem:[%s11547_s7 + $0x150] ss:$8 sps:$4 sm:$0xff]   ;;  %v17751_v51 = vld [vmem:[#allocation66_spill] sm:$0xff] }
 0x619   : > { %v5742_v17 = vadd.f32 %v5505_v29, %v17746_v30  ;;  %v8243_v10 = vrot.slane %v5741_v63, 1 }
 0x61a   : > { %17745 = vst [vmem:[#allocation266_spill] sm:$0xff] %v15427_v8  ;;  %v5507_v54 = vpop.f32.mrf.mxu1  ;;  %v15432_v7 = vpop.f32.mrf.mxu0 }
 0x61b   : > { %17747 = vst [vmem:[#allocation65_spill] sm:$0xff] %v15432_v7  ;;  %v8244_v9 = vrot.slane %v5742_v17, 1  ;;  %v5743_v40 = vadd.f32 %v5507_v54, %v17748_v33  ;;  %v15447_v17 = vld [vmem:[%s11547_s7 + $0x164] ss:$8 sps:$4 sm:$0xff]  }
 0x61c   : > { %v5511_v16 = vpop.f32.mrf.mxu1  ;;  %v15435_v2 = vpop.f32.mrf.mxu0  ;;  %6874 = vmatmul.mubr.bf16.gmra.mxu1 %v15291_v61  ;;  %7580 = vmatmul.mubr.bf16.gmra.mxu0 %v15439_v1 }
 0x61d   : > { %17749 = vst [vmem:[#allocation267_spill] sm:$0xff] %v15435_v2  ;;  %v8299_v30 = vsel %vm8276_vm0, %v8242_v57, %v8244_v9  ;;  %v8245_v6 = vrot.slane %v5743_v40, 1  ;;  %v5744_v0 = vadd.f32 %v5511_v16, %v17750_v19  ;;  %6883 = vmatprep.mubr.bf16.mxu1 %v15299_v39  ;;  %7589 = vmatprep.mubr.bf16.mxu0 %v15447_v17  ;;  %v17754_v57 = vld [vmem:[#allocation270_spill] sm:$0xff]  ;;  %v17755_v2 = vld [vmem:[#allocation67_spill] sm:$0xff] }
 0x61e   : > { %v15451_v33 = vadd.f32 %v8299_v30, %v17751_v51  ;;  %v5513_v61 = vpop.f32.mrf.mxu1  ;;  %v15453_v29 = vpop.f32.mrf.mxu0 }
 0x61f   : > { %17753 = vst [vmem:[#allocation269_spill] sm:$0xff] %v15453_v29  ;;  %v8300_v63 = vsel %vm8276_vm0, %v8243_v10, %v8245_v6  ;;  %v8246_v54 = vrot.slane %v5744_v0, 1  ;;  %v5745_v40 = vadd.f32 %v5513_v61, %v17754_v57  ;;  %v17759_v29 = vld [vmem:[#allocation68_spill] sm:$0xff] }
 0x620   : > { %17752 = vst [vmem:[#allocation268_spill] sm:$0xff] %v15451_v33  ;;  %v15459_v16 = vadd.f32 %v8300_v63, %v17755_v2  ;;  %v5515_v39 = vpop.f32.mrf.mxu1  ;;  %v15461_v19 = vpop.f32.mrf.mxu0  ;;  %v17758_v33 = vld [vmem:[#allocation271_spill] sm:$0xff]  ;;  %v17762_v63 = vld [vmem:[#allocation272_spill] sm:$0xff] }
 0x621   : > { %17757 = vst [vmem:[#allocation270_spill] sm:$0xff] %v15461_v19  ;;  %v8297_v30 = vsel %vm8276_vm0, %v8244_v9, %v8246_v54  ;;  %v8247_v51 = vrot.slane %v5745_v40, 1  ;;  %v5746_v7 = vadd.f32 %v5515_v39, %v17758_v33  ;;  %v15481_v33 = vld [vmem:[%s11547_s7 + $0x160] ss:$8 sps:$4 sm:$0xff]  }
 0x622   : > { %17756 = vst [vmem:[#allocation66_spill] sm:$0xff] %v15459_v16  ;;  %v15467_v8 = vadd.f32 %v8297_v30, %v17759_v29  ;;  %v5517_v10 = vpop.f32.mrf.mxu1  ;;  %v15469_v0 = vpop.f32.mrf.mxu0  ;;  %v17763_v16 = vld [vmem:[#allocation69_spill] sm:$0xff]  ;;  %v15489_v30 = vld [vmem:[%s11547_s7 + $0x174] ss:$8 sps:$4 sm:$0xff]  }
 0x623   : > { %17761 = vst [vmem:[#allocation271_spill] sm:$0xff] %v15469_v0  ;;  %v8298_v2 = vsel %vm8276_vm0, %v8245_v6, %v8247_v51  ;;  %v8248_v61 = vrot.slane %v5746_v7, 1  ;;  %v5747_v57 = vadd.f32 %v5517_v10, %v17762_v63  ;;  %v17766_v6 = vld [vmem:[#allocation273_spill] sm:$0xff] }
 0x624   : > { %17760 = vst [vmem:[#allocation67_spill] sm:$0xff] %v15467_v8  ;;  %v15475_v19 = vadd.f32 %v8298_v2, %v17763_v16  ;;  %v5521_v9 = vpop.f32.mrf.mxu1  ;;  %v15477_v40 = vpop.f32.mrf.mxu0  ;;  %6884 = vmatmul.mubr.bf16.gmra.mxu1 %v15333_v34  ;;  %7590 = vmatmul.mubr.bf16.gmra.mxu0 %v15481_v33  ;;  %v17767_v16 = vld [vmem:[#allocation71_spill] sm:$0xff] }
 0x625   : > { %17765 = vst [vmem:[#allocation272_spill] sm:$0xff] %v15477_v40  ;;  %v8295_v29 = vsel %vm8276_vm0, %v8246_v54, %v8248_v61  ;;  %v8249_v39 = vrot.slane %v5747_v57, 1  ;;  %v5748_v7 = vadd.f32 %v5521_v9, %v17766_v6  ;;  %6893 = vmatprep.mubr.bf16.mxu1 %v15341_v45  ;;  %7599 = vmatprep.mubr.bf16.mxu0 %v15489_v30  ;;  %v17770_v61 = vld [vmem:[#allocation73_spill] sm:$0xff]  ;;  %v17773_v6 = vld [vmem:[#allocation274_spill] sm:$0xff] }
 0x626   : > { %17764 = vst [vmem:[#allocation68_spill] sm:$0xff] %v15475_v19  ;;  %v15493_v10 = vadd.f32 %v8295_v29, %v17767_v16  ;;  %v5523_v34 = vpop.f32.mrf.mxu1  ;;  %v15495_v2 = vpop.f32.mrf.mxu0 }
 0x627   : > { %17769 = vst [vmem:[#allocation273_spill] sm:$0xff] %v15495_v2  ;;  %v8296_v63 = vsel %vm8276_vm0, %v8247_v51, %v8249_v39  ;;  %v5749_v54 = vadd.f32 %v5523_v34, %v13966_v52  ;;  %v17775_v2 = vld [vmem:[#allocation275_spill] sm:$0xff] }
 0x628   : > { %17768 = vst [vmem:[#allocation69_spill] sm:$0xff] %v15493_v10  ;;  %v15501_v57 = vadd.f32 %v8296_v63, %v17770_v61  ;;  %v5525_v45 = vpop.f32.mrf.mxu1  ;;  %v15503_v9 = vpop.f32.mrf.mxu0  ;;  %v8250_v10 = vrot.slane %v5748_v7, 1  ;;  %v15513_v52 = vld [vmem:[%s11547_s7 + $0x170] ss:$8 sps:$4 sm:$0xff]   ;;  %v17778_v7 = vld [vmem:[#allocation74_spill] sm:$0xff] }
 0x629   : > { %17772 = vst [vmem:[#allocation73_spill] sm:$0xff] %v15503_v9  ;;  %v5750_v19 = vadd.f32 %v5525_v45, %v17773_v6  ;;  %v8251_v39 = vrot.slane %v5749_v54, 1  ;;  %v17777_v61 = vld [vmem:[#allocation276_spill] sm:$0xff] }
 0x62a   : > { %17771 = vst [vmem:[#allocation71_spill] sm:$0xff] %v15501_v57  ;;  %v5527_v29 = vpop.f32.mrf.mxu1  ;;  %v15506_v16 = vpop.f32.mrf.mxu0 }
 0x62b   : > { %17774 = vst [vmem:[#allocation274_spill] sm:$0xff] %v15506_v16  ;;  %v8252_v40 = vrot.slane %v5750_v19, 1  ;;  %v5751_v8 = vadd.f32 %v5527_v29, %v17775_v2  ;;  %v15521_v19 = vld [vmem:[%s11547_s7 + $0x184] ss:$8 sps:$4 sm:$0xff]  }
 0x62c   : > { %v5531_v0 = vpop.f32.mrf.mxu1  ;;  %v15509_v51 = vpop.f32.mrf.mxu0  ;;  %6894 = vmatmul.mubr.bf16.gmra.mxu1 %v15365_v18  ;;  %7600 = vmatmul.mubr.bf16.gmra.mxu0 %v15513_v52 }
 0x62d   : > { %17776 = vst [vmem:[#allocation275_spill] sm:$0xff] %v15509_v51  ;;  %v8293_v34 = vsel %vm8276_vm0, %v8250_v10, %v8252_v40  ;;  %v8253_v63 = vrot.slane %v5751_v8, 1  ;;  %v5752_v45 = vadd.f32 %v5531_v0, %v17777_v61  ;;  %6903 = vmatprep.mubr.bf16.mxu1 %v15373_v62  ;;  %7609 = vmatprep.mubr.bf16.mxu0 %v15521_v19  ;;  %v17781_v10 = vld [vmem:[#allocation277_spill] sm:$0xff]  ;;  %v17782_v51 = vld [vmem:[#allocation75_spill] sm:$0xff] }
 0x62e   : > { %v15525_v2 = vadd.f32 %v8293_v34, %v17778_v7  ;;  %v5533_v18 = vpop.f32.mrf.mxu1  ;;  %v15527_v6 = vpop.f32.mrf.mxu0 }
 0x62f   : > { %17780 = vst [vmem:[#allocation74_spill] sm:$0xff] %v15527_v6  ;;  %v8294_v54 = vsel %vm8276_vm0, %v8251_v39, %v8253_v63  ;;  %v8254_v29 = vrot.slane %v5752_v45, 1  ;;  %v5753_v8 = vadd.f32 %v5533_v18, %v17781_v10  ;;  %v17786_v6 = vld [vmem:[#allocation76_spill] sm:$0xff] }
 0x630   : > { %17779 = vst [vmem:[#allocation276_spill] sm:$0xff] %v15525_v2  ;;  %v15533_v0 = vadd.f32 %v8294_v54, %v17782_v51  ;;  %v5535_v62 = vpop.f32.mrf.mxu1  ;;  %v15535_v61 = vpop.f32.mrf.mxu0  ;;  %v17785_v2 = vld [vmem:[#allocation278_spill] sm:$0xff]  ;;  %v17789_v54 = vld [vmem:[#allocation279_spill] sm:$0xff] }
 0x631   : > { %17784 = vst [vmem:[#allocation75_spill] sm:$0xff] %v15535_v61  ;;  %v8291_v34 = vsel %vm8276_vm0, %v8252_v40, %v8254_v29  ;;  %v8255_v7 = vrot.slane %v5753_v8, 1  ;;  %v5754_v16 = vadd.f32 %v5535_v62, %v17785_v2  ;;  %v15555_v2 = vld [vmem:[%s11547_s7 + $0x180] ss:$8 sps:$4 sm:$0xff]  }
 0x632   : > { %17783 = vst [vmem:[#allocation277_spill] sm:$0xff] %v15533_v0  ;;  %v15541_v57 = vadd.f32 %v8291_v34, %v17786_v6  ;;  %v5537_v39 = vpop.f32.mrf.mxu1  ;;  %v15543_v45 = vpop.f32.mrf.mxu0  ;;  %v17790_v0 = vld [vmem:[#allocation77_spill] sm:$0xff]  ;;  %v15563_v34 = vld [vmem:[%s11547_s7 + $0x194] ss:$8 sps:$4 sm:$0xff]  }
 0x633   : > { %17788 = vst [vmem:[#allocation76_spill] sm:$0xff] %v15543_v45  ;;  %v8292_v51 = vsel %vm8276_vm0, %v8253_v63, %v8255_v7  ;;  %v8256_v18 = vrot.slane %v5754_v16, 1  ;;  %v5755_v10 = vadd.f32 %v5537_v39, %v17789_v54  ;;  %v17793_v63 = vld [vmem:[#allocation280_spill] sm:$0xff] }
 0x634   : > { %17787 = vst [vmem:[#allocation278_spill] sm:$0xff] %v15541_v57  ;;  %v15549_v61 = vadd.f32 %v8292_v51, %v17790_v0  ;;  %v5541_v40 = vpop.f32.mrf.mxu1  ;;  %v15551_v8 = vpop.f32.mrf.mxu0  ;;  %6904 = vmatmul.mubr.bf16.gmra.mxu1 %v15407_v24  ;;  %7610 = vmatmul.mubr.bf16.gmra.mxu0 %v15555_v2  ;;  %v17794_v0 = vld [vmem:[#allocation79_spill] sm:$0xff] }
 0x635   : > { %17792 = vst [vmem:[#allocation77_spill] sm:$0xff] %v15551_v8  ;;  %v8289_v6 = vsel %vm8276_vm0, %v8254_v29, %v8256_v18  ;;  %v8257_v62 = vrot.slane %v5755_v10, 1  ;;  %v5756_v16 = vadd.f32 %v5541_v40, %v17793_v63  ;;  %6913 = vmatprep.mubr.bf16.mxu1 %v15415_v28  ;;  %7619 = vmatprep.mubr.bf16.mxu0 %v15563_v34  ;;  %v17797_v29 = vld [vmem:[#allocation281_spill] sm:$0xff]  ;;  %v17798_v10 = vld [vmem:[#allocation80_spill] sm:$0xff] }
 0x636   : > { %17791 = vst [vmem:[#allocation279_spill] sm:$0xff] %v15549_v61  ;;  %v15567_v39 = vadd.f32 %v8289_v6, %v17794_v0  ;;  %v5543_v24 = vpop.f32.mrf.mxu1  ;;  %v15569_v51 = vpop.f32.mrf.mxu0  ;;  %v17799_v61 = vld [vmem:[#allocation282_spill] sm:$0xff] }
 0x637   : > { %17796 = vst [vmem:[#allocation79_spill] sm:$0xff] %v15569_v51  ;;  %v8290_v54 = vsel %vm8276_vm0, %v8255_v7, %v8257_v62  ;;  %v5757_v18 = vadd.f32 %v5543_v24, %v17797_v29  ;;  %v17800_v51 = vld [vmem:[#allocation283_spill] sm:$0xff] }
 0x638   : > { %17795 = vst [vmem:[#allocation280_spill] sm:$0xff] %v15567_v39  ;;  %v15575_v40 = vadd.f32 %v8290_v54, %v17798_v10  ;;  %v5545_v28 = vpop.f32.mrf.mxu1  ;;  %v15577_v63 = vpop.f32.mrf.mxu0  ;;  %v8258_v39 = vrot.slane %v5756_v16, 1  ;;  %v15587_v62 = vld [vmem:[%s11547_s7 + $0x190] ss:$8 sps:$4 sm:$0xff]   ;;  %v17801_v16 = vld [vmem:[#allocation82_spill] sm:$0xff] }
 0x639   : > { %v5758_v8 = vadd.f32 %v5545_v28, %v17799_v61  ;;  %v8259_v24 = vrot.slane %v5757_v18, 1 }
 0x63a   : > { %v5547_v6 = vpop.f32.mrf.mxu1  ;;  %v15580_v0 = vpop.f32.mrf.mxu0 }
 0x63b   : > { %v8260_v57 = vrot.slane %v5758_v8, 1  ;;  %v5759_v45 = vadd.f32 %v5547_v6, %v17800_v51  ;;  %v11277_v8 = vld [vmem:[%s11547_s7 + $0x1a4] ss:$8 sps:$4 sm:$0xff]  }
 0x63c   : > { %v5551_v9 = vpop.f32.mrf.mxu1  ;;  %v15583_v7 = vpop.f32.mrf.mxu0  ;;  %6914 = vmatmul.mubr.bf16.gmra.mxu1 %v15439_v1  ;;  %7620 = vmatmul.mubr.bf16.gmra.mxu0 %v15587_v62 }
 0x63d   : > { %v8287_v61 = vsel %vm8276_vm0, %v8258_v39, %v8260_v57  ;;  %v8261_v54 = vrot.slane %v5759_v45, 1  ;;  %v5760_v29 = vadd.f32 %v5551_v9, %v14005_v46  ;;  %6923 = vmatprep.mubr.bf16.mxu1 %v15447_v17  ;;  %7629 = vmatprep.mubr.bf16.mxu0 %v11277_v8  ;;  %v17803_v39 = vld [vmem:[#allocation84_spill] sm:$0xff] }
 0x63e   : > { %v15596_v51 = vadd.f32 %v8287_v61, %v17801_v16  ;;  %v5553_v10 = vpop.f32.mrf.mxu1  ;;  %v15598_v1 = vpop.f32.mrf.mxu0  ;;  %v17806_v16 = vld [vmem:[#allocation86_spill] sm:$0xff] }
 0x63f   : > { %v8288_v28 = vsel %vm8276_vm0, %v8259_v24, %v8261_v54  ;;  %v8262_v18 = vrot.slane %v5760_v29, 1  ;;  %v5761_v6 = vadd.f32 %v5553_v10, %v14008_v41 }
 0x640   : > { %17802 = vst [vmem:[#allocation281_spill] sm:$0xff] %v15596_v51  ;;  %v15604_v45 = vadd.f32 %v8288_v28, %v17803_v39  ;;  %v5555_v46 = vpop.f32.mrf.mxu1  ;;  %v15606_v17 = vpop.f32.mrf.mxu0  ;;  %v17807_v28 = vld [vmem:[#allocation284_spill] sm:$0xff] }
 0x641   : > { %17805 = vst [vmem:[#allocation282_spill] sm:$0xff] %v15606_v17  ;;  %v8285_v9 = vsel %vm8276_vm0, %v8260_v57, %v8262_v18  ;;  %v8263_v61 = vrot.slane %v5761_v6, 1  ;;  %v5762_v8 = vadd.f32 %v5555_v46, %v14010_v47  ;;  %v11278_v47 = vld [vmem:[%s11547_s7 + $0x1a0] ss:$8 sps:$4 sm:$0xff]  }
 0x642   : > { %17804 = vst [vmem:[#allocation80_spill] sm:$0xff] %v15604_v45  ;;  %v15612_v51 = vadd.f32 %v8285_v9, %v17806_v16  ;;  %v5557_v24 = vpop.f32.mrf.mxu1  ;;  %v15614_v29 = vpop.f32.mrf.mxu0  ;;  %v17808_v45 = vld [vmem:[#allocation88_spill] sm:$0xff] }
 0x643   : > { %v8286_v41 = vsel %vm8276_vm0, %v8261_v54, %v8263_v61  ;;  %v8264_v10 = vrot.slane %v5762_v8, 1  ;;  %v5763_v39 = vadd.f32 %v5557_v24, %v17807_v28  ;;  %v11279_v54 = vld [vmem:[%s11547_s7 + $0x1b4] ss:$8 sps:$4 sm:$0xff]   ;;  %v17811_v8 = vld [vmem:[#allocation90_spill] sm:$0xff]  ;;  %v17814_v28 = vld [vmem:[#allocation285_spill] sm:$0xff] }
 0x644   : > { %v15620_v17 = vadd.f32 %v8286_v41, %v17808_v45  ;;  %v5561_v57 = vpop.f32.mrf.mxu1  ;;  %v15622_v6 = vpop.f32.mrf.mxu0  ;;  %6924 = vmatmul.mubr.bf16.gmra.mxu1 %v15481_v33  ;;  %7630 = vmatmul.mubr.bf16.gmra.mxu0 %v11278_v47 }
 0x645   : > { %17810 = vst [vmem:[#allocation82_spill] sm:$0xff] %v15622_v6  ;;  %v8283_v46 = vsel %vm8276_vm0, %v8262_v18, %v8264_v10  ;;  %v8265_v9 = vrot.slane %v5763_v39, 1  ;;  %v5764_v16 = vadd.f32 %v5561_v57, %v14015_v27  ;;  %6933 = vmatprep.mubr.bf16.mxu1 %v15489_v30  ;;  %7639 = vmatprep.mubr.bf16.mxu0 %v11279_v54  ;;  %v17815_v18 = vld [vmem:[#allocation91_spill] sm:$0xff]  ;;  %v17816_v30 = vld [vmem:[#allocation286_spill] sm:$0xff] }
 0x646   : > { %17809 = vst [vmem:[#allocation283_spill] sm:$0xff] %v15620_v17  ;;  %v15632_v45 = vadd.f32 %v8283_v46, %v17811_v8  ;;  %v5563_v24 = vpop.f32.mrf.mxu1  ;;  %v15634_v41 = vpop.f32.mrf.mxu0 }
 0x647   : > { %17813 = vst [vmem:[#allocation86_spill] sm:$0xff] %v15634_v41  ;;  %v8284_v33 = vsel %vm8276_vm0, %v8263_v61, %v8265_v9  ;;  %v5765_v47 = vadd.f32 %v5563_v24, %v17814_v28  ;;  %v8266_v8 = vrot.slane %v5764_v16, 1  ;;  %v17817_v41 = vld [vmem:[#allocation287_spill] sm:$0xff]  ;;  %v11281_v16 = vld [vmem:[%s11547_s7 + $0x1c4] ss:$8 sps:$4 sm:$0xff]  }
 0x648   : > { %17812 = vst [vmem:[#allocation84_spill] sm:$0xff] %v15632_v45  ;;  %v15640_v10 = vadd.f32 %v8284_v33, %v17815_v18  ;;  %v5565_v27 = vpop.f32.mrf.mxu1  ;;  %v15642_v39 = vpop.f32.mrf.mxu0  ;;  %v11280_v9 = vld [vmem:[%s11547_s7 + $0x1b0] ss:$8 sps:$4 sm:$0xff]  }
 0x649   : > { %v5766_v57 = vadd.f32 %v5565_v27, %v17816_v30  ;;  %v8267_v24 = vrot.slane %v5765_v47, 1  ;;  %v17819_v18 = vld [vmem:[#allocation288_spill] sm:$0xff] }
 0x64a   : > { %v5567_v46 = vpop.f32.mrf.mxu1  ;;  %v15645_v54 = vpop.f32.mrf.mxu0  ;;  %v17820_v30 = vld [vmem:[#allocation92_spill] sm:$0xff] }
 0x64b   : > { %v8268_v45 = vrot.slane %v5766_v57, 1  ;;  %v5767_v17 = vadd.f32 %v5567_v46, %v17817_v41 }
 0x64c   : > { %v5571_v6 = vpop.f32.mrf.mxu1  ;;  %v15648_v61 = vpop.f32.mrf.mxu0  ;;  %6934 = vmatmul.mubr.bf16.gmra.mxu1 %v15513_v52  ;;  %7640 = vmatmul.mubr.bf16.gmra.mxu0 %v11280_v9  ;;  %v17823_v9 = vld [vmem:[#allocation289_spill] sm:$0xff] }
 0x64d   : > { %17818 = vst [vmem:[#allocation284_spill] sm:$0xff] %v15648_v61  ;;  %v8281_v33 = vsel %vm8276_vm0, %v8266_v8, %v8268_v45  ;;  %v8269_v28 = vrot.slane %v5767_v17, 1  ;;  %v5768_v27 = vadd.f32 %v5571_v6, %v17819_v18  ;;  %6943 = vmatprep.mubr.bf16.mxu1 %v15521_v19  ;;  %7649 = vmatprep.mubr.bf16.mxu0 %v11281_v16  ;;  %v17824_v8 = vld [vmem:[#allocation93_spill] sm:$0xff]  ;;  %v17827_v16 = vld [vmem:[#allocation290_spill] sm:$0xff] }
 0x64e   : > { %v15658_v41 = vadd.f32 %v8281_v33, %v17820_v30  ;;  %v5573_v57 = vpop.f32.mrf.mxu1  ;;  %v15660_v46 = vpop.f32.mrf.mxu0 }
 0x64f   : > { %17822 = vst [vmem:[#allocation90_spill] sm:$0xff] %v15660_v46  ;;  %v8282_v52 = vsel %vm8276_vm0, %v8267_v24, %v8269_v28  ;;  %v8270_v47 = vrot.slane %v5768_v27, 1  ;;  %v5769_v61 = vadd.f32 %v5573_v57, %v17823_v9  ;;  %v17831_v9 = vld [vmem:[#allocation291_spill] sm:$0xff] }
 0x650   : > { %17821 = vst [vmem:[#allocation88_spill] sm:$0xff] %v15658_v41  ;;  %v15666_v17 = vadd.f32 %v8282_v52, %v17824_v8  ;;  %v5575_v6 = vpop.f32.mrf.mxu1  ;;  %v15668_v19 = vpop.f32.mrf.mxu0  ;;  %v17828_v41 = vld [vmem:[#allocation95_spill] sm:$0xff] }
 0x651   : > { %17826 = vst [vmem:[#allocation91_spill] sm:$0xff] %v15668_v19  ;;  %v8279_v33 = vsel %vm8276_vm0, %v8268_v45, %v8270_v47  ;;  %v8271_v18 = vrot.slane %v5769_v61, 1  ;;  %v5770_v30 = vadd.f32 %v5575_v6, %v17827_v16  ;;  %v11282_v6 = vld [vmem:[%s11547_s7 + $0x1c0] ss:$8 sps:$4 sm:$0xff]   ;;  %v17834_v16 = vld [vmem:[#allocation292_spill] sm:$0xff] }
 0x652   : > { %17825 = vst [vmem:[#allocation285_spill] sm:$0xff] %v15666_v17  ;;  %v15674_v46 = vadd.f32 %v8279_v33, %v17828_v41  ;;  %v5577_v24 = vpop.f32.mrf.mxu1  ;;  %v15676_v27 = vpop.f32.mrf.mxu0  ;;  %v17832_v17 = vld [vmem:[#allocation97_spill] sm:$0xff] }
 0x653   : > { %17830 = vst [vmem:[#allocation287_spill] sm:$0xff] %v15676_v27  ;;  %v8280_v57 = vsel %vm8276_vm0, %v8269_v28, %v8271_v18  ;;  %v8272_v52 = vrot.slane %v5770_v30, 1  ;;  %v5771_v8 = vadd.f32 %v5577_v24, %v17831_v9  ;;  %v11283_v28 = vld [vmem:[%s11547_s7 + $0x1d4] ss:$8 sps:$4 sm:$0xff]  }
 0x654   : > { %17829 = vst [vmem:[#allocation286_spill] sm:$0xff] %v15674_v46  ;;  %v15682_v19 = vadd.f32 %v8280_v57, %v17832_v17  ;;  %v6705_v45 = vpop.f32.mrf.mxu1  ;;  %6944 = vmatmul.mubr.bf16.gmra.mxu1 %v15555_v2  ;;  %v7411_v61 = vpop.f32.mrf.mxu0  ;;  %7650 = vmatmul.mubr.bf16.gmra.mxu0 %v11282_v6  ;;  %v17835_v30 = vld [vmem:[#allocation99_spill] sm:$0xff]  ;;  %v17837_v6 = vld [vmem:[#allocation101_spill] sm:$0xff] }
 0x655   : > { %v8277_v41 = vsel %vm8276_vm0, %v8270_v47, %v8272_v52  ;;  %v8273_v33 = vrot.slane %v5771_v8, 1  ;;  %v6706_v46 = vadd.f32 %v6705_v45, %v17834_v16  ;;  %6953 = vmatprep.mubr.bf16.mxu1 %v15563_v34  ;;  %7659 = vmatprep.mubr.bf16.mxu0 %v11283_v28  ;;  %v17839_v34 = vld [vmem:[#allocation293_spill] sm:$0xff] }
 0x656   : > { %17833 = vst [vmem:[#allocation288_spill] sm:$0xff] %v15682_v19  ;;  %v15692_v17 = vadd.f32 %v8277_v41, %v17835_v30  ;;  %v6707_v24 = vpop.f32.mrf.mxu1  ;;  %v7413_v57 = vpop.f32.mrf.mxu0  ;;  %v9050_v41 = vsub.s32 0, %v14056_v49 }
 0x657   : > { %v8278_v2 = vsel %vm8276_vm0, %v8271_v18, %v8273_v33  ;;  %v6708_v9 = vadd.f32 %v6707_v24, %v14054_v14  ;;  %v7890_v45 = vadd.f32 %v7411_v61, %v6706_v46  ;;  %v9046_v14 = vld [vmem:[%s16771_s2] sm:$0x3]  ;;  %v17840_v33 = vld [vmem:[#allocation294_spill] sm:$0xff]  ;;  %v9054_v46 = vsub.s32 1, %v14056_v49 }
 0x658   : > { %17836 = vst [vmem:[#allocation92_spill] sm:$0xff] %v15692_v17  ;;  %v15698_v47 = vadd.f32 %v8278_v2, %v17837_v6  ;;  %v6709_v52 = vpop.f32.mrf.mxu1  ;;  %v7415_v8 = vpop.f32.mrf.mxu0  ;;  %v11284_v2 = vld [vmem:[%s11547_s7 + $0x1d0] ss:$8 sps:$4 sm:$0xff]  }
 0x659   : > { %v6710_v16 = vadd.f32 %v6709_v52, %v17839_v34  ;;  %v7891_v28 = vadd.f32 %v7413_v57, %v6708_v9  ;;  %v8565_v9 = vrot.slane %v7890_v45, 2  ;;  %v11285_v34 = vld [vmem:[%s11547_s7 + $0x1a4] ss:$8 sps:$4 sm:$0xff]  }
 0x65a   : > { %17838 = vst [vmem:[#allocation289_spill] sm:$0xff] %v15698_v47  ;;  %v6711_v30 = vpop.f32.mrf.mxu1  ;;  %v7417_v17 = vpop.f32.mrf.mxu0 }
 0x65b   : > { %v7892_v18 = vadd.f32 %v7415_v8, %v6710_v16  ;;  %v6712_v24 = vadd.f32 %v6711_v30, %v17840_v33  ;;  %v11286_v16 = vld [vmem:[%s11547_s7 + $0x1e4] ss:$8 sps:$4 sm:$0xff]   ;;  %v8566_v30 = vrot.slane %v7891_v28, 2  ;;  %v15718_v33 = vrot.slane %v9046_v14, %v9050_v41 }
 0x65c   : > { %v6715_v61 = vpop.f32.mrf.mxu1  ;;  %6954 = vmatmul.mubr.bf16.gmra.mxu1 %v15587_v62  ;;  %v7421_v57 = vpop.f32.mrf.mxu0  ;;  %7660 = vmatmul.mubr.bf16.gmra.mxu0 %v11284_v2 }
 0x65d   : > { %v8567_v6 = vrot.slane %v7892_v18, 2  ;;  %v7893_v52 = vadd.f32 %v7417_v17, %v6712_v24  ;;  %v6716_v8 = vadd.f32 %v6715_v61, %v14067_v44  ;;  %6963 = vmatprep.mubr.bf16.mxu1 %v11285_v34  ;;  %7669 = vmatprep.mubr.bf16.mxu0 %v11286_v16  ;;  %v15724_v44 = vrot.slane %v9046_v14, %v9054_v46 }
 0x65e   : > { %v6717_v47 = vpop.f32.mrf.mxu1  ;;  %v7423_v62 = vpop.f32.mrf.mxu0 }
 0x65f   : > { %v8900_v2 = vsel %vm8757_vm1, %v8565_v9, %v8567_v6  ;;  %v8568_v45 = vrot.slane %v7893_v52, 2  ;;  %v7894_v19 = vadd.f32 %v7421_v57, %v6716_v8  ;;  %v6718_v27 = vadd.f32 %v6717_v47, %v14078_v25 }
 0x660   : > { %v8902_v17 = vadd.f32 %v8900_v2, %v14076_v59  ;;  %v6719_v18 = vpop.f32.mrf.mxu1  ;;  %v7425_v24 = vpop.f32.mrf.mxu0  ;;  %v11289_v2 = vld [vmem:[%s11547_s7 + $0x1b4] ss:$8 sps:$4 sm:$0xff]  }
 0x661   : > { %v8901_v28 = vsel %vm8757_vm1, %v8566_v30, %v8568_v45  ;;  %v8569_v41 = vrot.slane %v7894_v19, 2  ;;  %v7895_v61 = vadd.f32 %v7423_v62, %v6718_v27  ;;  %v6720_v34 = vadd.f32 %v6719_v18, %v14086_v21  ;;  %v11287_v27 = vld [vmem:[%s11547_s7 + $0x1a0] ss:$8 sps:$4 sm:$0xff]  }
 0x662   : > { %v9058_v9 = vadd.f32 %v15718_v33, %v8902_v17  ;;  %v8903_v25 = vadd.f32 %v8901_v28, %v14084_v4  ;;  %v6721_v47 = vpop.f32.mrf.mxu1  ;;  %v7427_v59 = vpop.f32.mrf.mxu0  ;;  %v11290_v17 = vld [vmem:[%s11547_s7 + $0x1f4] ss:$8 sps:$4 sm:$0xff]  }
 0x663   : > { %v8898_v14 = vsel %vm8757_vm1, %v8567_v6, %v8569_v41  ;;  %v8570_v46 = vrot.slane %v7895_v61, 2  ;;  %v7896_v57 = vadd.f32 %v7425_v24, %v6720_v34  ;;  %v6722_v52 = vadd.f32 %v6721_v47, %v14094_v36  ;;  %v11288_v6 = vld [vmem:[%s11547_s7 + $0x1e0] ss:$8 sps:$4 sm:$0xff]  }
 0x664   : > { %9202 = vst [vmem:[%s15735_s29] sm:$0xff] %v9058_v9  ;;  %v9059_v21 = vadd.f32 %v15724_v44, %v8903_v25  ;;  %v8904_v4 = vadd.f32 %v8898_v14, %v14092_v38  ;;  %v6725_v19 = vpop.f32.mrf.mxu1  ;;  %6964 = vmatmul.mubr.bf16.gmra.mxu1 %v11287_v27  ;;  %v7431_v8 = vpop.f32.mrf.mxu0  ;;  %7670 = vmatmul.mubr.bf16.gmra.mxu0 %v11288_v6  ;;  %v11291_v6 = vld [vmem:[%s11547_s7 + $0x1b0] ss:$8 sps:$4 sm:$0xff]  }
 0x665   : > { %v8899_v16 = vsel %vm8757_vm1, %v8568_v45, %v8570_v46  ;;  %v8571_v36 = vrot.slane %v7896_v57, 2  ;;  %v7897_v30 = vadd.f32 %v7427_v59, %v6722_v52  ;;  %v6726_v62 = vadd.f32 %v6725_v19, %v14103_v20  ;;  %6973 = vmatprep.mubr.bf16.mxu1 %v11289_v2  ;;  %7679 = vmatprep.mubr.bf16.mxu0 %v11290_v17  ;;  %v17842_v19 = vld [vmem:[#allocation296_spill] sm:$0xff]  ;;  %v11293_v17 = vld [vmem:[%s11547_s7 + $0x1c4] ss:$8 sps:$4 sm:$0xff]  }
 0x666   : > { %9203 = vst [vmem:[%s15735_s29 + $0x8] sm:$0xff] %v9059_v21  ;;  %v9060_v38 = vadd.f32 %v15718_v33, %v8904_v4  ;;  %v8905_v18 = vadd.f32 %v8899_v16, %v14100_v56  ;;  %v6727_v24 = vpop.f32.mrf.mxu1  ;;  %v7433_v28 = vpop.f32.mrf.mxu0  ;;  %v11292_v16 = vld [vmem:[%s11547_s7 + $0x1f0] ss:$8 sps:$4 sm:$0xff]  }
 0x667   : > { %v8896_v45 = vsel %vm8757_vm1, %v8569_v41, %v8571_v36  ;;  %v8572_v61 = vrot.slane %v7897_v30, 2  ;;  %v6728_v34 = vadd.f32 %v6727_v24, %v14114_v50  ;;  %v7898_v59 = vadd.f32 %v7431_v8, %v6726_v62  ;;  %v17841_v50 = vld [vmem:[#allocation295_spill] sm:$0xff] }
 0x668   : > { %9204 = vst [vmem:[%s15735_s29 + $0x10] sm:$0xff] %v9060_v38  ;;  %v9061_v20 = vadd.f32 %v15724_v44, %v8905_v18  ;;  %v8906_v9 = vadd.f32 %v8896_v45, %v14112_v26  ;;  %v6729_v25 = vpop.f32.mrf.mxu1  ;;  %v7435_v47 = vpop.f32.mrf.mxu0  ;;  %v11294_v38 = vld [vmem:[%s11547_s7 + $0x204] ss:$8 sps:$4 sm:$0xff]  }
 0x669   : > { %v8897_v56 = vsel %vm8757_vm1, %v8570_v46, %v8572_v61  ;;  %v6730_v14 = vadd.f32 %v6729_v25, %v14122_v53  ;;  %v7899_v52 = vadd.f32 %v7433_v28, %v6728_v34  ;;  %v8573_v36 = vrot.slane %v7898_v59, 2 }
 0x66a   : > { %9205 = vst [vmem:[%s15735_s29 + $0x18] sm:$0xff] %v9061_v20  ;;  %v9062_v41 = vadd.f32 %v15718_v33, %v8906_v9  ;;  %v8907_v57 = vadd.f32 %v8897_v56, %v17841_v50  ;;  %v6731_v21 = vpop.f32.mrf.mxu1  ;;  %v7437_v4 = vpop.f32.mrf.mxu0 }
 0x66b   : > { %v7900_v26 = vadd.f32 %v7435_v47, %v6730_v14  ;;  %v6732_v27 = vadd.f32 %v6731_v21, %v17842_v19  ;;  %v8574_v18 = vrot.slane %v7899_v52, 2 }
 0x66c   : > { %9206 = vst [vmem:[%s15735_s29 + $0x20] sm:$0xff] %v9062_v41  ;;  %v9063_v46 = vadd.f32 %v15724_v44, %v8907_v57  ;;  %v6735_v8 = vpop.f32.mrf.mxu1  ;;  %6974 = vmatmul.mubr.bf16.gmra.mxu1 %v11291_v6  ;;  %v7441_v53 = vpop.f32.mrf.mxu0  ;;  %7680 = vmatmul.mubr.bf16.gmra.mxu0 %v11292_v16  ;;  %v11297_v16 = vld [vmem:[%s11547_s7 + $0x1d4] ss:$8 sps:$4 sm:$0xff]  }
 0x66d   : > { %v8575_v30 = vrot.slane %v7900_v26, 2  ;;  %v7901_v62 = vadd.f32 %v7437_v4, %v6732_v27  ;;  %v6736_v2 = vadd.f32 %v6735_v8, %v14141_v35  ;;  %6983 = vmatprep.mubr.bf16.mxu1 %v11293_v17  ;;  %7689 = vmatprep.mubr.bf16.mxu0 %v11294_v38  ;;  %v11295_v27 = vld [vmem:[%s11547_s7 + $0x1c0] ss:$8 sps:$4 sm:$0xff]  }
 0x66e   : > { %9207 = vst [vmem:[%s15735_s29 + $0x28] sm:$0xff] %v9063_v46  ;;  %v6737_v24 = vpop.f32.mrf.mxu1  ;;  %v7443_v28 = vpop.f32.mrf.mxu0  ;;  %v11296_v46 = vld [vmem:[%s11547_s7 + $0x200] ss:$8 sps:$4 sm:$0xff]  }
 0x66f   : > { %v8894_v45 = vsel %vm8757_vm1, %v8573_v36, %v8575_v30  ;;  %v8576_v61 = vrot.slane %v7901_v62, 2  ;;  %v7902_v34 = vadd.f32 %v7441_v53, %v6736_v2  ;;  %v6738_v20 = vadd.f32 %v6737_v24, %v14152_v42  ;;  %v11298_v36 = vld [vmem:[%s11547_s7 + $0x214] ss:$8 sps:$4 sm:$0xff]  }
 0x670   : > { %v8908_v9 = vadd.f32 %v8894_v45, %v14150_v43  ;;  %v6739_v25 = vpop.f32.mrf.mxu1  ;;  %v7445_v35 = vpop.f32.mrf.mxu0 }
 0x671   : > { %v8895_v47 = vsel %vm8757_vm1, %v8574_v18, %v8576_v61  ;;  %v8577_v56 = vrot.slane %v7902_v34, 2  ;;  %v7903_v59 = vadd.f32 %v7443_v28, %v6738_v20  ;;  %v6740_v14 = vadd.f32 %v6739_v25, %v14160_v37 }
 0x672   : > { %v9064_v41 = vadd.f32 %v15718_v33, %v8908_v9  ;;  %v8909_v50 = vadd.f32 %v8895_v47, %v14158_v3  ;;  %v6741_v57 = vpop.f32.mrf.mxu1  ;;  %v7447_v42 = vpop.f32.mrf.mxu0 }
 0x673   : > { %v8892_v43 = vsel %vm8757_vm1, %v8575_v30, %v8577_v56  ;;  %v8578_v52 = vrot.slane %v7903_v59, 2  ;;  %v7904_v21 = vadd.f32 %v7445_v35, %v6740_v14  ;;  %v6742_v4 = vadd.f32 %v6741_v57, %v14168_v11  ;;  %v11299_v14 = vld [vmem:[%s11547_s7 + $0x1d0] ss:$8 sps:$4 sm:$0xff]  }
 0x674   : > { %9208 = vst [vmem:[%s15735_s29 + $0x30] sm:$0xff] %v9064_v41  ;;  %v9065_v26 = vadd.f32 %v15724_v44, %v8909_v50  ;;  %v8910_v37 = vadd.f32 %v8892_v43, %v14166_v5  ;;  %v6745_v19 = vpop.f32.mrf.mxu1  ;;  %6984 = vmatmul.mubr.bf16.gmra.mxu1 %v11295_v27  ;;  %v7451_v3 = vpop.f32.mrf.mxu0  ;;  %7690 = vmatmul.mubr.bf16.gmra.mxu0 %v11296_v46  ;;  %v11300_v41 = vld [vmem:[%s11547_s7 + $0x210] ss:$8 sps:$4 sm:$0xff]   ;;  %v11301_v43 = vld [vmem:[%s11547_s7 + $0x1e4] ss:$8 sps:$4 sm:$0xff]  }
 0x675   : > { %v8893_v8 = vsel %vm8757_vm1, %v8576_v61, %v8578_v52  ;;  %v8579_v6 = vrot.slane %v7904_v21, 2  ;;  %v7905_v53 = vadd.f32 %v7447_v42, %v6742_v4  ;;  %v6746_v11 = vadd.f32 %v6745_v19, %v14177_v13  ;;  %6993 = vmatprep.mubr.bf16.mxu1 %v11297_v16  ;;  %7699 = vmatprep.mubr.bf16.mxu0 %v11298_v36 }
 0x676   : > { %9209 = vst [vmem:[%s15735_s29 + $0x38] sm:$0xff] %v9065_v26  ;;  %v9066_v5 = vadd.f32 %v15718_v33, %v8910_v37  ;;  %v8911_v30 = vadd.f32 %v8893_v8, %v14174_v32  ;;  %v6747_v62 = vpop.f32.mrf.mxu1  ;;  %v7453_v2 = vpop.f32.mrf.mxu0 }
 0x677   : > { %v8890_v17 = vsel %vm8757_vm1, %v8577_v56, %v8579_v6  ;;  %v8580_v38 = vrot.slane %v7905_v53, 2  ;;  %v6748_v18 = vadd.f32 %v6747_v62, %v14188_v31  ;;  %v7906_v61 = vadd.f32 %v7451_v3, %v6746_v11  ;;  %v17843_v11 = vld [vmem:[#allocation298_spill] sm:$0xff] }
 0x678   : > { %9210 = vst [vmem:[%s15735_s29 + $0x40] sm:$0xff] %v9066_v5  ;;  %v9067_v13 = vadd.f32 %v15724_v44, %v8911_v30  ;;  %v8912_v24 = vadd.f32 %v8890_v17, %v14186_v48  ;;  %v6749_v28 = vpop.f32.mrf.mxu1  ;;  %v7455_v45 = vpop.f32.mrf.mxu0  ;;  %v17844_v5 = vld [vmem:[#allocation297_spill] sm:$0xff] }
 0x679   : > { %v8891_v32 = vsel %vm8757_vm1, %v8578_v52, %v8580_v38  ;;  %v6750_v34 = vadd.f32 %v6749_v28, %v14196_v58  ;;  %v7907_v9 = vadd.f32 %v7453_v2, %v6748_v18  ;;  %v8581_v50 = vrot.slane %v7906_v61, 2  ;;  %v11302_v52 = vld [vmem:[%s11547_s7 + $0x224] ss:$8 sps:$4 sm:$0xff]   ;;  %v17845_v38 = vld [vmem:[#allocation300_spill] sm:$0xff] }
 0x67a   : > { %9211 = vst [vmem:[%s15735_s29 + $0x48] sm:$0xff] %v9067_v13  ;;  %v9068_v20 = vadd.f32 %v15718_v33, %v8912_v24  ;;  %v8913_v31 = vadd.f32 %v8891_v32, %v14194_v60  ;;  %v6751_v25 = vpop.f32.mrf.mxu1  ;;  %v7457_v35 = vpop.f32.mrf.mxu0  ;;  %v17846_v24 = vld [vmem:[#allocation299_spill] sm:$0xff]  ;;  %v11303_v32 = vld [vmem:[%s11547_s7 + $0x1e0] ss:$8 sps:$4 sm:$0xff]  }
 0x67b   : > { %v7908_v48 = vadd.f32 %v7455_v45, %v6750_v34  ;;  %v6752_v47 = vadd.f32 %v6751_v25, %v14199_v15  ;;  %v8582_v15 = vrot.slane %v7907_v9, 2  ;;  %v11304_v34 = vld [vmem:[%s11547_s7 + $0x220] ss:$8 sps:$4 sm:$0xff]  }
 0x67c   : > { %9212 = vst [vmem:[%s15735_s29 + $0x50] sm:$0xff] %v9068_v20  ;;  %v9069_v56 = vadd.f32 %v15724_v44, %v8913_v31  ;;  %v6755_v59 = vpop.f32.mrf.mxu1  ;;  %6994 = vmatmul.mubr.bf16.gmra.mxu1 %v11299_v14  ;;  %v7461_v58 = vpop.f32.mrf.mxu0  ;;  %7700 = vmatmul.mubr.bf16.gmra.mxu0 %v11300_v41  ;;  %v17847_v25 = vld [vmem:[#allocation301_spill] sm:$0xff] }
 0x67d   : > { %v8583_v60 = vrot.slane %v7908_v48, 2  ;;  %v7909_v57 = vadd.f32 %v7457_v35, %v6752_v47  ;;  %v6756_v42 = vadd.f32 %v6755_v59, %v14203_v23  ;;  %7003 = vmatprep.mubr.bf16.mxu1 %v11301_v43  ;;  %7709 = vmatprep.mubr.bf16.mxu0 %v11302_v52  ;;  %v11305_v48 = vld [vmem:[%s11547_s7 + $0x1f4] ss:$8 sps:$4 sm:$0xff]   ;;  %v17848_v59 = vld [vmem:[#allocation102_spill] sm:$0xff] }
 0x67e   : > { %9213 = vst [vmem:[%s15735_s29 + $0x58] sm:$0xff] %v9069_v56  ;;  %v6757_v21 = vpop.f32.mrf.mxu1  ;;  %v7463_v4 = vpop.f32.mrf.mxu0  ;;  %v11306_v47 = vld [vmem:[%s11547_s7 + $0x234] ss:$8 sps:$4 sm:$0xff]  }
 0x67f   : > { %v8888_v26 = vsel %vm8757_vm1, %v8581_v50, %v8583_v60  ;;  %v8584_v37 = vrot.slane %v7909_v57, 2  ;;  %v7910_v19 = vadd.f32 %v7461_v58, %v6756_v42  ;;  %v6758_v27 = vadd.f32 %v6757_v21, %v14214_v12  ;;  %v17849_v57 = vld [vmem:[#allocation302_spill] sm:$0xff]  ;;  %v17850_v52 = vld [vmem:[#allocation103_spill] sm:$0xff] }
 0x680   : > { %v8914_v3 = vadd.f32 %v8888_v26, %v14212_v22  ;;  %v6759_v46 = vpop.f32.mrf.mxu1  ;;  %v7465_v23 = vpop.f32.mrf.mxu0 }
 0x681   : > { %v8889_v8 = vsel %vm8757_vm1, %v8582_v15, %v8584_v37  ;;  %v8585_v6 = vrot.slane %v7910_v19, 2  ;;  %v7911_v53 = vadd.f32 %v7463_v4, %v6758_v27  ;;  %v6760_v16 = vadd.f32 %v6759_v46, %v17843_v11  ;;  %v17851_v19 = vld [vmem:[#allocation303_spill] sm:$0xff]  ;;  %v17852_v46 = vld [vmem:[#allocation22_spill] sm:$0xff] }
 0x682   : > { %v9070_v36 = vadd.f32 %v15718_v33, %v8914_v3  ;;  %v8915_v30 = vadd.f32 %v8889_v8, %v17844_v5  ;;  %v6761_v62 = vpop.f32.mrf.mxu1  ;;  %v7467_v12 = vpop.f32.mrf.mxu0 }
 0x683   : > { %v8886_v22 = vsel %vm8757_vm1, %v8583_v60, %v8585_v6  ;;  %v8586_v2 = vrot.slane %v7911_v53, 2  ;;  %v7912_v17 = vadd.f32 %v7465_v23, %v6760_v16  ;;  %v6762_v18 = vadd.f32 %v6761_v62, %v17845_v38  ;;  %v17853_v16 = vld [vmem:[#allocation304_spill] sm:$0xff] }
 0x684   : > { %9214 = vst [vmem:[%s15735_s29 + $0x60] sm:$0xff] %v9070_v36  ;;  %v9071_v13 = vadd.f32 %v15724_v44, %v8915_v30  ;;  %v8916_v28 = vadd.f32 %v8886_v22, %v17846_v24  ;;  %v6765_v45 = vpop.f32.mrf.mxu1  ;;  %7004 = vmatmul.mubr.bf16.gmra.mxu1 %v11303_v32  ;;  %v7471_v61 = vpop.f32.mrf.mxu0  ;;  %7710 = vmatmul.mubr.bf16.gmra.mxu0 %v11304_v34  ;;  %v11307_v62 = vld [vmem:[%s11547_s7 + $0x1f0] ss:$8 sps:$4 sm:$0xff]   ;;  %v11309_v24 = vld [vmem:[%s11547_s7 + $0x204] ss:$8 sps:$4 sm:$0xff]  }
 0x685   : > { %v8887_v20 = vsel %vm8757_vm1, %v8584_v37, %v8586_v2  ;;  %v8587_v31 = vrot.slane %v7912_v17, 2  ;;  %v7913_v9 = vadd.f32 %v7467_v12, %v6762_v18  ;;  %v6766_v35 = vadd.f32 %v6765_v45, %v17847_v25  ;;  %7013 = vmatprep.mubr.bf16.mxu1 %v11305_v48  ;;  %7719 = vmatprep.mubr.bf16.mxu0 %v11306_v47  ;;  %v11308_v22 = vld [vmem:[%s11547_s7 + $0x230] ss:$8 sps:$4 sm:$0xff]   ;;  %v17854_v18 = vld [vmem:[#allocation305_spill] sm:$0xff] }
 0x686   : > { %9215 = vst [vmem:[%s15735_s29 + $0x68] sm:$0xff] %v9071_v13  ;;  %v9072_v56 = vadd.f32 %v15718_v33, %v8916_v28  ;;  %v8917_v14 = vadd.f32 %v8887_v20, %v17848_v59  ;;  %v6767_v58 = vpop.f32.mrf.mxu1  ;;  %v7473_v41 = vpop.f32.mrf.mxu0  ;;  %v11310_v28 = vld [vmem:[%s11547_s7 + $0x244] ss:$8 sps:$4 sm:$0xff]  }
 0x687   : > { %v8884_v50 = vsel %vm8757_vm1, %v8585_v6, %v8587_v31  ;;  %v8588_v60 = vrot.slane %v7913_v9, 2  ;;  %v6768_v42 = vadd.f32 %v6767_v58, %v17849_v57  ;;  %v7914_v37 = vadd.f32 %v7471_v61, %v6766_v35  ;;  %v17855_v9 = vld [vmem:[#allocation306_spill] sm:$0xff]  ;;  %v17856_v35 = vld [vmem:[#allocation104_spill] sm:$0xff] }
 0x688   : > { %9216 = vst [vmem:[%s15735_s29 + $0x70] sm:$0xff] %v9072_v56  ;;  %v9073_v43 = vadd.f32 %v15724_v44, %v8917_v14  ;;  %v8918_v15 = vadd.f32 %v8884_v50, %v17850_v52  ;;  %v6769_v21 = vpop.f32.mrf.mxu1  ;;  %v7475_v4 = vpop.f32.mrf.mxu0  ;;  %v17858_v57 = vld [vmem:[#allocation134_spill] sm:$0xff] }
 0x689   : > { %v8885_v26 = vsel %vm8757_vm1, %v8586_v2, %v8588_v60  ;;  %v6770_v27 = vadd.f32 %v6769_v21, %v17851_v19  ;;  %v7915_v8 = vadd.f32 %v7473_v41, %v6768_v42  ;;  %v8589_v2 = vrot.slane %v7914_v37, 2  ;;  %v17857_v41 = vld [vmem:[#allocation25_spill] sm:$0xff] }
 0x68a   : > { %9217 = vst [vmem:[%s15735_s29 + $0x78] sm:$0xff] %v9073_v43  ;;  %v9074_v3 = vadd.f32 %v15718_v33, %v8918_v15  ;;  %v8919_v23 = vadd.f32 %v8885_v26, %v17852_v46  ;;  %v6771_v6 = vpop.f32.mrf.mxu1  ;;  %v7477_v53 = vpop.f32.mrf.mxu0  ;;  %v17859_v26 = vld [vmem:[#allocation27_spill] sm:$0xff] }
 0x68b   : > { %v7916_v11 = vadd.f32 %v7475_v4, %v6770_v27  ;;  %v6772_v36 = vadd.f32 %v6771_v6, %v17853_v16  ;;  %v8590_v45 = vrot.slane %v7915_v8, 2  ;;  %v17860_v27 = vld [vmem:[#allocation135_spill] sm:$0xff]  ;;  %v11312_v6 = vld [vmem:[%s11547_s7 + $0x240] ss:$8 sps:$4 sm:$0xff]  }
 0x68c   : > { %9218 = vst [vmem:[%s15735_s29 + $0x80] sm:$0xff] %v9074_v3  ;;  %v9075_v5 = vadd.f32 %v15724_v44, %v8919_v23  ;;  %v6775_v30 = vpop.f32.mrf.mxu1  ;;  %7014 = vmatmul.mubr.bf16.gmra.mxu1 %v11307_v62  ;;  %v7481_v12 = vpop.f32.mrf.mxu0  ;;  %7720 = vmatmul.mubr.bf16.gmra.mxu0 %v11308_v22  ;;  %v11311_v23 = vld [vmem:[%s11547_s7 + $0x200] ss:$8 sps:$4 sm:$0xff]   ;;  %v11314_v62 = vld [vmem:[%s11547_s7 + $0x254] ss:$8 sps:$4 sm:$0xff]  }
 0x68d   : > { %v8591_v17 = vrot.slane %v7916_v11, 2  ;;  %v7917_v38 = vadd.f32 %v7477_v53, %v6772_v36  ;;  %v6776_v13 = vadd.f32 %v6775_v30, %v17854_v18  ;;  %7023 = vmatprep.mubr.bf16.mxu1 %v11309_v24  ;;  %7729 = vmatprep.mubr.bf16.mxu0 %v11310_v28  ;;  %v17861_v36 = vld [vmem:[#allocation29_spill] sm:$0xff]  ;;  %v11313_v30 = vld [vmem:[%s11547_s7 + $0x214] ss:$8 sps:$4 sm:$0xff]  }
 0x68e   : > { %9219 = vst [vmem:[%s15735_s29 + $0x88] sm:$0xff] %v9075_v5  ;;  %v6777_v32 = vpop.f32.mrf.mxu1  ;;  %v7483_v61 = vpop.f32.mrf.mxu0  ;;  %v17862_v22 = vld [vmem:[#allocation136_spill] sm:$0xff]  ;;  %v17863_v24 = vld [vmem:[#allocation31_spill] sm:$0xff] }
 0x68f   : > { %v8882_v34 = vsel %vm8757_vm1, %v8589_v2, %v8591_v17  ;;  %v8592_v20 = vrot.slane %v7917_v38, 2  ;;  %v7918_v31 = vadd.f32 %v7481_v12, %v6776_v13  ;;  %v6778_v25 = vadd.f32 %v6777_v32, %v17855_v9  ;;  %v17864_v32 = vld [vmem:[#allocation137_spill] sm:$0xff] }
 0x690   : > { %v8920_v48 = vadd.f32 %v8882_v34, %v17856_v35  ;;  %v6779_v47 = vpop.f32.mrf.mxu1  ;;  %v7485_v56 = vpop.f32.mrf.mxu0 }
 0x691   : > { %v8883_v59 = vsel %vm8757_vm1, %v8590_v45, %v8592_v20  ;;  %v8593_v14 = vrot.slane %v7918_v31, 2  ;;  %v7919_v58 = vadd.f32 %v7483_v61, %v6778_v25  ;;  %v6780_v50 = vadd.f32 %v6779_v47, %v17857_v41  ;;  %v17865_v25 = vld [vmem:[#allocation105_spill] sm:$0xff]  ;;  %v17866_v47 = vld [vmem:[#allocation138_spill] sm:$0xff] }
 0x692   : > { %v9076_v60 = vadd.f32 %v15718_v33, %v8920_v48  ;;  %v8921_v42 = vadd.f32 %v8883_v59, %v17858_v57  ;;  %v6781_v43 = vpop.f32.mrf.mxu1  ;;  %v7487_v52 = vpop.f32.mrf.mxu0 }
 0x693   : > { %v8880_v15 = vsel %vm8757_vm1, %v8591_v17, %v8593_v14  ;;  %v8594_v21 = vrot.slane %v7919_v58, 2  ;;  %v7920_v4 = vadd.f32 %v7485_v56, %v6780_v50  ;;  %v6782_v37 = vadd.f32 %v6781_v43, %v17859_v26  ;;  %v17867_v50 = vld [vmem:[#allocation139_spill] sm:$0xff] }
 0x694   : > { %9220 = vst [vmem:[%s15735_s29 + $0x90] sm:$0xff] %v9076_v60  ;;  %v9077_v19 = vadd.f32 %v15724_v44, %v8921_v42  ;;  %v8922_v3 = vadd.f32 %v8880_v15, %v17860_v27  ;;  %v6785_v46 = vpop.f32.mrf.mxu1  ;;  %7024 = vmatmul.mubr.bf16.gmra.mxu1 %v11311_v23  ;;  %v7491_v8 = vpop.f32.mrf.mxu0  ;;  %7730 = vmatmul.mubr.bf16.gmra.mxu0 %v11312_v6  ;;  %v11315_v43 = vld [vmem:[%s11547_s7 + $0x210] ss:$8 sps:$4 sm:$0xff]   ;;  %v11317_v27 = vld [vmem:[%s11547_s7 + $0x224] ss:$8 sps:$4 sm:$0xff]  }
 0x695   : > { %v8881_v53 = vsel %vm8757_vm1, %v8592_v20, %v8594_v21  ;;  %v8595_v11 = vrot.slane %v7920_v4, 2  ;;  %v7921_v16 = vadd.f32 %v7487_v52, %v6782_v37  ;;  %v6786_v5 = vadd.f32 %v6785_v46, %v17861_v36  ;;  %7033 = vmatprep.mubr.bf16.mxu1 %v11313_v30  ;;  %7739 = vmatprep.mubr.bf16.mxu0 %v11314_v62  ;;  %v11316_v15 = vld [vmem:[%s11547_s7 + $0x250] ss:$8 sps:$4 sm:$0xff]  }
 0x696   : > { %9221 = vst [vmem:[%s15735_s29 + $0x98] sm:$0xff] %v9077_v19  ;;  %v9078_v12 = vadd.f32 %v15718_v33, %v8922_v3  ;;  %v8923_v2 = vadd.f32 %v8881_v53, %v17862_v22  ;;  %v6787_v17 = vpop.f32.mrf.mxu1  ;;  %v7493_v38 = vpop.f32.mrf.mxu0  ;;  %v17868_v37 = vld [vmem:[#allocation140_spill] sm:$0xff]  ;;  %v11318_v3 = vld [vmem:[%s11547_s7 + $0x264] ss:$8 sps:$4 sm:$0xff]  }
 0x697   : > { %v8878_v18 = vsel %vm8757_vm1, %v8593_v14, %v8595_v11  ;;  %v8596_v13 = vrot.slane %v7921_v16, 2  ;;  %v6788_v28 = vadd.f32 %v6787_v17, %v17863_v24  ;;  %v7922_v9 = vadd.f32 %v7491_v8, %v6786_v5  ;;  %v17869_v16 = vld [vmem:[#allocation106_spill] sm:$0xff]  ;;  %v17870_v5 = vld [vmem:[#allocation141_spill] sm:$0xff] }
 0x698   : > { %9222 = vst [vmem:[%s15735_s29 + $0xa0] sm:$0xff] %v9078_v12  ;;  %v9079_v45 = vadd.f32 %v15724_v44, %v8923_v2  ;;  %v8924_v61 = vadd.f32 %v8878_v18, %v17864_v32  ;;  %v6789_v34 = vpop.f32.mrf.mxu1  ;;  %v7495_v20 = vpop.f32.mrf.mxu0  ;;  %v17872_v24 = vld [vmem:[#allocation142_spill] sm:$0xff] }
 0x699   : > { %v8879_v31 = vsel %vm8757_vm1, %v8594_v21, %v8596_v13  ;;  %v6790_v35 = vadd.f32 %v6789_v34, %v17865_v25  ;;  %v7923_v59 = vadd.f32 %v7493_v38, %v6788_v28  ;;  %v8597_v21 = vrot.slane %v7922_v9, 2  ;;  %v17871_v38 = vld [vmem:[#allocation107_spill] sm:$0xff] }
 0x69a   : > { %9223 = vst [vmem:[%s15735_s29 + $0xa8] sm:$0xff] %v9079_v45  ;;  %v9080_v48 = vadd.f32 %v15718_v33, %v8924_v61  ;;  %v8925_v56 = vadd.f32 %v8879_v31, %v17866_v47  ;;  %v6791_v14 = vpop.f32.mrf.mxu1  ;;  %v7497_v58 = vpop.f32.mrf.mxu0  ;;  %v17873_v31 = vld [vmem:[#allocation108_spill] sm:$0xff] }
 0x69b   : > { %v7924_v41 = vadd.f32 %v7495_v20, %v6790_v35  ;;  %v6792_v60 = vadd.f32 %v6791_v14, %v17867_v50  ;;  %v8598_v46 = vrot.slane %v7923_v59, 2  ;;  %v17874_v35 = vld [vmem:[#allocation143_spill] sm:$0xff]  ;;  %v11320_v14 = vld [vmem:[%s11547_s7 + $0x260] ss:$8 sps:$4 sm:$0xff]  }
 0x69c   : > { %9224 = vst [vmem:[%s15735_s29 + $0xb0] sm:$0xff] %v9080_v48  ;;  %v9081_v57 = vadd.f32 %v15724_v44, %v8925_v56  ;;  %v6795_v42 = vpop.f32.mrf.mxu1  ;;  %7034 = vmatmul.mubr.bf16.gmra.mxu1 %v11315_v43  ;;  %v7501_v52 = vpop.f32.mrf.mxu0  ;;  %7740 = vmatmul.mubr.bf16.gmra.mxu0 %v11316_v15  ;;  %v11319_v56 = vld [vmem:[%s11547_s7 + $0x220] ss:$8 sps:$4 sm:$0xff]   ;;  %v11322_v43 = vld [vmem:[%s11547_s7 + $0x274] ss:$8 sps:$4 sm:$0xff]  }
 0x69d   : > { %v8599_v4 = vrot.slane %v7924_v41, 2  ;;  %v7925_v26 = vadd.f32 %v7497_v58, %v6792_v60  ;;  %v6796_v19 = vadd.f32 %v6795_v42, %v17868_v37  ;;  %7043 = vmatprep.mubr.bf16.mxu1 %v11317_v27  ;;  %7749 = vmatprep.mubr.bf16.mxu0 %v11318_v3  ;;  %v17875_v60 = vld [vmem:[#allocation109_spill] sm:$0xff]  ;;  %v11321_v42 = vld [vmem:[%s11547_s7 + $0x234] ss:$8 sps:$4 sm:$0xff]   ;;  %v17877_v27 = vld [vmem:[#allocation110_spill] sm:$0xff] }
 0x69e   : > { %9225 = vst [vmem:[%s15735_s29 + $0xb8] sm:$0xff] %v9081_v57  ;;  %v6797_v23 = vpop.f32.mrf.mxu1  ;;  %v7503_v8 = vpop.f32.mrf.mxu0  ;;  %v17876_v15 = vld [vmem:[#allocation144_spill] sm:$0xff] }
 0x69f   : > { %v8876_v6 = vsel %vm8757_vm1, %v8597_v21, %v8599_v4  ;;  %v8600_v53 = vrot.slane %v7925_v26, 2  ;;  %v7926_v11 = vadd.f32 %v7501_v52, %v6796_v19  ;;  %v6798_v36 = vadd.f32 %v6797_v23, %v17869_v16  ;;  %v17878_v23 = vld [vmem:[#allocation145_spill] sm:$0xff] }
 0x6a0   : > { %v8926_v30 = vadd.f32 %v8876_v6, %v17870_v5  ;;  %v6799_v62 = vpop.f32.mrf.mxu1  ;;  %v7505_v12 = vpop.f32.mrf.mxu0 }
 0x6a1   : > { %v8877_v22 = vsel %vm8757_vm1, %v8598_v46, %v8600_v53  ;;  %v8601_v2 = vrot.slane %v7926_v11, 2  ;;  %v7927_v17 = vadd.f32 %v7503_v8, %v6798_v36  ;;  %v6800_v18 = vadd.f32 %v6799_v62, %v17871_v38  ;;  %v17879_v36 = vld [vmem:[#allocation111_spill] sm:$0xff]  ;;  %v17880_v62 = vld [vmem:[#allocation146_spill] sm:$0xff] }
 0x6a2   : > { %v9082_v13 = vadd.f32 %v15718_v33, %v8926_v30  ;;  %v8927_v28 = vadd.f32 %v8877_v22, %v17872_v24  ;;  %v6801_v45 = vpop.f32.mrf.mxu1  ;;  %v7507_v32 = vpop.f32.mrf.mxu0 }
 0x6a3   : > { %v8874_v61 = vsel %vm8757_vm1, %v8599_v4, %v8601_v2  ;;  %v8602_v34 = vrot.slane %v7927_v17, 2  ;;  %v7928_v20 = vadd.f32 %v7505_v12, %v6800_v18  ;;  %v6802_v9 = vadd.f32 %v6801_v45, %v17873_v31  ;;  %v17881_v18 = vld [vmem:[#allocation147_spill] sm:$0xff] }
 0x6a4   : > { %9226 = vst [vmem:[%s15735_s29 + $0xc0] sm:$0xff] %v9082_v13  ;;  %v9083_v25 = vadd.f32 %v15724_v44, %v8927_v28  ;;  %v8928_v48 = vadd.f32 %v8874_v61, %v17874_v35  ;;  %v6805_v47 = vpop.f32.mrf.mxu1  ;;  %7044 = vmatmul.mubr.bf16.gmra.mxu1 %v11319_v56  ;;  %v7511_v59 = vpop.f32.mrf.mxu0  ;;  %7750 = vmatmul.mubr.bf16.gmra.mxu0 %v11320_v14  ;;  %v11323_v45 = vld [vmem:[%s11547_s7 + $0x230] ss:$8 sps:$4 sm:$0xff]   ;;  %v11325_v35 = vld [vmem:[%s11547_s7 + $0x244] ss:$8 sps:$4 sm:$0xff]  }
 0x6a5   : > { %v8875_v58 = vsel %vm8757_vm1, %v8600_v53, %v8602_v34  ;;  %v8603_v41 = vrot.slane %v7928_v20, 2  ;;  %v7929_v50 = vadd.f32 %v7507_v32, %v6802_v9  ;;  %v6806_v57 = vadd.f32 %v6805_v47, %v17875_v60  ;;  %7053 = vmatprep.mubr.bf16.mxu1 %v11321_v42  ;;  %7759 = vmatprep.mubr.bf16.mxu0 %v11322_v43  ;;  %v11324_v61 = vld [vmem:[%s11547_s7 + $0x270] ss:$8 sps:$4 sm:$0xff]  }
 0x6a6   : > { %9227 = vst [vmem:[%s15735_s29 + $0xc8] sm:$0xff] %v9083_v25  ;;  %v9084_v52 = vadd.f32 %v15718_v33, %v8928_v48  ;;  %v8929_v21 = vadd.f32 %v8875_v58, %v17876_v15  ;;  %v6807_v4 = vpop.f32.mrf.mxu1  ;;  %v7513_v26 = vpop.f32.mrf.mxu0  ;;  %v17882_v9 = vld [vmem:[#allocation148_spill] sm:$0xff]  ;;  %v11326_v48 = vld [vmem:[%s11547_s7 + $0x284] ss:$8 sps:$4 sm:$0xff]  }
 0x6a7   : > { %v8872_v37 = vsel %vm8757_vm1, %v8601_v2, %v8603_v41  ;;  %v8604_v19 = vrot.slane %v7929_v50, 2  ;;  %v6808_v3 = vadd.f32 %v6807_v4, %v17877_v27  ;;  %v7930_v16 = vadd.f32 %v7511_v59, %v6806_v57  ;;  %v17883_v50 = vld [vmem:[#allocation112_spill] sm:$0xff]  ;;  %v17884_v57 = vld [vmem:[#allocation149_spill] sm:$0xff]  ;;  %v17886_v27 = vld [vmem:[#allocation150_spill] sm:$0xff] }
 0x6a8   : > { %9228 = vst [vmem:[%s15735_s29 + $0xd0] sm:$0xff] %v9084_v52  ;;  %v9085_v46 = vadd.f32 %v15724_v44, %v8929_v21  ;;  %v8930_v8 = vadd.f32 %v8872_v37, %v17878_v23  ;;  %v6809_v6 = vpop.f32.mrf.mxu1  ;;  %v7515_v53 = vpop.f32.mrf.mxu0 }
 0x6a9   : > { %v8873_v11 = vsel %vm8757_vm1, %v8602_v34, %v8604_v19  ;;  %v6810_v5 = vadd.f32 %v6809_v6, %v17879_v36  ;;  %v7931_v22 = vadd.f32 %v7513_v26, %v6808_v3  ;;  %v8605_v34 = vrot.slane %v7930_v16, 2  ;;  %v17885_v26 = vld [vmem:[#allocation113_spill] sm:$0xff] }
 0x6aa   : > { %9229 = vst [vmem:[%s15735_s29 + $0xd8] sm:$0xff] %v9085_v46  ;;  %v9086_v30 = vadd.f32 %v15718_v33, %v8930_v8  ;;  %v8931_v12 = vadd.f32 %v8873_v11, %v17880_v62  ;;  %v6811_v2 = vpop.f32.mrf.mxu1  ;;  %v7517_v17 = vpop.f32.mrf.mxu0  ;;  %v17887_v11 = vld [vmem:[#allocation114_spill] sm:$0xff] }
 0x6ab   : > { %v7932_v38 = vadd.f32 %v7515_v53, %v6810_v5  ;;  %v6812_v13 = vadd.f32 %v6811_v2, %v17881_v18  ;;  %v8606_v47 = vrot.slane %v7931_v22, 2  ;;  %v17888_v5 = vld [vmem:[#allocation151_spill] sm:$0xff]  ;;  %v11328_v2 = vld [vmem:[%s11547_s7 + $0x280] ss:$8 sps:$4 sm:$0xff]  }
 0x6ac   : > { %9230 = vst [vmem:[%s15735_s29 + $0xe0] sm:$0xff] %v9086_v30  ;;  %v9087_v24 = vadd.f32 %v15724_v44, %v8931_v12  ;;  %v6815_v28 = vpop.f32.mrf.mxu1  ;;  %7054 = vmatmul.mubr.bf16.gmra.mxu1 %v11323_v45  ;;  %v7521_v32 = vpop.f32.mrf.mxu0  ;;  %7760 = vmatmul.mubr.bf16.gmra.mxu0 %v11324_v61  ;;  %v11327_v12 = vld [vmem:[%s11547_s7 + $0x240] ss:$8 sps:$4 sm:$0xff]   ;;  %v11330_v45 = vld [vmem:[%s11547_s7 + $0x294] ss:$8 sps:$4 sm:$0xff]  }
 0x6ad   : > { %v8607_v20 = vrot.slane %v7932_v38, 2  ;;  %v7933_v31 = vadd.f32 %v7517_v17, %v6812_v13  ;;  %v6816_v25 = vadd.f32 %v6815_v28, %v17882_v9  ;;  %7063 = vmatprep.mubr.bf16.mxu1 %v11325_v35  ;;  %7769 = vmatprep.mubr.bf16.mxu0 %v11326_v48  ;;  %v17889_v13 = vld [vmem:[#allocation115_spill] sm:$0xff]  ;;  %v17890_v61 = vld [vmem:[#allocation152_spill] sm:$0xff] }
 0x6ae   : > { %9231 = vst [vmem:[%s15735_s29 + $0xe8] sm:$0xff] %v9087_v24  ;;  %v6817_v56 = vpop.f32.mrf.mxu1  ;;  %v7523_v59 = vpop.f32.mrf.mxu0  ;;  %v11329_v28 = vld [vmem:[%s11547_s7 + $0x254] ss:$8 sps:$4 sm:$0xff]  }
 0x6af   : > { %v8870_v14 = vsel %vm8757_vm1, %v8605_v34, %v8607_v20  ;;  %v8608_v58 = vrot.slane %v7933_v31, 2  ;;  %v7934_v41 = vadd.f32 %v7521_v32, %v6816_v25  ;;  %v6818_v60 = vadd.f32 %v6817_v56, %v17883_v50  ;;  %v17891_v35 = vld [vmem:[#allocation116_spill] sm:$0xff]  ;;  %v17892_v56 = vld [vmem:[#allocation153_spill] sm:$0xff] }
 0x6b0   : > { %v8932_v42 = vadd.f32 %v8870_v14, %v17884_v57  ;;  %v6819_v43 = vpop.f32.mrf.mxu1  ;;  %v7525_v52 = vpop.f32.mrf.mxu0 }
 0x6b1   : > { %v8871_v15 = vsel %vm8757_vm1, %v8606_v47, %v8608_v58  ;;  %v8609_v21 = vrot.slane %v7934_v41, 2  ;;  %v7935_v4 = vadd.f32 %v7523_v59, %v6818_v60  ;;  %v6820_v37 = vadd.f32 %v6819_v43, %v17885_v26  ;;  %v17893_v60 = vld [vmem:[#allocation117_spill] sm:$0xff]  ;;  %v17894_v43 = vld [vmem:[#allocation154_spill] sm:$0xff] }
 0x6b2   : > { %v9088_v19 = vadd.f32 %v15718_v33, %v8932_v42  ;;  %v8933_v3 = vadd.f32 %v8871_v15, %v17886_v27  ;;  %v6821_v46 = vpop.f32.mrf.mxu1  ;;  %v7527_v23 = vpop.f32.mrf.mxu0 }
 0x6b3   : > { %v8868_v8 = vsel %vm8757_vm1, %v8607_v20, %v8609_v21  ;;  %v8610_v6 = vrot.slane %v7935_v4, 2  ;;  %v7936_v53 = vadd.f32 %v7525_v52, %v6820_v37  ;;  %v6822_v16 = vadd.f32 %v6821_v46, %v17887_v11  ;;  %v17895_v37 = vld [vmem:[#allocation155_spill] sm:$0xff] }
 0x6b4   : > { %9232 = vst [vmem:[%s15735_s29 + $0xf0] sm:$0xff] %v9088_v19  ;;  %v9089_v36 = vadd.f32 %v15724_v44, %v8933_v3  ;;  %v8934_v30 = vadd.f32 %v8868_v8, %v17888_v5  ;;  %v6825_v62 = vpop.f32.mrf.mxu1  ;;  %7064 = vmatmul.mubr.bf16.gmra.mxu1 %v11327_v12  ;;  %v7531_v22 = vpop.f32.mrf.mxu0  ;;  %7770 = vmatmul.mubr.bf16.gmra.mxu0 %v11328_v2  ;;  %v11331_v46 = vld [vmem:[%s11547_s7 + $0x250] ss:$8 sps:$4 sm:$0xff]   ;;  %v11333_v5 = vld [vmem:[%s11547_s7 + $0x264] ss:$8 sps:$4 sm:$0xff]  }
 0x6b5   : > { %v8869_v17 = vsel %vm8757_vm1, %v8608_v58, %v8610_v6  ;;  %v8611_v38 = vrot.slane %v7936_v53, 2  ;;  %v7937_v18 = vadd.f32 %v7527_v23, %v6822_v16  ;;  %v6826_v24 = vadd.f32 %v6825_v62, %v17889_v13  ;;  %7073 = vmatprep.mubr.bf16.mxu1 %v11329_v28  ;;  %7779 = vmatprep.mubr.bf16.mxu0 %v11330_v45  ;;  %v11332_v8 = vld [vmem:[%s11547_s7 + $0x290] ss:$8 sps:$4 sm:$0xff]  }
 0x6b6   : > { %9233 = vst [vmem:[%s15735_s29 + $0xf8] sm:$0xff] %v9089_v36  ;;  %v9090_v32 = vadd.f32 %v15718_v33, %v8934_v30  ;;  %v8935_v34 = vadd.f32 %v8869_v17, %v17890_v61  ;;  %v6827_v20 = vpop.f32.mrf.mxu1  ;;  %v7533_v31 = vpop.f32.mrf.mxu0  ;;  %v17896_v16 = vld [vmem:[#allocation156_spill] sm:$0xff]  ;;  %v11334_v30 = vld [vmem:[%s11547_s7 + $0x2a4] ss:$8 sps:$4 sm:$0xff]  }
 0x6b7   : > { %v8866_v9 = vsel %vm8757_vm1, %v8609_v21, %v8611_v38  ;;  %v8612_v25 = vrot.slane %v7937_v18, 2  ;;  %v6828_v48 = vadd.f32 %v6827_v20, %v17891_v35  ;;  %v7938_v50 = vadd.f32 %v7531_v22, %v6826_v24  ;;  %v17897_v18 = vld [vmem:[#allocation118_spill] sm:$0xff]  ;;  %v17898_v24 = vld [vmem:[#allocation157_spill] sm:$0xff] }
 0x6b8   : > { %9234 = vst [vmem:[%s15735_s29 + $0x100] sm:$0xff] %v9090_v32  ;;  %v9091_v47 = vadd.f32 %v15724_v44, %v8935_v34  ;;  %v8936_v59 = vadd.f32 %v8866_v9, %v17892_v56  ;;  %v6829_v14 = vpop.f32.mrf.mxu1  ;;  %v7535_v58 = vpop.f32.mrf.mxu0  ;;  %v17900_v35 = vld [vmem:[#allocation158_spill] sm:$0xff] }
 0x6b9   : > { %v8867_v41 = vsel %vm8757_vm1, %v8610_v6, %v8612_v25  ;;  %v6830_v57 = vadd.f32 %v6829_v14, %v17893_v60  ;;  %v7939_v15 = vadd.f32 %v7533_v31, %v6828_v48  ;;  %v8613_v6 = vrot.slane %v7938_v50, 2  ;;  %v17899_v31 = vld [vmem:[#allocation47_spill] sm:$0xff] }
 0x6ba   : > { %9235 = vst [vmem:[%s15735_s29 + $0x108] sm:$0xff] %v9091_v47  ;;  %v9092_v42 = vadd.f32 %v15718_v33, %v8936_v59  ;;  %v8937_v52 = vadd.f32 %v8867_v41, %v17894_v43  ;;  %v6831_v21 = vpop.f32.mrf.mxu1  ;;  %v7537_v4 = vpop.f32.mrf.mxu0  ;;  %v17901_v41 = vld [vmem:[#allocation49_spill] sm:$0xff] }
 0x6bb   : > { %v7940_v26 = vadd.f32 %v7535_v58, %v6830_v57  ;;  %v6832_v19 = vadd.f32 %v6831_v21, %v17895_v37  ;;  %v8614_v62 = vrot.slane %v7939_v15, 2  ;;  %v17902_v57 = vld [vmem:[#allocation159_spill] sm:$0xff]  ;;  %v11336_v21 = vld [vmem:[%s11547_s7 + $0x2a0] ss:$8 sps:$4 sm:$0xff]  }
 0x6bc   : > { %9236 = vst [vmem:[%s15735_s29 + $0x110] sm:$0xff] %v9092_v42  ;;  %v9093_v27 = vadd.f32 %v15724_v44, %v8937_v52  ;;  %v6835_v3 = vpop.f32.mrf.mxu1  ;;  %7074 = vmatmul.mubr.bf16.gmra.mxu1 %v11331_v46  ;;  %v7541_v23 = vpop.f32.mrf.mxu0  ;;  %7780 = vmatmul.mubr.bf16.gmra.mxu0 %v11332_v8  ;;  %v11335_v52 = vld [vmem:[%s11547_s7 + $0x260] ss:$8 sps:$4 sm:$0xff]   ;;  %v11338_v46 = vld [vmem:[%s11547_s7 + $0x2b4] ss:$8 sps:$4 sm:$0xff]  }
 0x6bd   : > { %v8615_v53 = vrot.slane %v7940_v26, 2  ;;  %v7941_v11 = vadd.f32 %v7537_v4, %v6832_v19  ;;  %v6836_v36 = vadd.f32 %v6835_v3, %v17896_v16  ;;  %7083 = vmatprep.mubr.bf16.mxu1 %v11333_v5  ;;  %7789 = vmatprep.mubr.bf16.mxu0 %v11334_v30  ;;  %v17903_v19 = vld [vmem:[#allocation51_spill] sm:$0xff]  ;;  %v17904_v8 = vld [vmem:[#allocation160_spill] sm:$0xff]  ;;  %v17905_v5 = vld [vmem:[#allocation53_spill] sm:$0xff] }
 0x6be   : > { %9237 = vst [vmem:[%s15735_s29 + $0x118] sm:$0xff] %v9093_v27  ;;  %v6837_v12 = vpop.f32.mrf.mxu1  ;;  %v7543_v22 = vpop.f32.mrf.mxu0  ;;  %v11337_v3 = vld [vmem:[%s11547_s7 + $0x274] ss:$8 sps:$4 sm:$0xff]  }
 0x6bf   : > { %v8864_v2 = vsel %vm8757_vm1, %v8613_v6, %v8615_v53  ;;  %v8616_v17 = vrot.slane %v7941_v11, 2  ;;  %v7942_v38 = vadd.f32 %v7541_v23, %v6836_v36  ;;  %v6838_v13 = vadd.f32 %v6837_v12, %v17897_v18  ;;  %v17906_v12 = vld [vmem:[#allocation161_spill] sm:$0xff] }
 0x6c0   : > { %v8938_v28 = vadd.f32 %v8864_v2, %v17898_v24  ;;  %v6839_v45 = vpop.f32.mrf.mxu1  ;;  %v7545_v32 = vpop.f32.mrf.mxu0 }
 0x6c1   : > { %v8865_v61 = vsel %vm8757_vm1, %v8614_v62, %v8616_v17  ;;  %v8617_v34 = vrot.slane %v7942_v38, 2  ;;  %v7943_v20 = vadd.f32 %v7543_v22, %v6838_v13  ;;  %v6840_v9 = vadd.f32 %v6839_v45, %v17899_v31  ;;  %v17907_v13 = vld [vmem:[#allocation55_spill] sm:$0xff]  ;;  %v17908_v45 = vld [vmem:[#allocation162_spill] sm:$0xff] }
 0x6c2   : > { %v9094_v25 = vadd.f32 %v15718_v33, %v8938_v28  ;;  %v8939_v48 = vadd.f32 %v8865_v61, %v17900_v35  ;;  %v6841_v47 = vpop.f32.mrf.mxu1  ;;  %v7547_v56 = vpop.f32.mrf.mxu0 }
 0x6c3   : > { %v8862_v59 = vsel %vm8757_vm1, %v8615_v53, %v8617_v34  ;;  %v8618_v14 = vrot.slane %v7943_v20, 2  ;;  %v7944_v58 = vadd.f32 %v7545_v32, %v6840_v9  ;;  %v6842_v50 = vadd.f32 %v6841_v47, %v17901_v41  ;;  %v17909_v9 = vld [vmem:[#allocation163_spill] sm:$0xff] }
 0x6c4   : > { %9238 = vst [vmem:[%s15735_s29 + $0x120] sm:$0xff] %v9094_v25  ;;  %v9095_v60 = vadd.f32 %v15724_v44, %v8939_v48  ;;  %v8940_v42 = vadd.f32 %v8862_v59, %v17902_v57  ;;  %v6845_v43 = vpop.f32.mrf.mxu1  ;;  %7084 = vmatmul.mubr.bf16.gmra.mxu1 %v11335_v52  ;;  %v7551_v15 = vpop.f32.mrf.mxu0  ;;  %7790 = vmatmul.mubr.bf16.gmra.mxu0 %v11336_v21  ;;  %v11339_v47 = vld [vmem:[%s11547_s7 + $0x270] ss:$8 sps:$4 sm:$0xff]   ;;  %v11341_v57 = vld [vmem:[%s11547_s7 + $0x284] ss:$8 sps:$4 sm:$0xff]  }
 0x6c5   : > { %v8863_v4 = vsel %vm8757_vm1, %v8616_v17, %v8618_v14  ;;  %v8619_v26 = vrot.slane %v7944_v58, 2  ;;  %v7945_v37 = vadd.f32 %v7547_v56, %v6842_v50  ;;  %v6846_v27 = vadd.f32 %v6845_v43, %v17903_v19  ;;  %7093 = vmatprep.mubr.bf16.mxu1 %v11337_v3  ;;  %7799 = vmatprep.mubr.bf16.mxu0 %v11338_v46  ;;  %v11340_v59 = vld [vmem:[%s11547_s7 + $0x2b0] ss:$8 sps:$4 sm:$0xff]  }
 0x6c6   : > { %9239 = vst [vmem:[%s15735_s29 + $0x128] sm:$0xff] %v9095_v60  ;;  %v9096_v23 = vadd.f32 %v15718_v33, %v8940_v42  ;;  %v8941_v6 = vadd.f32 %v8863_v4, %v17904_v8  ;;  %v6847_v53 = vpop.f32.mrf.mxu1  ;;  %v7553_v11 = vpop.f32.mrf.mxu0  ;;  %v17910_v50 = vld [vmem:[#allocation164_spill] sm:$0xff]  ;;  %v11342_v42 = vld [vmem:[%s11547_s7 + $0x2c4] ss:$8 sps:$4 sm:$0xff]  }
 0x6c7   : > { %v8860_v16 = vsel %vm8757_vm1, %v8617_v34, %v8619_v26  ;;  %v8620_v36 = vrot.slane %v7945_v37, 2  ;;  %v6848_v30 = vadd.f32 %v6847_v53, %v17905_v5  ;;  %v7946_v18 = vadd.f32 %v7551_v15, %v6846_v27  ;;  %v17911_v37 = vld [vmem:[#allocation119_spill] sm:$0xff]  ;;  %v17912_v27 = vld [vmem:[#allocation165_spill] sm:$0xff]  ;;  %v17914_v5 = vld [vmem:[#allocation166_spill] sm:$0xff] }
 0x6c8   : > { %9240 = vst [vmem:[%s15735_s29 + $0x130] sm:$0xff] %v9096_v23  ;;  %v9097_v62 = vadd.f32 %v15724_v44, %v8941_v6  ;;  %v8942_v22 = vadd.f32 %v8860_v16, %v17906_v12  ;;  %v6849_v2 = vpop.f32.mrf.mxu1  ;;  %v7555_v17 = vpop.f32.mrf.mxu0 }
 0x6c9   : > { %v8861_v38 = vsel %vm8757_vm1, %v8618_v14, %v8620_v36  ;;  %v6850_v24 = vadd.f32 %v6849_v2, %v17907_v13  ;;  %v7947_v61 = vadd.f32 %v7553_v11, %v6848_v30  ;;  %v8621_v14 = vrot.slane %v7946_v18, 2  ;;  %v17913_v11 = vld [vmem:[#allocation120_spill] sm:$0xff] }
 0x6ca   : > { %9241 = vst [vmem:[%s15735_s29 + $0x138] sm:$0xff] %v9097_v62  ;;  %v9098_v28 = vadd.f32 %v15718_v33, %v8942_v22  ;;  %v8943_v32 = vadd.f32 %v8861_v38, %v17908_v45  ;;  %v6851_v34 = vpop.f32.mrf.mxu1  ;;  %v7557_v20 = vpop.f32.mrf.mxu0  ;;  %v17915_v38 = vld [vmem:[#allocation59_spill] sm:$0xff] }
 0x6cb   : > { %v7948_v31 = vadd.f32 %v7555_v17, %v6850_v24  ;;  %v6852_v25 = vadd.f32 %v6851_v34, %v17909_v9  ;;  %v8622_v43 = vrot.slane %v7947_v61, 2  ;;  %v17916_v24 = vld [vmem:[#allocation167_spill] sm:$0xff]  ;;  %v11344_v34 = vld [vmem:[%s11547_s7 + $0x2c0] ss:$8 sps:$4 sm:$0xff]  }
 0x6cc   : > { %9242 = vst [vmem:[%s15735_s29 + $0x140] sm:$0xff] %v9098_v28  ;;  %v9099_v35 = vadd.f32 %v15724_v44, %v8943_v32  ;;  %v6855_v48 = vpop.f32.mrf.mxu1  ;;  %7094 = vmatmul.mubr.bf16.gmra.mxu1 %v11339_v47  ;;  %v7561_v56 = vpop.f32.mrf.mxu0  ;;  %7800 = vmatmul.mubr.bf16.gmra.mxu0 %v11340_v59  ;;  %v11343_v32 = vld [vmem:[%s11547_s7 + $0x280] ss:$8 sps:$4 sm:$0xff]   ;;  %v11346_v47 = vld [vmem:[%s11547_s7 + $0x2d4] ss:$8 sps:$4 sm:$0xff]  }
 0x6cd   : > { %v8623_v58 = vrot.slane %v7948_v31, 2  ;;  %v7949_v41 = vadd.f32 %v7557_v20, %v6852_v25  ;;  %v6856_v60 = vadd.f32 %v6855_v48, %v17910_v50  ;;  %7103 = vmatprep.mubr.bf16.mxu1 %v11341_v57  ;;  %7809 = vmatprep.mubr.bf16.mxu0 %v11342_v42  ;;  %v17917_v25 = vld [vmem:[#allocation61_spill] sm:$0xff]  ;;  %v11345_v48 = vld [vmem:[%s11547_s7 + $0x294] ss:$8 sps:$4 sm:$0xff]  }
 0x6ce   : > { %9243 = vst [vmem:[%s15735_s29 + $0x148] sm:$0xff] %v9099_v35  ;;  %v6857_v52 = vpop.f32.mrf.mxu1  ;;  %v7563_v15 = vpop.f32.mrf.mxu0  ;;  %v17918_v59 = vld [vmem:[#allocation168_spill] sm:$0xff]  ;;  %v17919_v57 = vld [vmem:[#allocation63_spill] sm:$0xff] }
 0x6cf   : > { %v8858_v21 = vsel %vm8757_vm1, %v8621_v14, %v8623_v58  ;;  %v8624_v4 = vrot.slane %v7949_v41, 2  ;;  %v7950_v26 = vadd.f32 %v7561_v56, %v6856_v60  ;;  %v6858_v19 = vadd.f32 %v6857_v52, %v17911_v37  ;;  %v17920_v52 = vld [vmem:[#allocation169_spill] sm:$0xff] }
 0x6d0   : > { %v8944_v3 = vadd.f32 %v8858_v21, %v17912_v27  ;;  %v6859_v46 = vpop.f32.mrf.mxu1  ;;  %v7565_v23 = vpop.f32.mrf.mxu0 }
 0x6d1   : > { %v8859_v8 = vsel %vm8757_vm1, %v8622_v43, %v8624_v4  ;;  %v8625_v6 = vrot.slane %v7950_v26, 2  ;;  %v7951_v53 = vadd.f32 %v7563_v15, %v6858_v19  ;;  %v6860_v16 = vadd.f32 %v6859_v46, %v17913_v11  ;;  %v17921_v19 = vld [vmem:[#allocation121_spill] sm:$0xff]  ;;  %v17922_v46 = vld [vmem:[#allocation170_spill] sm:$0xff] }
 0x6d2   : > { %v9100_v36 = vadd.f32 %v15718_v33, %v8944_v3  ;;  %v8945_v30 = vadd.f32 %v8859_v8, %v17914_v5  ;;  %v6861_v62 = vpop.f32.mrf.mxu1  ;;  %v7567_v12 = vpop.f32.mrf.mxu0 }
 0x6d3   : > { %v8856_v22 = vsel %vm8757_vm1, %v8623_v58, %v8625_v6  ;;  %v8626_v2 = vrot.slane %v7951_v53, 2  ;;  %v7952_v17 = vadd.f32 %v7565_v23, %v6860_v16  ;;  %v6862_v18 = vadd.f32 %v6861_v62, %v17915_v38  ;;  %v17923_v16 = vld [vmem:[#allocation171_spill] sm:$0xff] }
 0x6d4   : > { %9244 = vst [vmem:[%s15735_s29 + $0x150] sm:$0xff] %v9100_v36  ;;  %v9101_v13 = vadd.f32 %v15724_v44, %v8945_v30  ;;  %v8946_v28 = vadd.f32 %v8856_v22, %v17916_v24  ;;  %v6865_v45 = vpop.f32.mrf.mxu1  ;;  %7104 = vmatmul.mubr.bf16.gmra.mxu1 %v11343_v32  ;;  %v7571_v61 = vpop.f32.mrf.mxu0  ;;  %7810 = vmatmul.mubr.bf16.gmra.mxu0 %v11344_v34  ;;  %v11347_v62 = vld [vmem:[%s11547_s7 + $0x290] ss:$8 sps:$4 sm:$0xff]   ;;  %v11349_v24 = vld [vmem:[%s11547_s7 + $0x2a4] ss:$8 sps:$4 sm:$0xff]  }
 0x6d5   : > { %v8857_v20 = vsel %vm8757_vm1, %v8624_v4, %v8626_v2  ;;  %v8627_v31 = vrot.slane %v7952_v17, 2  ;;  %v7953_v9 = vadd.f32 %v7567_v12, %v6862_v18  ;;  %v6866_v35 = vadd.f32 %v6865_v45, %v17917_v25  ;;  %7113 = vmatprep.mubr.bf16.mxu1 %v11345_v48  ;;  %7819 = vmatprep.mubr.bf16.mxu0 %v11346_v47  ;;  %v11348_v22 = vld [vmem:[%s11547_s7 + $0x2d0] ss:$8 sps:$4 sm:$0xff]  }
 0x6d6   : > { %9245 = vst [vmem:[%s15735_s29 + $0x158] sm:$0xff] %v9101_v13  ;;  %v9102_v56 = vadd.f32 %v15718_v33, %v8946_v28  ;;  %v8947_v14 = vadd.f32 %v8857_v20, %v17918_v59  ;;  %v6867_v58 = vpop.f32.mrf.mxu1  ;;  %v7573_v41 = vpop.f32.mrf.mxu0  ;;  %v17924_v18 = vld [vmem:[#allocation172_spill] sm:$0xff]  ;;  %v11350_v28 = vld [vmem:[%s11547_s7 + $0x2e4] ss:$8 sps:$4 sm:$0xff]  }
 0x6d7   : > { %v8854_v50 = vsel %vm8757_vm1, %v8625_v6, %v8627_v31  ;;  %v8628_v60 = vrot.slane %v7953_v9, 2  ;;  %v6868_v42 = vadd.f32 %v6867_v58, %v17919_v57  ;;  %v7954_v37 = vadd.f32 %v7571_v61, %v6866_v35  ;;  %v17925_v9 = vld [vmem:[#allocation122_spill] sm:$0xff]  ;;  %v17926_v35 = vld [vmem:[#allocation173_spill] sm:$0xff] }
 0x6d8   : > { %9246 = vst [vmem:[%s15735_s29 + $0x160] sm:$0xff] %v9102_v56  ;;  %v9103_v43 = vadd.f32 %v15724_v44, %v8947_v14  ;;  %v8948_v15 = vadd.f32 %v8854_v50, %v17920_v52  ;;  %v6869_v21 = vpop.f32.mrf.mxu1  ;;  %v7575_v4 = vpop.f32.mrf.mxu0  ;;  %v17928_v57 = vld [vmem:[#allocation174_spill] sm:$0xff] }
 0x6d9   : > { %v8855_v26 = vsel %vm8757_vm1, %v8626_v2, %v8628_v60  ;;  %v6870_v27 = vadd.f32 %v6869_v21, %v17921_v19  ;;  %v7955_v8 = vadd.f32 %v7573_v41, %v6868_v42  ;;  %v8629_v2 = vrot.slane %v7954_v37, 2  ;;  %v17927_v41 = vld [vmem:[#allocation123_spill] sm:$0xff] }
 0x6da   : > { %9247 = vst [vmem:[%s15735_s29 + $0x168] sm:$0xff] %v9103_v43  ;;  %v9104_v3 = vadd.f32 %v15718_v33, %v8948_v15  ;;  %v8949_v23 = vadd.f32 %v8855_v26, %v17922_v46  ;;  %v6871_v6 = vpop.f32.mrf.mxu1  ;;  %v7577_v53 = vpop.f32.mrf.mxu0  ;;  %v17929_v26 = vld [vmem:[#allocation124_spill] sm:$0xff] }
 0x6db   : > { %v7956_v11 = vadd.f32 %v7575_v4, %v6870_v27  ;;  %v6872_v36 = vadd.f32 %v6871_v6, %v17923_v16  ;;  %v8630_v45 = vrot.slane %v7955_v8, 2  ;;  %v17930_v27 = vld [vmem:[#allocation175_spill] sm:$0xff]  ;;  %v11352_v6 = vld [vmem:[%s11547_s7 + $0x2e0] ss:$8 sps:$4 sm:$0xff]  }
 0x6dc   : > { %9248 = vst [vmem:[%s15735_s29 + $0x170] sm:$0xff] %v9104_v3  ;;  %v9105_v5 = vadd.f32 %v15724_v44, %v8949_v23  ;;  %v6875_v30 = vpop.f32.mrf.mxu1  ;;  %7114 = vmatmul.mubr.bf16.gmra.mxu1 %v11347_v62  ;;  %v7581_v12 = vpop.f32.mrf.mxu0  ;;  %7820 = vmatmul.mubr.bf16.gmra.mxu0 %v11348_v22  ;;  %v11351_v23 = vld [vmem:[%s11547_s7 + $0x2a0] ss:$8 sps:$4 sm:$0xff]   ;;  %v11354_v62 = vld [vmem:[%s11547_s7 + $0x2f4] ss:$8 sps:$4 sm:$0xff]  }
 0x6dd   : > { %v8631_v17 = vrot.slane %v7956_v11, 2  ;;  %v7957_v38 = vadd.f32 %v7577_v53, %v6872_v36  ;;  %v6876_v13 = vadd.f32 %v6875_v30, %v17924_v18  ;;  %7123 = vmatprep.mubr.bf16.mxu1 %v11349_v24  ;;  %7829 = vmatprep.mubr.bf16.mxu0 %v11350_v28  ;;  %v17931_v36 = vld [vmem:[#allocation125_spill] sm:$0xff]  ;;  %v11353_v30 = vld [vmem:[%s11547_s7 + $0x2b4] ss:$8 sps:$4 sm:$0xff]   ;;  %v17933_v24 = vld [vmem:[#allocation70_spill] sm:$0xff] }
 0x6de   : > { %9249 = vst [vmem:[%s15735_s29 + $0x178] sm:$0xff] %v9105_v5  ;;  %v6877_v32 = vpop.f32.mrf.mxu1  ;;  %v7583_v61 = vpop.f32.mrf.mxu0  ;;  %v17932_v22 = vld [vmem:[#allocation176_spill] sm:$0xff] }
 0x6df   : > { %v8852_v34 = vsel %vm8757_vm1, %v8629_v2, %v8631_v17  ;;  %v8632_v20 = vrot.slane %v7957_v38, 2  ;;  %v7958_v31 = vadd.f32 %v7581_v12, %v6876_v13  ;;  %v6878_v25 = vadd.f32 %v6877_v32, %v17925_v9  ;;  %v17934_v32 = vld [vmem:[#allocation177_spill] sm:$0xff] }
 0x6e0   : > { %v8950_v48 = vadd.f32 %v8852_v34, %v17926_v35  ;;  %v6879_v47 = vpop.f32.mrf.mxu1  ;;  %v7585_v56 = vpop.f32.mrf.mxu0 }
 0x6e1   : > { %v8853_v59 = vsel %vm8757_vm1, %v8630_v45, %v8632_v20  ;;  %v8633_v14 = vrot.slane %v7958_v31, 2  ;;  %v7959_v58 = vadd.f32 %v7583_v61, %v6878_v25  ;;  %v6880_v50 = vadd.f32 %v6879_v47, %v17927_v41  ;;  %v17935_v25 = vld [vmem:[#allocation72_spill] sm:$0xff]  ;;  %v17936_v47 = vld [vmem:[#allocation178_spill] sm:$0xff] }
 0x6e2   : > { %v9106_v60 = vadd.f32 %v15718_v33, %v8950_v48  ;;  %v8951_v42 = vadd.f32 %v8853_v59, %v17928_v57  ;;  %v6881_v43 = vpop.f32.mrf.mxu1  ;;  %v7587_v52 = vpop.f32.mrf.mxu0 }
 0x6e3   : > { %v8850_v15 = vsel %vm8757_vm1, %v8631_v17, %v8633_v14  ;;  %v8634_v21 = vrot.slane %v7959_v58, 2  ;;  %v7960_v4 = vadd.f32 %v7585_v56, %v6880_v50  ;;  %v6882_v37 = vadd.f32 %v6881_v43, %v17929_v26  ;;  %v17937_v50 = vld [vmem:[#allocation179_spill] sm:$0xff] }
 0x6e4   : > { %9250 = vst [vmem:[%s15735_s29 + $0x180] sm:$0xff] %v9106_v60  ;;  %v9107_v19 = vadd.f32 %v15724_v44, %v8951_v42  ;;  %v8952_v3 = vadd.f32 %v8850_v15, %v17930_v27  ;;  %v6885_v46 = vpop.f32.mrf.mxu1  ;;  %7124 = vmatmul.mubr.bf16.gmra.mxu1 %v11351_v23  ;;  %v7591_v8 = vpop.f32.mrf.mxu0  ;;  %7830 = vmatmul.mubr.bf16.gmra.mxu0 %v11352_v6  ;;  %v11355_v43 = vld [vmem:[%s11547_s7 + $0x2b0] ss:$8 sps:$4 sm:$0xff]   ;;  %v11357_v27 = vld [vmem:[%s11547_s7 + $0x2c4] ss:$8 sps:$4 sm:$0xff]  }
 0x6e5   : > { %v8851_v53 = vsel %vm8757_vm1, %v8632_v20, %v8634_v21  ;;  %v8635_v11 = vrot.slane %v7960_v4, 2  ;;  %v7961_v16 = vadd.f32 %v7587_v52, %v6882_v37  ;;  %v6886_v5 = vadd.f32 %v6885_v46, %v17931_v36  ;;  %7133 = vmatprep.mubr.bf16.mxu1 %v11353_v30  ;;  %7839 = vmatprep.mubr.bf16.mxu0 %v11354_v62  ;;  %v11356_v15 = vld [vmem:[%s11547_s7 + $0x2f0] ss:$8 sps:$4 sm:$0xff]  }
 0x6e6   : > { %9251 = vst [vmem:[%s15735_s29 + $0x188] sm:$0xff] %v9107_v19  ;;  %v9108_v12 = vadd.f32 %v15718_v33, %v8952_v3  ;;  %v8953_v2 = vadd.f32 %v8851_v53, %v17932_v22  ;;  %v6887_v17 = vpop.f32.mrf.mxu1  ;;  %v7593_v38 = vpop.f32.mrf.mxu0  ;;  %v17938_v37 = vld [vmem:[#allocation180_spill] sm:$0xff]  ;;  %v11358_v3 = vld [vmem:[%s11547_s7 + $0x304] ss:$8 sps:$4 sm:$0xff]  }
 0x6e7   : > { %v8848_v18 = vsel %vm8757_vm1, %v8633_v14, %v8635_v11  ;;  %v8636_v13 = vrot.slane %v7961_v16, 2  ;;  %v6888_v28 = vadd.f32 %v6887_v17, %v17933_v24  ;;  %v7962_v9 = vadd.f32 %v7591_v8, %v6886_v5  ;;  %v17939_v16 = vld [vmem:[#allocation126_spill] sm:$0xff]  ;;  %v17940_v5 = vld [vmem:[#allocation181_spill] sm:$0xff] }
 0x6e8   : > { %9252 = vst [vmem:[%s15735_s29 + $0x190] sm:$0xff] %v9108_v12  ;;  %v9109_v45 = vadd.f32 %v15724_v44, %v8953_v2  ;;  %v8954_v61 = vadd.f32 %v8848_v18, %v17934_v32  ;;  %v6889_v34 = vpop.f32.mrf.mxu1  ;;  %v7595_v20 = vpop.f32.mrf.mxu0  ;;  %v17942_v24 = vld [vmem:[#allocation182_spill] sm:$0xff] }
 0x6e9   : > { %v8849_v31 = vsel %vm8757_vm1, %v8634_v21, %v8636_v13  ;;  %v6890_v35 = vadd.f32 %v6889_v34, %v17935_v25  ;;  %v7963_v59 = vadd.f32 %v7593_v38, %v6888_v28  ;;  %v8637_v21 = vrot.slane %v7962_v9, 2  ;;  %v17941_v38 = vld [vmem:[#allocation127_spill] sm:$0xff] }
 0x6ea   : > { %9253 = vst [vmem:[%s15735_s29 + $0x198] sm:$0xff] %v9109_v45  ;;  %v9110_v48 = vadd.f32 %v15718_v33, %v8954_v61  ;;  %v8955_v56 = vadd.f32 %v8849_v31, %v17936_v47  ;;  %v6891_v14 = vpop.f32.mrf.mxu1  ;;  %v7597_v58 = vpop.f32.mrf.mxu0  ;;  %v17943_v31 = vld [vmem:[#allocation128_spill] sm:$0xff] }
 0x6eb   : > { %v7964_v41 = vadd.f32 %v7595_v20, %v6890_v35  ;;  %v6892_v60 = vadd.f32 %v6891_v14, %v17937_v50  ;;  %v8638_v46 = vrot.slane %v7963_v59, 2  ;;  %v17944_v35 = vld [vmem:[#allocation183_spill] sm:$0xff]  ;;  %v11360_v14 = vld [vmem:[%s11547_s7 + $0x300] ss:$8 sps:$4 sm:$0xff]  }
 0x6ec   : > { %9254 = vst [vmem:[%s15735_s29 + $0x1a0] sm:$0xff] %v9110_v48  ;;  %v9111_v57 = vadd.f32 %v15724_v44, %v8955_v56  ;;  %v6895_v42 = vpop.f32.mrf.mxu1  ;;  %7134 = vmatmul.mubr.bf16.gmra.mxu1 %v11355_v43  ;;  %v7601_v52 = vpop.f32.mrf.mxu0  ;;  %7840 = vmatmul.mubr.bf16.gmra.mxu0 %v11356_v15  ;;  %v11359_v56 = vld [vmem:[%s11547_s7 + $0x2c0] ss:$8 sps:$4 sm:$0xff]   ;;  %v11362_v43 = vld [vmem:[%s11547_s7 + $0x314] ss:$8 sps:$4 sm:$0xff]  }
 0x6ed   : > { %v8639_v4 = vrot.slane %v7964_v41, 2  ;;  %v7965_v26 = vadd.f32 %v7597_v58, %v6892_v60  ;;  %v6896_v19 = vadd.f32 %v6895_v42, %v17938_v37  ;;  %7143 = vmatprep.mubr.bf16.mxu1 %v11357_v27  ;;  %7849 = vmatprep.mubr.bf16.mxu0 %v11358_v3  ;;  %v17945_v60 = vld [vmem:[#allocation129_spill] sm:$0xff]  ;;  %v11361_v42 = vld [vmem:[%s11547_s7 + $0x2d4] ss:$8 sps:$4 sm:$0xff]   ;;  %v17947_v27 = vld [vmem:[#allocation78_spill] sm:$0xff] }
 0x6ee   : > { %9255 = vst [vmem:[%s15735_s29 + $0x1a8] sm:$0xff] %v9111_v57  ;;  %v6897_v23 = vpop.f32.mrf.mxu1  ;;  %v7603_v8 = vpop.f32.mrf.mxu0  ;;  %v17946_v15 = vld [vmem:[#allocation184_spill] sm:$0xff] }
 0x6ef   : > { %v8846_v6 = vsel %vm8757_vm1, %v8637_v21, %v8639_v4  ;;  %v8640_v53 = vrot.slane %v7965_v26, 2  ;;  %v7966_v11 = vadd.f32 %v7601_v52, %v6896_v19  ;;  %v6898_v36 = vadd.f32 %v6897_v23, %v17939_v16  ;;  %v17948_v23 = vld [vmem:[#allocation185_spill] sm:$0xff] }
 0x6f0   : > { %v8956_v30 = vadd.f32 %v8846_v6, %v17940_v5  ;;  %v6899_v62 = vpop.f32.mrf.mxu1  ;;  %v7605_v12 = vpop.f32.mrf.mxu0 }
 0x6f1   : > { %v8847_v22 = vsel %vm8757_vm1, %v8638_v46, %v8640_v53  ;;  %v8641_v2 = vrot.slane %v7966_v11, 2  ;;  %v7967_v17 = vadd.f32 %v7603_v8, %v6898_v36  ;;  %v6900_v18 = vadd.f32 %v6899_v62, %v17941_v38  ;;  %v17949_v36 = vld [vmem:[#allocation130_spill] sm:$0xff] }
 0x6f2   : > { %v9112_v13 = vadd.f32 %v15718_v33, %v8956_v30  ;;  %v8957_v28 = vadd.f32 %v8847_v22, %v17942_v24  ;;  %v6901_v45 = vpop.f32.mrf.mxu1  ;;  %v7607_v32 = vpop.f32.mrf.mxu0  ;;  %v17950_v62 = vld [vmem:[#allocation186_spill] sm:$0xff] }
 0x6f3   : > { %v8844_v61 = vsel %vm8757_vm1, %v8639_v4, %v8641_v2  ;;  %v8642_v34 = vrot.slane %v7967_v17, 2  ;;  %v7968_v20 = vadd.f32 %v7605_v12, %v6900_v18  ;;  %v6902_v9 = vadd.f32 %v6901_v45, %v17943_v31  ;;  %v17951_v18 = vld [vmem:[#allocation187_spill] sm:$0xff] }
 0x6f4   : > { %9256 = vst [vmem:[%s15735_s29 + $0x1b0] sm:$0xff] %v9112_v13  ;;  %v9113_v25 = vadd.f32 %v15724_v44, %v8957_v28  ;;  %v8958_v48 = vadd.f32 %v8844_v61, %v17944_v35  ;;  %v6905_v47 = vpop.f32.mrf.mxu1  ;;  %7144 = vmatmul.mubr.bf16.gmra.mxu1 %v11359_v56  ;;  %v7611_v59 = vpop.f32.mrf.mxu0  ;;  %7850 = vmatmul.mubr.bf16.gmra.mxu0 %v11360_v14  ;;  %v11363_v45 = vld [vmem:[%s11547_s7 + $0x2d0] ss:$8 sps:$4 sm:$0xff]   ;;  %v11365_v35 = vld [vmem:[%s11547_s7 + $0x2e4] ss:$8 sps:$4 sm:$0xff]  }
 0x6f5   : > { %v8845_v58 = vsel %vm8757_vm1, %v8640_v53, %v8642_v34  ;;  %v8643_v41 = vrot.slane %v7968_v20, 2  ;;  %v7969_v50 = vadd.f32 %v7607_v32, %v6902_v9  ;;  %v6906_v57 = vadd.f32 %v6905_v47, %v17945_v60  ;;  %7153 = vmatprep.mubr.bf16.mxu1 %v11361_v42  ;;  %7859 = vmatprep.mubr.bf16.mxu0 %v11362_v43  ;;  %v11364_v61 = vld [vmem:[%s11547_s7 + $0x310] ss:$8 sps:$4 sm:$0xff]  }
 0x6f6   : > { %9257 = vst [vmem:[%s15735_s29 + $0x1b8] sm:$0xff] %v9113_v25  ;;  %v9114_v52 = vadd.f32 %v15718_v33, %v8958_v48  ;;  %v8959_v21 = vadd.f32 %v8845_v58, %v17946_v15  ;;  %v6907_v4 = vpop.f32.mrf.mxu1  ;;  %v7613_v26 = vpop.f32.mrf.mxu0  ;;  %v17952_v9 = vld [vmem:[#allocation188_spill] sm:$0xff]  ;;  %v11366_v48 = vld [vmem:[%s11547_s7 + $0x324] ss:$8 sps:$4 sm:$0xff]  }
 0x6f7   : > { %v8842_v37 = vsel %vm8757_vm1, %v8641_v2, %v8643_v41  ;;  %v8644_v19 = vrot.slane %v7969_v50, 2  ;;  %v6908_v3 = vadd.f32 %v6907_v4, %v17947_v27  ;;  %v7970_v16 = vadd.f32 %v7611_v59, %v6906_v57  ;;  %v17953_v50 = vld [vmem:[#allocation81_spill] sm:$0xff]  ;;  %v17956_v27 = vld [vmem:[#allocation190_spill] sm:$0xff] }
 0x6f8   : > { %9258 = vst [vmem:[%s15735_s29 + $0x1c0] sm:$0xff] %v9114_v52  ;;  %v9115_v46 = vadd.f32 %v15724_v44, %v8959_v21  ;;  %v8960_v8 = vadd.f32 %v8842_v37, %v17948_v23  ;;  %v6909_v6 = vpop.f32.mrf.mxu1  ;;  %v7615_v53 = vpop.f32.mrf.mxu0  ;;  %v17954_v57 = vld [vmem:[#allocation189_spill] sm:$0xff] }
 0x6f9   : > { %v8843_v11 = vsel %vm8757_vm1, %v8642_v34, %v8644_v19  ;;  %v6910_v5 = vadd.f32 %v6909_v6, %v17949_v36  ;;  %v7971_v22 = vadd.f32 %v7613_v26, %v6908_v3  ;;  %v8645_v34 = vrot.slane %v7970_v16, 2  ;;  %v17955_v26 = vld [vmem:[#allocation83_spill] sm:$0xff] }
 0x6fa   : > { %9259 = vst [vmem:[%s15735_s29 + $0x1c8] sm:$0xff] %v9115_v46  ;;  %v9116_v30 = vadd.f32 %v15718_v33, %v8960_v8  ;;  %v8961_v12 = vadd.f32 %v8843_v11, %v17950_v62  ;;  %v6911_v2 = vpop.f32.mrf.mxu1  ;;  %v7617_v17 = vpop.f32.mrf.mxu0  ;;  %v17957_v11 = vld [vmem:[#allocation85_spill] sm:$0xff] }
 0x6fb   : > { %v7972_v38 = vadd.f32 %v7615_v53, %v6910_v5  ;;  %v6912_v13 = vadd.f32 %v6911_v2, %v17951_v18  ;;  %v8646_v47 = vrot.slane %v7971_v22, 2  ;;  %v17958_v5 = vld [vmem:[#allocation191_spill] sm:$0xff]  ;;  %v11368_v2 = vld [vmem:[%s11547_s7 + $0x320] ss:$8 sps:$4 sm:$0xff]  }
 0x6fc   : > { %9260 = vst [vmem:[%s15735_s29 + $0x1d0] sm:$0xff] %v9116_v30  ;;  %v9117_v24 = vadd.f32 %v15724_v44, %v8961_v12  ;;  %v6915_v28 = vpop.f32.mrf.mxu1  ;;  %7154 = vmatmul.mubr.bf16.gmra.mxu1 %v11363_v45  ;;  %v7621_v32 = vpop.f32.mrf.mxu0  ;;  %7860 = vmatmul.mubr.bf16.gmra.mxu0 %v11364_v61  ;;  %v11367_v12 = vld [vmem:[%s11547_s7 + $0x2e0] ss:$8 sps:$4 sm:$0xff]   ;;  %v11370_v45 = vld [vmem:[%s11547_s7 + $0x334] ss:$8 sps:$4 sm:$0xff]  }
 0x6fd   : > { %v8647_v20 = vrot.slane %v7972_v38, 2  ;;  %v7973_v31 = vadd.f32 %v7617_v17, %v6912_v13  ;;  %v6916_v25 = vadd.f32 %v6915_v28, %v17952_v9  ;;  %7163 = vmatprep.mubr.bf16.mxu1 %v11365_v35  ;;  %7869 = vmatprep.mubr.bf16.mxu0 %v11366_v48  ;;  %v17959_v13 = vld [vmem:[#allocation87_spill] sm:$0xff]  ;;  %v17960_v61 = vld [vmem:[#allocation192_spill] sm:$0xff]  ;;  %v17961_v35 = vld [vmem:[#allocation89_spill] sm:$0xff] }
 0x6fe   : > { %9261 = vst [vmem:[%s15735_s29 + $0x1d8] sm:$0xff] %v9117_v24  ;;  %v6917_v56 = vpop.f32.mrf.mxu1  ;;  %v7623_v59 = vpop.f32.mrf.mxu0  ;;  %v11369_v28 = vld [vmem:[%s11547_s7 + $0x2f4] ss:$8 sps:$4 sm:$0xff]  }
 0x6ff   : > { %v8840_v14 = vsel %vm8757_vm1, %v8645_v34, %v8647_v20  ;;  %v8648_v58 = vrot.slane %v7973_v31, 2  ;;  %v7974_v41 = vadd.f32 %v7621_v32, %v6916_v25  ;;  %v6918_v60 = vadd.f32 %v6917_v56, %v17953_v50  ;;  %v17962_v56 = vld [vmem:[#allocation193_spill] sm:$0xff] }
 0x700   : > { %v8962_v42 = vadd.f32 %v8840_v14, %v17954_v57  ;;  %v6919_v43 = vpop.f32.mrf.mxu1  ;;  %v7625_v52 = vpop.f32.mrf.mxu0 }
 0x701   : > { %v8841_v15 = vsel %vm8757_vm1, %v8646_v47, %v8648_v58  ;;  %v8649_v21 = vrot.slane %v7974_v41, 2  ;;  %v7975_v4 = vadd.f32 %v7623_v59, %v6918_v60  ;;  %v6920_v37 = vadd.f32 %v6919_v43, %v17955_v26  ;;  %v17963_v60 = vld [vmem:[#allocation131_spill] sm:$0xff]  ;;  %v17964_v43 = vld [vmem:[#allocation194_spill] sm:$0xff] }
 0x702   : > { %v9118_v19 = vadd.f32 %v15718_v33, %v8962_v42  ;;  %v8963_v3 = vadd.f32 %v8841_v15, %v17956_v27  ;;  %v6921_v46 = vpop.f32.mrf.mxu1  ;;  %v7627_v23 = vpop.f32.mrf.mxu0 }
 0x703   : > { %v8838_v8 = vsel %vm8757_vm1, %v8647_v20, %v8649_v21  ;;  %v8650_v6 = vrot.slane %v7975_v4, 2  ;;  %v7976_v53 = vadd.f32 %v7625_v52, %v6920_v37  ;;  %v6922_v16 = vadd.f32 %v6921_v46, %v17957_v11  ;;  %v17965_v37 = vld [vmem:[#allocation195_spill] sm:$0xff] }
 0x704   : > { %9262 = vst [vmem:[%s15735_s29 + $0x1e0] sm:$0xff] %v9118_v19  ;;  %v9119_v36 = vadd.f32 %v15724_v44, %v8963_v3  ;;  %v8964_v30 = vadd.f32 %v8838_v8, %v17958_v5  ;;  %v6925_v62 = vpop.f32.mrf.mxu1  ;;  %7164 = vmatmul.mubr.bf16.gmra.mxu1 %v11367_v12  ;;  %v7631_v22 = vpop.f32.mrf.mxu0  ;;  %7870 = vmatmul.mubr.bf16.gmra.mxu0 %v11368_v2  ;;  %v11371_v46 = vld [vmem:[%s11547_s7 + $0x2f0] ss:$8 sps:$4 sm:$0xff]  }
 0x705   : > { %v8839_v17 = vsel %vm8757_vm1, %v8648_v58, %v8650_v6  ;;  %v8651_v38 = vrot.slane %v7976_v53, 2  ;;  %v7977_v18 = vadd.f32 %v7627_v23, %v6922_v16  ;;  %v6926_v24 = vadd.f32 %v6925_v62, %v17959_v13  ;;  %7173 = vmatprep.mubr.bf16.mxu1 %v11369_v28  ;;  %7879 = vmatprep.mubr.bf16.mxu0 %v11370_v45  ;;  %v11372_v8 = vld [vmem:[%s11547_s7 + $0x330] ss:$8 sps:$4 sm:$0xff]   ;;  %s10204_s7 = smul.u32 18432, %s11479_s16  ;;  %s16729_s16 = scalar_lea.sflag [#allocation3], %s161_s25 }
 0x706   : > { %9263 = vst [vmem:[%s15735_s29 + $0x1e8] sm:$0xff] %v9119_v36  ;;  %v9120_v32 = vadd.f32 %v15718_v33, %v8964_v30  ;;  %v8965_v34 = vadd.f32 %v8839_v17, %v17960_v61  ;;  %v6927_v20 = vpop.f32.mrf.mxu1  ;;  %v7633_v31 = vpop.f32.mrf.mxu0  ;;  %v17966_v16 = vld [vmem:[#allocation196_spill] sm:$0xff] }
 0x707   : > { %v8836_v9 = vsel %vm8757_vm1, %v8649_v21, %v8651_v38  ;;  %v8652_v25 = vrot.slane %v7977_v18, 2  ;;  %v6928_v48 = vadd.f32 %v6927_v20, %v17961_v35  ;;  %v7978_v50 = vadd.f32 %v7631_v22, %v6926_v24  ;;  %v17967_v17 = vld [vmem:[#allocation132_spill] sm:$0xff]  ;;  %v17968_v18 = vld [vmem:[#allocation197_spill] sm:$0xff]  ;;  %s16720_s6 = scalar_lea.hbm %s16772_s3, %s10204_s7 }
 0x708   : > { %9264 = vst [vmem:[%s15735_s29 + $0x1f0] sm:$0xff] %v9120_v32  ;;  %v9121_v47 = vadd.f32 %v15724_v44, %v8965_v34  ;;  %v8966_v59 = vadd.f32 %v8836_v9, %v17962_v56  ;;  %v6929_v14 = vpop.f32.mrf.mxu1  ;;  %v7635_v58 = vpop.f32.mrf.mxu0  ;;  %v17969_v34 = vld [vmem:[#allocation133_spill] sm:$0xff]  ;;  %v17970_v9 = vld [vmem:[#allocation198_spill] sm:$0xff] }
 0x709   : > { %v8837_v41 = vsel %vm8757_vm1, %v8650_v6, %v8652_v25  ;;  %v6930_v57 = vadd.f32 %v6929_v14, %v17963_v60  ;;  %v7979_v15 = vadd.f32 %v7633_v31, %v6928_v48  ;;  %v8653_v6 = vrot.slane %v7978_v50, 2  ;;  %v17971_v14 = vld [vmem:[#allocation94_spill] sm:$0xff]  ;;  %v17972_v50 = vld [vmem:[#allocation199_spill] sm:$0xff] }
 0x70a   : > { %9265 = vst [vmem:[%s15735_s29 + $0x1f8] sm:$0xff] %v9121_v47  ;;  %v9122_v42 = vadd.f32 %v15718_v33, %v8966_v59  ;;  %v8967_v52 = vadd.f32 %v8837_v41, %v17964_v43  ;;  %v6931_v21 = vpop.f32.mrf.mxu1  ;;  %v7637_v4 = vpop.f32.mrf.mxu0 }
 0x70b   : > { %v7980_v26 = vadd.f32 %v7635_v58, %v6930_v57  ;;  %v6932_v19 = vadd.f32 %v6931_v21, %v17965_v37  ;;  %v8654_v5 = vrot.slane %v7979_v15, 2  ;;  %v17973_v21 = vld [vmem:[#allocation96_spill] sm:$0xff] }
 0x70c   : > { %9266 = vst [vmem:[%s15735_s29 + $0x200] sm:$0xff] %v9122_v42  ;;  %v9123_v27 = vadd.f32 %v15724_v44, %v8967_v52  ;;  %v6935_v3 = vpop.f32.mrf.mxu1  ;;  %7174 = vmatmul.mubr.bf16.gmra.mxu1 %v11371_v46  ;;  %v7641_v23 = vpop.f32.mrf.mxu0  ;;  %7880 = vmatmul.mubr.bf16.gmra.mxu0 %v11372_v8  ;;  %v17974_v37 = vld [vmem:[#allocation200_spill] sm:$0xff]  ;;  %v17975_v8 = vld [vmem:[#allocation98_spill] sm:$0xff] }
 0x70d   : > { %v8655_v53 = vrot.slane %v7980_v26, 2  ;;  %v7981_v11 = vadd.f32 %v7637_v4, %v6932_v19  ;;  %v6936_v36 = vadd.f32 %v6935_v3, %v17966_v16 }
 0x70e   : > { %9267 = vst [vmem:[%s15735_s29 + $0x208] sm:$0xff] %v9123_v27  ;;  %v6937_v30 = vpop.f32.mrf.mxu1  ;;  %v7643_v62 = vpop.f32.mrf.mxu0 }
 0x70f   : > { %v8834_v12 = vsel %vm8757_vm1, %v8653_v6, %v8655_v53  ;;  %v8656_v22 = vrot.slane %v7981_v11, 2  ;;  %v7982_v2 = vadd.f32 %v7641_v23, %v6936_v36  ;;  %v6938_v38 = vadd.f32 %v6937_v30, %v17967_v17  ;;  %v17976_v11 = vld [vmem:[#allocation201_spill] sm:$0xff]  ;;  %v17978_v17 = vld [vmem:[#allocation202_spill] sm:$0xff] }
 0x710   : > { %v8968_v13 = vadd.f32 %v8834_v12, %v17968_v18  ;;  %v6939_v24 = vpop.f32.mrf.mxu1  ;;  %v7645_v28 = vpop.f32.mrf.mxu0  ;;  %v17977_v12 = vld [vmem:[#allocation100_spill] sm:$0xff] }
 0x711   : > { %v8835_v45 = vsel %vm8757_vm1, %v8654_v5, %v8656_v22  ;;  %v8657_v32 = vrot.slane %v7982_v2, 2  ;;  %v7983_v61 = vadd.f32 %v7643_v62, %v6938_v38  ;;  %v6940_v20 = vadd.f32 %v6939_v24, %v17969_v34 }
 0x712   : > { %v9124_v31 = vadd.f32 %v15718_v33, %v8968_v13  ;;  %v8969_v25 = vadd.f32 %v8835_v45, %v17970_v9  ;;  %v6941_v35 = vpop.f32.mrf.mxu1  ;;  %v7647_v48 = vpop.f32.mrf.mxu0  ;;  %v17979_v45 = vld [vmem:[#allocation203_spill] sm:$0xff] }
 0x713   : > { %v8832_v47 = vsel %vm8757_vm1, %v8655_v53, %v8657_v32  ;;  %v8658_v56 = vrot.slane %v7983_v61, 2  ;;  %v7984_v59 = vadd.f32 %v7645_v28, %v6940_v20  ;;  %v6942_v58 = vadd.f32 %v6941_v35, %v17971_v14  ;;  %v17980_v35 = vld [vmem:[#allocation204_spill] sm:$0xff] }
 0x714   : > { %9268 = vst [vmem:[%s15735_s29 + $0x210] sm:$0xff] %v9124_v31  ;;  %v9125_v41 = vadd.f32 %v15724_v44, %v8969_v25  ;;  %v8970_v60 = vadd.f32 %v8832_v47, %v17972_v50  ;;  %v6945_v57 = vpop.f32.mrf.mxu1  ;;  %v7651_v42 = vpop.f32.mrf.mxu0  ;;  %v17981_v50 = vld [vmem:[#allocation5_spill] sm:$0xff] }
 0x715   : > { %v8833_v43 = vsel %vm8757_vm1, %v8656_v22, %v8658_v56  ;;  %v8659_v52 = vrot.slane %v7984_v59, 2  ;;  %v7985_v15 = vadd.f32 %v7647_v48, %v6942_v58  ;;  %v6946_v4 = vadd.f32 %v6945_v57, %v17973_v21  ;;  %v17982_v57 = vld [vmem:[#allocation205_spill] sm:$0xff] }
 0x716   : > { %9269 = vst [vmem:[%s15735_s29 + $0x218] sm:$0xff] %v9125_v41  ;;  %v9126_v26 = vadd.f32 %v15718_v33, %v8970_v60  ;;  %v8971_v19 = vadd.f32 %v8833_v43, %v17974_v37  ;;  %v6947_v27 = vpop.f32.mrf.mxu1  ;;  %v7653_v3 = vpop.f32.mrf.mxu0 }
 0x717   : > { %v8830_v46 = vsel %vm8757_vm1, %v8657_v32, %v8659_v52  ;;  %v8660_v23 = vrot.slane %v7985_v15, 2  ;;  %v6948_v6 = vadd.f32 %v6947_v27, %v17975_v8  ;;  %v7986_v62 = vadd.f32 %v7651_v42, %v6946_v4  ;;  %v17984_v27 = vld [vmem:[#allocation206_spill] sm:$0xff] }
 0x718   : > { %9270 = vst [vmem:[%s15735_s29 + $0x220] sm:$0xff] %v9126_v26  ;;  %v9127_v53 = vadd.f32 %v15724_v44, %v8971_v19  ;;  %v8972_v16 = vadd.f32 %v8830_v46, %v17976_v11  ;;  %v6949_v36 = vpop.f32.mrf.mxu1  ;;  %v7655_v5 = vpop.f32.mrf.mxu0  ;;  %v17983_v26 = vld [vmem:[#allocation6_spill] sm:$0xff]  ;;  %v17985_v11 = vld [vmem:[#allocation7_spill] sm:$0xff] }
 0x719   : > { %v8831_v30 = vsel %vm8757_vm1, %v8658_v56, %v8660_v23  ;;  %v6950_v22 = vadd.f32 %v6949_v36, %v17977_v12  ;;  %v7987_v18 = vadd.f32 %v7653_v3, %v6948_v6  ;;  %v8661_v31 = vrot.slane %v7986_v62, 2 }
 0x71a   : > { %9271 = vst [vmem:[%s15735_s29 + $0x228] sm:$0xff] %v9127_v53  ;;  %v9128_v2 = vadd.f32 %v15718_v33, %v8972_v16  ;;  %v8973_v38 = vadd.f32 %v8831_v30, %v17978_v17  ;;  %v6951_v13 = vpop.f32.mrf.mxu1  ;;  %v7657_v24 = vpop.f32.mrf.mxu0 }
 0x71b   : > { %v7988_v28 = vadd.f32 %v7655_v5, %v6950_v22  ;;  %v6952_v32 = vadd.f32 %v6951_v13, %v17979_v45  ;;  %v8662_v47 = vrot.slane %v7987_v18, 2  ;;  %v17986_v5 = vld [vmem:[#allocation207_spill] sm:$0xff] }
 0x71c   : > { %9272 = vst [vmem:[%s15735_s29 + $0x230] sm:$0xff] %v9128_v2  ;;  %v9129_v61 = vadd.f32 %v15724_v44, %v8973_v38  ;;  %v6955_v34 = vpop.f32.mrf.mxu1  ;;  %v7661_v20 = vpop.f32.mrf.mxu0  ;;  %v17987_v38 = vld [vmem:[#allocation8_spill] sm:$0xff] }
 0x71d   : > { %v8663_v9 = vrot.slane %v7988_v28, 2  ;;  %v7989_v25 = vadd.f32 %v7657_v24, %v6952_v32  ;;  %v6956_v48 = vadd.f32 %v6955_v34, %v17980_v35  ;;  %v17988_v24 = vld [vmem:[#allocation208_spill] sm:$0xff] }
 0x71e   : > { %9273 = vst [vmem:[%s15735_s29 + $0x238] sm:$0xff] %v9129_v61  ;;  %v6957_v56 = vpop.f32.mrf.mxu1  ;;  %v7663_v59 = vpop.f32.mrf.mxu0 }
 0x71f   : > { %v8828_v14 = vsel %vm8757_vm1, %v8661_v31, %v8663_v9  ;;  %v8664_v58 = vrot.slane %v7989_v25, 2  ;;  %v7990_v41 = vadd.f32 %v7661_v20, %v6956_v48  ;;  %v6958_v60 = vadd.f32 %v6957_v56, %v17981_v50  ;;  %v17989_v20 = vld [vmem:[#allocation9_spill] sm:$0xff]  ;;  %v17992_v50 = vld [vmem:[#allocation210_spill] sm:$0xff] }
 0x720   : > { %v8974_v42 = vadd.f32 %v8828_v14, %v17982_v57  ;;  %v6959_v43 = vpop.f32.mrf.mxu1  ;;  %v7665_v52 = vpop.f32.mrf.mxu0  ;;  %v17990_v25 = vld [vmem:[#allocation209_spill] sm:$0xff]  ;;  %v17991_v14 = vld [vmem:[#allocation10_spill] sm:$0xff] }
 0x721   : > { %v8829_v15 = vsel %vm8757_vm1, %v8662_v47, %v8664_v58  ;;  %v8665_v21 = vrot.slane %v7990_v41, 2  ;;  %v7991_v4 = vadd.f32 %v7663_v59, %v6958_v60  ;;  %v6960_v37 = vadd.f32 %v6959_v43, %v17983_v26 }
 0x722   : > { %v9130_v19 = vadd.f32 %v15718_v33, %v8974_v42  ;;  %v8975_v3 = vadd.f32 %v8829_v15, %v17984_v27  ;;  %v6961_v46 = vpop.f32.mrf.mxu1  ;;  %v7667_v23 = vpop.f32.mrf.mxu0  ;;  %v17993_v15 = vld [vmem:[#allocation211_spill] sm:$0xff] }
 0x723   : > { %v8826_v8 = vsel %vm8757_vm1, %v8663_v9, %v8665_v21  ;;  %v8666_v6 = vrot.slane %v7991_v4, 2  ;;  %v7992_v53 = vadd.f32 %v7665_v52, %v6960_v37  ;;  %v6962_v16 = vadd.f32 %v6961_v46, %v17985_v11  ;;  %v17994_v46 = vld [vmem:[#allocation212_spill] sm:$0xff] }
 0x724   : > { %9274 = vst [vmem:[%s15735_s29 + $0x240] sm:$0xff] %v9130_v19  ;;  %v9131_v36 = vadd.f32 %v15724_v44, %v8975_v3  ;;  %v8976_v30 = vadd.f32 %v8826_v8, %v17986_v5  ;;  %v6965_v62 = vpop.f32.mrf.mxu1  ;;  %v7671_v12 = vpop.f32.mrf.mxu0  ;;  %v17995_v5 = vld [vmem:[#allocation11_spill] sm:$0xff] }
 0x725   : > { %v8827_v22 = vsel %vm8757_vm1, %v8664_v58, %v8666_v6  ;;  %v8667_v2 = vrot.slane %v7992_v53, 2  ;;  %v7993_v17 = vadd.f32 %v7667_v23, %v6962_v16  ;;  %v6966_v18 = vadd.f32 %v6965_v62, %v17987_v38  ;;  %v17996_v62 = vld [vmem:[#allocation213_spill] sm:$0xff] }
 0x726   : > { %9275 = vst [vmem:[%s15735_s29 + $0x248] sm:$0xff] %v9131_v36  ;;  %v9132_v13 = vadd.f32 %v15718_v33, %v8976_v30  ;;  %v8977_v28 = vadd.f32 %v8827_v22, %v17988_v24  ;;  %v6967_v45 = vpop.f32.mrf.mxu1  ;;  %v7673_v32 = vpop.f32.mrf.mxu0 }
 0x727   : > { %v8824_v61 = vsel %vm8757_vm1, %v8665_v21, %v8667_v2  ;;  %v8668_v34 = vrot.slane %v7993_v17, 2  ;;  %v6968_v31 = vadd.f32 %v6967_v45, %v17989_v20  ;;  %v7994_v59 = vadd.f32 %v7671_v12, %v6966_v18  ;;  %v17998_v45 = vld [vmem:[#allocation214_spill] sm:$0xff] }
 0x728   : > { %9276 = vst [vmem:[%s15735_s29 + $0x250] sm:$0xff] %v9132_v13  ;;  %v9133_v9 = vadd.f32 %v15724_v44, %v8977_v28  ;;  %v8978_v35 = vadd.f32 %v8824_v61, %v17990_v25  ;;  %v6969_v48 = vpop.f32.mrf.mxu1  ;;  %v7675_v47 = vpop.f32.mrf.mxu0  ;;  %v17997_v13 = vld [vmem:[#allocation12_spill] sm:$0xff]  ;;  %v17999_v25 = vld [vmem:[#allocation13_spill] sm:$0xff] }
 0x729   : > { %v8825_v56 = vsel %vm8757_vm1, %v8666_v6, %v8668_v34  ;;  %v6970_v58 = vadd.f32 %v6969_v48, %v17991_v14  ;;  %v7995_v57 = vadd.f32 %v7673_v32, %v6968_v31  ;;  %v8669_v19 = vrot.slane %v7994_v59, 2 }
 0x72a   : > { %9277 = vst [vmem:[%s15735_s29 + $0x258] sm:$0xff] %v9133_v9  ;;  %v9134_v41 = vadd.f32 %v15718_v33, %v8978_v35  ;;  %v8979_v60 = vadd.f32 %v8825_v56, %v17992_v50  ;;  %v6971_v42 = vpop.f32.mrf.mxu1  ;;  %v7677_v43 = vpop.f32.mrf.mxu0 }
 0x72b   : > { %v7996_v52 = vadd.f32 %v7675_v47, %v6970_v58  ;;  %v6972_v21 = vadd.f32 %v6971_v42, %v17993_v15  ;;  %v8670_v8 = vrot.slane %v7995_v57, 2  ;;  %v18000_v47 = vld [vmem:[#allocation215_spill] sm:$0xff] }
 0x72c   : > { %9278 = vst [vmem:[%s15735_s29 + $0x260] sm:$0xff] %v9134_v41  ;;  %v9135_v4 = vadd.f32 %v15724_v44, %v8979_v60  ;;  %v6975_v26 = vpop.f32.mrf.mxu1  ;;  %v7681_v37 = vpop.f32.mrf.mxu0  ;;  %v18001_v60 = vld [vmem:[#allocation14_spill] sm:$0xff] }
 0x72d   : > { %v8671_v27 = vrot.slane %v7996_v52, 2  ;;  %v7997_v3 = vadd.f32 %v7677_v43, %v6972_v21  ;;  %v6976_v23 = vadd.f32 %v6975_v26, %v17994_v46  ;;  %v18002_v43 = vld [vmem:[#allocation216_spill] sm:$0xff] }
 0x72e   : > { %9279 = vst [vmem:[%s15735_s29 + $0x268] sm:$0xff] %v9135_v4  ;;  %v6977_v6 = vpop.f32.mrf.mxu1  ;;  %v7683_v53 = vpop.f32.mrf.mxu0 }
 0x72f   : > { %v8822_v11 = vsel %vm8757_vm1, %v8669_v19, %v8671_v27  ;;  %v8672_v16 = vrot.slane %v7997_v3, 2  ;;  %v7998_v36 = vadd.f32 %v7681_v37, %v6976_v23  ;;  %v6978_v30 = vadd.f32 %v6977_v6, %v17995_v5  ;;  %v18003_v37 = vld [vmem:[#allocation15_spill] sm:$0xff]  ;;  %v18004_v3 = vld [vmem:[#allocation217_spill] sm:$0xff]  ;;  %v18006_v5 = vld [vmem:[#allocation218_spill] sm:$0xff] }
 0x730   : > { %v8980_v12 = vadd.f32 %v8822_v11, %v17996_v62  ;;  %v6979_v22 = vpop.f32.mrf.mxu1  ;;  %v7685_v2 = vpop.f32.mrf.mxu0  ;;  %v18005_v11 = vld [vmem:[#allocation16_spill] sm:$0xff] }
 0x731   : > { %v8823_v17 = vsel %vm8757_vm1, %v8670_v8, %v8672_v16  ;;  %v8673_v38 = vrot.slane %v7998_v36, 2  ;;  %v7999_v18 = vadd.f32 %v7683_v53, %v6978_v30  ;;  %v6980_v24 = vadd.f32 %v6979_v22, %v17997_v13 }
 0x732   : > { %v9136_v28 = vadd.f32 %v15718_v33, %v8980_v12  ;;  %v8981_v32 = vadd.f32 %v8823_v17, %v17998_v45  ;;  %v6981_v61 = vpop.f32.mrf.mxu1  ;;  %v7687_v34 = vpop.f32.mrf.mxu0  ;;  %v18007_v17 = vld [vmem:[#allocation219_spill] sm:$0xff] }
 0x733   : > { %v8820_v20 = vsel %vm8757_vm1, %v8671_v27, %v8673_v38  ;;  %v8674_v31 = vrot.slane %v7999_v18, 2  ;;  %v8000_v9 = vadd.f32 %v7685_v2, %v6980_v24  ;;  %v6982_v35 = vadd.f32 %v6981_v61, %v17999_v25  ;;  %v18008_v61 = vld [vmem:[#allocation220_spill] sm:$0xff] }
 0x734   : > { %9280 = vst [vmem:[%s15735_s29 + $0x270] sm:$0xff] %v9136_v28  ;;  %v9137_v48 = vadd.f32 %v15724_v44, %v8981_v32  ;;  %v8982_v56 = vadd.f32 %v8820_v20, %v18000_v47  ;;  %v6985_v59 = vpop.f32.mrf.mxu1  ;;  %v7691_v14 = vpop.f32.mrf.mxu0  ;;  %v18009_v47 = vld [vmem:[#allocation17_spill] sm:$0xff] }
 0x735   : > { %v8821_v58 = vsel %vm8757_vm1, %v8672_v16, %v8674_v31  ;;  %v8675_v41 = vrot.slane %v8000_v9, 2  ;;  %v8001_v50 = vadd.f32 %v7687_v34, %v6982_v35  ;;  %v6986_v57 = vadd.f32 %v6985_v59, %v18001_v60  ;;  %v18010_v59 = vld [vmem:[#allocation221_spill] sm:$0xff] }
 0x736   : > { %9281 = vst [vmem:[%s15735_s29 + $0x278] sm:$0xff] %v9137_v48  ;;  %v9138_v42 = vadd.f32 %v15718_v33, %v8982_v56  ;;  %v8983_v52 = vadd.f32 %v8821_v58, %v18002_v43  ;;  %v6987_v15 = vpop.f32.mrf.mxu1  ;;  %v7693_v21 = vpop.f32.mrf.mxu0 }
 0x737   : > { %v8818_v4 = vsel %vm8757_vm1, %v8673_v38, %v8675_v41  ;;  %v8676_v26 = vrot.slane %v8001_v50, 2  ;;  %v6988_v19 = vadd.f32 %v6987_v15, %v18003_v37  ;;  %v8002_v53 = vadd.f32 %v7691_v14, %v6986_v57  ;;  %v18012_v15 = vld [vmem:[#allocation222_spill] sm:$0xff] }
 0x738   : > { %9282 = vst [vmem:[%s15735_s29 + $0x280] sm:$0xff] %v9138_v42  ;;  %v9139_v27 = vadd.f32 %v15724_v44, %v8983_v52  ;;  %v8984_v46 = vadd.f32 %v8818_v4, %v18004_v3  ;;  %v6989_v23 = vpop.f32.mrf.mxu1  ;;  %v7695_v8 = vpop.f32.mrf.mxu0  ;;  %v18011_v42 = vld [vmem:[#allocation18_spill] sm:$0xff]  ;;  %v18013_v3 = vld [vmem:[#allocation19_spill] sm:$0xff] }
 0x739   : > { %v8819_v6 = vsel %vm8757_vm1, %v8674_v31, %v8676_v26  ;;  %v6990_v16 = vadd.f32 %v6989_v23, %v18005_v11  ;;  %v8003_v62 = vadd.f32 %v7693_v21, %v6988_v19  ;;  %v8677_v28 = vrot.slane %v8002_v53, 2 }
 0x73a   : > { %9283 = vst [vmem:[%s15735_s29 + $0x288] sm:$0xff] %v9139_v27  ;;  %v9140_v36 = vadd.f32 %v15718_v33, %v8984_v46  ;;  %v8985_v30 = vadd.f32 %v8819_v6, %v18006_v5  ;;  %v6991_v12 = vpop.f32.mrf.mxu1  ;;  %v7697_v22 = vpop.f32.mrf.mxu0 }
 0x73b   : > { %v8004_v2 = vadd.f32 %v7695_v8, %v6990_v16  ;;  %v6992_v38 = vadd.f32 %v6991_v12, %v18007_v17  ;;  %v8678_v20 = vrot.slane %v8003_v62, 2  ;;  %v18014_v8 = vld [vmem:[#allocation223_spill] sm:$0xff] }
 0x73c   : > { %9284 = vst [vmem:[%s15735_s29 + $0x290] sm:$0xff] %v9140_v36  ;;  %v9141_v18 = vadd.f32 %v15724_v44, %v8985_v30  ;;  %v6995_v13 = vpop.f32.mrf.mxu1  ;;  %v7701_v24 = vpop.f32.mrf.mxu0  ;;  %v18015_v30 = vld [vmem:[#allocation20_spill] sm:$0xff] }
 0x73d   : > { %v8679_v45 = vrot.slane %v8004_v2, 2  ;;  %v8005_v32 = vadd.f32 %v7697_v22, %v6992_v38  ;;  %v6996_v34 = vadd.f32 %v6995_v13, %v18008_v61  ;;  %v18016_v22 = vld [vmem:[#allocation224_spill] sm:$0xff] }
 0x73e   : > { %9285 = vst [vmem:[%s15735_s29 + $0x298] sm:$0xff] %v9141_v18  ;;  %v6997_v31 = vpop.f32.mrf.mxu1  ;;  %v7703_v9 = vpop.f32.mrf.mxu0 }
 0x73f   : > { %v8816_v25 = vsel %vm8757_vm1, %v8677_v28, %v8679_v45  ;;  %v8680_v35 = vrot.slane %v8005_v32, 2  ;;  %v8006_v48 = vadd.f32 %v7701_v24, %v6996_v34  ;;  %v6998_v56 = vadd.f32 %v6997_v31, %v18009_v47  ;;  %v18017_v24 = vld [vmem:[#allocation21_spill] sm:$0xff]  ;;  %v18020_v47 = vld [vmem:[#allocation226_spill] sm:$0xff] }
 0x740   : > { %v8986_v14 = vadd.f32 %v8816_v25, %v18010_v59  ;;  %v6999_v58 = vpop.f32.mrf.mxu1  ;;  %v7705_v41 = vpop.f32.mrf.mxu0  ;;  %v18018_v32 = vld [vmem:[#allocation225_spill] sm:$0xff]  ;;  %v18019_v25 = vld [vmem:[#allocation23_spill] sm:$0xff] }
 0x741   : > { %v8817_v50 = vsel %vm8757_vm1, %v8678_v20, %v8680_v35  ;;  %v8681_v60 = vrot.slane %v8006_v48, 2  ;;  %v8007_v57 = vadd.f32 %v7703_v9, %v6998_v56  ;;  %v7000_v43 = vadd.f32 %v6999_v58, %v18011_v42 }
 0x742   : > { %v9142_v52 = vadd.f32 %v15718_v33, %v8986_v14  ;;  %v8987_v21 = vadd.f32 %v8817_v50, %v18012_v15  ;;  %v7001_v4 = vpop.f32.mrf.mxu1  ;;  %v7707_v26 = vpop.f32.mrf.mxu0  ;;  %v18021_v50 = vld [vmem:[#allocation227_spill] sm:$0xff] }
 0x743   : > { %v8814_v37 = vsel %vm8757_vm1, %v8679_v45, %v8681_v60  ;;  %v8682_v19 = vrot.slane %v8007_v57, 2  ;;  %v8008_v27 = vadd.f32 %v7705_v41, %v7000_v43  ;;  %v7002_v46 = vadd.f32 %v7001_v4, %v18013_v3  ;;  %v18022_v4 = vld [vmem:[#allocation228_spill] sm:$0xff] }
 0x744   : > { %9286 = vst [vmem:[%s15735_s29 + $0x2a0] sm:$0xff] %v9142_v52  ;;  %v9143_v23 = vadd.f32 %v15724_v44, %v8987_v21  ;;  %v8988_v6 = vadd.f32 %v8814_v37, %v18014_v8  ;;  %v7005_v53 = vpop.f32.mrf.mxu1  ;;  %v7711_v11 = vpop.f32.mrf.mxu0  ;;  %v18023_v8 = vld [vmem:[#allocation24_spill] sm:$0xff] }
 0x745   : > { %v8815_v16 = vsel %vm8757_vm1, %v8680_v35, %v8682_v19  ;;  %v8683_v36 = vrot.slane %v8008_v27, 2  ;;  %v8009_v5 = vadd.f32 %v7707_v26, %v7002_v46  ;;  %v7006_v62 = vadd.f32 %v7005_v53, %v18015_v30  ;;  %v18024_v53 = vld [vmem:[#allocation229_spill] sm:$0xff] }
 0x746   : > { %9287 = vst [vmem:[%s15735_s29 + $0x2a8] sm:$0xff] %v9143_v23  ;;  %v9144_v12 = vadd.f32 %v15718_v33, %v8988_v6  ;;  %v8989_v2 = vadd.f32 %v8815_v16, %v18016_v22  ;;  %v7007_v17 = vpop.f32.mrf.mxu1  ;;  %v7713_v38 = vpop.f32.mrf.mxu0 }
 0x747   : > { %v8812_v18 = vsel %vm8757_vm1, %v8681_v60, %v8683_v36  ;;  %v8684_v13 = vrot.slane %v8009_v5, 2  ;;  %v7008_v28 = vadd.f32 %v7007_v17, %v18017_v24  ;;  %v8010_v9 = vadd.f32 %v7711_v11, %v7006_v62  ;;  %v18026_v17 = vld [vmem:[#allocation230_spill] sm:$0xff] }
 0x748   : > { %9288 = vst [vmem:[%s15735_s29 + $0x2b0] sm:$0xff] %v9144_v12  ;;  %v9145_v45 = vadd.f32 %v15724_v44, %v8989_v2  ;;  %v8990_v61 = vadd.f32 %v8812_v18, %v18018_v32  ;;  %v7009_v34 = vpop.f32.mrf.mxu1  ;;  %v7715_v20 = vpop.f32.mrf.mxu0  ;;  %v18025_v12 = vld [vmem:[#allocation26_spill] sm:$0xff]  ;;  %v18027_v32 = vld [vmem:[#allocation28_spill] sm:$0xff] }
 0x749   : > { %v8813_v31 = vsel %vm8757_vm1, %v8682_v19, %v8684_v13  ;;  %v7010_v35 = vadd.f32 %v7009_v34, %v18019_v25  ;;  %v8011_v59 = vadd.f32 %v7713_v38, %v7008_v28  ;;  %v8685_v52 = vrot.slane %v8010_v9, 2 }
 0x74a   : > { %9289 = vst [vmem:[%s15735_s29 + $0x2b8] sm:$0xff] %v9145_v45  ;;  %v9146_v48 = vadd.f32 %v15718_v33, %v8990_v61  ;;  %v8991_v56 = vadd.f32 %v8813_v31, %v18020_v47  ;;  %v7011_v14 = vpop.f32.mrf.mxu1  ;;  %v7717_v58 = vpop.f32.mrf.mxu0 }
 0x74b   : > { %v8012_v41 = vadd.f32 %v7715_v20, %v7010_v35  ;;  %v7012_v60 = vadd.f32 %v7011_v14, %v18021_v50  ;;  %v8686_v37 = vrot.slane %v8011_v59, 2  ;;  %v18028_v20 = vld [vmem:[#allocation231_spill] sm:$0xff] }
 0x74c   : > { %9290 = vst [vmem:[%s15735_s29 + $0x2c0] sm:$0xff] %v9146_v48  ;;  %v9147_v57 = vadd.f32 %v15724_v44, %v8991_v56  ;;  %v7015_v42 = vpop.f32.mrf.mxu1  ;;  %v7721_v43 = vpop.f32.mrf.mxu0  ;;  %v18029_v56 = vld [vmem:[#allocation30_spill] sm:$0xff] }
 0x74d   : > { %v8687_v15 = vrot.slane %v8012_v41, 2  ;;  %v8013_v21 = vadd.f32 %v7717_v58, %v7012_v60  ;;  %v7016_v26 = vadd.f32 %v7015_v42, %v18022_v4  ;;  %v18030_v58 = vld [vmem:[#allocation232_spill] sm:$0xff] }
 0x74e   : > { %9291 = vst [vmem:[%s15735_s29 + $0x2c8] sm:$0xff] %v9147_v57  ;;  %v7017_v19 = vpop.f32.mrf.mxu1  ;;  %v7723_v27 = vpop.f32.mrf.mxu0 }
 0x74f   : > { %v8810_v3 = vsel %vm8757_vm1, %v8685_v52, %v8687_v15  ;;  %v8688_v46 = vrot.slane %v8013_v21, 2  ;;  %v8014_v23 = vadd.f32 %v7721_v43, %v7016_v26  ;;  %v7018_v6 = vadd.f32 %v7017_v19, %v18023_v8  ;;  %v18031_v43 = vld [vmem:[#allocation32_spill] sm:$0xff]  ;;  %v18032_v21 = vld [vmem:[#allocation233_spill] sm:$0xff]  ;;  %v18034_v8 = vld [vmem:[#allocation234_spill] sm:$0xff] }
 0x750   : > { %v8992_v11 = vadd.f32 %v8810_v3, %v18024_v53  ;;  %v7019_v16 = vpop.f32.mrf.mxu1  ;;  %v7725_v36 = vpop.f32.mrf.mxu0  ;;  %v18033_v3 = vld [vmem:[#allocation33_spill] sm:$0xff] }
 0x751   : > { %v8811_v5 = vsel %vm8757_vm1, %v8686_v37, %v8688_v46  ;;  %v8689_v30 = vrot.slane %v8014_v23, 2  ;;  %v8015_v62 = vadd.f32 %v7723_v27, %v7018_v6  ;;  %v7020_v22 = vadd.f32 %v7019_v16, %v18025_v12 }
 0x752   : > { %v9148_v2 = vadd.f32 %v15718_v33, %v8992_v11  ;;  %v8993_v38 = vadd.f32 %v8811_v5, %v18026_v17  ;;  %v7021_v18 = vpop.f32.mrf.mxu1  ;;  %v7727_v13 = vpop.f32.mrf.mxu0  ;;  %v18035_v5 = vld [vmem:[#allocation235_spill] sm:$0xff] }
 0x753   : > { %v8808_v24 = vsel %vm8757_vm1, %v8687_v15, %v8689_v30  ;;  %v8690_v28 = vrot.slane %v8015_v62, 2  ;;  %v8016_v45 = vadd.f32 %v7725_v36, %v7020_v22  ;;  %v7022_v61 = vadd.f32 %v7021_v18, %v18027_v32  ;;  %v18036_v18 = vld [vmem:[#allocation236_spill] sm:$0xff] }
 0x754   : > { %9292 = vst [vmem:[%s15735_s29 + $0x2d0] sm:$0xff] %v9148_v2  ;;  %v9149_v34 = vadd.f32 %v15724_v44, %v8993_v38  ;;  %v8994_v31 = vadd.f32 %v8808_v24, %v18028_v20  ;;  %v7025_v9 = vpop.f32.mrf.mxu1  ;;  %v7731_v25 = vpop.f32.mrf.mxu0  ;;  %v18037_v20 = vld [vmem:[#allocation34_spill] sm:$0xff] }
 0x755   : > { %v8809_v35 = vsel %vm8757_vm1, %v8688_v46, %v8690_v28  ;;  %v8691_v48 = vrot.slane %v8016_v45, 2  ;;  %v8017_v47 = vadd.f32 %v7727_v13, %v7022_v61  ;;  %v7026_v59 = vadd.f32 %v7025_v9, %v18029_v56  ;;  %v18038_v9 = vld [vmem:[#allocation237_spill] sm:$0xff] }
 0x756   : > { %9293 = vst [vmem:[%s15735_s29 + $0x2d8] sm:$0xff] %v9149_v34  ;;  %v9150_v14 = vadd.f32 %v15718_v33, %v8994_v31  ;;  %v8995_v41 = vadd.f32 %v8809_v35, %v18030_v58  ;;  %v7027_v50 = vpop.f32.mrf.mxu1  ;;  %v7733_v60 = vpop.f32.mrf.mxu0 }
 0x757   : > { %v8806_v57 = vsel %vm8757_vm1, %v8689_v30, %v8691_v48  ;;  %v8692_v42 = vrot.slane %v8017_v47, 2  ;;  %v7028_v52 = vadd.f32 %v7027_v50, %v18031_v43  ;;  %v8018_v27 = vadd.f32 %v7731_v25, %v7026_v59  ;;  %v18040_v50 = vld [vmem:[#allocation238_spill] sm:$0xff] }
 0x758   : > { %9294 = vst [vmem:[%s15735_s29 + $0x2e0] sm:$0xff] %v9150_v14  ;;  %v9151_v15 = vadd.f32 %v15724_v44, %v8995_v41  ;;  %v8996_v4 = vadd.f32 %v8806_v57, %v18032_v21  ;;  %v7029_v26 = vpop.f32.mrf.mxu1  ;;  %v7735_v37 = vpop.f32.mrf.mxu0  ;;  %v18039_v14 = vld [vmem:[#allocation35_spill] sm:$0xff]  ;;  %v18041_v21 = vld [vmem:[#allocation36_spill] sm:$0xff] }
 0x759   : > { %v8807_v19 = vsel %vm8757_vm1, %v8690_v28, %v8692_v42  ;;  %v7030_v46 = vadd.f32 %v7029_v26, %v18033_v3  ;;  %v8019_v53 = vadd.f32 %v7733_v60, %v7028_v52  ;;  %v8693_v2 = vrot.slane %v8018_v27, 2 }
 0x75a   : > { %9295 = vst [vmem:[%s15735_s29 + $0x2e8] sm:$0xff] %v9151_v15  ;;  %v9152_v23 = vadd.f32 %v15718_v33, %v8996_v4  ;;  %v8997_v6 = vadd.f32 %v8807_v19, %v18034_v8  ;;  %v7031_v11 = vpop.f32.mrf.mxu1  ;;  %v7737_v16 = vpop.f32.mrf.mxu0 }
 0x75b   : > { %v8020_v36 = vadd.f32 %v7735_v37, %v7030_v46  ;;  %v7032_v30 = vadd.f32 %v7031_v11, %v18035_v5  ;;  %v8694_v24 = vrot.slane %v8019_v53, 2  ;;  %v18042_v37 = vld [vmem:[#allocation239_spill] sm:$0xff] }
 0x75c   : > { %9296 = vst [vmem:[%s15735_s29 + $0x2f0] sm:$0xff] %v9152_v23  ;;  %v9153_v62 = vadd.f32 %v15724_v44, %v8997_v6  ;;  %v7035_v12 = vpop.f32.mrf.mxu1  ;;  %v7741_v22 = vpop.f32.mrf.mxu0  ;;  %v18043_v6 = vld [vmem:[#allocation37_spill] sm:$0xff] }
 0x75d   : > { %v8695_v17 = vrot.slane %v8020_v36, 2  ;;  %v8021_v38 = vadd.f32 %v7737_v16, %v7032_v30  ;;  %v7036_v13 = vadd.f32 %v7035_v12, %v18036_v18  ;;  %v18044_v16 = vld [vmem:[#allocation240_spill] sm:$0xff] }
 0x75e   : > { %9297 = vst [vmem:[%s15735_s29 + $0x2f8] sm:$0xff] %v9153_v62  ;;  %v7037_v28 = vpop.f32.mrf.mxu1  ;;  %v7743_v45 = vpop.f32.mrf.mxu0 }
 0x75f   : > { %v8804_v32 = vsel %vm8757_vm1, %v8693_v2, %v8695_v17  ;;  %v8696_v61 = vrot.slane %v8021_v38, 2  ;;  %v8022_v34 = vadd.f32 %v7741_v22, %v7036_v13  ;;  %v7038_v31 = vadd.f32 %v7037_v28, %v18037_v20  ;;  %v18045_v22 = vld [vmem:[#allocation38_spill] sm:$0xff]  ;;  %v18046_v38 = vld [vmem:[#allocation241_spill] sm:$0xff] }
 0x760   : > { %v8998_v25 = vadd.f32 %v8804_v32, %v18038_v9  ;;  %v7039_v35 = vpop.f32.mrf.mxu1  ;;  %v7745_v48 = vpop.f32.mrf.mxu0  ;;  %v18047_v32 = vld [vmem:[#allocation39_spill] sm:$0xff]  ;;  %v18048_v20 = vld [vmem:[#allocation242_spill] sm:$0xff] }
 0x761   : > { %v8805_v47 = vsel %vm8757_vm1, %v8694_v24, %v8696_v61  ;;  %v8697_v56 = vrot.slane %v8022_v34, 2  ;;  %v8023_v59 = vadd.f32 %v7743_v45, %v7038_v31  ;;  %v7040_v58 = vadd.f32 %v7039_v35, %v18039_v14 }
 0x762   : > { %v9154_v41 = vadd.f32 %v15718_v33, %v8998_v25  ;;  %v8999_v60 = vadd.f32 %v8805_v47, %v18040_v50  ;;  %v7041_v57 = vpop.f32.mrf.mxu1  ;;  %v7747_v42 = vpop.f32.mrf.mxu0  ;;  %v18049_v47 = vld [vmem:[#allocation243_spill] sm:$0xff] }
 0x763   : > { %v8802_v43 = vsel %vm8757_vm1, %v8695_v17, %v8697_v56  ;;  %v8698_v52 = vrot.slane %v8023_v59, 2  ;;  %v8024_v15 = vadd.f32 %v7745_v48, %v7040_v58  ;;  %v7042_v4 = vadd.f32 %v7041_v57, %v18041_v21  ;;  %v18050_v57 = vld [vmem:[#allocation244_spill] sm:$0xff] }
 0x764   : > { %9298 = vst [vmem:[%s15735_s29 + $0x300] sm:$0xff] %v9154_v41  ;;  %v9155_v26 = vadd.f32 %v15724_v44, %v8999_v60  ;;  %v9000_v19 = vadd.f32 %v8802_v43, %v18042_v37  ;;  %v7045_v27 = vpop.f32.mrf.mxu1  ;;  %v7751_v3 = vpop.f32.mrf.mxu0  ;;  %v18051_v37 = vld [vmem:[#allocation40_spill] sm:$0xff] }
 0x765   : > { %v8803_v46 = vsel %vm8757_vm1, %v8696_v61, %v8698_v52  ;;  %v8699_v23 = vrot.slane %v8024_v15, 2  ;;  %v8025_v8 = vadd.f32 %v7747_v42, %v7042_v4  ;;  %v7046_v53 = vadd.f32 %v7045_v27, %v18043_v6  ;;  %v18052_v27 = vld [vmem:[#allocation245_spill] sm:$0xff] }
 0x766   : > { %9299 = vst [vmem:[%s15735_s29 + $0x308] sm:$0xff] %v9155_v26  ;;  %v9156_v11 = vadd.f32 %v15718_v33, %v9000_v19  ;;  %v9001_v36 = vadd.f32 %v8803_v46, %v18044_v16  ;;  %v7047_v5 = vpop.f32.mrf.mxu1  ;;  %v7753_v30 = vpop.f32.mrf.mxu0 }
 0x767   : > { %v8800_v62 = vsel %vm8757_vm1, %v8697_v56, %v8699_v23  ;;  %v8700_v12 = vrot.slane %v8025_v8, 2  ;;  %v7048_v2 = vadd.f32 %v7047_v5, %v18045_v22  ;;  %v8026_v45 = vadd.f32 %v7751_v3, %v7046_v53  ;;  %v18054_v5 = vld [vmem:[#allocation246_spill] sm:$0xff] }
 0x768   : > { %9300 = vst [vmem:[%s15735_s29 + $0x310] sm:$0xff] %v9156_v11  ;;  %v9157_v17 = vadd.f32 %v15724_v44, %v9001_v36  ;;  %v9002_v18 = vadd.f32 %v8800_v62, %v18046_v38  ;;  %v7049_v13 = vpop.f32.mrf.mxu1  ;;  %v7755_v24 = vpop.f32.mrf.mxu0  ;;  %v18053_v11 = vld [vmem:[#allocation41_spill] sm:$0xff]  ;;  %v18055_v38 = vld [vmem:[#allocation42_spill] sm:$0xff] }
 0x769   : > { %v8801_v28 = vsel %vm8757_vm1, %v8698_v52, %v8700_v12  ;;  %v7050_v61 = vadd.f32 %v7049_v13, %v18047_v32  ;;  %v8027_v9 = vadd.f32 %v7753_v30, %v7048_v2  ;;  %v8701_v41 = vrot.slane %v8026_v45, 2 }
 0x76a   : > { %9301 = vst [vmem:[%s15735_s29 + $0x318] sm:$0xff] %v9157_v17  ;;  %v9158_v34 = vadd.f32 %v15718_v33, %v9002_v18  ;;  %v9003_v31 = vadd.f32 %v8801_v28, %v18048_v20  ;;  %v7051_v25 = vpop.f32.mrf.mxu1  ;;  %v7757_v35 = vpop.f32.mrf.mxu0 }
 0x76b   : > { %v8028_v48 = vadd.f32 %v7755_v24, %v7050_v61  ;;  %v7052_v56 = vadd.f32 %v7051_v25, %v18049_v47  ;;  %v8702_v43 = vrot.slane %v8027_v9, 2  ;;  %v18056_v24 = vld [vmem:[#allocation247_spill] sm:$0xff] }
 0x76c   : > { %9302 = vst [vmem:[%s15735_s29 + $0x320] sm:$0xff] %v9158_v34  ;;  %v9159_v59 = vadd.f32 %v15724_v44, %v9003_v31  ;;  %v7055_v14 = vpop.f32.mrf.mxu1  ;;  %v7761_v58 = vpop.f32.mrf.mxu0  ;;  %v18057_v31 = vld [vmem:[#allocation43_spill] sm:$0xff] }
 0x76d   : > { %v8703_v50 = vrot.slane %v8028_v48, 2  ;;  %v8029_v60 = vadd.f32 %v7757_v35, %v7052_v56  ;;  %v7056_v42 = vadd.f32 %v7055_v14, %v18050_v57  ;;  %v18058_v35 = vld [vmem:[#allocation248_spill] sm:$0xff] }
 0x76e   : > { %9303 = vst [vmem:[%s15735_s29 + $0x328] sm:$0xff] %v9159_v59  ;;  %v7057_v52 = vpop.f32.mrf.mxu1  ;;  %v7763_v15 = vpop.f32.mrf.mxu0 }
 0x76f   : > { %v8798_v21 = vsel %vm8757_vm1, %v8701_v41, %v8703_v50  ;;  %v8704_v4 = vrot.slane %v8029_v60, 2  ;;  %v8030_v26 = vadd.f32 %v7761_v58, %v7056_v42  ;;  %v7058_v19 = vadd.f32 %v7057_v52, %v18051_v37  ;;  %v18059_v58 = vld [vmem:[#allocation44_spill] sm:$0xff]  ;;  %v18060_v60 = vld [vmem:[#allocation249_spill] sm:$0xff]  ;;  %v18062_v37 = vld [vmem:[#allocation250_spill] sm:$0xff] }
 0x770   : > { %v9004_v3 = vadd.f32 %v8798_v21, %v18052_v27  ;;  %v7059_v46 = vpop.f32.mrf.mxu1  ;;  %v7765_v23 = vpop.f32.mrf.mxu0  ;;  %v18061_v21 = vld [vmem:[#allocation45_spill] sm:$0xff] }
 0x771   : > { %v8799_v8 = vsel %vm8757_vm1, %v8702_v43, %v8704_v4  ;;  %v8705_v6 = vrot.slane %v8030_v26, 2  ;;  %v8031_v53 = vadd.f32 %v7763_v15, %v7058_v19  ;;  %v7060_v16 = vadd.f32 %v7059_v46, %v18053_v11 }
 0x772   : > { %v9160_v36 = vadd.f32 %v15718_v33, %v9004_v3  ;;  %v9005_v30 = vadd.f32 %v8799_v8, %v18054_v5  ;;  %v7061_v62 = vpop.f32.mrf.mxu1  ;;  %v7767_v12 = vpop.f32.mrf.mxu0  ;;  %v18063_v8 = vld [vmem:[#allocation251_spill] sm:$0xff] }
 0x773   : > { %v8796_v22 = vsel %vm8757_vm1, %v8703_v50, %v8705_v6  ;;  %v8706_v2 = vrot.slane %v8031_v53, 2  ;;  %v8032_v17 = vadd.f32 %v7765_v23, %v7060_v16  ;;  %v7062_v18 = vadd.f32 %v7061_v62, %v18055_v38  ;;  %v18064_v62 = vld [vmem:[#allocation252_spill] sm:$0xff] }
 0x774   : > { %9304 = vst [vmem:[%s15735_s29 + $0x330] sm:$0xff] %v9160_v36  ;;  %v9161_v13 = vadd.f32 %v15724_v44, %v9005_v30  ;;  %v9006_v28 = vadd.f32 %v8796_v22, %v18056_v24  ;;  %v7065_v45 = vpop.f32.mrf.mxu1  ;;  %v7771_v32 = vpop.f32.mrf.mxu0  ;;  %v18065_v24 = vld [vmem:[#allocation46_spill] sm:$0xff] }
 0x775   : > { %v8797_v61 = vsel %vm8757_vm1, %v8704_v4, %v8706_v2  ;;  %v8707_v34 = vrot.slane %v8032_v17, 2  ;;  %v8033_v20 = vadd.f32 %v7767_v12, %v7062_v18  ;;  %v7066_v9 = vadd.f32 %v7065_v45, %v18057_v31  ;;  %v18066_v45 = vld [vmem:[#allocation253_spill] sm:$0xff] }
 0x776   : > { %9305 = vst [vmem:[%s15735_s29 + $0x338] sm:$0xff] %v9161_v13  ;;  %v9162_v25 = vadd.f32 %v15718_v33, %v9006_v28  ;;  %v9007_v48 = vadd.f32 %v8797_v61, %v18058_v35  ;;  %v7067_v47 = vpop.f32.mrf.mxu1  ;;  %v7773_v56 = vpop.f32.mrf.mxu0 }
 0x777   : > { %v8794_v59 = vsel %vm8757_vm1, %v8705_v6, %v8707_v34  ;;  %v8708_v14 = vrot.slane %v8033_v20, 2  ;;  %v7068_v41 = vadd.f32 %v7067_v47, %v18059_v58  ;;  %v8034_v15 = vadd.f32 %v7771_v32, %v7066_v9  ;;  %v18068_v47 = vld [vmem:[#allocation254_spill] sm:$0xff] }
 0x778   : > { %9306 = vst [vmem:[%s15735_s29 + $0x340] sm:$0xff] %v9162_v25  ;;  %v9163_v50 = vadd.f32 %v15724_v44, %v9007_v48  ;;  %v9008_v57 = vadd.f32 %v8794_v59, %v18060_v60  ;;  %v7069_v42 = vpop.f32.mrf.mxu1  ;;  %v7775_v43 = vpop.f32.mrf.mxu0  ;;  %v18067_v25 = vld [vmem:[#allocation48_spill] sm:$0xff]  ;;  %v18069_v60 = vld [vmem:[#allocation50_spill] sm:$0xff] }
 0x779   : > { %v8795_v52 = vsel %vm8757_vm1, %v8706_v2, %v8708_v14  ;;  %v7070_v4 = vadd.f32 %v7069_v42, %v18061_v21  ;;  %v8035_v27 = vadd.f32 %v7773_v56, %v7068_v41  ;;  %v8709_v36 = vrot.slane %v8034_v15, 2 }
 0x77a   : > { %9307 = vst [vmem:[%s15735_s29 + $0x348] sm:$0xff] %v9163_v50  ;;  %v9164_v26 = vadd.f32 %v15718_v33, %v9008_v57  ;;  %v9009_v19 = vadd.f32 %v8795_v52, %v18062_v37  ;;  %v7071_v3 = vpop.f32.mrf.mxu1  ;;  %v7777_v46 = vpop.f32.mrf.mxu0 }
 0x77b   : > { %v8036_v23 = vadd.f32 %v7775_v43, %v7070_v4  ;;  %v7072_v6 = vadd.f32 %v7071_v3, %v18063_v8  ;;  %v8710_v22 = vrot.slane %v8035_v27, 2  ;;  %v18070_v43 = vld [vmem:[#allocation255_spill] sm:$0xff] }
 0x77c   : > { %9308 = vst [vmem:[%s15735_s29 + $0x350] sm:$0xff] %v9164_v26  ;;  %v9165_v53 = vadd.f32 %v15724_v44, %v9009_v19  ;;  %v7075_v11 = vpop.f32.mrf.mxu1  ;;  %v7781_v16 = vpop.f32.mrf.mxu0  ;;  %v18071_v19 = vld [vmem:[#allocation52_spill] sm:$0xff] }
 0x77d   : > { %v8711_v5 = vrot.slane %v8036_v23, 2  ;;  %v8037_v30 = vadd.f32 %v7777_v46, %v7072_v6  ;;  %v7076_v12 = vadd.f32 %v7075_v11, %v18064_v62  ;;  %v18072_v46 = vld [vmem:[#allocation256_spill] sm:$0xff] }
 0x77e   : > { %9309 = vst [vmem:[%s15735_s29 + $0x358] sm:$0xff] %v9165_v53  ;;  %v7077_v2 = vpop.f32.mrf.mxu1  ;;  %v7783_v17 = vpop.f32.mrf.mxu0 }
 0x77f   : > { %v8792_v38 = vsel %vm8757_vm1, %v8709_v36, %v8711_v5  ;;  %v8712_v18 = vrot.slane %v8037_v30, 2  ;;  %v8038_v13 = vadd.f32 %v7781_v16, %v7076_v12  ;;  %v7078_v28 = vadd.f32 %v7077_v2, %v18065_v24  ;;  %v18073_v16 = vld [vmem:[#allocation54_spill] sm:$0xff]  ;;  %v18074_v30 = vld [vmem:[#allocation257_spill] sm:$0xff] }
 0x780   : > { %v9010_v32 = vadd.f32 %v8792_v38, %v18066_v45  ;;  %v7079_v61 = vpop.f32.mrf.mxu1  ;;  %v7785_v34 = vpop.f32.mrf.mxu0  ;;  %v18075_v38 = vld [vmem:[#allocation56_spill] sm:$0xff]  ;;  %v18076_v24 = vld [vmem:[#allocation258_spill] sm:$0xff] }
 0x781   : > { %v8793_v20 = vsel %vm8757_vm1, %v8710_v22, %v8712_v18  ;;  %v8713_v31 = vrot.slane %v8038_v13, 2  ;;  %v8039_v9 = vadd.f32 %v7783_v17, %v7078_v28  ;;  %v7080_v35 = vadd.f32 %v7079_v61, %v18067_v25 }
 0x782   : > { %v9166_v48 = vadd.f32 %v15718_v33, %v9010_v32  ;;  %v9011_v56 = vadd.f32 %v8793_v20, %v18068_v47  ;;  %v7081_v59 = vpop.f32.mrf.mxu1  ;;  %v7787_v14 = vpop.f32.mrf.mxu0  ;;  %v18077_v20 = vld [vmem:[#allocation259_spill] sm:$0xff] }
 0x783   : > { %v8790_v58 = vsel %vm8757_vm1, %v8711_v5, %v8713_v31  ;;  %v8714_v41 = vrot.slane %v8039_v9, 2  ;;  %v8040_v50 = vadd.f32 %v7785_v34, %v7080_v35  ;;  %v7082_v57 = vadd.f32 %v7081_v59, %v18069_v60  ;;  %v18078_v59 = vld [vmem:[#allocation260_spill] sm:$0xff] }
 0x784   : > { %9310 = vst [vmem:[%s15735_s29 + $0x360] sm:$0xff] %v9166_v48  ;;  %v9167_v42 = vadd.f32 %v15724_v44, %v9011_v56  ;;  %v9012_v52 = vadd.f32 %v8790_v58, %v18070_v43  ;;  %v7085_v15 = vpop.f32.mrf.mxu1  ;;  %v7791_v21 = vpop.f32.mrf.mxu0  ;;  %v18079_v43 = vld [vmem:[#allocation57_spill] sm:$0xff] }
 0x785   : > { %v8791_v4 = vsel %vm8757_vm1, %v8712_v18, %v8714_v41  ;;  %v8715_v26 = vrot.slane %v8040_v50, 2  ;;  %v8041_v37 = vadd.f32 %v7787_v14, %v7082_v57  ;;  %v7086_v27 = vadd.f32 %v7085_v15, %v18071_v19  ;;  %v18080_v15 = vld [vmem:[#allocation261_spill] sm:$0xff] }
 0x786   : > { %9311 = vst [vmem:[%s15735_s29 + $0x368] sm:$0xff] %v9167_v42  ;;  %v9168_v3 = vadd.f32 %v15718_v33, %v9012_v52  ;;  %v9013_v23 = vadd.f32 %v8791_v4, %v18072_v46  ;;  %v7087_v8 = vpop.f32.mrf.mxu1  ;;  %v7793_v6 = vpop.f32.mrf.mxu0 }
 0x787   : > { %v8788_v53 = vsel %vm8757_vm1, %v8713_v31, %v8715_v26  ;;  %v8716_v11 = vrot.slane %v8041_v37, 2  ;;  %v7088_v36 = vadd.f32 %v7087_v8, %v18073_v16  ;;  %v8042_v17 = vadd.f32 %v7791_v21, %v7086_v27  ;;  %v18082_v8 = vld [vmem:[#allocation262_spill] sm:$0xff] }
 0x788   : > { %9312 = vst [vmem:[%s15735_s29 + $0x370] sm:$0xff] %v9168_v3  ;;  %v9169_v5 = vadd.f32 %v15724_v44, %v9013_v23  ;;  %v9014_v62 = vadd.f32 %v8788_v53, %v18074_v30  ;;  %v7089_v12 = vpop.f32.mrf.mxu1  ;;  %v7795_v22 = vpop.f32.mrf.mxu0  ;;  %v18081_v3 = vld [vmem:[#allocation58_spill] sm:$0xff]  ;;  %v18083_v30 = vld [vmem:[#allocation60_spill] sm:$0xff] }
 0x789   : > { %v8789_v2 = vsel %vm8757_vm1, %v8714_v41, %v8716_v11  ;;  %v7090_v18 = vadd.f32 %v7089_v12, %v18075_v38  ;;  %v8043_v45 = vadd.f32 %v7793_v6, %v7088_v36  ;;  %v8717_v48 = vrot.slane %v8042_v17, 2 }
 0x78a   : > { %9313 = vst [vmem:[%s15735_s29 + $0x378] sm:$0xff] %v9169_v5  ;;  %v9170_v13 = vadd.f32 %v15718_v33, %v9014_v62  ;;  %v9015_v28 = vadd.f32 %v8789_v2, %v18076_v24  ;;  %v7091_v32 = vpop.f32.mrf.mxu1  ;;  %v7797_v61 = vpop.f32.mrf.mxu0 }
 0x78b   : > { %v8044_v34 = vadd.f32 %v7795_v22, %v7090_v18  ;;  %v7092_v31 = vadd.f32 %v7091_v32, %v18077_v20  ;;  %v8718_v58 = vrot.slane %v8043_v45, 2  ;;  %v18084_v22 = vld [vmem:[#allocation263_spill] sm:$0xff] }
 0x78c   : > { %9314 = vst [vmem:[%s15735_s29 + $0x380] sm:$0xff] %v9170_v13  ;;  %v9171_v9 = vadd.f32 %v15724_v44, %v9015_v28  ;;  %v7095_v25 = vpop.f32.mrf.mxu1  ;;  %v7801_v35 = vpop.f32.mrf.mxu0  ;;  %v18085_v28 = vld [vmem:[#allocation62_spill] sm:$0xff] }
 0x78d   : > { %v8719_v47 = vrot.slane %v8044_v34, 2  ;;  %v8045_v56 = vadd.f32 %v7797_v61, %v7092_v31  ;;  %v7096_v14 = vadd.f32 %v7095_v25, %v18078_v59  ;;  %v18086_v61 = vld [vmem:[#allocation264_spill] sm:$0xff] }
 0x78e   : > { %9315 = vst [vmem:[%s15735_s29 + $0x388] sm:$0xff] %v9171_v9  ;;  %v7097_v41 = vpop.f32.mrf.mxu1  ;;  %v7803_v50 = vpop.f32.mrf.mxu0 }
 0x78f   : > { %v8786_v60 = vsel %vm8757_vm1, %v8717_v48, %v8719_v47  ;;  %v8720_v57 = vrot.slane %v8045_v56, 2  ;;  %v8046_v42 = vadd.f32 %v7801_v35, %v7096_v14  ;;  %v7098_v52 = vadd.f32 %v7097_v41, %v18079_v43  ;;  %v18087_v35 = vld [vmem:[#allocation64_spill] sm:$0xff]  ;;  %v18088_v56 = vld [vmem:[#allocation265_spill] sm:$0xff] }
 0x790   : > { %v9016_v21 = vadd.f32 %v8786_v60, %v18080_v15  ;;  %v7099_v4 = vpop.f32.mrf.mxu1  ;;  %v7805_v26 = vpop.f32.mrf.mxu0 }
 0x791   : > { %v8787_v37 = vsel %vm8757_vm1, %v8718_v58, %v8720_v57  ;;  %v8721_v19 = vrot.slane %v8046_v42, 2  ;;  %v8047_v27 = vadd.f32 %v7803_v50, %v7098_v52  ;;  %v7100_v46 = vadd.f32 %v7099_v4, %v18081_v3  ;;  %v18089_v42 = vld [vmem:[#allocation266_spill] sm:$0xff] }
 0x792   : > { %v9172_v23 = vadd.f32 %v15718_v33, %v9016_v21  ;;  %v9017_v6 = vadd.f32 %v8787_v37, %v18082_v8  ;;  %v7101_v53 = vpop.f32.mrf.mxu1  ;;  %v7807_v11 = vpop.f32.mrf.mxu0  ;;  %v18091_v8 = vld [vmem:[#allocation267_spill] sm:$0xff] }
 0x793   : > { %v8784_v16 = vsel %vm8757_vm1, %v8719_v47, %v8721_v19  ;;  %v8722_v36 = vrot.slane %v8047_v27, 2  ;;  %v8048_v5 = vadd.f32 %v7805_v26, %v7100_v46  ;;  %v7102_v62 = vadd.f32 %v7101_v53, %v18083_v30  ;;  %v18090_v26 = vld [vmem:[#allocation65_spill] sm:$0xff] }
 0x794   : > { %9316 = vst [vmem:[%s15735_s29 + $0x390] sm:$0xff] %v9172_v23  ;;  %v9173_v12 = vadd.f32 %v15724_v44, %v9017_v6  ;;  %v9018_v2 = vadd.f32 %v8784_v16, %v18084_v22  ;;  %v7105_v17 = vpop.f32.mrf.mxu1  ;;  %v7811_v38 = vpop.f32.mrf.mxu0  ;;  %v18093_v22 = vld [vmem:[#allocation268_spill] sm:$0xff] }
 0x795   : > { %v8785_v18 = vsel %vm8757_vm1, %v8720_v57, %v8722_v36  ;;  %v8723_v13 = vrot.slane %v8048_v5, 2  ;;  %v8049_v24 = vadd.f32 %v7807_v11, %v7102_v62  ;;  %v7106_v45 = vadd.f32 %v7105_v17, %v18085_v28  ;;  %v18092_v62 = vld [vmem:[#allocation269_spill] sm:$0xff]  ;;  %v18094_v28 = vld [vmem:[#allocation270_spill] sm:$0xff] }
 0x796   : > { %9317 = vst [vmem:[%s15735_s29 + $0x398] sm:$0xff] %v9173_v12  ;;  %v9174_v32 = vadd.f32 %v15718_v33, %v9018_v2  ;;  %v9019_v34 = vadd.f32 %v8785_v18, %v18086_v61  ;;  %v7107_v20 = vpop.f32.mrf.mxu1  ;;  %v7813_v31 = vpop.f32.mrf.mxu0  ;;  %v18095_v61 = vld [vmem:[#allocation66_spill] sm:$0xff] }
 0x797   : > { %v8782_v9 = vsel %vm8757_vm1, %v8721_v19, %v8723_v13  ;;  %v8724_v25 = vrot.slane %v8049_v24, 2  ;;  %v7108_v48 = vadd.f32 %v7107_v20, %v18087_v35  ;;  %v8050_v50 = vadd.f32 %v7811_v38, %v7106_v45 }
 0x798   : > { %9318 = vst [vmem:[%s15735_s29 + $0x3a0] sm:$0xff] %v9174_v32  ;;  %v9175_v47 = vadd.f32 %v15724_v44, %v9019_v34  ;;  %v9020_v59 = vadd.f32 %v8782_v9, %v18088_v56  ;;  %v7109_v14 = vpop.f32.mrf.mxu1  ;;  %v7815_v58 = vpop.f32.mrf.mxu0 }
 0x799   : > { %v8783_v41 = vsel %vm8757_vm1, %v8722_v36, %v8724_v25  ;;  %v7110_v60 = vadd.f32 %v7109_v14, %v15429_v55  ;;  %v8051_v52 = vadd.f32 %v7813_v31, %v7108_v48  ;;  %v8725_v46 = vrot.slane %v8050_v50, 2  ;;  %v18096_v48 = vld [vmem:[#allocation271_spill] sm:$0xff] }
 0x79a   : > { %9319 = vst [vmem:[%s15735_s29 + $0x3a8] sm:$0xff] %v9175_v47  ;;  %v9176_v57 = vadd.f32 %v15718_v33, %v9020_v59  ;;  %v9021_v43 = vadd.f32 %v8783_v41, %v18089_v42  ;;  %v7111_v15 = vpop.f32.mrf.mxu1  ;;  %v7817_v21 = vpop.f32.mrf.mxu0  ;;  %v18097_v59 = vld [vmem:[#allocation67_spill] sm:$0xff]  ;;  %v18098_v42 = vld [vmem:[#allocation272_spill] sm:$0xff] }
 0x79b   : > { %v8052_v4 = vadd.f32 %v7815_v58, %v7110_v60  ;;  %v7112_v37 = vadd.f32 %v7111_v15, %v18090_v26  ;;  %v8726_v53 = vrot.slane %v8051_v52, 2  ;;  %v18099_v15 = vld [vmem:[#allocation68_spill] sm:$0xff] }
 0x79c   : > { %9320 = vst [vmem:[%s15735_s29 + $0x3b0] sm:$0xff] %v9176_v57  ;;  %v9177_v19 = vadd.f32 %v15724_v44, %v9021_v43  ;;  %v7115_v27 = vpop.f32.mrf.mxu1  ;;  %v7821_v3 = vpop.f32.mrf.mxu0 }
 0x79d   : > { %v8727_v23 = vrot.slane %v8052_v4, 2  ;;  %v8053_v55 = vadd.f32 %v7817_v21, %v7112_v37  ;;  %v7116_v6 = vadd.f32 %v7115_v27, %v18091_v8  ;;  %v18100_v27 = vld [vmem:[#allocation273_spill] sm:$0xff] }
 0x79e   : > { %9321 = vst [vmem:[%s15735_s29 + $0x3b8] sm:$0xff] %v9177_v19  ;;  %v7117_v11 = vpop.f32.mrf.mxu1  ;;  %v7823_v16 = vpop.f32.mrf.mxu0 }
 0x79f   : > { %v8780_v36 = vsel %vm8757_vm1, %v8725_v46, %v8727_v23  ;;  %v8728_v5 = vrot.slane %v8053_v55, 2  ;;  %v8054_v30 = vadd.f32 %v7821_v3, %v7116_v6  ;;  %v7118_v12 = vadd.f32 %v7117_v11, %v18092_v62 }
 0x7a0   : > { %v9022_v2 = vadd.f32 %v8780_v36, %v18093_v22  ;;  %v7119_v17 = vpop.f32.mrf.mxu1  ;;  %v7825_v38 = vpop.f32.mrf.mxu0 }
 0x7a1   : > { %v8781_v18 = vsel %vm8757_vm1, %v8726_v53, %v8728_v5  ;;  %v8729_v13 = vrot.slane %v8054_v30, 2  ;;  %v8055_v24 = vadd.f32 %v7823_v16, %v7118_v12  ;;  %v7120_v45 = vadd.f32 %v7119_v17, %v18094_v28  ;;  %v18102_v16 = vld [vmem:[#allocation73_spill] sm:$0xff]  ;;  %v18103_v30 = vld [vmem:[#allocation71_spill] sm:$0xff] }
 0x7a2   : > { %v9178_v32 = vadd.f32 %v15718_v33, %v9022_v2  ;;  %v9023_v34 = vadd.f32 %v8781_v18, %v18095_v61  ;;  %v7121_v20 = vpop.f32.mrf.mxu1  ;;  %v7827_v31 = vpop.f32.mrf.mxu0 }
 0x7a3   : > { %v8778_v9 = vsel %vm8757_vm1, %v8727_v23, %v8729_v13  ;;  %v8730_v25 = vrot.slane %v8055_v24, 2  ;;  %v8056_v35 = vadd.f32 %v7825_v38, %v7120_v45  ;;  %v7122_v47 = vadd.f32 %v7121_v20, %v18096_v48  ;;  %v18101_v23 = vld [vmem:[#allocation69_spill] sm:$0xff]  ;;  %v18104_v38 = vld [vmem:[#allocation274_spill] sm:$0xff] }
 0x7a4   : > { %9322 = vst [vmem:[%s15735_s29 + $0x3c0] sm:$0xff] %v9178_v32  ;;  %v9179_v56 = vadd.f32 %v15724_v44, %v9023_v34  ;;  %v9024_v14 = vadd.f32 %v8778_v9, %v18097_v59  ;;  %v7125_v58 = vpop.f32.mrf.mxu1  ;;  %v7831_v41 = vpop.f32.mrf.mxu0  ;;  %v18105_v34 = vld [vmem:[#allocation275_spill] sm:$0xff] }
 0x7a5   : > { %v8779_v50 = vsel %vm8757_vm1, %v8728_v5, %v8730_v25  ;;  %v8731_v60 = vrot.slane %v8056_v35, 2  ;;  %v8057_v57 = vadd.f32 %v7827_v31, %v7122_v47  ;;  %v7126_v43 = vadd.f32 %v7125_v58, %v18098_v42 }
 0x7a6   : > { %9323 = vst [vmem:[%s15735_s29 + $0x3c8] sm:$0xff] %v9179_v56  ;;  %v9180_v52 = vadd.f32 %v15718_v33, %v9024_v14  ;;  %v9025_v21 = vadd.f32 %v8779_v50, %v18099_v15  ;;  %v7127_v4 = vpop.f32.mrf.mxu1  ;;  %v7833_v26 = vpop.f32.mrf.mxu0  ;;  %v18106_v56 = vld [vmem:[#allocation74_spill] sm:$0xff]  ;;  %v18107_v14 = vld [vmem:[#allocation276_spill] sm:$0xff] }
 0x7a7   : > { %v8776_v37 = vsel %vm8757_vm1, %v8729_v13, %v8731_v60  ;;  %v8732_v19 = vrot.slane %v8057_v57, 2  ;;  %v7128_v3 = vadd.f32 %v7127_v4, %v18100_v27  ;;  %v8058_v11 = vadd.f32 %v7831_v41, %v7126_v43  ;;  %v18108_v43 = vld [vmem:[#allocation75_spill] sm:$0xff] }
 0x7a8   : > { %9324 = vst [vmem:[%s15735_s29 + $0x3d0] sm:$0xff] %v9180_v52  ;;  %v9181_v46 = vadd.f32 %v15724_v44, %v9025_v21  ;;  %v9026_v55 = vadd.f32 %v8776_v37, %v18101_v23  ;;  %v7129_v8 = vpop.f32.mrf.mxu1  ;;  %v7835_v6 = vpop.f32.mrf.mxu0  ;;  %v18109_v21 = vld [vmem:[#allocation277_spill] sm:$0xff] }
 0x7a9   : > { %v8777_v53 = vsel %vm8757_vm1, %v8730_v25, %v8732_v19  ;;  %v7130_v36 = vadd.f32 %v7129_v8, %v18102_v16  ;;  %v8059_v12 = vadd.f32 %v7833_v26, %v7128_v3  ;;  %v8733_v45 = vrot.slane %v8058_v11, 2  ;;  %v18111_v8 = vld [vmem:[#allocation278_spill] sm:$0xff] }
 0x7aa   : > { %9325 = vst [vmem:[%s15735_s29 + $0x3d8] sm:$0xff] %v9181_v46  ;;  %v9182_v5 = vadd.f32 %v15718_v33, %v9026_v55  ;;  %v9027_v62 = vadd.f32 %v8777_v53, %v18103_v30  ;;  %v7131_v22 = vpop.f32.mrf.mxu1  ;;  %v7837_v2 = vpop.f32.mrf.mxu0  ;;  %v18110_v46 = vld [vmem:[#allocation76_spill] sm:$0xff]  ;;  %v18112_v30 = vld [vmem:[#allocation77_spill] sm:$0xff] }
 0x7ab   : > { %v8060_v17 = vadd.f32 %v7835_v6, %v7130_v36  ;;  %v7132_v18 = vadd.f32 %v7131_v22, %v18104_v38  ;;  %v8734_v31 = vrot.slane %v8059_v12, 2  ;;  %v18113_v22 = vld [vmem:[#allocation279_spill] sm:$0xff] }
 0x7ac   : > { %9326 = vst [vmem:[%s15735_s29 + $0x3e0] sm:$0xff] %v9182_v5  ;;  %v9183_v13 = vadd.f32 %v15724_v44, %v9027_v62  ;;  %v7135_v24 = vpop.f32.mrf.mxu1  ;;  %v7841_v28 = vpop.f32.mrf.mxu0 }
 0x7ad   : > { %v8735_v32 = vrot.slane %v8060_v17, 2  ;;  %v8061_v61 = vadd.f32 %v7837_v2, %v7132_v18  ;;  %v7136_v20 = vadd.f32 %v7135_v24, %v18105_v34  ;;  %v18114_v24 = vld [vmem:[#allocation79_spill] sm:$0xff] }
 0x7ae   : > { %9327 = vst [vmem:[%s15735_s29 + $0x3e8] sm:$0xff] %v9183_v13  ;;  %v7137_v9 = vpop.f32.mrf.mxu1  ;;  %v7843_v25 = vpop.f32.mrf.mxu0 }
 0x7af   : > { %v8774_v35 = vsel %vm8757_vm1, %v8733_v45, %v8735_v32  ;;  %v8736_v48 = vrot.slane %v8061_v61, 2  ;;  %v8062_v47 = vadd.f32 %v7841_v28, %v7136_v20  ;;  %v7138_v59 = vadd.f32 %v7137_v9, %v18106_v56 }
 0x7b0   : > { %v9028_v58 = vadd.f32 %v8774_v35, %v18107_v14  ;;  %v7139_v41 = vpop.f32.mrf.mxu1  ;;  %v7845_v50 = vpop.f32.mrf.mxu0 }
 0x7b1   : > { %v8775_v60 = vsel %vm8757_vm1, %v8734_v31, %v8736_v48  ;;  %v8737_v57 = vrot.slane %v8062_v47, 2  ;;  %v8063_v42 = vadd.f32 %v7843_v25, %v7138_v59  ;;  %v7140_v52 = vadd.f32 %v7139_v41, %v18108_v43 }
 0x7b2   : > { %v9184_v15 = vadd.f32 %v15718_v33, %v9028_v58  ;;  %v9029_v4 = vadd.f32 %v8775_v60, %v18109_v21  ;;  %v7141_v26 = vpop.f32.mrf.mxu1  ;;  %v7847_v37 = vpop.f32.mrf.mxu0 }
 0x7b3   : > { %v8772_v19 = vsel %vm8757_vm1, %v8735_v32, %v8737_v57  ;;  %v8738_v27 = vrot.slane %v8063_v42, 2  ;;  %v8064_v3 = vadd.f32 %v7845_v50, %v7140_v52  ;;  %v7142_v23 = vadd.f32 %v7141_v26, %v18110_v46  ;;  %v18115_v32 = vld [vmem:[#allocation280_spill] sm:$0xff] }
 0x7b4   : > { %9328 = vst [vmem:[%s15735_s29 + $0x3f0] sm:$0xff] %v9184_v15  ;;  %v9185_v55 = vadd.f32 %v15724_v44, %v9029_v4  ;;  %v9030_v6 = vadd.f32 %v8772_v19, %v18111_v8  ;;  %v7145_v53 = vpop.f32.mrf.mxu1  ;;  %v7851_v11 = vpop.f32.mrf.mxu0 }
 0x7b5   : > { %v8773_v16 = vsel %vm8757_vm1, %v8736_v48, %v8738_v27  ;;  %v8739_v36 = vrot.slane %v8064_v3, 2  ;;  %v8065_v5 = vadd.f32 %v7847_v37, %v7142_v23  ;;  %v7146_v62 = vadd.f32 %v7145_v53, %v18112_v30  ;;  %v18116_v37 = vld [vmem:[#allocation281_spill] sm:$0xff]  ;;  %v18118_v53 = vld [vmem:[#allocation80_spill] sm:$0xff] }
 0x7b6   : > { %9329 = vst [vmem:[%s15735_s29 + $0x3f8] sm:$0xff] %v9185_v55  ;;  %v9186_v12 = vadd.f32 %v15718_v33, %v9030_v6  ;;  %v9031_v2 = vadd.f32 %v8773_v16, %v18113_v22  ;;  %v7147_v17 = vpop.f32.mrf.mxu1  ;;  %v7853_v38 = vpop.f32.mrf.mxu0  ;;  %v18117_v55 = vld [vmem:[#allocation282_spill] sm:$0xff] }
 0x7b7   : > { %v8770_v18 = vsel %vm8757_vm1, %v8737_v57, %v8739_v36  ;;  %v8740_v13 = vrot.slane %v8065_v5, 2  ;;  %v7148_v28 = vadd.f32 %v7147_v17, %v18114_v24  ;;  %v8066_v9 = vadd.f32 %v7851_v11, %v7146_v62  ;;  %v18119_v24 = vld [vmem:[#allocation82_spill] sm:$0xff] }
 0x7b8   : > { %9330 = vst [vmem:[%s15735_s29 + $0x400] sm:$0xff] %v9186_v12  ;;  %v9187_v45 = vadd.f32 %v15724_v44, %v9031_v2  ;;  %v9032_v61 = vadd.f32 %v8770_v18, %v18115_v32  ;;  %v7149_v34 = vpop.f32.mrf.mxu1  ;;  %v7855_v20 = vpop.f32.mrf.mxu0 }
 0x7b9   : > { %v8771_v31 = vsel %vm8757_vm1, %v8738_v27, %v8740_v13  ;;  %v7150_v25 = vadd.f32 %v7149_v34, %v15577_v63  ;;  %v8067_v47 = vadd.f32 %v7853_v38, %v7148_v28  ;;  %v8741_v57 = vrot.slane %v8066_v9, 2 }
 0x7ba   : > { %9331 = vst [vmem:[%s15735_s29 + $0x408] sm:$0xff] %v9187_v45  ;;  %v9188_v35 = vadd.f32 %v15718_v33, %v9032_v61  ;;  %v9033_v48 = vadd.f32 %v8771_v31, %v15575_v40  ;;  %v7151_v56 = vpop.f32.mrf.mxu1  ;;  %v7857_v59 = vpop.f32.mrf.mxu0  ;;  %v18121_v31 = vld [vmem:[#allocation86_spill] sm:$0xff] }
 0x7bb   : > { %v8068_v14 = vadd.f32 %v7855_v20, %v7150_v25  ;;  %v7152_v58 = vadd.f32 %v7151_v56, %v15580_v0  ;;  %v8742_v52 = vrot.slane %v8067_v47, 2 }
 0x7bc   : > { %9332 = vst [vmem:[%s15735_s29 + $0x410] sm:$0xff] %v9188_v35  ;;  %v9189_v41 = vadd.f32 %v15724_v44, %v9033_v48  ;;  %v7155_v50 = vpop.f32.mrf.mxu1  ;;  %v7861_v60 = vpop.f32.mrf.mxu0  ;;  %v18122_v35 = vld [vmem:[#allocation84_spill] sm:$0xff] }
 0x7bd   : > { %v8743_v42 = vrot.slane %v8068_v14, 2  ;;  %v8069_v63 = vadd.f32 %v7857_v59, %v7152_v58  ;;  %v7156_v43 = vadd.f32 %v7155_v50, %v15583_v7 }
 0x7be   : > { %9333 = vst [vmem:[%s15735_s29 + $0x418] sm:$0xff] %v9189_v41  ;;  %v7157_v15 = vpop.f32.mrf.mxu1  ;;  %v7863_v40 = vpop.f32.mrf.mxu0 }
 0x7bf   : > { %v8768_v21 = vsel %vm8757_vm1, %v8741_v57, %v8743_v42  ;;  %v8744_v4 = vrot.slane %v8069_v63, 2  ;;  %v8070_v26 = vadd.f32 %v7861_v60, %v7156_v43  ;;  %v7158_v0 = vadd.f32 %v7157_v15, %v15598_v1 }
 0x7c0   : > { %v9034_v19 = vadd.f32 %v8768_v21, %v18116_v37  ;;  %v7159_v27 = vpop.f32.mrf.mxu1  ;;  %v7865_v3 = vpop.f32.mrf.mxu0 }
 0x7c1   : > { %v8769_v46 = vsel %vm8757_vm1, %v8742_v52, %v8744_v4  ;;  %v8745_v7 = vrot.slane %v8070_v26, 2  ;;  %v8071_v23 = vadd.f32 %v7863_v40, %v7158_v0  ;;  %v7160_v8 = vadd.f32 %v7159_v27, %v18117_v55  ;;  %v18123_v26 = vld [vmem:[#allocation284_spill] sm:$0xff] }
 0x7c2   : > { %v9190_v6 = vadd.f32 %v15718_v33, %v9034_v19  ;;  %v9035_v11 = vadd.f32 %v8769_v46, %v18118_v53  ;;  %v7161_v16 = vpop.f32.mrf.mxu1  ;;  %v7867_v36 = vpop.f32.mrf.mxu0 }
 0x7c3   : > { %v8766_v1 = vsel %vm8757_vm1, %v8743_v42, %v8745_v7  ;;  %v8746_v5 = vrot.slane %v8071_v23, 2  ;;  %v8072_v30 = vadd.f32 %v7865_v3, %v7160_v8  ;;  %v7162_v62 = vadd.f32 %v7161_v16, %v15614_v29  ;;  %v18120_v29 = vld [vmem:[#allocation283_spill] sm:$0xff]  ;;  %v18125_v23 = vld [vmem:[#allocation88_spill] sm:$0xff] }
 0x7c4   : > { %9334 = vst [vmem:[%s15735_s29 + $0x420] sm:$0xff] %v9190_v6  ;;  %v9191_v12 = vadd.f32 %v15724_v44, %v9035_v11  ;;  %v9036_v22 = vadd.f32 %v8766_v1, %v15612_v51  ;;  %v7165_v2 = vpop.f32.mrf.mxu1  ;;  %v7871_v17 = vpop.f32.mrf.mxu0 }
 0x7c5   : > { %v8767_v38 = vsel %vm8757_vm1, %v8744_v4, %v8746_v5  ;;  %v8747_v18 = vrot.slane %v8072_v30, 2  ;;  %v8073_v13 = vadd.f32 %v7867_v36, %v7162_v62  ;;  %v7166_v28 = vadd.f32 %v7165_v2, %v18119_v24  ;;  %v18126_v36 = vld [vmem:[#allocation91_spill] sm:$0xff]  ;;  %v18127_v30 = vld [vmem:[#allocation285_spill] sm:$0xff]  ;;  %v18129_v24 = vld [vmem:[#allocation286_spill] sm:$0xff] }
 0x7c6   : > { %9335 = vst [vmem:[%s15735_s29 + $0x428] sm:$0xff] %v9191_v12  ;;  %v9192_v45 = vadd.f32 %v15718_v33, %v9036_v22  ;;  %v9037_v32 = vadd.f32 %v8767_v38, %v18120_v29  ;;  %v7167_v61 = vpop.f32.mrf.mxu1  ;;  %v7873_v34 = vpop.f32.mrf.mxu0  ;;  %v18128_v38 = vld [vmem:[#allocation287_spill] sm:$0xff] }
 0x7c7   : > { %v8764_v51 = vsel %vm8757_vm1, %v8745_v7, %v8747_v18  ;;  %v8748_v20 = vrot.slane %v8073_v13, 2  ;;  %v7168_v9 = vadd.f32 %v7167_v61, %v18121_v31  ;;  %v8074_v14 = vadd.f32 %v7871_v17, %v7166_v28 }
 0x7c8   : > { %9336 = vst [vmem:[%s15735_s29 + $0x430] sm:$0xff] %v9192_v45  ;;  %v9193_v25 = vadd.f32 %v15724_v44, %v9037_v32  ;;  %v9038_v48 = vadd.f32 %v8764_v51, %v18122_v35  ;;  %v7169_v47 = vpop.f32.mrf.mxu1  ;;  %v7875_v56 = vpop.f32.mrf.mxu0  ;;  %v18130_v51 = vld [vmem:[#allocation288_spill] sm:$0xff] }
 0x7c9   : > { %v8765_v59 = vsel %vm8757_vm1, %v8746_v5, %v8748_v20  ;;  %v7170_v58 = vadd.f32 %v7169_v47, %v15642_v39  ;;  %v8075_v60 = vadd.f32 %v7873_v34, %v7168_v9  ;;  %v8749_v21 = vrot.slane %v8074_v14, 2  ;;  %v18131_v35 = vld [vmem:[#allocation92_spill] sm:$0xff] }
 0x7ca   : > { %9337 = vst [vmem:[%s15735_s29 + $0x438] sm:$0xff] %v9193_v25  ;;  %v9194_v41 = vadd.f32 %v15718_v33, %v9038_v48  ;;  %v9039_v50 = vadd.f32 %v8765_v59, %v15640_v10  ;;  %v7171_v57 = vpop.f32.mrf.mxu1  ;;  %v7877_v42 = vpop.f32.mrf.mxu0  ;;  %v18132_v59 = vld [vmem:[#allocation289_spill] sm:$0xff] }
 0x7cb   : > { %v8076_v63 = vadd.f32 %v7875_v56, %v7170_v58  ;;  %v7172_v43 = vadd.f32 %v7171_v57, %v15645_v54  ;;  %v8750_v37 = vrot.slane %v8075_v60, 2  ;;  %v18124_v54 = vld [vmem:[#allocation90_spill] sm:$0xff] }
 0x7cc   : > { %9338 = vst [vmem:[%s15735_s29 + $0x440] sm:$0xff] %v9194_v41  ;;  %v9195_v52 = vadd.f32 %v15724_v44, %v9039_v50  ;;  %v7175_v15 = vpop.f32.mrf.mxu1  ;;  %v7881_v40 = vpop.f32.mrf.mxu0 }
 0x7cd   : > { %v8751_v4 = vrot.slane %v8076_v63, 2  ;;  %v8077_v39 = vadd.f32 %v7877_v42, %v7172_v43  ;;  %v7176_v0 = vadd.f32 %v7175_v15, %v18123_v26 }
 0x7ce   : > { %9339 = vst [vmem:[%s15735_s29 + $0x448] sm:$0xff] %v9195_v52  ;;  %v7177_v19 = vpop.f32.mrf.mxu1  ;;  %v7883_v10 = vpop.f32.mrf.mxu0 }
 0x7cf   : > { %v8762_v27 = vsel %vm8757_vm1, %v8749_v21, %v8751_v4  ;;  %v8752_v3 = vrot.slane %v8077_v39, 2  ;;  %v8078_v46 = vadd.f32 %v7881_v40, %v7176_v0  ;;  %v7178_v7 = vadd.f32 %v7177_v19, %v18124_v54 }
 0x7d0   : > { %v9040_v55 = vadd.f32 %v8762_v27, %v18125_v23  ;;  %v7179_v8 = vpop.f32.mrf.mxu1  ;;  %v7885_v6 = vpop.f32.mrf.mxu0 }
 0x7d1   : > { %v8763_v53 = vsel %vm8757_vm1, %v8750_v37, %v8752_v3  ;;  %v8753_v11 = vrot.slane %v8078_v46, 2  ;;  %v8079_v16 = vadd.f32 %v7883_v10, %v7178_v7  ;;  %v7180_v1 = vadd.f32 %v7179_v8, %v18126_v36 }
 0x7d2   : > { %v9196_v5 = vadd.f32 %v15718_v33, %v9040_v55  ;;  %v9041_v62 = vadd.f32 %v8763_v53, %v18127_v30  ;;  %v7181_v12 = vpop.f32.mrf.mxu1  ;;  %v7887_v45 = vpop.f32.mrf.mxu0 }
 0x7d3   : > { %v8760_v22 = vsel %vm8757_vm1, %v8751_v4, %v8753_v11  ;;  %v8754_v2 = vrot.slane %v8079_v16, 2  ;;  %v8080_v17 = vadd.f32 %v7885_v6, %v7180_v1  ;;  %v7182_v18 = vadd.f32 %v7181_v12, %v18128_v38 }
 0x7d4   : > { %9340 = vst [vmem:[%s15735_s29 + $0x450] sm:$0xff] %v9196_v5  ;;  %v9197_v13 = vadd.f32 %v15724_v44, %v9041_v62  ;;  %v9042_v28 = vadd.f32 %v8760_v22, %v18129_v24 }
 0x7d5   : > { %v8761_v29 = vsel %vm8757_vm1, %v8752_v3, %v8754_v2  ;;  %v8755_v32 = vrot.slane %v8080_v17, 2  ;;  %v8081_v61 = vadd.f32 %v7887_v45, %v7182_v18 }
 0x7d6   : > { %9341 = vst [vmem:[%s15735_s29 + $0x458] sm:$0xff] %v9197_v13  ;;  %v9198_v34 = vadd.f32 %v15718_v33, %v9042_v28  ;;  %v9043_v20 = vadd.f32 %v8761_v29, %v18130_v51 }
 0x7d7   : > { %v8758_v31 = vsel %vm8757_vm1, %v8753_v11, %v8755_v32  ;;  %v8756_v9 = vrot.slane %v8081_v61, 2 }
 0x7d8   : > { %9342 = vst [vmem:[%s15735_s29 + $0x460] sm:$0xff] %v9198_v34  ;;  %v9199_v25 = vadd.f32 %v15724_v44, %v9043_v20  ;;  %v9044_v48 = vadd.f32 %v8758_v31, %v18131_v35 }
 0x7d9   : > { %v8759_v47 = vsel %vm8757_vm1, %v8754_v2, %v8756_v9 }
 0x7da   : > { %9343 = vst [vmem:[%s15735_s29 + $0x468] sm:$0xff] %v9199_v25  ;;  %v9200_v56 = vadd.f32 %v15718_v33, %v9044_v48  ;;  %v9045_v14 = vadd.f32 %v8759_v47, %v18132_v59 }
 0x7dc   : > { %9344 = vst [vmem:[%s15735_s29 + $0x470] sm:$0xff] %v9200_v56  ;;  %v9201_v58 = vadd.f32 %v15724_v44, %v9045_v14 }
 0x7de   : > { %9345 = vst [vmem:[%s15735_s29 + $0x478] sm:$0xff] %v9201_v58 }
 0x7df   : > { %11386 = shalt.err (!%p11383_p3)
}
 0x7e0   : > { %s11387_s17 = scalar_lea.hbm %s16720_s6, 18432  ;;  %s11391_s24 = scalar_lea.hbm %s16772_s3, 36864 }
 0x7e1   : > { %p11388_p4 = scmp.ne.s32.totalorder %s16720_s6, %s11387_s17  ;;  %p11392_p9 = scmp.lt.s32.totalorder %s16720_s6, %s16772_s3 }
 0x7e2   : > { %p11393_p10 = scmp.lt.s32.totalorder %s11391_s24, %s11387_s17 }
 0x7e3   : > { %p11389_p7 = pnand %p11388_p4, %p11496_p5 }
 0x7e4   : > { %p11394_p11 = por %p11393_p10, %p11392_p9 }
 0x7e5   : > { %p11390_p8 = pneg %p11389_p7 }
 0x7e7   : > { %p11395_p12 = pnand %p11394_p11, %p11390_p8 }
 0x7e9   : > { %11398 = shalt.err (!%p11395_p12)
}
 0x7ea   : > { %s11436_s27 = smov 256   ;;  %s11437_s28 = smov 16  }
 0x7eb   : > { %10205 = dma.vmem_to_hbm [thread:$0]  (%p11496_p5), %s16722_s30, 18432, %s16720_s6, %s16729_s16, %s11436_s27, %s11436_s27, %s11437_s28  }
 0x7ec PF: > { %p10211_p13 = scmp.ge.s32.totalorder %s11433_s15, 2  ;;  %s9375_s29 = sand.u32 1, %s11421_s12  }
 0x7ed   : > { %s9376_s7 = scalar_lea.sflag [#allocation3], %s9375_s29 }
 0x7ee   : > { %p10208_p0 = pnand %p10211_p13, %p11500_p6 }
 0x7f0   : > { %p10209_p1 = pneg %p10208_p0 }
 0x7f2   : > { %11416 = dma.done.wait (%p10209_p1), %s9376_s7, 18432  }
 0x7f3   : > { %11418 = vsyncadd (%p10209_p1), %s9376_s7, 4294948864  ;;  %p13_p2 = scmp.ge.s32.totalorder %s11483_s18, 4   ;;  %s18133_s12 = smov %s11425_s13 }
 0x7f4   : > { %s18134_s13 = smov %s11429_s14  ;;  %s18135_s14 = smov %s11494_s21 }
 0x7f5   : > { %s18136_s15 = smov %s11483_s18  ;;  %15 = sbr.rel (!%p13_p2) target bundleno = 3 (0x3), region = 75 }
 0x7fa   :  { %9381 = vsyncpa [#allocation3], 1 }
 0x7fb   :  { %9383 = vsyncpa [#allocation3 + $0x1], 1 }

</bundles_post_ra>
